<compile_context>
chip_gen: v7x
topology: tpu7x:2x2x1
jax: 0.10.0
libtpu: 0.0.40
codegen_flags: <defaults>
</compile_context>

<pallas_src>
import jax
import jax.numpy as jnp
import numpy as np
from jax.experimental import pallas as pl
from jax.experimental.pallas import tpu as pltpu


def _round_up(x, m):
    return (x + m - 1) // m * m


def _vmem_footprint(shape, itemsize=4):
    """Physical f32 VMEM bytes: minor dim padded to 128 lanes, 2nd-minor to 8 sublanes."""
    if len(shape) < 2:
        return _round_up(int(np.prod(shape)) * itemsize, 4096)
    lead = int(np.prod(shape[:-2])) if len(shape) > 2 else 1
    return lead * _round_up(shape[-2], 8) * _round_up(shape[-1], 128) * itemsize


# ----------------------------------------------------------------------------
# Fused kernel: pad(x) -> conv3x3+relu -> conv3x3 (+ folded 1x1 skip) -> avgpool2x2
# ----------------------------------------------------------------------------
def _disc_opt_kernel(x_ref, w1_ref, b1_ref, w2_ref, w0_ref, bo_ref,
                     o_ref, xs_ref, h1p_ref, acc_ref):
    f32 = jnp.float32
    _, H, W, Cin = x_ref.shape
    c_mid = w1_ref.shape[-1]
    cout_p = o_ref.shape[-1]
    Ho, Wo = H // 2, W // 2
    Wp_x = xs_ref.shape[1]
    Wp_h = h1p_ref.shape[1]

    # ---- stage x zero-padded (1 px) in VMEM: interior overwritten every image, the
    #      border re-zeroed every image (cheap; no cross-iteration scratch invariant).
    xs_ref[1:1 + H, 1:1 + W, :] = x_ref[0]
    xs_ref[0:1, :, :] = jnp.zeros((1, Wp_x, Cin), f32)
    xs_ref[H + 1:H + 2, :, :] = jnp.zeros((1, Wp_x, Cin), f32)
    xs_ref[1:1 + H, 0:1, :] = jnp.zeros((H, 1, Cin), f32)
    xs_ref[1:1 + H, W + 1:W + 2, :] = jnp.zeros((H, 1, Cin), f32)

    # ---- conv1 (3x3, pad 1): 9 accumulating K=Cin matmuls into the f32 accumulator.
    for t in range(9):
        dy, dx = divmod(t, 3)
        slab = xs_ref[dy:dy + H, dx:dx + W, :].reshape(H * W, Cin)
        contrib = jnp.dot(slab, w1_ref[t], preferred_element_type=f32)
        if t == 0:
            acc_ref[...] = contrib
        else:
            acc_ref[...] += contrib

    # ---- relu(conv1 + b1), staged zero-padded in VMEM (never round-trips HBM).
    h1p_ref[0:1, :, :] = jnp.zeros((1, Wp_h, c_mid), f32)
    h1p_ref[H + 1:H + 2, :, :] = jnp.zeros((1, Wp_h, c_mid), f32)
    h1p_ref[1:1 + H, 0:1, :] = jnp.zeros((H, 1, c_mid), f32)
    h1p_ref[1:1 + H, W + 1:W + 2, :] = jnp.zeros((H, 1, c_mid), f32)
    h1 = jnp.maximum(acc_ref[...] + b1_ref[...], 0.0)
    h1p_ref[1:1 + H, 1:1 + W, :] = h1.reshape(H, W, c_mid)

    # ---- conv2 (3x3, pad 1; weights pre-scaled by 1/4) + folded 1x1 skip (also 1/4),
    #      accumulated in the same VMEM scratch (skip commutes with the avg-pool).
    for t in range(9):
        dy, dx = divmod(t, 3)
        slab = h1p_ref[dy:dy + H, dx:dx + W, :].reshape(H * W, c_mid)
        contrib = jnp.dot(slab, w2_ref[t], preferred_element_type=f32)
        if t == 0:
            acc_ref[...] = contrib
        else:
            acc_ref[...] += contrib
    x_int = xs_ref[1:1 + H, 1:1 + W, :].reshape(H * W, Cin)
    acc_ref[...] += jnp.dot(x_int, w0_ref[...], preferred_element_type=f32)

    # ---- 2x2 avg-pool: two pair-sum passes (1/4 already folded into the weights),
    #      pre-summed bias (b2 + b0) added once at quarter resolution.
    acc = acc_ref[...]                                  # (H*W, c_mid), rows = h*W + w
    a4 = acc.reshape(Ho, 2, W, c_mid)
    vsum = a4[:, 0] + a4[:, 1]                          # vertical pair-sum (Ho, W, c_mid)
    v4 = vsum.reshape(Ho, Wo, 2, c_mid)
    pooled = v4[:, :, 0, :] + v4[:, :, 1, :]            # horizontal pair-sum (Ho, Wo, c_mid)
    out = pooled + bo_ref[...]

    # lane-dense HBM store: pad channels up to the 128-wide output block.
    if cout_p > c_mid:
        out = jnp.concatenate(
            [out, jnp.zeros((Ho, Wo, cout_p - c_mid), f32)], axis=-1)
    o_ref[0] = out.astype(o_ref.dtype)


# ----------------------------------------------------------------------------
# JAX-side wrapper (layout plumbing + weight prep; all hot-path math in-kernel)
# ----------------------------------------------------------------------------
@jax.jit
def disc_opt_block(x_nchw, w1, b1, w2, b2, w0, b0):
    """Pallas implementation of DiscOptBlock.forward. Input/output layout: NCHW."""
    N, Cin, H, W = x_nchw.shape
    Cout = w1.shape[0]
    assert H % 2 == 0 and W % 2 == 0, "spatial dims must be even for the 2x2 avg-pool"
    Ho, Wo = H // 2, W // 2

    c_mid = _round_up(Cout, 8)      # internal channel width (conv2 K / scratch lanes)
    cout_p = _round_up(Cout, 128)   # lane-dense HBM output block
    Wp = _round_up(W + 2, 8)
    f32 = jnp.float32

    # layout plumbing only: NCHW -> NHWC, un-padded (kernel pads spatially in VMEM).
    x_nhwc = jnp.transpose(x_nchw, (0, 2, 3, 1)).astype(f32)

    # conv1 weight (Cout,Cin,3,3) -> (9, Cin, c_mid); tap index t = dy*3 + dx.
    w1t = jnp.transpose(w1, (2, 3, 1, 0)).astype(f32)                   # (3,3,Cin,Cout)
    w1f = (jnp.zeros((3, 3, Cin, c_mid), f32).at[..., :Cout].set(w1t)
           .reshape(9, Cin, c_mid))
    # conv2 weight -> (9, c_mid, c_mid), pre-scaled by 1/4 (avg-pool folded in).
    w2t = jnp.transpose(w2, (2, 3, 1, 0)).astype(f32)                   # (3,3,Cout,Cout)
    w2f = (jnp.zeros((3, 3, c_mid, c_mid), f32).at[:, :, :Cout, :Cout].set(w2t)
           .reshape(9, c_mid, c_mid) * 0.25)
    # 1x1 skip weight -> (Cin, c_mid), pre-scaled by 1/4.
    w0f = (jnp.zeros((Cin, c_mid), f32)
           .at[:, :Cout].set(jnp.transpose(w0[:, :, 0, 0]).astype(f32)) * 0.25)
    b1f = jnp.zeros((1, c_mid), f32).at[0, :Cout].set(b1.astype(f32))
    bof = jnp.zeros((1, c_mid), f32).at[0, :Cout].set((b2 + b0).astype(f32))

    # explicit scoped-VMEM budget: in/out blocks double-buffered, scratches single.
    est = (2 * _vmem_footprint((1, H, W, Cin))
           + 2 * _vmem_footprint((1, Ho, Wo, cout_p))
           + 2 * (_vmem_footprint((9, Cin, c_mid)) + _vmem_footprint((9, c_mid, c_mid))
                  + _vmem_footprint((Cin, c_mid)) + 2 * _vmem_footprint((1, c_mid)))
           + _vmem_footprint((H + 2, Wp, Cin))
           + _vmem_footprint((H + 2, Wp, c_mid))
           + _vmem_footprint((H * W, c_mid)))
    vmem_limit = int(min(100 * 2**20, max(32 * 2**20, 2 * est)))

    out = pl.pallas_call(
        _disc_opt_kernel,
        out_shape=jax.ShapeDtypeStruct((N, Ho, Wo, cout_p), f32),
        grid=(N,),
        in_specs=[
            pl.BlockSpec((1, H, W, Cin), lambda n: (n, 0, 0, 0)),       # x (un-padded)
            pl.BlockSpec((9, Cin, c_mid), lambda n: (0, 0, 0)),         # w1 per-tap
            pl.BlockSpec((1, c_mid), lambda n: (0, 0)),                 # b1
            pl.BlockSpec((9, c_mid, c_mid), lambda n: (0, 0, 0)),       # w2 per-tap (/4)
            pl.BlockSpec((Cin, c_mid), lambda n: (0, 0)),               # w0 1x1 skip (/4)
            pl.BlockSpec((1, c_mid), lambda n: (0, 0)),                 # b2 + b0
        ],
        out_specs=pl.BlockSpec((1, Ho, Wo, cout_p), lambda n: (n, 0, 0, 0)),
        scratch_shapes=[
            pltpu.VMEM((H + 2, Wp, Cin), f32),      # zero-padded x
            pltpu.VMEM((H + 2, Wp, c_mid), f32),    # zero-padded relu(conv1)
            pltpu.VMEM((H * W, c_mid), f32),        # f32 accumulator (conv1, conv2+skip)
        ],
        compiler_params=pltpu.CompilerParams(
            dimension_semantics=("parallel",),
            vmem_limit_bytes=vmem_limit),
    )(x_nhwc, w1f, b1f, w2f, w0f, bof)

    # strip channel padding, NHWC -> NCHW
    return jnp.transpose(out[..., :Cout], (0, 3, 1, 2))


# ----------------------------------------------------------------------------
# Pure-JAX reference (mirrors the PyTorch forward)
# ----------------------------------------------------------------------------
def _ref_forward(x, w1, b1, w2, b2, w0, b0):
    def conv(t, w, b, pad):
        y = jax.lax.conv_general_dilated(
            t, w, window_strides=(1, 1), padding=[(pad, pad), (pad, pad)],
            dimension_numbers=("NCHW", "OIHW", "NCHW"))
        return y + b[None, :, None, None]

    def pool(t):
        N, C, H, W = t.shape
        return t.reshape(N, C, H // 2, 2, W // 2, 2).mean(axis=(3, 5))

    h = jnp.maximum(conv(x, w1, b1, 1), 0.0)
    h = conv(h, w2, b2, 1)
    h = pool(h)
    s = conv(pool(x), w0, b0, 0)
    return h + s


# ----------------------------------------------------------------------------
# Main
# ----------------------------------------------------------------------------
if __name__ == "__main__":
    N, Cin, Cout, H, W = 2, 4, 8, 16, 16

    key = jax.random.PRNGKey(0)
    ks = jax.random.split(key, 7)
    x = jax.random.normal(ks[0], (N, Cin, H, W), dtype=jnp.float32)
    # torch-style conv weights: (out_ch, in_ch, kh, kw)
    w1 = 0.1 * jax.random.normal(ks[1], (Cout, Cin, 3, 3), dtype=jnp.float32)
    b1 = 0.1 * jax.random.normal(ks[2], (Cout,), dtype=jnp.float32)
    w2 = 0.1 * jax.random.normal(ks[3], (Cout, Cout, 3, 3), dtype=jnp.float32)
    b2 = 0.1 * jax.random.normal(ks[4], (Cout,), dtype=jnp.float32)
    w0 = 0.1 * jax.random.normal(ks[5], (Cout, Cin, 1, 1), dtype=jnp.float32)
    b0 = 0.1 * jax.random.normal(ks[6], (Cout,), dtype=jnp.float32)

    out = disc_opt_block(x, w1, b1, w2, b2, w0, b0)
    out = jax.block_until_ready(out)

    ref = _ref_forward(x, w1, b1, w2, b2, w0, b0)
    assert out.shape == (N, Cout, H // 2, W // 2), out.shape
    np.testing.assert_allclose(np.asarray(out), np.asarray(ref), rtol=2e-4, atol=2e-4)

    print("KERNEL_OK")
</pallas_src>

<mosaic_0001>
module attributes {stable_mosaic.version = 11 : i64} {
  func.func @_disc_opt_kernel(%arg0: i32, %arg1: memref<1x16x16x4xf32, #tpu.memory_space<vmem>>, %arg2: memref<9x4x8xf32, #tpu.memory_space<vmem>>, %arg3: memref<1x8xf32, #tpu.memory_space<vmem>>, %arg4: memref<9x8x8xf32, #tpu.memory_space<vmem>>, %arg5: memref<4x8xf32, #tpu.memory_space<vmem>>, %arg6: memref<1x8xf32, #tpu.memory_space<vmem>>, %arg7: memref<1x8x8x128xf32, #tpu.memory_space<vmem>>, %arg8: memref<18x24x4xf32, #tpu.memory_space<vmem>>, %arg9: memref<18x24x8xf32, #tpu.memory_space<vmem>>, %arg10: memref<256x8xf32, #tpu.memory_space<vmem>>) attributes {dimension_semantics = [#tpu.dimension_semantics<parallel>], iteration_bounds = array<i64: 2>, scalar_prefetch = 0 : i64, scratch_operands = 3 : i64, tpu.core_type = #tpu.core_type<tc>, window_params = [{transform_indices = @transform_0, window_bounds = array<i64: 1, 16, 16, 4>}, {pipeline_mode = #tpu.pipeline_mode<synchronous>, transform_indices = @transform_1, window_bounds = array<i64: 9, 4, 8>}, {pipeline_mode = #tpu.pipeline_mode<synchronous>, transform_indices = @transform_2, window_bounds = array<i64: 1, 8>}, {pipeline_mode = #tpu.pipeline_mode<synchronous>, transform_indices = @transform_3, window_bounds = array<i64: 9, 8, 8>}, {pipeline_mode = #tpu.pipeline_mode<synchronous>, transform_indices = @transform_4, window_bounds = array<i64: 4, 8>}, {pipeline_mode = #tpu.pipeline_mode<synchronous>, transform_indices = @transform_5, window_bounds = array<i64: 1, 8>}, {transform_indices = @transform_6, window_bounds = array<i64: 1, 8, 8, 128>}]} {
    %c0 = arith.constant 0 : index
    %c0_0 = arith.constant 0 : index
    %c0_1 = arith.constant 0 : index
    %c0_2 = arith.constant 0 : index
    %0 = vector.load %arg1[%c0, %c0_0, %c0_1, %c0_2] : memref<1x16x16x4xf32, #tpu.memory_space<vmem>>, vector<1x16x16x4xf32>
    %1 = vector.shape_cast %0 : vector<1x16x16x4xf32> to vector<16x16x4xf32>
    %c1 = arith.constant 1 : index
    %c1_3 = arith.constant 1 : index
    %c0_4 = arith.constant 0 : index
    %2 = vector.load %arg8[%c1, %c1_3, %c0_4] : memref<18x24x4xf32, #tpu.memory_space<vmem>>, vector<16x16x4xf32>
    tpu.vector_store %arg8[%c1, %c1_3, %c0_4], %1 {strides = array<i32>} : memref<18x24x4xf32, #tpu.memory_space<vmem>>, vector<16x16x4xf32>,
    %cst = arith.constant 0.000000e+00 : f32
    %3 = vector.broadcast %cst : f32 to vector<1x24x4xf32>
    %c0_5 = arith.constant 0 : index
    %c0_6 = arith.constant 0 : index
    %c0_7 = arith.constant 0 : index
    %4 = vector.load %arg8[%c0_5, %c0_6, %c0_7] : memref<18x24x4xf32, #tpu.memory_space<vmem>>, vector<1x24x4xf32>
    tpu.vector_store %arg8[%c0_5, %c0_6, %c0_7], %3 {strides = array<i32>} : memref<18x24x4xf32, #tpu.memory_space<vmem>>, vector<1x24x4xf32>,
    %cst_8 = arith.constant 0.000000e+00 : f32
    %5 = vector.broadcast %cst_8 : f32 to vector<1x24x4xf32>
    %c17 = arith.constant 17 : index
    %c0_9 = arith.constant 0 : index
    %c0_10 = arith.constant 0 : index
    %6 = vector.load %arg8[%c17, %c0_9, %c0_10] : memref<18x24x4xf32, #tpu.memory_space<vmem>>, vector<1x24x4xf32>
    tpu.vector_store %arg8[%c17, %c0_9, %c0_10], %5 {strides = array<i32>} : memref<18x24x4xf32, #tpu.memory_space<vmem>>, vector<1x24x4xf32>,
    %cst_11 = arith.constant 0.000000e+00 : f32
    %7 = vector.broadcast %cst_11 : f32 to vector<16x1x4xf32>
    %c1_12 = arith.constant 1 : index
    %c0_13 = arith.constant 0 : index
    %c0_14 = arith.constant 0 : index
    %8 = vector.load %arg8[%c1_12, %c0_13, %c0_14] : memref<18x24x4xf32, #tpu.memory_space<vmem>>, vector<16x1x4xf32>
    tpu.vector_store %arg8[%c1_12, %c0_13, %c0_14], %7 {strides = array<i32>} : memref<18x24x4xf32, #tpu.memory_space<vmem>>, vector<16x1x4xf32>,
    %cst_15 = arith.constant 0.000000e+00 : f32
    %9 = vector.broadcast %cst_15 : f32 to vector<16x1x4xf32>
    %c1_16 = arith.constant 1 : index
    %c17_17 = arith.constant 17 : index
    %c0_18 = arith.constant 0 : index
    %10 = vector.load %arg8[%c1_16, %c17_17, %c0_18] : memref<18x24x4xf32, #tpu.memory_space<vmem>>, vector<16x1x4xf32>
    tpu.vector_store %arg8[%c1_16, %c17_17, %c0_18], %9 {strides = array<i32>} : memref<18x24x4xf32, #tpu.memory_space<vmem>>, vector<16x1x4xf32>,
    %c0_19 = arith.constant 0 : index
    %c0_20 = arith.constant 0 : index
    %c0_21 = arith.constant 0 : index
    %11 = vector.load %arg8[%c0_19, %c0_20, %c0_21] : memref<18x24x4xf32, #tpu.memory_space<vmem>>, vector<16x16x4xf32>
    %12 = vector.shape_cast %11 : vector<16x16x4xf32> to vector<256x4xf32>
    %c0_22 = arith.constant 0 : index
    %c0_23 = arith.constant 0 : index
    %c0_24 = arith.constant 0 : index
    %13 = vector.load %arg2[%c0_22, %c0_23, %c0_24] : memref<9x4x8xf32, #tpu.memory_space<vmem>>, vector<1x4x8xf32>
    %14 = vector.shape_cast %13 : vector<1x4x8xf32> to vector<4x8xf32>
    %cst_25 = arith.constant dense<0.000000e+00> : vector<256x8xf32>
    %15 = tpu.matmul %12, %14, %cst_25 {dimension_numbers = #tpu.dot_dimension_numbers<[1], [0], [0], [1], [0, 0, 1, 1], [], []>} : vector<256x4xf32>, vector<4x8xf32>, vector<256x8xf32> -> vector<256x8xf32>
    %c0_26 = arith.constant 0 : index
    %c0_27 = arith.constant 0 : index
    %16 = vector.load %arg10[%c0_26, %c0_27] : memref<256x8xf32, #tpu.memory_space<vmem>>, vector<256x8xf32>
    tpu.vector_store %arg10[%c0_26, %c0_27], %15 {strides = array<i32>} : memref<256x8xf32, #tpu.memory_space<vmem>>, vector<256x8xf32>,
    %c0_28 = arith.constant 0 : index
    %c1_29 = arith.constant 1 : index
    %c0_30 = arith.constant 0 : index
    %17 = vector.load %arg8[%c0_28, %c1_29, %c0_30] : memref<18x24x4xf32, #tpu.memory_space<vmem>>, vector<16x16x4xf32>
    %18 = vector.shape_cast %17 : vector<16x16x4xf32> to vector<256x4xf32>
    %c1_31 = arith.constant 1 : index
    %c0_32 = arith.constant 0 : index
    %c0_33 = arith.constant 0 : index
    %19 = vector.load %arg2[%c1_31, %c0_32, %c0_33] : memref<9x4x8xf32, #tpu.memory_space<vmem>>, vector<1x4x8xf32>
    %20 = vector.shape_cast %19 : vector<1x4x8xf32> to vector<4x8xf32>
    %cst_34 = arith.constant dense<0.000000e+00> : vector<256x8xf32>
    %21 = tpu.matmul %18, %20, %cst_34 {dimension_numbers = #tpu.dot_dimension_numbers<[1], [0], [0], [1], [0, 0, 1, 1], [], []>} : vector<256x4xf32>, vector<4x8xf32>, vector<256x8xf32> -> vector<256x8xf32>
    %c0_35 = arith.constant 0 : index
    %c0_36 = arith.constant 0 : index
    %22 = vector.load %arg10[%c0_35, %c0_36] : memref<256x8xf32, #tpu.memory_space<vmem>>, vector<256x8xf32>
    %23 = arith.addf %22, %21 : vector<256x8xf32>
    %c0_37 = arith.constant 0 : index
    %c0_38 = arith.constant 0 : index
    %24 = vector.load %arg10[%c0_37, %c0_38] : memref<256x8xf32, #tpu.memory_space<vmem>>, vector<256x8xf32>
    tpu.vector_store %arg10[%c0_37, %c0_38], %23 {strides = array<i32>} : memref<256x8xf32, #tpu.memory_space<vmem>>, vector<256x8xf32>,
    %c0_39 = arith.constant 0 : index
    %c2 = arith.constant 2 : index
    %c0_40 = arith.constant 0 : index
    %25 = vector.load %arg8[%c0_39, %c2, %c0_40] : memref<18x24x4xf32, #tpu.memory_space<vmem>>, vector<16x16x4xf32>
    %26 = vector.shape_cast %25 : vector<16x16x4xf32> to vector<256x4xf32>
    %c2_41 = arith.constant 2 : index
    %c0_42 = arith.constant 0 : index
    %c0_43 = arith.constant 0 : index
    %27 = vector.load %arg2[%c2_41, %c0_42, %c0_43] : memref<9x4x8xf32, #tpu.memory_space<vmem>>, vector<1x4x8xf32>
    %28 = vector.shape_cast %27 : vector<1x4x8xf32> to vector<4x8xf32>
    %cst_44 = arith.constant dense<0.000000e+00> : vector<256x8xf32>
    %29 = tpu.matmul %26, %28, %cst_44 {dimension_numbers = #tpu.dot_dimension_numbers<[1], [0], [0], [1], [0, 0, 1, 1], [], []>} : vector<256x4xf32>, vector<4x8xf32>, vector<256x8xf32> -> vector<256x8xf32>
    %c0_45 = arith.constant 0 : index
    %c0_46 = arith.constant 0 : index
    %30 = vector.load %arg10[%c0_45, %c0_46] : memref<256x8xf32, #tpu.memory_space<vmem>>, vector<256x8xf32>
    %31 = arith.addf %30, %29 : vector<256x8xf32>
    %c0_47 = arith.constant 0 : index
    %c0_48 = arith.constant 0 : index
    %32 = vector.load %arg10[%c0_47, %c0_48] : memref<256x8xf32, #tpu.memory_space<vmem>>, vector<256x8xf32>
    tpu.vector_store %arg10[%c0_47, %c0_48], %31 {strides = array<i32>} : memref<256x8xf32, #tpu.memory_space<vmem>>, vector<256x8xf32>,
    %c1_49 = arith.constant 1 : index
    %c0_50 = arith.constant 0 : index
    %c0_51 = arith.constant 0 : index
    %33 = vector.load %arg8[%c1_49, %c0_50, %c0_51] : memref<18x24x4xf32, #tpu.memory_space<vmem>>, vector<16x16x4xf32>
    %34 = vector.shape_cast %33 : vector<16x16x4xf32> to vector<256x4xf32>
    %c3 = arith.constant 3 : index
    %c0_52 = arith.constant 0 : index
    %c0_53 = arith.constant 0 : index
    %35 = vector.load %arg2[%c3, %c0_52, %c0_53] : memref<9x4x8xf32, #tpu.memory_space<vmem>>, vector<1x4x8xf32>
    %36 = vector.shape_cast %35 : vector<1x4x8xf32> to vector<4x8xf32>
    %cst_54 = arith.constant dense<0.000000e+00> : vector<256x8xf32>
    %37 = tpu.matmul %34, %36, %cst_54 {dimension_numbers = #tpu.dot_dimension_numbers<[1], [0], [0], [1], [0, 0, 1, 1], [], []>} : vector<256x4xf32>, vector<4x8xf32>, vector<256x8xf32> -> vector<256x8xf32>
    %c0_55 = arith.constant 0 : index
    %c0_56 = arith.constant 0 : index
    %38 = vector.load %arg10[%c0_55, %c0_56] : memref<256x8xf32, #tpu.memory_space<vmem>>, vector<256x8xf32>
    %39 = arith.addf %38, %37 : vector<256x8xf32>
    %c0_57 = arith.constant 0 : index
    %c0_58 = arith.constant 0 : index
    %40 = vector.load %arg10[%c0_57, %c0_58] : memref<256x8xf32, #tpu.memory_space<vmem>>, vector<256x8xf32>
    tpu.vector_store %arg10[%c0_57, %c0_58], %39 {strides = array<i32>} : memref<256x8xf32, #tpu.memory_space<vmem>>, vector<256x8xf32>,
    %c1_59 = arith.constant 1 : index
    %c1_60 = arith.constant 1 : index
    %c0_61 = arith.constant 0 : index
    %41 = vector.load %arg8[%c1_59, %c1_60, %c0_61] : memref<18x24x4xf32, #tpu.memory_space<vmem>>, vector<16x16x4xf32>
    %42 = vector.shape_cast %41 : vector<16x16x4xf32> to vector<256x4xf32>
    %c4 = arith.constant 4 : index
    %c0_62 = arith.constant 0 : index
    %c0_63 = arith.constant 0 : index
    %43 = vector.load %arg2[%c4, %c0_62, %c0_63] : memref<9x4x8xf32, #tpu.memory_space<vmem>>, vector<1x4x8xf32>
    %44 = vector.shape_cast %43 : vector<1x4x8xf32> to vector<4x8xf32>
    %cst_64 = arith.constant dense<0.000000e+00> : vector<256x8xf32>
    %45 = tpu.matmul %42, %44, %cst_64 {dimension_numbers = #tpu.dot_dimension_numbers<[1], [0], [0], [1], [0, 0, 1, 1], [], []>} : vector<256x4xf32>, vector<4x8xf32>, vector<256x8xf32> -> vector<256x8xf32>
    %c0_65 = arith.constant 0 : index
    %c0_66 = arith.constant 0 : index
    %46 = vector.load %arg10[%c0_65, %c0_66] : memref<256x8xf32, #tpu.memory_space<vmem>>, vector<256x8xf32>
    %47 = arith.addf %46, %45 : vector<256x8xf32>
    %c0_67 = arith.constant 0 : index
    %c0_68 = arith.constant 0 : index
    %48 = vector.load %arg10[%c0_67, %c0_68] : memref<256x8xf32, #tpu.memory_space<vmem>>, vector<256x8xf32>
    tpu.vector_store %arg10[%c0_67, %c0_68], %47 {strides = array<i32>} : memref<256x8xf32, #tpu.memory_space<vmem>>, vector<256x8xf32>,
    %c1_69 = arith.constant 1 : index
    %c2_70 = arith.constant 2 : index
    %c0_71 = arith.constant 0 : index
    %49 = vector.load %arg8[%c1_69, %c2_70, %c0_71] : memref<18x24x4xf32, #tpu.memory_space<vmem>>, vector<16x16x4xf32>
    %50 = vector.shape_cast %49 : vector<16x16x4xf32> to vector<256x4xf32>
    %c5 = arith.constant 5 : index
    %c0_72 = arith.constant 0 : index
    %c0_73 = arith.constant 0 : index
    %51 = vector.load %arg2[%c5, %c0_72, %c0_73] : memref<9x4x8xf32, #tpu.memory_space<vmem>>, vector<1x4x8xf32>
    %52 = vector.shape_cast %51 : vector<1x4x8xf32> to vector<4x8xf32>
    %cst_74 = arith.constant dense<0.000000e+00> : vector<256x8xf32>
    %53 = tpu.matmul %50, %52, %cst_74 {dimension_numbers = #tpu.dot_dimension_numbers<[1], [0], [0], [1], [0, 0, 1, 1], [], []>} : vector<256x4xf32>, vector<4x8xf32>, vector<256x8xf32> -> vector<256x8xf32>
    %c0_75 = arith.constant 0 : index
    %c0_76 = arith.constant 0 : index
    %54 = vector.load %arg10[%c0_75, %c0_76] : memref<256x8xf32, #tpu.memory_space<vmem>>, vector<256x8xf32>
    %55 = arith.addf %54, %53 : vector<256x8xf32>
    %c0_77 = arith.constant 0 : index
    %c0_78 = arith.constant 0 : index
    %56 = vector.load %arg10[%c0_77, %c0_78] : memref<256x8xf32, #tpu.memory_space<vmem>>, vector<256x8xf32>
    tpu.vector_store %arg10[%c0_77, %c0_78], %55 {strides = array<i32>} : memref<256x8xf32, #tpu.memory_space<vmem>>, vector<256x8xf32>,
    %c2_79 = arith.constant 2 : index
    %c0_80 = arith.constant 0 : index
    %c0_81 = arith.constant 0 : index
    %57 = vector.load %arg8[%c2_79, %c0_80, %c0_81] : memref<18x24x4xf32, #tpu.memory_space<vmem>>, vector<16x16x4xf32>
    %58 = vector.shape_cast %57 : vector<16x16x4xf32> to vector<256x4xf32>
    %c6 = arith.constant 6 : index
    %c0_82 = arith.constant 0 : index
    %c0_83 = arith.constant 0 : index
    %59 = vector.load %arg2[%c6, %c0_82, %c0_83] : memref<9x4x8xf32, #tpu.memory_space<vmem>>, vector<1x4x8xf32>
    %60 = vector.shape_cast %59 : vector<1x4x8xf32> to vector<4x8xf32>
    %cst_84 = arith.constant dense<0.000000e+00> : vector<256x8xf32>
    %61 = tpu.matmul %58, %60, %cst_84 {dimension_numbers = #tpu.dot_dimension_numbers<[1], [0], [0], [1], [0, 0, 1, 1], [], []>} : vector<256x4xf32>, vector<4x8xf32>, vector<256x8xf32> -> vector<256x8xf32>
    %c0_85 = arith.constant 0 : index
    %c0_86 = arith.constant 0 : index
    %62 = vector.load %arg10[%c0_85, %c0_86] : memref<256x8xf32, #tpu.memory_space<vmem>>, vector<256x8xf32>
    %63 = arith.addf %62, %61 : vector<256x8xf32>
    %c0_87 = arith.constant 0 : index
    %c0_88 = arith.constant 0 : index
    %64 = vector.load %arg10[%c0_87, %c0_88] : memref<256x8xf32, #tpu.memory_space<vmem>>, vector<256x8xf32>
    tpu.vector_store %arg10[%c0_87, %c0_88], %63 {strides = array<i32>} : memref<256x8xf32, #tpu.memory_space<vmem>>, vector<256x8xf32>,
    %c2_89 = arith.constant 2 : index
    %c1_90 = arith.constant 1 : index
    %c0_91 = arith.constant 0 : index
    %65 = vector.load %arg8[%c2_89, %c1_90, %c0_91] : memref<18x24x4xf32, #tpu.memory_space<vmem>>, vector<16x16x4xf32>
    %66 = vector.shape_cast %65 : vector<16x16x4xf32> to vector<256x4xf32>
    %c7 = arith.constant 7 : index
    %c0_92 = arith.constant 0 : index
    %c0_93 = arith.constant 0 : index
    %67 = vector.load %arg2[%c7, %c0_92, %c0_93] : memref<9x4x8xf32, #tpu.memory_space<vmem>>, vector<1x4x8xf32>
    %68 = vector.shape_cast %67 : vector<1x4x8xf32> to vector<4x8xf32>
    %cst_94 = arith.constant dense<0.000000e+00> : vector<256x8xf32>
    %69 = tpu.matmul %66, %68, %cst_94 {dimension_numbers = #tpu.dot_dimension_numbers<[1], [0], [0], [1], [0, 0, 1, 1], [], []>} : vector<256x4xf32>, vector<4x8xf32>, vector<256x8xf32> -> vector<256x8xf32>
    %c0_95 = arith.constant 0 : index
    %c0_96 = arith.constant 0 : index
    %70 = vector.load %arg10[%c0_95, %c0_96] : memref<256x8xf32, #tpu.memory_space<vmem>>, vector<256x8xf32>
    %71 = arith.addf %70, %69 : vector<256x8xf32>
    %c0_97 = arith.constant 0 : index
    %c0_98 = arith.constant 0 : index
    %72 = vector.load %arg10[%c0_97, %c0_98] : memref<256x8xf32, #tpu.memory_space<vmem>>, vector<256x8xf32>
    tpu.vector_store %arg10[%c0_97, %c0_98], %71 {strides = array<i32>} : memref<256x8xf32, #tpu.memory_space<vmem>>, vector<256x8xf32>,
    %c2_99 = arith.constant 2 : index
    %c2_100 = arith.constant 2 : index
    %c0_101 = arith.constant 0 : index
    %73 = vector.load %arg8[%c2_99, %c2_100, %c0_101] : memref<18x24x4xf32, #tpu.memory_space<vmem>>, vector<16x16x4xf32>
    %74 = vector.shape_cast %73 : vector<16x16x4xf32> to vector<256x4xf32>
    %c8 = arith.constant 8 : index
    %c0_102 = arith.constant 0 : index
    %c0_103 = arith.constant 0 : index
    %75 = vector.load %arg2[%c8, %c0_102, %c0_103] : memref<9x4x8xf32, #tpu.memory_space<vmem>>, vector<1x4x8xf32>
    %76 = vector.shape_cast %75 : vector<1x4x8xf32> to vector<4x8xf32>
    %cst_104 = arith.constant dense<0.000000e+00> : vector<256x8xf32>
    %77 = tpu.matmul %74, %76, %cst_104 {dimension_numbers = #tpu.dot_dimension_numbers<[1], [0], [0], [1], [0, 0, 1, 1], [], []>} : vector<256x4xf32>, vector<4x8xf32>, vector<256x8xf32> -> vector<256x8xf32>
    %c0_105 = arith.constant 0 : index
    %c0_106 = arith.constant 0 : index
    %78 = vector.load %arg10[%c0_105, %c0_106] : memref<256x8xf32, #tpu.memory_space<vmem>>, vector<256x8xf32>
    %79 = arith.addf %78, %77 : vector<256x8xf32>
    %c0_107 = arith.constant 0 : index
    %c0_108 = arith.constant 0 : index
    %80 = vector.load %arg10[%c0_107, %c0_108] : memref<256x8xf32, #tpu.memory_space<vmem>>, vector<256x8xf32>
    tpu.vector_store %arg10[%c0_107, %c0_108], %79 {strides = array<i32>} : memref<256x8xf32, #tpu.memory_space<vmem>>, vector<256x8xf32>,
    %cst_109 = arith.constant 0.000000e+00 : f32
    %81 = vector.broadcast %cst_109 : f32 to vector<1x24x8xf32>
    %c0_110 = arith.constant 0 : index
    %c0_111 = arith.constant 0 : index
    %c0_112 = arith.constant 0 : index
    %82 = vector.load %arg9[%c0_110, %c0_111, %c0_112] : memref<18x24x8xf32, #tpu.memory_space<vmem>>, vector<1x24x8xf32>
    tpu.vector_store %arg9[%c0_110, %c0_111, %c0_112], %81 {strides = array<i32>} : memref<18x24x8xf32, #tpu.memory_space<vmem>>, vector<1x24x8xf32>,
    %cst_113 = arith.constant 0.000000e+00 : f32
    %83 = vector.broadcast %cst_113 : f32 to vector<1x24x8xf32>
    %c17_114 = arith.constant 17 : index
    %c0_115 = arith.constant 0 : index
    %c0_116 = arith.constant 0 : index
    %84 = vector.load %arg9[%c17_114, %c0_115, %c0_116] : memref<18x24x8xf32, #tpu.memory_space<vmem>>, vector<1x24x8xf32>
    tpu.vector_store %arg9[%c17_114, %c0_115, %c0_116], %83 {strides = array<i32>} : memref<18x24x8xf32, #tpu.memory_space<vmem>>, vector<1x24x8xf32>,
    %cst_117 = arith.constant 0.000000e+00 : f32
    %85 = vector.broadcast %cst_117 : f32 to vector<16x1x8xf32>
    %c1_118 = arith.constant 1 : index
    %c0_119 = arith.constant 0 : index
    %c0_120 = arith.constant 0 : index
    %86 = vector.load %arg9[%c1_118, %c0_119, %c0_120] : memref<18x24x8xf32, #tpu.memory_space<vmem>>, vector<16x1x8xf32>
    tpu.vector_store %arg9[%c1_118, %c0_119, %c0_120], %85 {strides = array<i32>} : memref<18x24x8xf32, #tpu.memory_space<vmem>>, vector<16x1x8xf32>,
    %cst_121 = arith.constant 0.000000e+00 : f32
    %87 = vector.broadcast %cst_121 : f32 to vector<16x1x8xf32>
    %c1_122 = arith.constant 1 : index
    %c17_123 = arith.constant 17 : index
    %c0_124 = arith.constant 0 : index
    %88 = vector.load %arg9[%c1_122, %c17_123, %c0_124] : memref<18x24x8xf32, #tpu.memory_space<vmem>>, vector<16x1x8xf32>
    tpu.vector_store %arg9[%c1_122, %c17_123, %c0_124], %87 {strides = array<i32>} : memref<18x24x8xf32, #tpu.memory_space<vmem>>, vector<16x1x8xf32>,
    %c0_125 = arith.constant 0 : index
    %c0_126 = arith.constant 0 : index
    %89 = vector.load %arg10[%c0_125, %c0_126] : memref<256x8xf32, #tpu.memory_space<vmem>>, vector<256x8xf32>
    %c0_127 = arith.constant 0 : index
    %c0_128 = arith.constant 0 : index
    %90 = vector.load %arg3[%c0_127, %c0_128] : memref<1x8xf32, #tpu.memory_space<vmem>>, vector<1x8xf32>
    %91 = vector.broadcast %90 : vector<1x8xf32> to vector<256x8xf32>
    %92 = arith.addf %89, %91 : vector<256x8xf32>
    %cst_129 = arith.constant 0.000000e+00 : f32
    %93 = vector.broadcast %cst_129 : f32 to vector<256x8xf32>
    %94 = arith.maximumf %92, %93 : vector<256x8xf32>
    %95 = vector.shape_cast %94 : vector<256x8xf32> to vector<16x16x8xf32>
    %c1_130 = arith.constant 1 : index
    %c1_131 = arith.constant 1 : index
    %c0_132 = arith.constant 0 : index
    %96 = vector.load %arg9[%c1_130, %c1_131, %c0_132] : memref<18x24x8xf32, #tpu.memory_space<vmem>>, vector<16x16x8xf32>
    tpu.vector_store %arg9[%c1_130, %c1_131, %c0_132], %95 {strides = array<i32>} : memref<18x24x8xf32, #tpu.memory_space<vmem>>, vector<16x16x8xf32>,
    %c0_133 = arith.constant 0 : index
    %c0_134 = arith.constant 0 : index
    %c0_135 = arith.constant 0 : index
    %97 = vector.load %arg9[%c0_133, %c0_134, %c0_135] : memref<18x24x8xf32, #tpu.memory_space<vmem>>, vector<16x16x8xf32>
    %98 = vector.shape_cast %97 : vector<16x16x8xf32> to vector<256x8xf32>
    %c0_136 = arith.constant 0 : index
    %c0_137 = arith.constant 0 : index
    %c0_138 = arith.constant 0 : index
    %99 = vector.load %arg4[%c0_136, %c0_137, %c0_138] : memref<9x8x8xf32, #tpu.memory_space<vmem>>, vector<1x8x8xf32>
    %100 = vector.shape_cast %99 : vector<1x8x8xf32> to vector<8x8xf32>
    %cst_139 = arith.constant dense<0.000000e+00> : vector<256x8xf32>
    %101 = tpu.matmul %98, %100, %cst_139 {dimension_numbers = #tpu.dot_dimension_numbers<[1], [0], [0], [1], [0, 0, 1, 1], [], []>} : vector<256x8xf32>, vector<8x8xf32>, vector<256x8xf32> -> vector<256x8xf32>
    %c0_140 = arith.constant 0 : index
    %c0_141 = arith.constant 0 : index
    %102 = vector.load %arg10[%c0_140, %c0_141] : memref<256x8xf32, #tpu.memory_space<vmem>>, vector<256x8xf32>
    tpu.vector_store %arg10[%c0_140, %c0_141], %101 {strides = array<i32>} : memref<256x8xf32, #tpu.memory_space<vmem>>, vector<256x8xf32>,
    %c0_142 = arith.constant 0 : index
    %c1_143 = arith.constant 1 : index
    %c0_144 = arith.constant 0 : index
    %103 = vector.load %arg9[%c0_142, %c1_143, %c0_144] : memref<18x24x8xf32, #tpu.memory_space<vmem>>, vector<16x16x8xf32>
    %104 = vector.shape_cast %103 : vector<16x16x8xf32> to vector<256x8xf32>
    %c1_145 = arith.constant 1 : index
    %c0_146 = arith.constant 0 : index
    %c0_147 = arith.constant 0 : index
    %105 = vector.load %arg4[%c1_145, %c0_146, %c0_147] : memref<9x8x8xf32, #tpu.memory_space<vmem>>, vector<1x8x8xf32>
    %106 = vector.shape_cast %105 : vector<1x8x8xf32> to vector<8x8xf32>
    %cst_148 = arith.constant dense<0.000000e+00> : vector<256x8xf32>
    %107 = tpu.matmul %104, %106, %cst_148 {dimension_numbers = #tpu.dot_dimension_numbers<[1], [0], [0], [1], [0, 0, 1, 1], [], []>} : vector<256x8xf32>, vector<8x8xf32>, vector<256x8xf32> -> vector<256x8xf32>
    %c0_149 = arith.constant 0 : index
    %c0_150 = arith.constant 0 : index
    %108 = vector.load %arg10[%c0_149, %c0_150] : memref<256x8xf32, #tpu.memory_space<vmem>>, vector<256x8xf32>
    %109 = arith.addf %108, %107 : vector<256x8xf32>
    %c0_151 = arith.constant 0 : index
    %c0_152 = arith.constant 0 : index
    %110 = vector.load %arg10[%c0_151, %c0_152] : memref<256x8xf32, #tpu.memory_space<vmem>>, vector<256x8xf32>
    tpu.vector_store %arg10[%c0_151, %c0_152], %109 {strides = array<i32>} : memref<256x8xf32, #tpu.memory_space<vmem>>, vector<256x8xf32>,
    %c0_153 = arith.constant 0 : index
    %c2_154 = arith.constant 2 : index
    %c0_155 = arith.constant 0 : index
    %111 = vector.load %arg9[%c0_153, %c2_154, %c0_155] : memref<18x24x8xf32, #tpu.memory_space<vmem>>, vector<16x16x8xf32>
    %112 = vector.shape_cast %111 : vector<16x16x8xf32> to vector<256x8xf32>
    %c2_156 = arith.constant 2 : index
    %c0_157 = arith.constant 0 : index
    %c0_158 = arith.constant 0 : index
    %113 = vector.load %arg4[%c2_156, %c0_157, %c0_158] : memref<9x8x8xf32, #tpu.memory_space<vmem>>, vector<1x8x8xf32>
    %114 = vector.shape_cast %113 : vector<1x8x8xf32> to vector<8x8xf32>
    %cst_159 = arith.constant dense<0.000000e+00> : vector<256x8xf32>
    %115 = tpu.matmul %112, %114, %cst_159 {dimension_numbers = #tpu.dot_dimension_numbers<[1], [0], [0], [1], [0, 0, 1, 1], [], []>} : vector<256x8xf32>, vector<8x8xf32>, vector<256x8xf32> -> vector<256x8xf32>
    %c0_160 = arith.constant 0 : index
    %c0_161 = arith.constant 0 : index
    %116 = vector.load %arg10[%c0_160, %c0_161] : memref<256x8xf32, #tpu.memory_space<vmem>>, vector<256x8xf32>
    %117 = arith.addf %116, %115 : vector<256x8xf32>
    %c0_162 = arith.constant 0 : index
    %c0_163 = arith.constant 0 : index
    %118 = vector.load %arg10[%c0_162, %c0_163] : memref<256x8xf32, #tpu.memory_space<vmem>>, vector<256x8xf32>
    tpu.vector_store %arg10[%c0_162, %c0_163], %117 {strides = array<i32>} : memref<256x8xf32, #tpu.memory_space<vmem>>, vector<256x8xf32>,
    %c1_164 = arith.constant 1 : index
    %c0_165 = arith.constant 0 : index
    %c0_166 = arith.constant 0 : index
    %119 = vector.load %arg9[%c1_164, %c0_165, %c0_166] : memref<18x24x8xf32, #tpu.memory_space<vmem>>, vector<16x16x8xf32>
    %120 = vector.shape_cast %119 : vector<16x16x8xf32> to vector<256x8xf32>
    %c3_167 = arith.constant 3 : index
    %c0_168 = arith.constant 0 : index
    %c0_169 = arith.constant 0 : index
    %121 = vector.load %arg4[%c3_167, %c0_168, %c0_169] : memref<9x8x8xf32, #tpu.memory_space<vmem>>, vector<1x8x8xf32>
    %122 = vector.shape_cast %121 : vector<1x8x8xf32> to vector<8x8xf32>
    %cst_170 = arith.constant dense<0.000000e+00> : vector<256x8xf32>
    %123 = tpu.matmul %120, %122, %cst_170 {dimension_numbers = #tpu.dot_dimension_numbers<[1], [0], [0], [1], [0, 0, 1, 1], [], []>} : vector<256x8xf32>, vector<8x8xf32>, vector<256x8xf32> -> vector<256x8xf32>
    %c0_171 = arith.constant 0 : index
    %c0_172 = arith.constant 0 : index
    %124 = vector.load %arg10[%c0_171, %c0_172] : memref<256x8xf32, #tpu.memory_space<vmem>>, vector<256x8xf32>
    %125 = arith.addf %124, %123 : vector<256x8xf32>
    %c0_173 = arith.constant 0 : index
    %c0_174 = arith.constant 0 : index
    %126 = vector.load %arg10[%c0_173, %c0_174] : memref<256x8xf32, #tpu.memory_space<vmem>>, vector<256x8xf32>
    tpu.vector_store %arg10[%c0_173, %c0_174], %125 {strides = array<i32>} : memref<256x8xf32, #tpu.memory_space<vmem>>, vector<256x8xf32>,
    %c1_175 = arith.constant 1 : index
    %c1_176 = arith.constant 1 : index
    %c0_177 = arith.constant 0 : index
    %127 = vector.load %arg9[%c1_175, %c1_176, %c0_177] : memref<18x24x8xf32, #tpu.memory_space<vmem>>, vector<16x16x8xf32>
    %128 = vector.shape_cast %127 : vector<16x16x8xf32> to vector<256x8xf32>
    %c4_178 = arith.constant 4 : index
    %c0_179 = arith.constant 0 : index
    %c0_180 = arith.constant 0 : index
    %129 = vector.load %arg4[%c4_178, %c0_179, %c0_180] : memref<9x8x8xf32, #tpu.memory_space<vmem>>, vector<1x8x8xf32>
    %130 = vector.shape_cast %129 : vector<1x8x8xf32> to vector<8x8xf32>
    %cst_181 = arith.constant dense<0.000000e+00> : vector<256x8xf32>
    %131 = tpu.matmul %128, %130, %cst_181 {dimension_numbers = #tpu.dot_dimension_numbers<[1], [0], [0], [1], [0, 0, 1, 1], [], []>} : vector<256x8xf32>, vector<8x8xf32>, vector<256x8xf32> -> vector<256x8xf32>
    %c0_182 = arith.constant 0 : index
    %c0_183 = arith.constant 0 : index
    %132 = vector.load %arg10[%c0_182, %c0_183] : memref<256x8xf32, #tpu.memory_space<vmem>>, vector<256x8xf32>
    %133 = arith.addf %132, %131 : vector<256x8xf32>
    %c0_184 = arith.constant 0 : index
    %c0_185 = arith.constant 0 : index
    %134 = vector.load %arg10[%c0_184, %c0_185] : memref<256x8xf32, #tpu.memory_space<vmem>>, vector<256x8xf32>
    tpu.vector_store %arg10[%c0_184, %c0_185], %133 {strides = array<i32>} : memref<256x8xf32, #tpu.memory_space<vmem>>, vector<256x8xf32>,
    %c1_186 = arith.constant 1 : index
    %c2_187 = arith.constant 2 : index
    %c0_188 = arith.constant 0 : index
    %135 = vector.load %arg9[%c1_186, %c2_187, %c0_188] : memref<18x24x8xf32, #tpu.memory_space<vmem>>, vector<16x16x8xf32>
    %136 = vector.shape_cast %135 : vector<16x16x8xf32> to vector<256x8xf32>
    %c5_189 = arith.constant 5 : index
    %c0_190 = arith.constant 0 : index
    %c0_191 = arith.constant 0 : index
    %137 = vector.load %arg4[%c5_189, %c0_190, %c0_191] : memref<9x8x8xf32, #tpu.memory_space<vmem>>, vector<1x8x8xf32>
    %138 = vector.shape_cast %137 : vector<1x8x8xf32> to vector<8x8xf32>
    %cst_192 = arith.constant dense<0.000000e+00> : vector<256x8xf32>
    %139 = tpu.matmul %136, %138, %cst_192 {dimension_numbers = #tpu.dot_dimension_numbers<[1], [0], [0], [1], [0, 0, 1, 1], [], []>} : vector<256x8xf32>, vector<8x8xf32>, vector<256x8xf32> -> vector<256x8xf32>
    %c0_193 = arith.constant 0 : index
    %c0_194 = arith.constant 0 : index
    %140 = vector.load %arg10[%c0_193, %c0_194] : memref<256x8xf32, #tpu.memory_space<vmem>>, vector<256x8xf32>
    %141 = arith.addf %140, %139 : vector<256x8xf32>
    %c0_195 = arith.constant 0 : index
    %c0_196 = arith.constant 0 : index
    %142 = vector.load %arg10[%c0_195, %c0_196] : memref<256x8xf32, #tpu.memory_space<vmem>>, vector<256x8xf32>
    tpu.vector_store %arg10[%c0_195, %c0_196], %141 {strides = array<i32>} : memref<256x8xf32, #tpu.memory_space<vmem>>, vector<256x8xf32>,
    %c2_197 = arith.constant 2 : index
    %c0_198 = arith.constant 0 : index
    %c0_199 = arith.constant 0 : index
    %143 = vector.load %arg9[%c2_197, %c0_198, %c0_199] : memref<18x24x8xf32, #tpu.memory_space<vmem>>, vector<16x16x8xf32>
    %144 = vector.shape_cast %143 : vector<16x16x8xf32> to vector<256x8xf32>
    %c6_200 = arith.constant 6 : index
    %c0_201 = arith.constant 0 : index
    %c0_202 = arith.constant 0 : index
    %145 = vector.load %arg4[%c6_200, %c0_201, %c0_202] : memref<9x8x8xf32, #tpu.memory_space<vmem>>, vector<1x8x8xf32>
    %146 = vector.shape_cast %145 : vector<1x8x8xf32> to vector<8x8xf32>
    %cst_203 = arith.constant dense<0.000000e+00> : vector<256x8xf32>
    %147 = tpu.matmul %144, %146, %cst_203 {dimension_numbers = #tpu.dot_dimension_numbers<[1], [0], [0], [1], [0, 0, 1, 1], [], []>} : vector<256x8xf32>, vector<8x8xf32>, vector<256x8xf32> -> vector<256x8xf32>
    %c0_204 = arith.constant 0 : index
    %c0_205 = arith.constant 0 : index
    %148 = vector.load %arg10[%c0_204, %c0_205] : memref<256x8xf32, #tpu.memory_space<vmem>>, vector<256x8xf32>
    %149 = arith.addf %148, %147 : vector<256x8xf32>
    %c0_206 = arith.constant 0 : index
    %c0_207 = arith.constant 0 : index
    %150 = vector.load %arg10[%c0_206, %c0_207] : memref<256x8xf32, #tpu.memory_space<vmem>>, vector<256x8xf32>
    tpu.vector_store %arg10[%c0_206, %c0_207], %149 {strides = array<i32>} : memref<256x8xf32, #tpu.memory_space<vmem>>, vector<256x8xf32>,
    %c2_208 = arith.constant 2 : index
    %c1_209 = arith.constant 1 : index
    %c0_210 = arith.constant 0 : index
    %151 = vector.load %arg9[%c2_208, %c1_209, %c0_210] : memref<18x24x8xf32, #tpu.memory_space<vmem>>, vector<16x16x8xf32>
    %152 = vector.shape_cast %151 : vector<16x16x8xf32> to vector<256x8xf32>
    %c7_211 = arith.constant 7 : index
    %c0_212 = arith.constant 0 : index
    %c0_213 = arith.constant 0 : index
    %153 = vector.load %arg4[%c7_211, %c0_212, %c0_213] : memref<9x8x8xf32, #tpu.memory_space<vmem>>, vector<1x8x8xf32>
    %154 = vector.shape_cast %153 : vector<1x8x8xf32> to vector<8x8xf32>
    %cst_214 = arith.constant dense<0.000000e+00> : vector<256x8xf32>
    %155 = tpu.matmul %152, %154, %cst_214 {dimension_numbers = #tpu.dot_dimension_numbers<[1], [0], [0], [1], [0, 0, 1, 1], [], []>} : vector<256x8xf32>, vector<8x8xf32>, vector<256x8xf32> -> vector<256x8xf32>
    %c0_215 = arith.constant 0 : index
    %c0_216 = arith.constant 0 : index
    %156 = vector.load %arg10[%c0_215, %c0_216] : memref<256x8xf32, #tpu.memory_space<vmem>>, vector<256x8xf32>
    %157 = arith.addf %156, %155 : vector<256x8xf32>
    %c0_217 = arith.constant 0 : index
    %c0_218 = arith.constant 0 : index
    %158 = vector.load %arg10[%c0_217, %c0_218] : memref<256x8xf32, #tpu.memory_space<vmem>>, vector<256x8xf32>
    tpu.vector_store %arg10[%c0_217, %c0_218], %157 {strides = array<i32>} : memref<256x8xf32, #tpu.memory_space<vmem>>, vector<256x8xf32>,
    %c2_219 = arith.constant 2 : index
    %c2_220 = arith.constant 2 : index
    %c0_221 = arith.constant 0 : index
    %159 = vector.load %arg9[%c2_219, %c2_220, %c0_221] : memref<18x24x8xf32, #tpu.memory_space<vmem>>, vector<16x16x8xf32>
    %160 = vector.shape_cast %159 : vector<16x16x8xf32> to vector<256x8xf32>
    %c8_222 = arith.constant 8 : index
    %c0_223 = arith.constant 0 : index
    %c0_224 = arith.constant 0 : index
    %161 = vector.load %arg4[%c8_222, %c0_223, %c0_224] : memref<9x8x8xf32, #tpu.memory_space<vmem>>, vector<1x8x8xf32>
    %162 = vector.shape_cast %161 : vector<1x8x8xf32> to vector<8x8xf32>
    %cst_225 = arith.constant dense<0.000000e+00> : vector<256x8xf32>
    %163 = tpu.matmul %160, %162, %cst_225 {dimension_numbers = #tpu.dot_dimension_numbers<[1], [0], [0], [1], [0, 0, 1, 1], [], []>} : vector<256x8xf32>, vector<8x8xf32>, vector<256x8xf32> -> vector<256x8xf32>
    %c0_226 = arith.constant 0 : index
    %c0_227 = arith.constant 0 : index
    %164 = vector.load %arg10[%c0_226, %c0_227] : memref<256x8xf32, #tpu.memory_space<vmem>>, vector<256x8xf32>
    %165 = arith.addf %164, %163 : vector<256x8xf32>
    %c0_228 = arith.constant 0 : index
    %c0_229 = arith.constant 0 : index
    %166 = vector.load %arg10[%c0_228, %c0_229] : memref<256x8xf32, #tpu.memory_space<vmem>>, vector<256x8xf32>
    tpu.vector_store %arg10[%c0_228, %c0_229], %165 {strides = array<i32>} : memref<256x8xf32, #tpu.memory_space<vmem>>, vector<256x8xf32>,
    %c1_230 = arith.constant 1 : index
    %c1_231 = arith.constant 1 : index
    %c0_232 = arith.constant 0 : index
    %167 = vector.load %arg8[%c1_230, %c1_231, %c0_232] : memref<18x24x4xf32, #tpu.memory_space<vmem>>, vector<16x16x4xf32>
    %168 = vector.shape_cast %167 : vector<16x16x4xf32> to vector<256x4xf32>
    %c0_233 = arith.constant 0 : index
    %c0_234 = arith.constant 0 : index
    %169 = vector.load %arg10[%c0_233, %c0_234] : memref<256x8xf32, #tpu.memory_space<vmem>>, vector<256x8xf32>
    %c0_235 = arith.constant 0 : index
    %c0_236 = arith.constant 0 : index
    %170 = vector.load %arg5[%c0_235, %c0_236] : memref<4x8xf32, #tpu.memory_space<vmem>>, vector<4x8xf32>
    %cst_237 = arith.constant dense<0.000000e+00> : vector<256x8xf32>
    %171 = tpu.matmul %168, %170, %cst_237 {dimension_numbers = #tpu.dot_dimension_numbers<[1], [0], [0], [1], [0, 0, 1, 1], [], []>} : vector<256x4xf32>, vector<4x8xf32>, vector<256x8xf32> -> vector<256x8xf32>
    %172 = arith.addf %169, %171 : vector<256x8xf32>
    %c0_238 = arith.constant 0 : index
    %c0_239 = arith.constant 0 : index
    %173 = vector.load %arg10[%c0_238, %c0_239] : memref<256x8xf32, #tpu.memory_space<vmem>>, vector<256x8xf32>
    tpu.vector_store %arg10[%c0_238, %c0_239], %172 {strides = array<i32>} : memref<256x8xf32, #tpu.memory_space<vmem>>, vector<256x8xf32>,
    %c0_240 = arith.constant 0 : index
    %c0_241 = arith.constant 0 : index
    %174 = vector.load %arg10[%c0_240, %c0_241] : memref<256x8xf32, #tpu.memory_space<vmem>>, vector<256x8xf32>
    %175 = vector.shape_cast %174 : vector<256x8xf32> to vector<8x2x16x8xf32>
    %176 = vector.extract_strided_slice %175 {offsets = [0, 0, 0, 0], sizes = [8, 1, 16, 8], strides = [1, 1, 1, 1]} : vector<8x2x16x8xf32> to vector<8x1x16x8xf32>
    %177 = vector.shape_cast %176 : vector<8x1x16x8xf32> to vector<8x16x8xf32>
    %178 = vector.extract_strided_slice %175 {offsets = [0, 1, 0, 0], sizes = [8, 1, 16, 8], strides = [1, 1, 1, 1]} : vector<8x2x16x8xf32> to vector<8x1x16x8xf32>
    %179 = vector.shape_cast %178 : vector<8x1x16x8xf32> to vector<8x16x8xf32>
    %180 = arith.addf %177, %179 : vector<8x16x8xf32>
    %181 = vector.shape_cast %180 : vector<8x16x8xf32> to vector<8x8x2x8xf32>
    %182 = vector.extract_strided_slice %181 {offsets = [0, 0, 0, 0], sizes = [8, 8, 1, 8], strides = [1, 1, 1, 1]} : vector<8x8x2x8xf32> to vector<8x8x1x8xf32>
    %183 = vector.shape_cast %182 : vector<8x8x1x8xf32> to vector<8x8x8xf32>
    %184 = vector.extract_strided_slice %181 {offsets = [0, 0, 1, 0], sizes = [8, 8, 1, 8], strides = [1, 1, 1, 1]} : vector<8x8x2x8xf32> to vector<8x8x1x8xf32>
    %185 = vector.shape_cast %184 : vector<8x8x1x8xf32> to vector<8x8x8xf32>
    %186 = arith.addf %183, %185 : vector<8x8x8xf32>
    %c0_242 = arith.constant 0 : index
    %c0_243 = arith.constant 0 : index
    %187 = vector.load %arg6[%c0_242, %c0_243] : memref<1x8xf32, #tpu.memory_space<vmem>>, vector<1x8xf32>
    %188 = vector.shape_cast %187 : vector<1x8xf32> to vector<1x1x8xf32>
    %189 = vector.broadcast %188 : vector<1x1x8xf32> to vector<8x8x8xf32>
    %190 = arith.addf %186, %189 : vector<8x8x8xf32>
    %cst_244 = arith.constant 0.000000e+00 : f32
    %191 = vector.broadcast %cst_244 : f32 to vector<8x8x120xf32>
    %192 = tpu.concatenate %190, %191 in 2 : vector<8x8x8xf32>, vector<8x8x120xf32> -> vector<8x8x128xf32>
    %c0_245 = arith.constant 0 : index
    %c0_246 = arith.constant 0 : index
    %c0_247 = arith.constant 0 : index
    %c0_248 = arith.constant 0 : index
    %193 = vector.load %arg7[%c0_245, %c0_246, %c0_247, %c0_248] : memref<1x8x8x128xf32, #tpu.memory_space<vmem>>, vector<1x8x8x128xf32>
    %194 = vector.shape_cast %193 : vector<1x8x8x128xf32> to vector<8x8x128xf32>
    %195 = vector.shape_cast %192 : vector<8x8x128xf32> to vector<1x8x8x128xf32>
    tpu.vector_store %arg7[%c0_245, %c0_246, %c0_247, %c0_248], %195 {strides = array<i32>} : memref<1x8x8x128xf32, #tpu.memory_space<vmem>>, vector<1x8x8x128xf32>,
    return
  }
  func.func @transform_0(%arg0: i32) -> (i32, i32, i32, i32) {
    %c0_i32 = arith.constant 0 : i32
    %c0_i32_0 = arith.constant 0 : i32
    %c0_i32_1 = arith.constant 0 : i32
    %c0_i32_2 = arith.constant 0 : i32
    return %arg0, %c0_i32, %c0_i32_0, %c0_i32_1 : i32, i32, i32, i32
  }
  func.func @transform_1(%arg0: i32) -> (i32, i32, i32) {
    %c0_i32 = arith.constant 0 : i32
    %c0_i32_0 = arith.constant 0 : i32
    %c0_i32_1 = arith.constant 0 : i32
    %c0_i32_2 = arith.constant 0 : i32
    return %c0_i32, %c0_i32_0, %c0_i32_1 : i32, i32, i32
  }
  func.func @transform_2(%arg0: i32) -> (i32, i32) {
    %c0_i32 = arith.constant 0 : i32
    %c0_i32_0 = arith.constant 0 : i32
    %c0_i32_1 = arith.constant 0 : i32
    return %c0_i32, %c0_i32_0 : i32, i32
  }
  func.func @transform_3(%arg0: i32) -> (i32, i32, i32) {
    %c0_i32 = arith.constant 0 : i32
    %c0_i32_0 = arith.constant 0 : i32
    %c0_i32_1 = arith.constant 0 : i32
    %c0_i32_2 = arith.constant 0 : i32
    return %c0_i32, %c0_i32_0, %c0_i32_1 : i32, i32, i32
  }
  func.func @transform_4(%arg0: i32) -> (i32, i32) {
    %c0_i32 = arith.constant 0 : i32
    %c0_i32_0 = arith.constant 0 : i32
    %c0_i32_1 = arith.constant 0 : i32
    return %c0_i32, %c0_i32_0 : i32, i32
  }
  func.func @transform_5(%arg0: i32) -> (i32, i32) {
    %c0_i32 = arith.constant 0 : i32
    %c0_i32_0 = arith.constant 0 : i32
    %c0_i32_1 = arith.constant 0 : i32
    return %c0_i32, %c0_i32_0 : i32, i32
  }
  func.func @transform_6(%arg0: i32) -> (i32, i32, i32, i32) {
    %c0_i32 = arith.constant 0 : i32
    %c0_i32_0 = arith.constant 0 : i32
    %c0_i32_1 = arith.constant 0 : i32
    %c0_i32_2 = arith.constant 0 : i32
    return %arg0, %c0_i32, %c0_i32_0, %c0_i32_1 : i32, i32, i32, i32
  }
}

</mosaic_0001>

<bundles_post_ra>
// kernel: disc_opt_block.1
= control target key start
LH: loop header
LB: loop body
LE: loop exit
PB: predicated region body
PF: predicated region fallthrough
CT: control target
= control target key end

     0   :  { %s12572_s21 = smov 0   ;;  %s15642_s0 = inlined_call_operand.vmem [shape: f32[2,16,16,4], index: 0, kind: input, shape index: {}]   ;;  %s15643_s1 = inlined_call_operand.vmem [shape: f32[9,4,8], index: 1, kind: input, shape index: {}]   ;;  %s15644_s2 = inlined_call_operand.vmem [shape: f32[1,8], index: 2, kind: input, shape index: {}]   ;;  %s15645_s3 = inlined_call_operand.vmem [shape: f32[9,8,8], index: 3, kind: input, shape index: {}]   ;;  %s15646_s4 = inlined_call_operand.vmem [shape: f32[4,8], index: 4, kind: input, shape index: {}]   ;;  %s15647_s5 = inlined_call_operand.vmem [shape: f32[1,8], index: 5, kind: input, shape index: {}]   ;;  %s15648_s6 = inlined_call_operand.vmem [shape: f32[2,8,8,128], index: 6, kind: output, shape index: {}]  }
   0x1 LB: > { %s10223_s22 = sadd.s32 4294967295, %s12533_s21   ;;  %p10227_p0 = scmp.ge.s32.totalorder %s12533_s21, 1  ;;  %s12533_s21 = sphi %s12572_s21, %s16_s21  }
   0x2   : > { %p212_p1 = scmp.lt.s32.totalorder %s12533_s21, 3 }
   0x4   : > { %p213_p2 = pnand %p10227_p0, %p212_p1 }
   0x6   : > { %216 = sbr.rel (%p213_p2) target bundleno = 1139 (0x473), region = 44 }
   0xd   : > { %v390_v0 = vld [vmem:[%s15643_s1] sm:$0xf]  ;;  %vm487_vm0 = vcmask 1043456   ;;  %p12583_p3 = scmp.lt.s32.totalorder %s10223_s22, 1  ;;  %vm285_vm1 = vcmask 31744   ;;  %vm325_vm2 = vcmask 24576  }
   0xe   : > { %12513 = vmatprep.subr.msk.mxu1 %vm487_vm0, %v390_v0  ;;  %v15649_v1 = vmov 0.0   ;;  %v12603_v2 = vld [vmem:[%s15643_s1 + $0x4] sm:$0xf]  ;;  %11563 = vmatprep.subr.msk.mxu0 %vm487_vm0, %v390_v0  ;;  %v12609_v3 = vld [vmem:[%s15643_s1 + $0x8] sm:$0xf]  ;;  %vm716_vm3 = vcmask 64512  }
   0xf   : > { %318 = vst.msk [vmem:[#allocation2] sm:$0xff] %vm285_vm1, %v15649_v1  ;;  %319 = vst.msk [vmem:[#allocation2 + $0x8] sm:$0xff] %vm285_vm1, %v15649_v1  ;;  %12514 = vmatpush3.msk.msra.mxu1 %vm487_vm0, %v390_v0  ;;  %s15829_s22 = smov (!%p12583_p3, %s10223_s22), 1  ;;  %11564 = vmatpush3.msk.msra.mxu0 %vm487_vm0, %v390_v0  ;;  %v12703_v10 = vld [vmem:[%s15643_s1 + $0x10] sm:$0xf]  ;;  %vm4390_vm4 = vcmask 57344  }
  0x10   : > { %320 = vst.msk [vmem:[#allocation2 + $0x10] sm:$0xff] %vm285_vm1, %v15649_v1  ;;  %322 = vst.msk [vmem:[#allocation2 + $0x198] sm:$0xff] %vm285_vm1, %v15649_v1  ;;  %11613 = vmatprep.subr.msk.mxu1 %vm487_vm0, %v12603_v2  ;;  %11663 = vmatprep.subr.msk.mxu0 %vm487_vm0, %v12609_v3  ;;  %s10934_s30 = sshll.u32 %s15829_s22, 8  ;;  %v12757_v32 = vld [vmem:[%s15643_s1 + $0xc] sm:$0xf]  ;;  %vm10081_vm5 = vcmask 1041409  }
  0x11   : > { %323 = vst.msk [vmem:[#allocation2 + $0x1a0] sm:$0xff] %vm285_vm1, %v15649_v1  ;;  %324 = vst.msk [vmem:[#allocation2 + $0x1a8] sm:$0xff] %vm285_vm1, %v15649_v1  ;;  %s12689_s9 = scalar_lea.vmem %s15642_s0, %s10934_s30  ;;  %vm10083_vm6 = vcmask 1042434   ;;  %vm10085_vm7 = vcmask 1043459   ;;  %vm10087_vm8 = vcmask 1044484   ;;  %vm10089_vm9 = vcmask 1045509  }
  0x12   : > { %333 = vst.msk [vmem:[#allocation2 + $0xc0] sm:$0x1] %vm325_vm2, %v15649_v1  ;;  %326 = vst.msk [vmem:[#allocation2 + $0x18] sm:$0x1] %vm325_vm2, %v15649_v1  ;;  %v266_v4 = vld [vmem:[%s12689_s9 + $0x70] sm:$0xff]  ;;  %v267_v5 = vld [vmem:[%s12689_s9 + $0x78] sm:$0xff] }
  0x13   : > { %327 = vst.msk [vmem:[#allocation2 + $0x30] sm:$0x1] %vm325_vm2, %v15649_v1  ;;  %328 = vst.msk [vmem:[#allocation2 + $0x48] sm:$0x1] %vm325_vm2, %v15649_v1  ;;  %v268_v6 = vld [vmem:[%s12689_s9 + $0x80] sm:$0xff]  ;;  %v269_v7 = vld [vmem:[%s12689_s9 + $0x88] sm:$0xff] }
  0x14   : > { %329 = vst.msk [vmem:[#allocation2 + $0x60] sm:$0x1] %vm325_vm2, %v15649_v1  ;;  %330 = vst.msk [vmem:[#allocation2 + $0x78] sm:$0x1] %vm325_vm2, %v15649_v1  ;;  %v270_v8 = vld [vmem:[%s12689_s9 + $0x90] sm:$0xff]  ;;  %v271_v9 = vld [vmem:[%s12689_s9 + $0x98] sm:$0xff] }
  0x15   : > { %331 = vst.msk [vmem:[#allocation2 + $0x90] sm:$0x1] %vm325_vm2, %v15649_v1  ;;  %332 = vst.msk [vmem:[#allocation2 + $0xa8] sm:$0x1] %vm325_vm2, %v15649_v1  ;;  %v272_v13 = vld [vmem:[%s12689_s9 + $0xa0] sm:$0xff]  ;;  %v273_v15 = vld [vmem:[%s12689_s9 + $0xa8] sm:$0xff] }
  0x16   : > { %334 = vst.msk [vmem:[#allocation2 + $0xd8] sm:$0x1] %vm325_vm2, %v15649_v1  ;;  %335 = vst.msk [vmem:[#allocation2 + $0xf0] sm:$0x1] %vm325_vm2, %v15649_v1  ;;  %v358_v11 = vld [vmem:[#allocation2] sm:$0xff]  ;;  %v359_v12 = vld [vmem:[#allocation2 + $0x8] sm:$0xff] }
  0x17   : > { %336 = vst.msk [vmem:[#allocation2 + $0x108] sm:$0x1] %vm325_vm2, %v15649_v1  ;;  %337 = vst.msk [vmem:[#allocation2 + $0x120] sm:$0x1] %vm325_vm2, %v15649_v1  ;;  %11565 = vmatprep.mubr.msk.f32.mxu0 %vm285_vm1, %v358_v11  ;;  %v252_v14 = vld [vmem:[%s12689_s9] sm:$0xff]  ;;  %v253_v16 = vld [vmem:[%s12689_s9 + $0x8] sm:$0xff] }
  0x18   : > { %338 = vst.msk [vmem:[#allocation2 + $0x138] sm:$0x1] %vm325_vm2, %v15649_v1  ;;  %339 = vst.msk [vmem:[#allocation2 + $0x150] sm:$0x1] %vm325_vm2, %v15649_v1  ;;  %11566 = vmatmul.mubr.msk.f32.vlgmr.msra.gmra.mrb[0].mxu0 %vm285_vm1, %v359_v12  ;;  %v274_v17 = vld [vmem:[%s12689_s9 + $0xb0] sm:$0xff]  ;;  %v275_v19 = vld [vmem:[%s12689_s9 + $0xb8] sm:$0xff] }
  0x19   : > { %340 = vst.msk [vmem:[#allocation2 + $0x168] sm:$0x1] %vm325_vm2, %v15649_v1  ;;  %341 = vst.msk [vmem:[#allocation2 + $0x180] sm:$0x1] %vm325_vm2, %v15649_v1  ;;  %v254_v18 = vld [vmem:[%s12689_s9 + $0x10] sm:$0xff]  ;;  %11664 = vmatpush3.msk.msra.mxu0 %vm487_vm0, %v12609_v3  ;;  %v255_v20 = vld [vmem:[%s12689_s9 + $0x18] sm:$0xff] }
  0x1a   : > { %342 = vst.msk [vmem:[#allocation2 + $0x29] sm:$0x1] %vm325_vm2, %v15649_v1  ;;  %343 = vst.msk [vmem:[#allocation2 + $0x41] sm:$0x1] %vm325_vm2, %v15649_v1  ;;  %v276_v21 = vld [vmem:[%s12689_s9 + $0xc0] sm:$0xff]  ;;  %v277_v23 = vld [vmem:[%s12689_s9 + $0xc8] sm:$0xff]  ;;  %11763 = vmatprep.subr.msk.mxu0 %vm487_vm0, %v12703_v10 }
  0x1b   : > { %344 = vst.msk [vmem:[#allocation2 + $0x59] sm:$0x1] %vm325_vm2, %v15649_v1  ;;  %345 = vst.msk [vmem:[#allocation2 + $0x71] sm:$0x1] %vm325_vm2, %v15649_v1  ;;  %v256_v22 = vld [vmem:[%s12689_s9 + $0x20] sm:$0xff]  ;;  %v257_v24 = vld [vmem:[%s12689_s9 + $0x28] sm:$0xff] }
  0x1c   : > { %346 = vst.msk [vmem:[#allocation2 + $0x89] sm:$0x1] %vm325_vm2, %v15649_v1  ;;  %347 = vst.msk [vmem:[#allocation2 + $0xa1] sm:$0x1] %vm325_vm2, %v15649_v1  ;;  %v278_v25 = vld [vmem:[%s12689_s9 + $0xd0] sm:$0xff]  ;;  %v279_v27 = vld [vmem:[%s12689_s9 + $0xd8] sm:$0xff] }
  0x1d   : > { %348 = vst.msk [vmem:[#allocation2 + $0xb9] sm:$0x1] %vm325_vm2, %v15649_v1  ;;  %349 = vst.msk [vmem:[#allocation2 + $0xd1] sm:$0x1] %vm325_vm2, %v15649_v1  ;;  %v258_v26 = vld [vmem:[%s12689_s9 + $0x30] sm:$0xff]  ;;  %v259_v28 = vld [vmem:[%s12689_s9 + $0x38] sm:$0xff] }
  0x1e   : > { %350 = vst.msk [vmem:[#allocation2 + $0xe9] sm:$0x1] %vm325_vm2, %v15649_v1  ;;  %351 = vst.msk [vmem:[#allocation2 + $0x101] sm:$0x1] %vm325_vm2, %v15649_v1  ;;  %v280_v33 = vld [vmem:[%s12689_s9 + $0xe0] sm:$0xff]  ;;  %v281_v44 = vld [vmem:[%s12689_s9 + $0xe8] sm:$0xff] }
  0x1f   : > { %352 = vst.msk [vmem:[#allocation2 + $0x119] sm:$0x1] %vm325_vm2, %v15649_v1  ;;  %353 = vst.msk [vmem:[#allocation2 + $0x131] sm:$0x1] %vm325_vm2, %v15649_v1  ;;  %v260_v34 = vld [vmem:[%s12689_s9 + $0x40] sm:$0xff]  ;;  %v261_v45 = vld [vmem:[%s12689_s9 + $0x48] sm:$0xff] }
  0x20   : > { %354 = vst.msk [vmem:[#allocation2 + $0x149] sm:$0x1] %vm325_vm2, %v15649_v1  ;;  %355 = vst.msk [vmem:[#allocation2 + $0x161] sm:$0x1] %vm325_vm2, %v15649_v1  ;;  %v262_v46 = vld [vmem:[%s12689_s9 + $0x50] sm:$0xff]  ;;  %v263_v47 = vld [vmem:[%s12689_s9 + $0x58] sm:$0xff] }
  0x21   : > { %356 = vst.msk [vmem:[#allocation2 + $0x179] sm:$0x1] %vm325_vm2, %v15649_v1  ;;  %357 = vst.msk [vmem:[#allocation2 + $0x191] sm:$0x1] %vm325_vm2, %v15649_v1  ;;  %v264_v51 = vld [vmem:[%s12689_s9 + $0x60] sm:$0xff]  ;;  %v265_v52 = vld [vmem:[%s12689_s9 + $0x68] sm:$0xff] }
  0x22   : > { %300 = vst.msk [vmem:[#allocation2 + $0xc1] sm:$0xff] %vm285_vm1, %v266_v4  ;;  %301 = vst.msk [vmem:[#allocation2 + $0xc9] sm:$0xff] %vm285_vm1, %v267_v5  ;;  %v1203_v5 = vld [vmem:[#allocation2 + $0x2] sm:$0xff]  ;;  %v12901_v12 = vld [vmem:[%s15643_s1 + $0x14] sm:$0xf]  ;;  %vm10091_vm10 = vcmask 1046534  }
  0x23   : > { %302 = vst.msk [vmem:[#allocation2 + $0xd9] sm:$0xff] %vm285_vm1, %v268_v6  ;;  %303 = vst.msk [vmem:[#allocation2 + $0xe1] sm:$0xff] %vm285_vm1, %v269_v7  ;;  %v749_v6 = vld [vmem:[#allocation2 + $0x1] sm:$0xff]  ;;  %v1204_v7 = vld [vmem:[#allocation2 + $0xa] sm:$0xff]  ;;  %vm10093_vm11 = vcmask 1047559   ;;  %s10935_s30 = sshll.u32 %s15829_s22, 6 }
  0x24   : > { %304 = vst.msk [vmem:[#allocation2 + $0xf1] sm:$0xff] %vm285_vm1, %v270_v8  ;;  %305 = vst.msk [vmem:[#allocation2 + $0xf9] sm:$0xff] %vm285_vm1, %v271_v9  ;;  %v750_v8 = vld [vmem:[#allocation2 + $0x9] sm:$0xff]  ;;  %s15303_s8 = scalar_lea.vmem %s15648_s6, %s10935_s30 }
  0x25   : > { %306 = vst.msk [vmem:[#allocation2 + $0x109] sm:$0xff] %vm285_vm1, %v272_v13  ;;  %286 = vst.msk [vmem:[#allocation2 + $0x19] sm:$0xff] %vm285_vm1, %v252_v14  ;;  %v12906_v13 = vld [vmem:[%s15643_s1 + $0x18] sm:$0xf] }
  0x26   : > { %307 = vst.msk [vmem:[#allocation2 + $0x111] sm:$0xff] %vm285_vm1, %v273_v15  ;;  %287 = vst.msk [vmem:[#allocation2 + $0x21] sm:$0xff] %vm285_vm1, %v253_v16  ;;  %v282_v15 = vld [vmem:[%s12689_s9 + $0xf0] sm:$0xff]  ;;  %v283_v16 = vld [vmem:[%s12689_s9 + $0xf8] sm:$0xff] }
  0x27   : > { %308 = vst.msk [vmem:[#allocation2 + $0x121] sm:$0xff] %vm285_vm1, %v274_v17  ;;  %288 = vst.msk [vmem:[#allocation2 + $0x31] sm:$0xff] %vm285_vm1, %v254_v18 }
  0x28   : > { %309 = vst.msk [vmem:[#allocation2 + $0x129] sm:$0xff] %vm285_vm1, %v275_v19  ;;  %289 = vst.msk [vmem:[#allocation2 + $0x39] sm:$0xff] %vm285_vm1, %v255_v20 }
  0x29   : > { %310 = vst.msk [vmem:[#allocation2 + $0x139] sm:$0xff] %vm285_vm1, %v276_v21  ;;  %290 = vst.msk [vmem:[#allocation2 + $0x49] sm:$0xff] %vm285_vm1, %v256_v22  ;;  %v12743_v29 = vld [vmem:[#allocation2 + $0xc0] sm:$0xff]  ;;  %v12745_v30 = vld [vmem:[#allocation2 + $0xc8] sm:$0xff] }
  0x2a   : > { %311 = vst.msk [vmem:[#allocation2 + $0x141] sm:$0xff] %vm285_vm1, %v277_v23  ;;  %291 = vst.msk [vmem:[#allocation2 + $0x51] sm:$0xff] %vm285_vm1, %v257_v24  ;;  %v12747_v31 = vld [vmem:[#allocation2 + $0xd8] sm:$0xff]  ;;  %11589 = vmatprep.mubr.msk.f32.mxu1 %vm285_vm1, %v12743_v29  ;;  %v12767_v35 = vld [vmem:[#allocation2 + $0xe0] sm:$0xff] }
  0x2b   : > { %312 = vst.msk [vmem:[#allocation2 + $0x151] sm:$0xff] %vm285_vm1, %v278_v25  ;;  %292 = vst.msk [vmem:[#allocation2 + $0x61] sm:$0xff] %vm285_vm1, %v258_v26  ;;  %11590 = vmatmul.mubr.msk.f32.vlgmr.msra.gmra.mrb[0].mxu1 %vm285_vm1, %v12745_v30  ;;  %v12775_v38 = vld [vmem:[#allocation2 + $0xf0] sm:$0xff]  ;;  %v12793_v41 = vld [vmem:[#allocation2 + $0xf8] sm:$0xff] }
  0x2c   : > { %313 = vst.msk [vmem:[#allocation2 + $0x159] sm:$0xff] %vm285_vm1, %v279_v27  ;;  %293 = vst.msk [vmem:[#allocation2 + $0x69] sm:$0xff] %vm285_vm1, %v259_v28  ;;  %11614 = vmatpush3.msk.msra.mxu1 %vm487_vm0, %v12603_v2  ;;  %11592 = vmatprep.mubr.msk.f32.mxu1 %vm285_vm1, %v12747_v31  ;;  %v12769_v36 = vld [vmem:[#allocation2 + $0x18] sm:$0xff]  ;;  %v12797_v43 = vld [vmem:[#allocation2 + $0x108] sm:$0xff] }
  0x2d   : > { %v12771_v37 = vld [vmem:[#allocation2 + $0x20] sm:$0xff]  ;;  %314 = vst.msk [vmem:[#allocation2 + $0x169] sm:$0xff] %vm285_vm1, %v280_v33  ;;  %294 = vst.msk [vmem:[#allocation2 + $0x79] sm:$0xff] %vm285_vm1, %v260_v34  ;;  %11568 = vmatprep.mubr.msk.f32.mxu0 %vm285_vm1, %v12769_v36  ;;  %11713 = vmatprep.subr.msk.mxu1 %vm487_vm0, %v12757_v32  ;;  %v12809_v48 = vld [vmem:[#allocation2 + $0x110] sm:$0xff] }
  0x2e   : > { %v12779_v39 = vld [vmem:[#allocation2 + $0x30] sm:$0xff]  ;;  %11569 = vmatmul.mubr.msk.f32.gmra.mrb[2].mxu0 %vm285_vm1, %v12771_v37  ;;  %315 = vst.msk [vmem:[#allocation2 + $0x171] sm:$0xff] %vm285_vm1, %v281_v44  ;;  %295 = vst.msk [vmem:[#allocation2 + $0x81] sm:$0xff] %vm285_vm1, %v261_v45  ;;  %v12823_v53 = vld [vmem:[#allocation2 + $0x120] sm:$0xff] }
  0x2f   : > { %11593 = vmatmul.mubr.msk.f32.gmra.mrb[2].mxu1 %vm285_vm1, %v12767_v35  ;;  %11571 = vmatprep.mubr.msk.f32.mxu0 %vm285_vm1, %v12779_v39  ;;  %v12789_v40 = vld [vmem:[#allocation2 + $0x38] sm:$0xff]  ;;  %296 = vst.msk [vmem:[#allocation2 + $0x91] sm:$0xff] %vm285_vm1, %v262_v46  ;;  %297 = vst.msk [vmem:[#allocation2 + $0x99] sm:$0xff] %vm285_vm1, %v263_v47  ;;  %v12837_v55 = vld [vmem:[#allocation2 + $0x128] sm:$0xff] }
  0x30   : > { %11595 = vmatprep.mubr.msk.f32.mxu1 %vm285_vm1, %v12775_v38  ;;  %v12795_v42 = vld [vmem:[#allocation2 + $0x48] sm:$0xff]  ;;  %298 = vst.msk [vmem:[#allocation2 + $0xa9] sm:$0xff] %vm285_vm1, %v264_v51  ;;  %299 = vst.msk [vmem:[#allocation2 + $0xb1] sm:$0xff] %vm285_vm1, %v265_v52  ;;  %v12841_v57 = vld [vmem:[#allocation2 + $0x138] sm:$0xff] }
  0x31   : > { %v12813_v49 = vld [vmem:[#allocation2 + $0x50] sm:$0xff]  ;;  %v12853_v59 = vld [vmem:[#allocation2 + $0x140] sm:$0xff]  ;;  %316 = vst.msk [vmem:[#allocation2 + $0x181] sm:$0xff] %vm285_vm1, %v282_v15  ;;  %317 = vst.msk [vmem:[#allocation2 + $0x189] sm:$0xff] %vm285_vm1, %v283_v16 }
  0x32   : > { %11572 = vmatmul.mubr.msk.f32.gmra.mrb[4].mxu0 %vm285_vm1, %v12789_v40  ;;  %v12819_v50 = vld [vmem:[#allocation2 + $0x60] sm:$0xff]  ;;  %v12857_v61 = vld [vmem:[#allocation2 + $0x150] sm:$0xff] }
  0x33   : > { %11596 = vmatmul.mubr.msk.f32.gmra.mrb[4].mxu1 %vm285_vm1, %v12793_v41  ;;  %11574 = vmatprep.mubr.msk.f32.mxu0 %vm285_vm1, %v12795_v42  ;;  %v12833_v54 = vld [vmem:[#allocation2 + $0x68] sm:$0xff]  ;;  %v12869_v63 = vld [vmem:[#allocation2 + $0x158] sm:$0xff] }
  0x34   : > { %11598 = vmatprep.mubr.msk.f32.mxu1 %vm285_vm1, %v12797_v43  ;;  %v12839_v56 = vld [vmem:[#allocation2 + $0x78] sm:$0xff]  ;;  %v12873_v2 = vld [vmem:[#allocation2 + $0x168] sm:$0xff] }
  0x35   : > { %v12849_v58 = vld [vmem:[#allocation2 + $0x80] sm:$0xff]  ;;  %v12885_v4 = vld [vmem:[#allocation2 + $0x170] sm:$0xff] }
  0x36   : > { %11575 = vmatmul.mubr.msk.f32.gmra.mrb[6].mxu0 %vm285_vm1, %v12813_v49  ;;  %v12855_v60 = vld [vmem:[#allocation2 + $0x90] sm:$0xff]  ;;  %v12865_v62 = vld [vmem:[#allocation2 + $0x98] sm:$0xff]  ;;  %15724 = vst [vmem:[#allocation5_spill] sm:$0xff] %v12885_v4  ;;  %v12911_v14 = vld [vmem:[#allocation2 + $0x22] sm:$0xff] }
  0x37   : > { %11599 = vmatmul.mubr.msk.f32.gmra.mrb[6].mxu1 %vm285_vm1, %v12809_v48  ;;  %11577 = vmatprep.mubr.msk.f32.mxu0 %vm285_vm1, %v12819_v50  ;;  %v12871_v0 = vld [vmem:[#allocation2 + $0xa8] sm:$0xff]  ;;  %v12881_v3 = vld [vmem:[#allocation2 + $0xb0] sm:$0xff]  ;;  %v12893_v9 = vld [vmem:[#allocation2 + $0x19] sm:$0xff]  ;;  %15726 = vst [vmem:[#allocation7_spill] sm:$0xff] %v12911_v14 }
  0x38   : > { %11601 = vmatprep.mubr.msk.f32.mxu1 %vm285_vm1, %v12823_v53  ;;  %v12896_v11 = vld [vmem:[#allocation2 + $0x1a] sm:$0xff]  ;;  %v12921_v18 = vld [vmem:[#allocation2 + $0x32] sm:$0xff]  ;;  %v12945_v21 = vld [vmem:[#allocation2 + $0x4a] sm:$0xff] }
  0x39   : > { %15725 = vst [vmem:[#allocation6_spill] sm:$0xff] %v12896_v11  ;;  %v12919_v17 = vld [vmem:[#allocation2 + $0x21] sm:$0xff]  ;;  %15727 = vst [vmem:[#allocation8_spill] sm:$0xff] %v12921_v18  ;;  %v12925_v19 = vld [vmem:[#allocation2 + $0x31] sm:$0xff] }
  0x3a   : > { %11578 = vmatmul.mubr.msk.f32.gmra.mrb[8].mxu0 %vm285_vm1, %v12833_v54  ;;  %v12943_v20 = vld [vmem:[#allocation2 + $0x39] sm:$0xff]  ;;  %15729 = vst [vmem:[#allocation10_spill] sm:$0xff] %v12945_v21  ;;  %v12947_v22 = vld [vmem:[#allocation2 + $0x49] sm:$0xff]  ;;  %v12959_v24 = vld [vmem:[#allocation2 + $0x51] sm:$0xff] }
  0x3b   : > { %11602 = vmatmul.mubr.msk.f32.gmra.mrb[8].mxu1 %vm285_vm1, %v12837_v55  ;;  %11580 = vmatprep.mubr.msk.f32.mxu0 %vm285_vm1, %v12839_v56  ;;  %v12955_v23 = vld [vmem:[#allocation2 + $0x52] sm:$0xff]  ;;  %v12961_v25 = vld [vmem:[#allocation2 + $0x62] sm:$0xff]  ;;  %v12971_v27 = vld [vmem:[#allocation2 + $0x6a] sm:$0xff] }
  0x3c   : > { %11604 = vmatprep.mubr.msk.f32.mxu1 %vm285_vm1, %v12841_v57  ;;  %15730 = vst [vmem:[#allocation11_spill] sm:$0xff] %v12955_v23  ;;  %15731 = vst [vmem:[#allocation12_spill] sm:$0xff] %v12961_v25  ;;  %v12963_v26 = vld [vmem:[#allocation2 + $0x61] sm:$0xff]  ;;  %v12975_v28 = vld [vmem:[#allocation2 + $0x69] sm:$0xff] }
  0x3d   : > { %15732 = vst [vmem:[#allocation13_spill] sm:$0xff] %v12971_v27  ;;  %v12979_v33 = vld [vmem:[#allocation2 + $0x79] sm:$0xff]  ;;  %v12987_v34 = vld [vmem:[#allocation2 + $0x82] sm:$0xff]  ;;  %v12995_v46 = vld [vmem:[#allocation2 + $0x91] sm:$0xff] }
  0x3e   : > { %11581 = vmatmul.mubr.msk.f32.gmra.mrb[10].mxu0 %vm285_vm1, %v12849_v58  ;;  %15734 = vst [vmem:[#allocation15_spill] sm:$0xff] %v12987_v34  ;;  %v12991_v44 = vld [vmem:[#allocation2 + $0x81] sm:$0xff]  ;;  %v12993_v45 = vld [vmem:[#allocation2 + $0x92] sm:$0xff]  ;;  %v13009_v52 = vld [vmem:[#allocation2 + $0xaa] sm:$0xff] }
  0x3f   : > { %11605 = vmatmul.mubr.msk.f32.gmra.mrb[10].mxu1 %vm285_vm1, %v12853_v59  ;;  %11583 = vmatprep.mubr.msk.f32.mxu0 %vm285_vm1, %v12855_v60  ;;  %15735 = vst [vmem:[#allocation16_spill] sm:$0xff] %v12993_v45  ;;  %v13003_v47 = vld [vmem:[#allocation2 + $0x9a] sm:$0xff]  ;;  %15737 = vst [vmem:[#allocation18_spill] sm:$0xff] %v13009_v52  ;;  %v13035_v16 = vld [vmem:[#allocation2 + $0xca] sm:$0xff] }
  0x40   : > { %11607 = vmatprep.mubr.msk.f32.mxu1 %vm285_vm1, %v12857_v61  ;;  %15736 = vst [vmem:[#allocation17_spill] sm:$0xff] %v13003_v47  ;;  %v13007_v51 = vld [vmem:[#allocation2 + $0x99] sm:$0xff]  ;;  %v13027_v15 = vld [vmem:[#allocation2 + $0xc1] sm:$0xff]  ;;  %15740 = vst [vmem:[#allocation21_spill] sm:$0xff] %v13035_v16 }
  0x41   : > { %v13039_v1 = vld [vmem:[#allocation2 + $0xc9] sm:$0xff] }
  0x42   : > { %11584 = vmatmul.mubr.msk.f32.gmra.mrb[12].mxu0 %vm285_vm1, %v12865_v62 }
  0x43   : > { %11608 = vmatmul.mubr.msk.f32.gmra.mrb[12].mxu1 %vm285_vm1, %v12869_v63  ;;  %11586 = vmatprep.mubr.msk.f32.mxu0 %vm285_vm1, %v12871_v0 }
  0x44   : > { %11610 = vmatprep.mubr.msk.f32.mxu1 %vm285_vm1, %v12873_v2 }
  0x46   : > { %11587 = vmatmul.mubr.msk.f32.gmra.mrb[14].mxu0 %vm285_vm1, %v12881_v3 }
  0x47   : > { %11611 = vmatmul.mubr.msk.f32.gmra.mrb[14].mxu1 %vm285_vm1, %v12885_v4  ;;  %11665 = vmatprep.mubr.msk.f32.mxu0 %vm285_vm1, %v1203_v5  ;;  %v13011_v5 = vld [vmem:[#allocation2 + $0xa9] sm:$0xff]  ;;  %v13159_v4 = vld [vmem:[#allocation2 + $0x172] sm:$0xff] }
  0x48   : > { %11615 = vmatprep.mubr.msk.f32.mxu1 %vm285_vm1, %v749_v6  ;;  %v13019_v6 = vld [vmem:[#allocation2 + $0xb2] sm:$0xff] }
  0x49   : > { %15738 = vst [vmem:[#allocation19_spill] sm:$0xff] %v13019_v6 }
  0x4a   : > { %11666 = vmatmul.mubr.msk.f32.vlgmr.msra.gmra.mrb[16].mxu0 %vm285_vm1, %v1204_v7  ;;  %v13023_v7 = vld [vmem:[#allocation2 + $0xb1] sm:$0xff] }
  0x4b   : > { %11616 = vmatmul.mubr.msk.f32.vlgmr.msra.gmra.mrb[16].mxu1 %vm285_vm1, %v750_v8  ;;  %11764 = vmatpush3.msk.msra.mxu0 %vm487_vm0, %v12703_v10  ;;  %v12939_v10 = vld [vmem:[#allocation2 + $0x3a] sm:$0xff]  ;;  %v13025_v8 = vld [vmem:[#allocation2 + $0xc2] sm:$0xff] }
  0x4c   : > { %11714 = vmatpush3.msk.msra.mxu1 %vm487_vm0, %v12757_v32  ;;  %11618 = vmatprep.mubr.msk.f32.mxu1 %vm285_vm1, %v12893_v9  ;;  %15728 = vst [vmem:[#allocation9_spill] sm:$0xff] %v12939_v10  ;;  %v12977_v32 = vld [vmem:[#allocation2 + $0x7a] sm:$0xff]  ;;  %15739 = vst [vmem:[#allocation20_spill] sm:$0xff] %v13025_v8 }
  0x4d   : > { %11668 = vmatprep.mubr.msk.f32.mxu0 %vm285_vm1, %v12896_v11  ;;  %11813 = vmatprep.subr.msk.mxu1 %vm487_vm0, %v12901_v12  ;;  %15733 = vst [vmem:[#allocation14_spill] sm:$0xff] %v12977_v32  ;;  %v13151_v11 = vld [vmem:[#allocation2 + $0x169] sm:$0xff] }
  0x4e   : > { %11669 = vmatmul.mubr.msk.f32.gmra.mrb[18].mxu0 %vm285_vm1, %v12911_v14  ;;  %11863 = vmatprep.subr.msk.mxu0 %vm487_vm0, %v12906_v13  ;;  %v13123_v14 = vld [vmem:[#allocation2 + $0x151] sm:$0xff] }
  0x4f   : > { %11619 = vmatmul.mubr.msk.f32.gmra.mrb[18].mxu1 %vm285_vm1, %v12919_v17  ;;  %11671 = vmatprep.mubr.msk.f32.mxu0 %vm285_vm1, %v12921_v18  ;;  %v13121_v18 = vld [vmem:[#allocation2 + $0x152] sm:$0xff] }
  0x50   : > { %11621 = vmatprep.mubr.msk.f32.mxu1 %vm285_vm1, %v12925_v19  ;;  %15751 = vst [vmem:[#allocation32_spill] sm:$0xff] %v13121_v18 }
  0x52   : > { %11672 = vmatmul.mubr.msk.f32.gmra.mrb[20].mxu0 %vm285_vm1, %v12939_v10  ;;  %v13107_v10 = vld [vmem:[#allocation2 + $0x139] sm:$0xff] }
  0x53   : > { %11622 = vmatmul.mubr.msk.f32.gmra.mrb[20].mxu1 %vm285_vm1, %v12943_v20  ;;  %11674 = vmatprep.mubr.msk.f32.mxu0 %vm285_vm1, %v12945_v21  ;;  %v13105_v21 = vld [vmem:[#allocation2 + $0x13a] sm:$0xff] }
  0x54   : > { %11624 = vmatprep.mubr.msk.f32.mxu1 %vm285_vm1, %v12947_v22  ;;  %15749 = vst [vmem:[#allocation30_spill] sm:$0xff] %v13105_v21 }
  0x56   : > { %11675 = vmatmul.mubr.msk.f32.gmra.mrb[22].mxu0 %vm285_vm1, %v12955_v23  ;;  %v13091_v23 = vld [vmem:[#allocation2 + $0x121] sm:$0xff] }
  0x57   : > { %11625 = vmatmul.mubr.msk.f32.gmra.mrb[22].mxu1 %vm285_vm1, %v12959_v24  ;;  %11677 = vmatprep.mubr.msk.f32.mxu0 %vm285_vm1, %v12961_v25  ;;  %v13089_v25 = vld [vmem:[#allocation2 + $0x122] sm:$0xff] }
  0x58   : > { %11627 = vmatprep.mubr.msk.f32.mxu1 %vm285_vm1, %v12963_v26  ;;  %15747 = vst [vmem:[#allocation28_spill] sm:$0xff] %v13089_v25 }
  0x5a   : > { %11678 = vmatmul.mubr.msk.f32.gmra.mrb[24].mxu0 %vm285_vm1, %v12971_v27  ;;  %v13075_v27 = vld [vmem:[#allocation2 + $0x109] sm:$0xff] }
  0x5b   : > { %11628 = vmatmul.mubr.msk.f32.gmra.mrb[24].mxu1 %vm285_vm1, %v12975_v28  ;;  %11680 = vmatprep.mubr.msk.f32.mxu0 %vm285_vm1, %v12977_v32  ;;  %v13073_v32 = vld [vmem:[#allocation2 + $0x10a] sm:$0xff] }
  0x5c   : > { %11630 = vmatprep.mubr.msk.f32.mxu1 %vm285_vm1, %v12979_v33  ;;  %15745 = vst [vmem:[#allocation26_spill] sm:$0xff] %v13073_v32 }
  0x5e   : > { %11681 = vmatmul.mubr.msk.f32.gmra.mrb[26].mxu0 %vm285_vm1, %v12987_v34  ;;  %v13059_v34 = vld [vmem:[#allocation2 + $0xf1] sm:$0xff] }
  0x5f   : > { %11631 = vmatmul.mubr.msk.f32.gmra.mrb[26].mxu1 %vm285_vm1, %v12991_v44  ;;  %11683 = vmatprep.mubr.msk.f32.mxu0 %vm285_vm1, %v12993_v45  ;;  %v13057_v45 = vld [vmem:[#allocation2 + $0xf2] sm:$0xff] }
  0x60   : > { %11633 = vmatprep.mubr.msk.f32.mxu1 %vm285_vm1, %v12995_v46  ;;  %15743 = vst [vmem:[#allocation24_spill] sm:$0xff] %v13057_v45 }
  0x62   : > { %11684 = vmatmul.mubr.msk.f32.gmra.mrb[28].mxu0 %vm285_vm1, %v13003_v47  ;;  %v13043_v47 = vld [vmem:[#allocation2 + $0xd9] sm:$0xff] }
  0x63   : > { %11634 = vmatmul.mubr.msk.f32.gmra.mrb[28].mxu1 %vm285_vm1, %v13007_v51  ;;  %11686 = vmatprep.mubr.msk.f32.mxu0 %vm285_vm1, %v13009_v52  ;;  %v13041_v52 = vld [vmem:[#allocation2 + $0xda] sm:$0xff] }
  0x64   : > { %11636 = vmatprep.mubr.msk.f32.mxu1 %vm285_vm1, %v13011_v5  ;;  %15741 = vst [vmem:[#allocation22_spill] sm:$0xff] %v13041_v52 }
  0x66   : > { %11687 = vmatmul.mubr.msk.f32.gmra.mrb[30].mxu0 %vm285_vm1, %v13019_v6  ;;  %v13055_v6 = vld [vmem:[#allocation2 + $0xe1] sm:$0xff] }
  0x67   : > { %11637 = vmatmul.mubr.msk.f32.gmra.mrb[30].mxu1 %vm285_vm1, %v13023_v7  ;;  %11689 = vmatprep.mubr.msk.f32.mxu0 %vm285_vm1, %v13025_v8  ;;  %v13051_v8 = vld [vmem:[#allocation2 + $0xe2] sm:$0xff] }
  0x68   : > { %11639 = vmatprep.mubr.msk.f32.mxu1 %vm285_vm1, %v13027_v15  ;;  %15742 = vst [vmem:[#allocation23_spill] sm:$0xff] %v13051_v8 }
  0x6a   : > { %11690 = vmatmul.mubr.msk.f32.gmra.mrb[32].mxu0 %vm285_vm1, %v13035_v16  ;;  %v13071_v16 = vld [vmem:[#allocation2 + $0xf9] sm:$0xff] }
  0x6b   : > { %11640 = vmatmul.mubr.msk.f32.gmra.mrb[32].mxu1 %vm285_vm1, %v13039_v1  ;;  %11692 = vmatprep.mubr.msk.f32.mxu0 %vm285_vm1, %v13041_v52  ;;  %v13067_v52 = vld [vmem:[#allocation2 + $0xfa] sm:$0xff] }
  0x6c   : > { %11642 = vmatprep.mubr.msk.f32.mxu1 %vm285_vm1, %v13043_v47  ;;  %15744 = vst [vmem:[#allocation25_spill] sm:$0xff] %v13067_v52 }
  0x6e   : > { %11693 = vmatmul.mubr.msk.f32.gmra.mrb[34].mxu0 %vm285_vm1, %v13051_v8  ;;  %v13087_v8 = vld [vmem:[#allocation2 + $0x111] sm:$0xff] }
  0x6f   : > { %11643 = vmatmul.mubr.msk.f32.gmra.mrb[34].mxu1 %vm285_vm1, %v13055_v6  ;;  %11695 = vmatprep.mubr.msk.f32.mxu0 %vm285_vm1, %v13057_v45  ;;  %v13083_v45 = vld [vmem:[#allocation2 + $0x112] sm:$0xff] }
  0x70   : > { %11645 = vmatprep.mubr.msk.f32.mxu1 %vm285_vm1, %v13059_v34  ;;  %15746 = vst [vmem:[#allocation27_spill] sm:$0xff] %v13083_v45 }
  0x72   : > { %11696 = vmatmul.mubr.msk.f32.gmra.mrb[36].mxu0 %vm285_vm1, %v13067_v52  ;;  %v13103_v52 = vld [vmem:[#allocation2 + $0x129] sm:$0xff] }
  0x73   : > { %11646 = vmatmul.mubr.msk.f32.gmra.mrb[36].mxu1 %vm285_vm1, %v13071_v16  ;;  %11698 = vmatprep.mubr.msk.f32.mxu0 %vm285_vm1, %v13073_v32  ;;  %v13099_v32 = vld [vmem:[#allocation2 + $0x12a] sm:$0xff] }
  0x74   : > { %11648 = vmatprep.mubr.msk.f32.mxu1 %vm285_vm1, %v13075_v27  ;;  %15748 = vst [vmem:[#allocation29_spill] sm:$0xff] %v13099_v32 }
  0x76   : > { %11699 = vmatmul.mubr.msk.f32.gmra.mrb[38].mxu0 %vm285_vm1, %v13083_v45  ;;  %v13119_v45 = vld [vmem:[#allocation2 + $0x141] sm:$0xff] }
  0x77   : > { %11649 = vmatmul.mubr.msk.f32.gmra.mrb[38].mxu1 %vm285_vm1, %v13087_v8  ;;  %11701 = vmatprep.mubr.msk.f32.mxu0 %vm285_vm1, %v13089_v25  ;;  %v13115_v25 = vld [vmem:[#allocation2 + $0x142] sm:$0xff] }
  0x78   : > { %11651 = vmatprep.mubr.msk.f32.mxu1 %vm285_vm1, %v13091_v23  ;;  %15750 = vst [vmem:[#allocation31_spill] sm:$0xff] %v13115_v25 }
  0x7a   : > { %11702 = vmatmul.mubr.msk.f32.gmra.mrb[40].mxu0 %vm285_vm1, %v13099_v32  ;;  %v15752_v32 = vmov 0.0  }
  0x7b   : > { %11652 = vmatmul.mubr.msk.f32.gmra.mrb[40].mxu1 %vm285_vm1, %v13103_v52  ;;  %11704 = vmatprep.mubr.msk.f32.mxu0 %vm285_vm1, %v13105_v21  ;;  %v13131_v21 = vld [vmem:[#allocation2 + $0x15a] sm:$0xff]  ;;  %4382 = vst.msk [vmem:[#allocation3] sm:$0xff] %vm716_vm3, %v15752_v32  ;;  %4383 = vst.msk [vmem:[#allocation3 + $0x8] sm:$0xff] %vm716_vm3, %v15752_v32 }
  0x7c   : > { %11654 = vmatprep.mubr.msk.f32.mxu1 %vm285_vm1, %v13107_v10  ;;  %4384 = vst.msk [vmem:[#allocation3 + $0x10] sm:$0xff] %vm716_vm3, %v15752_v32  ;;  %4386 = vst.msk [vmem:[#allocation3 + $0x198] sm:$0xff] %vm716_vm3, %v15752_v32 }
  0x7d   : > { %4387 = vst.msk [vmem:[#allocation3 + $0x1a0] sm:$0xff] %vm716_vm3, %v15752_v32  ;;  %4388 = vst.msk [vmem:[#allocation3 + $0x1a8] sm:$0xff] %vm716_vm3, %v15752_v32  ;;  %v13163_v32 = vld [vmem:[#allocation2 + $0x171] sm:$0xff] }
  0x7e   : > { %11705 = vmatmul.mubr.msk.f32.gmra.mrb[42].mxu0 %vm285_vm1, %v13115_v25  ;;  %v13149_v25 = vld [vmem:[#allocation2 + $0x16a] sm:$0xff] }
  0x7f   : > { %11655 = vmatmul.mubr.msk.f32.gmra.mrb[42].mxu1 %vm285_vm1, %v13119_v45  ;;  %11707 = vmatprep.mubr.msk.f32.mxu0 %vm285_vm1, %v13121_v18  ;;  %v13147_v18 = vld [vmem:[#allocation2 + $0x159] sm:$0xff]  ;;  %15753 = vst [vmem:[#allocation33_spill] sm:$0xff] %v13149_v25 }
  0x80   : > { %11657 = vmatprep.mubr.msk.f32.mxu1 %vm285_vm1, %v13123_v14 }
  0x82   : > { %11708 = vmatmul.mubr.msk.f32.gmra.mrb[44].mxu0 %vm285_vm1, %v13131_v21 }
  0x83   : > { %11658 = vmatmul.mubr.msk.f32.gmra.mrb[44].mxu1 %vm285_vm1, %v13147_v18  ;;  %11710 = vmatprep.mubr.msk.f32.mxu0 %vm285_vm1, %v13149_v25  ;;  %v13178_v25 = vld [vmem:[%s15643_s1 + $0x1c] sm:$0xf] }
  0x84   : > { %11660 = vmatprep.mubr.msk.f32.mxu1 %vm285_vm1, %v13151_v11 }
  0x86   : > { %11711 = vmatmul.mubr.msk.f32.gmra.mrb[46].mxu0 %vm285_vm1, %v13159_v4 }
  0x87   : > { %11661 = vmatmul.mubr.msk.f32.gmra.mrb[46].mxu1 %vm285_vm1, %v13163_v32  ;;  %11765 = vmatprep.mubr.msk.f32.mxu0 %vm285_vm1, %v12893_v9  ;;  %v13187_v9 = vld [vmem:[%s15643_s1 + $0x20] sm:$0xf] }
  0x88   : > { %11715 = vmatprep.mubr.msk.f32.mxu1 %vm285_vm1, %v12769_v36  ;;  %v13303_v36 = vld [vmem:[#allocation2 + $0x181] sm:$0xff] }
  0x8a   : > { %11766 = vmatmul.mubr.msk.f32.vlgmr.msra.gmra.mrb[48].mxu0 %vm285_vm1, %v12919_v17  ;;  %v15756_v17 = vld [vmem:[#allocation7_spill] sm:$0xff] }
  0x8b   : > { %11716 = vmatmul.mubr.msk.f32.vlgmr.msra.gmra.mrb[48].mxu1 %vm285_vm1, %v12771_v37  ;;  %11864 = vmatpush3.msk.msra.mxu0 %vm487_vm0, %v12906_v13  ;;  %v13305_v37 = vld [vmem:[#allocation2 + $0x180] sm:$0xff]  ;;  %v13313_v13 = vld [vmem:[#allocation2 + $0x189] sm:$0xff] }
  0x8c   : > { %11814 = vmatpush3.msk.msra.mxu1 %vm487_vm0, %v12901_v12  ;;  %11718 = vmatprep.mubr.msk.f32.mxu1 %vm285_vm1, %v12779_v39  ;;  %v15754_v12 = vld [vmem:[#allocation5_spill] sm:$0xff] }
  0x8d   : > { %11768 = vmatprep.mubr.msk.f32.mxu0 %vm285_vm1, %v12925_v19  ;;  %11913 = vmatprep.subr.msk.mxu1 %vm487_vm0, %v13178_v25 }
  0x8e   : > { %11769 = vmatmul.mubr.msk.f32.gmra.mrb[50].mxu0 %vm285_vm1, %v12943_v20  ;;  %11963 = vmatprep.subr.msk.mxu0 %vm487_vm0, %v13187_v9 }
  0x8f   : > { %11719 = vmatmul.mubr.msk.f32.gmra.mrb[50].mxu1 %vm285_vm1, %v12789_v40  ;;  %11771 = vmatprep.mubr.msk.f32.mxu0 %vm285_vm1, %v12947_v22 }
  0x90   : > { %11721 = vmatprep.mubr.msk.f32.mxu1 %vm285_vm1, %v12795_v42 }
  0x92   : > { %11772 = vmatmul.mubr.msk.f32.gmra.mrb[52].mxu0 %vm285_vm1, %v12959_v24 }
  0x93   : > { %11722 = vmatmul.mubr.msk.f32.gmra.mrb[52].mxu1 %vm285_vm1, %v12813_v49  ;;  %11774 = vmatprep.mubr.msk.f32.mxu0 %vm285_vm1, %v12963_v26 }
  0x94   : > { %11724 = vmatprep.mubr.msk.f32.mxu1 %vm285_vm1, %v12819_v50 }
  0x96   : > { %11775 = vmatmul.mubr.msk.f32.gmra.mrb[54].mxu0 %vm285_vm1, %v12975_v28 }
  0x97   : > { %11725 = vmatmul.mubr.msk.f32.gmra.mrb[54].mxu1 %vm285_vm1, %v12833_v54  ;;  %11777 = vmatprep.mubr.msk.f32.mxu0 %vm285_vm1, %v12979_v33 }
  0x98   : > { %11727 = vmatprep.mubr.msk.f32.mxu1 %vm285_vm1, %v12839_v56 }
  0x9a   : > { %11778 = vmatmul.mubr.msk.f32.gmra.mrb[56].mxu0 %vm285_vm1, %v12991_v44 }
  0x9b   : > { %11728 = vmatmul.mubr.msk.f32.gmra.mrb[56].mxu1 %vm285_vm1, %v12849_v58  ;;  %11780 = vmatprep.mubr.msk.f32.mxu0 %vm285_vm1, %v12995_v46 }
  0x9c   : > { %11730 = vmatprep.mubr.msk.f32.mxu1 %vm285_vm1, %v12855_v60 }
  0x9e   : > { %11781 = vmatmul.mubr.msk.f32.gmra.mrb[58].mxu0 %vm285_vm1, %v13007_v51 }
  0x9f   : > { %11731 = vmatmul.mubr.msk.f32.gmra.mrb[58].mxu1 %vm285_vm1, %v12865_v62  ;;  %11783 = vmatprep.mubr.msk.f32.mxu0 %vm285_vm1, %v13011_v5 }
  0xa0   : > { %11733 = vmatprep.mubr.msk.f32.mxu1 %vm285_vm1, %v12871_v0 }
  0xa2   : > { %11784 = vmatmul.mubr.msk.f32.gmra.mrb[60].mxu0 %vm285_vm1, %v13023_v7 }
  0xa3   : > { %11734 = vmatmul.mubr.msk.f32.gmra.mrb[60].mxu1 %vm285_vm1, %v12881_v3  ;;  %11786 = vmatprep.mubr.msk.f32.mxu0 %vm285_vm1, %v13027_v15 }
  0xa4   : > { %11736 = vmatprep.mubr.msk.f32.mxu1 %vm285_vm1, %v12743_v29 }
  0xa6   : > { %11787 = vmatmul.mubr.msk.f32.gmra.mrb[62].mxu0 %vm285_vm1, %v13039_v1 }
  0xa7   : > { %11737 = vmatmul.mubr.msk.f32.gmra.mrb[62].mxu1 %vm285_vm1, %v12745_v30  ;;  %11789 = vmatprep.mubr.msk.f32.mxu0 %vm285_vm1, %v13043_v47 }
  0xa8   : > { %11739 = vmatprep.mubr.msk.f32.mxu1 %vm285_vm1, %v12747_v31 }
  0xaa   : > { %11790 = vmatmul.mubr.msk.f32.gmra.mrb[64].mxu0 %vm285_vm1, %v13055_v6 }
  0xab   : > { %11740 = vmatmul.mubr.msk.f32.gmra.mrb[64].mxu1 %vm285_vm1, %v12767_v35  ;;  %11792 = vmatprep.mubr.msk.f32.mxu0 %vm285_vm1, %v13059_v34 }
  0xac   : > { %11742 = vmatprep.mubr.msk.f32.mxu1 %vm285_vm1, %v12775_v38 }
  0xae   : > { %11793 = vmatmul.mubr.msk.f32.gmra.mrb[66].mxu0 %vm285_vm1, %v13071_v16 }
  0xaf   : > { %11743 = vmatmul.mubr.msk.f32.gmra.mrb[66].mxu1 %vm285_vm1, %v12793_v41  ;;  %11795 = vmatprep.mubr.msk.f32.mxu0 %vm285_vm1, %v13075_v27 }
  0xb0   : > { %11745 = vmatprep.mubr.msk.f32.mxu1 %vm285_vm1, %v12797_v43 }
  0xb2   : > { %11796 = vmatmul.mubr.msk.f32.gmra.mrb[68].mxu0 %vm285_vm1, %v13087_v8 }
  0xb3   : > { %11746 = vmatmul.mubr.msk.f32.gmra.mrb[68].mxu1 %vm285_vm1, %v12809_v48  ;;  %11798 = vmatprep.mubr.msk.f32.mxu0 %vm285_vm1, %v13091_v23 }
  0xb4   : > { %11748 = vmatprep.mubr.msk.f32.mxu1 %vm285_vm1, %v12823_v53 }
  0xb6   : > { %11799 = vmatmul.mubr.msk.f32.gmra.mrb[70].mxu0 %vm285_vm1, %v13103_v52 }
  0xb7   : > { %11749 = vmatmul.mubr.msk.f32.gmra.mrb[70].mxu1 %vm285_vm1, %v12837_v55  ;;  %11801 = vmatprep.mubr.msk.f32.mxu0 %vm285_vm1, %v13107_v10  ;;  %v15760_v10 = vld [vmem:[#allocation11_spill] sm:$0xff] }
  0xb8   : > { %11751 = vmatprep.mubr.msk.f32.mxu1 %vm285_vm1, %v12841_v57 }
  0xba   : > { %11802 = vmatmul.mubr.msk.f32.gmra.mrb[72].mxu0 %vm285_vm1, %v13119_v45 }
  0xbb   : > { %11752 = vmatmul.mubr.msk.f32.gmra.mrb[72].mxu1 %vm285_vm1, %v12853_v59  ;;  %11804 = vmatprep.mubr.msk.f32.mxu0 %vm285_vm1, %v13123_v14  ;;  %v15755_v14 = vld [vmem:[#allocation6_spill] sm:$0xff] }
  0xbc   : > { %11754 = vmatprep.mubr.msk.f32.mxu1 %vm285_vm1, %v12857_v61 }
  0xbe   : > { %11805 = vmatmul.mubr.msk.f32.gmra.mrb[74].mxu0 %vm285_vm1, %v13147_v18  ;;  %v15757_v18 = vld [vmem:[#allocation8_spill] sm:$0xff] }
  0xbf   : > { %11755 = vmatmul.mubr.msk.f32.gmra.mrb[74].mxu1 %vm285_vm1, %v12869_v63  ;;  %11807 = vmatprep.mubr.msk.f32.mxu0 %vm285_vm1, %v13151_v11  ;;  %v13317_v11 = vld [vmem:[#allocation2 + $0x188] sm:$0xff] }
  0xc0   : > { %11757 = vmatprep.mubr.msk.f32.mxu1 %vm285_vm1, %v12873_v2 }
  0xc2   : > { %11808 = vmatmul.mubr.msk.f32.gmra.mrb[76].mxu0 %vm285_vm1, %v13163_v32  ;;  %v13447_v32 = vld [vmem:[#allocation2 + $0x182] sm:$0xff] }
  0xc3   : > { %11758 = vmatmul.mubr.msk.f32.gmra.mrb[76].mxu1 %vm285_vm1, %v15754_v12  ;;  %11810 = vmatprep.mubr.msk.f32.mxu0 %vm285_vm1, %v13303_v36 }
  0xc4   : > { %11760 = vmatprep.mubr.msk.f32.mxu1 %vm285_vm1, %v13305_v37 }
  0xc6   : > { %11811 = vmatmul.mubr.msk.f32.gmra.mrb[78].mxu0 %vm285_vm1, %v13313_v13 }
  0xc7   : > { %11761 = vmatmul.mubr.msk.f32.gmra.mrb[78].mxu1 %vm285_vm1, %v13317_v11  ;;  %11865 = vmatprep.mubr.msk.f32.mxu0 %vm285_vm1, %v12779_v39  ;;  %v15758_v39 = vld [vmem:[#allocation9_spill] sm:$0xff] }
  0xc8   : > { %11815 = vmatprep.mubr.msk.f32.mxu1 %vm285_vm1, %v15755_v14 }
  0xca   : > { %11866 = vmatmul.mubr.msk.f32.vlgmr.msra.gmra.mrb[80].mxu0 %vm285_vm1, %v12789_v40  ;;  %v15759_v40 = vld [vmem:[#allocation10_spill] sm:$0xff] }
  0xcb   : > { %11816 = vmatmul.mubr.msk.f32.vlgmr.msra.gmra.mrb[80].mxu1 %vm285_vm1, %v15756_v17  ;;  %11964 = vmatpush3.msk.msra.mxu0 %vm487_vm0, %v13187_v9  ;;  %v3051_v9 = vld [vmem:[#allocation2 + $0x1a0] sm:$0xff] }
  0xcc   : > { %11914 = vmatpush3.msk.msra.mxu1 %vm487_vm0, %v13178_v25  ;;  %11818 = vmatprep.mubr.msk.f32.mxu1 %vm285_vm1, %v15757_v18 }
  0xcd   : > { %11868 = vmatprep.mubr.msk.f32.mxu0 %vm285_vm1, %v12795_v42  ;;  %v15761_v42 = vld [vmem:[#allocation12_spill] sm:$0xff] }
  0xce   : > { %11869 = vmatmul.mubr.msk.f32.gmra.mrb[82].mxu0 %vm285_vm1, %v12813_v49  ;;  %v15762_v49 = vld [vmem:[#allocation13_spill] sm:$0xff] }
  0xcf   : > { %11819 = vmatmul.mubr.msk.f32.gmra.mrb[82].mxu1 %vm285_vm1, %v15758_v39  ;;  %11871 = vmatprep.mubr.msk.f32.mxu0 %vm285_vm1, %v12819_v50  ;;  %v15763_v50 = vld [vmem:[#allocation14_spill] sm:$0xff] }
  0xd0   : > { %11821 = vmatprep.mubr.msk.f32.mxu1 %vm285_vm1, %v15759_v40 }
  0xd2   : > { %11872 = vmatmul.mubr.msk.f32.gmra.mrb[84].mxu0 %vm285_vm1, %v12833_v54  ;;  %v15764_v54 = vld [vmem:[#allocation15_spill] sm:$0xff] }
  0xd3   : > { %11822 = vmatmul.mubr.msk.f32.gmra.mrb[84].mxu1 %vm285_vm1, %v15760_v10  ;;  %11874 = vmatprep.mubr.msk.f32.mxu0 %vm285_vm1, %v12839_v56  ;;  %v15765_v56 = vld [vmem:[#allocation16_spill] sm:$0xff] }
  0xd4   : > { %11824 = vmatprep.mubr.msk.f32.mxu1 %vm285_vm1, %v15761_v42 }
  0xd6   : > { %11875 = vmatmul.mubr.msk.f32.gmra.mrb[86].mxu0 %vm285_vm1, %v12849_v58  ;;  %v15766_v58 = vld [vmem:[#allocation17_spill] sm:$0xff] }
  0xd7   : > { %11825 = vmatmul.mubr.msk.f32.gmra.mrb[86].mxu1 %vm285_vm1, %v15762_v49  ;;  %11877 = vmatprep.mubr.msk.f32.mxu0 %vm285_vm1, %v12855_v60  ;;  %v15767_v60 = vld [vmem:[#allocation18_spill] sm:$0xff] }
  0xd8   : > { %11827 = vmatprep.mubr.msk.f32.mxu1 %vm285_vm1, %v15763_v50 }
  0xda   : > { %11878 = vmatmul.mubr.msk.f32.gmra.mrb[88].mxu0 %vm285_vm1, %v12865_v62  ;;  %v15768_v62 = vld [vmem:[#allocation19_spill] sm:$0xff] }
  0xdb   : > { %11828 = vmatmul.mubr.msk.f32.gmra.mrb[88].mxu1 %vm285_vm1, %v15764_v54  ;;  %11880 = vmatprep.mubr.msk.f32.mxu0 %vm285_vm1, %v12871_v0  ;;  %v15769_v0 = vld [vmem:[#allocation20_spill] sm:$0xff] }
  0xdc   : > { %11830 = vmatprep.mubr.msk.f32.mxu1 %vm285_vm1, %v15765_v56 }
  0xde   : > { %11881 = vmatmul.mubr.msk.f32.gmra.mrb[90].mxu0 %vm285_vm1, %v12881_v3  ;;  %v15770_v3 = vld [vmem:[#allocation21_spill] sm:$0xff] }
  0xdf   : > { %11831 = vmatmul.mubr.msk.f32.gmra.mrb[90].mxu1 %vm285_vm1, %v15766_v58  ;;  %11883 = vmatprep.mubr.msk.f32.mxu0 %vm285_vm1, %v12743_v29  ;;  %v15771_v29 = vld [vmem:[#allocation22_spill] sm:$0xff] }
  0xe0   : > { %11833 = vmatprep.mubr.msk.f32.mxu1 %vm285_vm1, %v15767_v60 }
  0xe2   : > { %11884 = vmatmul.mubr.msk.f32.gmra.mrb[92].mxu0 %vm285_vm1, %v12745_v30  ;;  %v15772_v30 = vld [vmem:[#allocation23_spill] sm:$0xff] }
  0xe3   : > { %11834 = vmatmul.mubr.msk.f32.gmra.mrb[92].mxu1 %vm285_vm1, %v15768_v62  ;;  %11886 = vmatprep.mubr.msk.f32.mxu0 %vm285_vm1, %v12747_v31  ;;  %v15773_v31 = vld [vmem:[#allocation24_spill] sm:$0xff] }
  0xe4   : > { %11836 = vmatprep.mubr.msk.f32.mxu1 %vm285_vm1, %v15769_v0 }
  0xe6   : > { %11887 = vmatmul.mubr.msk.f32.gmra.mrb[94].mxu0 %vm285_vm1, %v12767_v35  ;;  %v15774_v35 = vld [vmem:[#allocation25_spill] sm:$0xff] }
  0xe7   : > { %11837 = vmatmul.mubr.msk.f32.gmra.mrb[94].mxu1 %vm285_vm1, %v15770_v3  ;;  %11889 = vmatprep.mubr.msk.f32.mxu0 %vm285_vm1, %v12775_v38  ;;  %v15775_v38 = vld [vmem:[#allocation26_spill] sm:$0xff] }
  0xe8   : > { %11839 = vmatprep.mubr.msk.f32.mxu1 %vm285_vm1, %v15771_v29 }
  0xea   : > { %11890 = vmatmul.mubr.msk.f32.gmra.mrb[96].mxu0 %vm285_vm1, %v12793_v41  ;;  %v15776_v41 = vld [vmem:[#allocation27_spill] sm:$0xff] }
  0xeb   : > { %11840 = vmatmul.mubr.msk.f32.gmra.mrb[96].mxu1 %vm285_vm1, %v15772_v30  ;;  %11892 = vmatprep.mubr.msk.f32.mxu0 %vm285_vm1, %v12797_v43  ;;  %v15777_v43 = vld [vmem:[#allocation28_spill] sm:$0xff] }
  0xec   : > { %11842 = vmatprep.mubr.msk.f32.mxu1 %vm285_vm1, %v15773_v31 }
  0xee   : > { %11893 = vmatmul.mubr.msk.f32.gmra.mrb[98].mxu0 %vm285_vm1, %v12809_v48  ;;  %v15778_v48 = vld [vmem:[#allocation29_spill] sm:$0xff] }
  0xef   : > { %11843 = vmatmul.mubr.msk.f32.gmra.mrb[98].mxu1 %vm285_vm1, %v15774_v35  ;;  %11895 = vmatprep.mubr.msk.f32.mxu0 %vm285_vm1, %v12823_v53  ;;  %v15779_v53 = vld [vmem:[#allocation30_spill] sm:$0xff] }
  0xf0   : > { %11845 = vmatprep.mubr.msk.f32.mxu1 %vm285_vm1, %v15775_v38 }
  0xf2   : > { %11896 = vmatmul.mubr.msk.f32.gmra.mrb[100].mxu0 %vm285_vm1, %v12837_v55  ;;  %v11567_v55 = vpop.f32.mrb[0].mxu0 }
  0xf3   : > { %11846 = vmatmul.mubr.msk.f32.gmra.mrb[100].mxu1 %vm285_vm1, %v15776_v41  ;;  %11898 = vmatprep.mubr.msk.f32.mxu0 %vm285_vm1, %v12841_v57  ;;  %718 = vst.msk [vmem:[#allocation4 + $0x8] sm:$0xff] %vm716_vm3, %v11567_v55  ;;  %v557_v23 = vpop.f32.mrb[1].mxu0  ;;  %v15780_v57 = vld [vmem:[#allocation31_spill] sm:$0xff] }
  0xf4   : > { %11848 = vmatprep.mubr.msk.f32.mxu1 %vm285_vm1, %v15777_v43  ;;  %717 = vst.msk [vmem:[#allocation4] sm:$0xff] %vm716_vm3, %v557_v23 }
  0xf6   : > { %11899 = vmatmul.mubr.msk.f32.gmra.mrb[102].mxu0 %vm285_vm1, %v12853_v59  ;;  %v15781_v59 = vld [vmem:[#allocation32_spill] sm:$0xff] }
  0xf7   : > { %11849 = vmatmul.mubr.msk.f32.gmra.mrb[102].mxu1 %vm285_vm1, %v15778_v48  ;;  %11901 = vmatprep.mubr.msk.f32.mxu0 %vm285_vm1, %v12857_v61 }
  0xf8   : > { %11851 = vmatprep.mubr.msk.f32.mxu1 %vm285_vm1, %v15779_v53 }
  0xfa   : > { %11902 = vmatmul.mubr.msk.f32.gmra.mrb[104].mxu0 %vm285_vm1, %v12869_v63  ;;  %v15782_v63 = vld [vmem:[#allocation33_spill] sm:$0xff]  ;;  %v1108_v35 = vld [vmem:[#allocation4 + $0x8] sm:$0xff] }
  0xfb   : > { %11852 = vmatmul.mubr.msk.f32.gmra.mrb[104].mxu1 %vm285_vm1, %v15780_v57  ;;  %11904 = vmatprep.mubr.msk.f32.mxu0 %vm285_vm1, %v12873_v2  ;;  %v3050_v2 = vld [vmem:[#allocation2 + $0x198] sm:$0xff] }
  0xfc   : > { %11854 = vmatprep.mubr.msk.f32.mxu1 %vm285_vm1, %v15781_v59  ;;  %v3944_v57 = vld [vmem:[#allocation2 + $0xf2] sm:$0xff] }
  0xfe   : > { %v11591_v61 = vpop.f32.mrb[0].mxu1  ;;  %11905 = vmatmul.mubr.msk.f32.gmra.mrb[106].mxu0 %vm285_vm1, %v15754_v12 }
  0xff   : > { %734 = vst.msk [vmem:[#allocation4 + $0x88] sm:$0xff] %vm716_vm3, %v11591_v61  ;;  %v637_v25 = vpop.f32.mrb[1].mxu1  ;;  %11855 = vmatmul.mubr.msk.f32.gmra.mrb[106].mxu1 %vm285_vm1, %v13131_v21  ;;  %11907 = vmatprep.mubr.msk.f32.mxu0 %vm285_vm1, %v13305_v37  ;;  %v13460_v37 = vld [vmem:[#allocation2 + $0x18a] sm:$0xff] }
 0x100   : > { %733 = vst.msk [vmem:[#allocation4 + $0x80] sm:$0xff] %vm716_vm3, %v637_v25  ;;  %11857 = vmatprep.mubr.msk.f32.mxu1 %vm285_vm1, %v15782_v63 }
 0x101   : > { %v11570_v45 = vpop.f32.mrb[2].mxu0 }
 0x102   : > { %v11594_v52 = vpop.f32.mrb[2].mxu1  ;;  %720 = vst.msk [vmem:[#allocation4 + $0x18] sm:$0xff] %vm716_vm3, %v11570_v45  ;;  %v567_v8 = vpop.f32.mrb[3].mxu0  ;;  %11908 = vmatmul.mubr.msk.f32.gmra.mrb[108].mxu0 %vm285_vm1, %v13317_v11 }
 0x103   : > { %736 = vst.msk [vmem:[#allocation4 + $0x98] sm:$0xff] %vm716_vm3, %v11594_v52  ;;  %v647_v21 = vpop.f32.mrb[3].mxu1  ;;  %11858 = vmatmul.mubr.msk.f32.gmra.mrb[108].mxu1 %vm285_vm1, %v13159_v4  ;;  %719 = vst.msk [vmem:[#allocation4 + $0x10] sm:$0xff] %vm716_vm3, %v567_v8  ;;  %11910 = vmatprep.mubr.msk.f32.mxu0 %vm285_vm1, %v3050_v2  ;;  %v3946_v8 = vld [vmem:[#allocation2 + $0x10a] sm:$0xff] }
 0x104   : > { %735 = vst.msk [vmem:[#allocation4 + $0x90] sm:$0xff] %vm716_vm3, %v647_v21  ;;  %11860 = vmatprep.mubr.msk.f32.mxu1 %vm285_vm1, %v13447_v32 }
 0x105   : > { %v11573_v12 = vpop.f32.mrb[4].mxu0 }
 0x106   : > { %v11597_v11 = vpop.f32.mrb[4].mxu1  ;;  %722 = vst.msk [vmem:[#allocation4 + $0x28] sm:$0xff] %vm716_vm3, %v11573_v12  ;;  %v577_v14 = vpop.f32.mrb[5].mxu0  ;;  %11911 = vmatmul.mubr.msk.f32.gmra.mrb[110].mxu0 %vm285_vm1, %v3051_v9 }
 0x107   : > { %738 = vst.msk [vmem:[#allocation4 + $0xa8] sm:$0xff] %vm716_vm3, %v11597_v11  ;;  %v657_v4 = vpop.f32.mrb[5].mxu1  ;;  %11861 = vmatmul.mubr.msk.f32.gmra.mrb[110].mxu1 %vm285_vm1, %v13460_v37  ;;  %721 = vst.msk [vmem:[#allocation4 + $0x20] sm:$0xff] %vm716_vm3, %v577_v14  ;;  %11965 = vmatprep.mubr.msk.f32.mxu0 %vm285_vm1, %v15757_v18 }
 0x108   : > { %737 = vst.msk [vmem:[#allocation4 + $0xa0] sm:$0xff] %vm716_vm3, %v657_v4  ;;  %11915 = vmatprep.mubr.msk.f32.mxu1 %vm285_vm1, %v12925_v19 }
 0x109   : > { %v11576_v17 = vpop.f32.mrb[6].mxu0  ;;  %v1110_v48 = vld [vmem:[#allocation4 + $0x18] sm:$0xff] }
 0x10a   : > { %v11600_v29 = vpop.f32.mrb[6].mxu1  ;;  %724 = vst.msk [vmem:[#allocation4 + $0x38] sm:$0xff] %vm716_vm3, %v11576_v17  ;;  %v587_v30 = vpop.f32.mrb[7].mxu0  ;;  %11966 = vmatmul.mubr.msk.f32.vlgmr.msra.gmra.mrb[112].mxu0 %vm285_vm1, %v15758_v39  ;;  %v1109_v23 = vld [vmem:[#allocation4 + $0x10] sm:$0xff] }
 0x10b   : > { %740 = vst.msk [vmem:[#allocation4 + $0xb8] sm:$0xff] %vm716_vm3, %v11600_v29  ;;  %v667_v31 = vpop.f32.mrb[7].mxu1  ;;  %11916 = vmatmul.mubr.msk.f32.vlgmr.msra.gmra.mrb[112].mxu1 %vm285_vm1, %v12943_v20  ;;  %723 = vst.msk [vmem:[#allocation4 + $0x30] sm:$0xff] %vm716_vm3, %v587_v30  ;;  %11968 = vmatprep.mubr.msk.f32.mxu0 %vm285_vm1, %v15759_v40  ;;  %v3947_v30 = vld [vmem:[#allocation2 + $0x112] sm:$0xff] }
 0x10c   : > { %739 = vst.msk [vmem:[#allocation4 + $0xb0] sm:$0xff] %vm716_vm3, %v667_v31  ;;  %11918 = vmatprep.mubr.msk.f32.mxu1 %vm285_vm1, %v12947_v22 }
 0x10d   : > { %v11579_v19 = vpop.f32.mrb[8].mxu0  ;;  %v1112_v61 = vld [vmem:[#allocation4 + $0x28] sm:$0xff] }
 0x10e   : > { %v11603_v18 = vpop.f32.mrb[8].mxu1  ;;  %726 = vst.msk [vmem:[#allocation4 + $0x48] sm:$0xff] %vm716_vm3, %v11579_v19  ;;  %v597_v39 = vpop.f32.mrb[9].mxu0  ;;  %11969 = vmatmul.mubr.msk.f32.gmra.mrb[114].mxu0 %vm285_vm1, %v15760_v10  ;;  %v1111_v2 = vld [vmem:[#allocation4 + $0x20] sm:$0xff] }
 0x10f   : > { %742 = vst.msk [vmem:[#allocation4 + $0xc8] sm:$0xff] %vm716_vm3, %v11603_v18  ;;  %v677_v20 = vpop.f32.mrb[9].mxu1  ;;  %11919 = vmatmul.mubr.msk.f32.gmra.mrb[114].mxu1 %vm285_vm1, %v12959_v24  ;;  %725 = vst.msk [vmem:[#allocation4 + $0x40] sm:$0xff] %vm716_vm3, %v597_v39  ;;  %11971 = vmatprep.mubr.msk.f32.mxu0 %vm285_vm1, %v15761_v42  ;;  %v3493_v18 = vld [vmem:[#allocation2 + $0x111] sm:$0xff]  ;;  %v3948_v39 = vld [vmem:[#allocation2 + $0x122] sm:$0xff] }
 0x110   : > { %741 = vst.msk [vmem:[#allocation4 + $0xc0] sm:$0xff] %vm716_vm3, %v677_v20  ;;  %11921 = vmatprep.mubr.msk.f32.mxu1 %vm285_vm1, %v12963_v26 }
 0x111   : > { %v11582_v22 = vpop.f32.mrb[10].mxu0 }
 0x112   : > { %v11606_v40 = vpop.f32.mrb[10].mxu1  ;;  %728 = vst.msk [vmem:[#allocation4 + $0x58] sm:$0xff] %vm716_vm3, %v11582_v22  ;;  %v607_v10 = vpop.f32.mrb[11].mxu0  ;;  %11972 = vmatmul.mubr.msk.f32.gmra.mrb[116].mxu0 %vm285_vm1, %v15762_v49  ;;  %v1113_v29 = vld [vmem:[#allocation4 + $0x30] sm:$0xff] }
 0x113   : > { %744 = vst.msk [vmem:[#allocation4 + $0xd8] sm:$0xff] %vm716_vm3, %v11606_v40  ;;  %v687_v24 = vpop.f32.mrb[11].mxu1  ;;  %11922 = vmatmul.mubr.msk.f32.gmra.mrb[116].mxu1 %vm285_vm1, %v12975_v28  ;;  %727 = vst.msk [vmem:[#allocation4 + $0x50] sm:$0xff] %vm716_vm3, %v607_v10  ;;  %11974 = vmatprep.mubr.msk.f32.mxu0 %vm285_vm1, %v15763_v50  ;;  %v3494_v40 = vld [vmem:[#allocation2 + $0x121] sm:$0xff] }
 0x114   : > { %743 = vst.msk [vmem:[#allocation4 + $0xd0] sm:$0xff] %vm716_vm3, %v687_v24  ;;  %11924 = vmatprep.mubr.msk.f32.mxu1 %vm285_vm1, %v12979_v33 }
 0x115   : > { %v11585_v26 = vpop.f32.mrb[12].mxu0 }
 0x116   : > { %v11609_v42 = vpop.f32.mrb[12].mxu1  ;;  %730 = vst.msk [vmem:[#allocation4 + $0x68] sm:$0xff] %vm716_vm3, %v11585_v26  ;;  %v617_v49 = vpop.f32.mrb[13].mxu0  ;;  %11975 = vmatmul.mubr.msk.f32.gmra.mrb[118].mxu0 %vm285_vm1, %v15764_v54  ;;  %v1116_v26 = vld [vmem:[#allocation4 + $0x48] sm:$0xff] }
 0x117   : > { %746 = vst.msk [vmem:[#allocation4 + $0xe8] sm:$0xff] %vm716_vm3, %v11609_v42  ;;  %v697_v28 = vpop.f32.mrb[13].mxu1  ;;  %11925 = vmatmul.mubr.msk.f32.gmra.mrb[118].mxu1 %vm285_vm1, %v12991_v44  ;;  %729 = vst.msk [vmem:[#allocation4 + $0x60] sm:$0xff] %vm716_vm3, %v617_v49  ;;  %11977 = vmatprep.mubr.msk.f32.mxu0 %vm285_vm1, %v15765_v56 }
 0x118   : > { %745 = vst.msk [vmem:[#allocation4 + $0xe0] sm:$0xff] %vm716_vm3, %v697_v28  ;;  %11927 = vmatprep.mubr.msk.f32.mxu1 %vm285_vm1, %v12995_v46  ;;  %v1115_v28 = vld [vmem:[#allocation4 + $0x40] sm:$0xff] }
 0x119   : > { %v11588_v33 = vpop.f32.mrb[14].mxu0 }
 0x11a   : > { %v11612_v50 = vpop.f32.mrb[14].mxu1  ;;  %732 = vst.msk [vmem:[#allocation4 + $0x78] sm:$0xff] %vm716_vm3, %v11588_v33  ;;  %v627_v54 = vpop.f32.mrb[15].mxu0  ;;  %11978 = vmatmul.mubr.msk.f32.gmra.mrb[120].mxu0 %vm285_vm1, %v15766_v58  ;;  %v3949_v33 = vld [vmem:[#allocation2 + $0x12a] sm:$0xff] }
 0x11b   : > { %748 = vst.msk [vmem:[#allocation4 + $0xf8] sm:$0xff] %vm716_vm3, %v11612_v50  ;;  %v707_v44 = vpop.f32.mrb[15].mxu1  ;;  %11928 = vmatmul.mubr.msk.f32.gmra.mrb[120].mxu1 %vm285_vm1, %v13007_v51  ;;  %731 = vst.msk [vmem:[#allocation4 + $0x70] sm:$0xff] %vm716_vm3, %v627_v54  ;;  %11980 = vmatprep.mubr.msk.f32.mxu0 %vm285_vm1, %v15767_v60  ;;  %v1107_v51 = vld [vmem:[#allocation4] sm:$0xff] }
 0x11c   : > { %747 = vst.msk [vmem:[#allocation4 + $0xf0] sm:$0xff] %vm716_vm3, %v707_v44  ;;  %11930 = vmatprep.mubr.msk.f32.mxu1 %vm285_vm1, %v13011_v5  ;;  %v3942_v5 = vld [vmem:[#allocation2 + $0xda] sm:$0xff]  ;;  %v3495_v44 = vld [vmem:[#allocation2 + $0x129] sm:$0xff] }
 0x11d   : > { %v11667_v46 = vpop.f32.mrb[16].mxu0 }
 0x11e   : > { %v11617_v56 = vpop.f32.mrb[16].mxu1  ;;  %v1402_v58 = vpop.f32.mrb[17].mxu0  ;;  %11981 = vmatmul.mubr.msk.f32.gmra.mrb[122].mxu0 %vm285_vm1, %v15768_v62 }
 0x11f   : > { %v1140_v38 = vadd.f32 %v11617_v56, %v1108_v35  ;;  %v948_v41 = vpop.f32.mrb[17].mxu1  ;;  %11931 = vmatmul.mubr.msk.f32.gmra.mrb[122].mxu1 %vm285_vm1, %v13023_v7  ;;  %11983 = vmatprep.mubr.msk.f32.mxu0 %vm285_vm1, %v15769_v0 }
 0x120   : > { %v1139_v60 = vadd.f32 %v1107_v51, %v948_v41  ;;  %11933 = vmatprep.mubr.msk.f32.mxu1 %vm285_vm1, %v13027_v15  ;;  %v3943_v15 = vld [vmem:[#allocation2 + $0xe2] sm:$0xff] }
 0x121   : > { %1172 = vst.msk [vmem:[#allocation4 + $0x8] sm:$0xff] %vm716_vm3, %v1140_v38  ;;  %v11670_v43 = vpop.f32.mrb[18].mxu0 }
 0x122   : > { %1171 = vst.msk [vmem:[#allocation4] sm:$0xff] %vm716_vm3, %v1139_v60  ;;  %v11620_v62 = vpop.f32.mrb[18].mxu1  ;;  %v1412_v53 = vpop.f32.mrb[19].mxu0  ;;  %11984 = vmatmul.mubr.msk.f32.gmra.mrb[124].mxu0 %vm285_vm1, %v15770_v3  ;;  %v1118_v60 = vld [vmem:[#allocation4 + $0x58] sm:$0xff] }
 0x123   : > { %v1142_v7 = vadd.f32 %v11620_v62, %v1110_v48  ;;  %v958_v55 = vpop.f32.mrb[19].mxu1  ;;  %11934 = vmatmul.mubr.msk.f32.gmra.mrb[124].mxu1 %vm285_vm1, %v13039_v1  ;;  %11986 = vmatprep.mubr.msk.f32.mxu0 %vm285_vm1, %v3942_v5  ;;  %v1117_v48 = vld [vmem:[#allocation4 + $0x50] sm:$0xff] }
 0x124   : > { %v1141_v0 = vadd.f32 %v1109_v23, %v958_v55  ;;  %11936 = vmatprep.mubr.msk.f32.mxu1 %vm285_vm1, %v13043_v47  ;;  %v3945_v47 = vld [vmem:[#allocation2 + $0xfa] sm:$0xff] }
 0x125   : > { %1174 = vst.msk [vmem:[#allocation4 + $0x18] sm:$0xff] %vm716_vm3, %v1142_v7  ;;  %v13551_v59 = vpop.f32.mrb[20].mxu0  ;;  %v3497_v23 = vld [vmem:[#allocation2 + $0x141] sm:$0xff] }
 0x126   : > { %1173 = vst.msk [vmem:[#allocation4 + $0x10] sm:$0xff] %vm716_vm3, %v1141_v0  ;;  %v11623_v3 = vpop.f32.mrb[20].mxu1  ;;  %v13554_v25 = vpop.f32.mrb[21].mxu0  ;;  %11987 = vmatmul.mubr.msk.f32.gmra.mrb[126].mxu0 %vm285_vm1, %v3943_v15  ;;  %v3952_v15 = vld [vmem:[#allocation2 + $0x152] sm:$0xff] }
 0x127   : > { %v1144_v1 = vadd.f32 %v11623_v3, %v1112_v61  ;;  %v968_v63 = vpop.f32.mrb[21].mxu1  ;;  %11937 = vmatmul.mubr.msk.f32.gmra.mrb[126].mxu1 %vm285_vm1, %v13055_v6  ;;  %11989 = vmatprep.mubr.msk.f32.mxu0 %vm285_vm1, %v3944_v57  ;;  %v1114_v6 = vld [vmem:[#allocation4 + $0x38] sm:$0xff] }
 0x128   : > { %v1143_v45 = vadd.f32 %v1111_v2, %v968_v63  ;;  %v1562_v52 = vld [vmem:[#allocation4 + $0x8] sm:$0xff]  ;;  %11939 = vmatprep.mubr.msk.f32.mxu1 %vm285_vm1, %v13059_v34 }
 0x129   : > { %1176 = vst.msk [vmem:[#allocation4 + $0x28] sm:$0xff] %vm716_vm3, %v1144_v1  ;;  %v1594_v21 = vadd.f32 %v11667_v46, %v1562_v52  ;;  %v1561_v9 = vld [vmem:[#allocation4] sm:$0xff]  ;;  %v13563_v12 = vpop.f32.mrb[22].mxu0  ;;  %v1120_v1 = vld [vmem:[#allocation4 + $0x68] sm:$0xff] }
 0x12a   : > { %1175 = vst.msk [vmem:[#allocation4 + $0x20] sm:$0xff] %vm716_vm3, %v1143_v45  ;;  %v1593_v11 = vadd.f32 %v1561_v9, %v1402_v58  ;;  %v11626_v14 = vpop.f32.mrb[22].mxu1  ;;  %v13566_v4 = vpop.f32.mrb[23].mxu0  ;;  %11990 = vmatmul.mubr.msk.f32.gmra.mrb[128].mxu0 %vm285_vm1, %v3945_v47  ;;  %v3950_v46 = vld [vmem:[#allocation2 + $0x13a] sm:$0xff] }
 0x12b   : > { %1626 = vst.msk [vmem:[#allocation4 + $0x8] sm:$0xff] %vm716_vm3, %v1594_v21  ;;  %v1146_v17 = vadd.f32 %v11626_v14, %v1114_v6  ;;  %v978_v34 = vpop.f32.mrb[23].mxu1  ;;  %11940 = vmatmul.mubr.msk.f32.gmra.mrb[128].mxu1 %vm285_vm1, %v13071_v16  ;;  %11992 = vmatprep.mubr.msk.f32.mxu0 %vm285_vm1, %v3946_v8  ;;  %v3496_v58 = vld [vmem:[#allocation2 + $0x139] sm:$0xff]  ;;  %v3500_v6 = vld [vmem:[#allocation2 + $0x169] sm:$0xff] }
 0x12c   : > { %1625 = vst.msk [vmem:[#allocation4] sm:$0xff] %vm716_vm3, %v1593_v11  ;;  %v1145_v31 = vadd.f32 %v1113_v29, %v978_v34  ;;  %v1564_v19 = vld [vmem:[#allocation4 + $0x18] sm:$0xff]  ;;  %11942 = vmatprep.mubr.msk.f32.mxu1 %vm285_vm1, %v13075_v27  ;;  %v1119_v45 = vld [vmem:[#allocation4 + $0x60] sm:$0xff] }
 0x12d   : > { %1178 = vst.msk [vmem:[#allocation4 + $0x38] sm:$0xff] %vm716_vm3, %v1146_v17  ;;  %v1596_v20 = vadd.f32 %v11670_v43, %v1564_v19  ;;  %v1563_v22 = vld [vmem:[#allocation4 + $0x10] sm:$0xff]  ;;  %v13577_v10 = vpop.f32.mrb[24].mxu0  ;;  %v3953_v52 = vld [vmem:[#allocation2 + $0x15a] sm:$0xff] }
 0x12e   : > { %1177 = vst.msk [vmem:[#allocation4 + $0x30] sm:$0xff] %vm716_vm3, %v1145_v31  ;;  %v1595_v16 = vadd.f32 %v1563_v22, %v1412_v53  ;;  %v11629_v24 = vpop.f32.mrb[24].mxu1  ;;  %v13580_v42 = vpop.f32.mrb[25].mxu0  ;;  %11993 = vmatmul.mubr.msk.f32.gmra.mrb[130].mxu0 %vm285_vm1, %v3947_v30  ;;  %v3951_v53 = vld [vmem:[#allocation2 + $0x142] sm:$0xff]  ;;  %v3499_v9 = vld [vmem:[#allocation2 + $0x159] sm:$0xff] }
 0x12f   : > { %1628 = vst.msk [vmem:[#allocation4 + $0x18] sm:$0xff] %vm716_vm3, %v1596_v20  ;;  %v1148_v27 = vadd.f32 %v11629_v24, %v1116_v26  ;;  %v988_v49 = vpop.f32.mrb[25].mxu1  ;;  %11943 = vmatmul.mubr.msk.f32.gmra.mrb[130].mxu1 %vm285_vm1, %v3493_v18  ;;  %11995 = vmatprep.mubr.msk.f32.mxu0 %vm285_vm1, %v3948_v39  ;;  %v1122_v29 = vld [vmem:[#allocation4 + $0x78] sm:$0xff]  ;;  %v1121_v18 = vld [vmem:[#allocation4 + $0x70] sm:$0xff] }
 0x130   : > { %1627 = vst.msk [vmem:[#allocation4 + $0x10] sm:$0xff] %vm716_vm3, %v1595_v16  ;;  %v1147_v50 = vadd.f32 %v1115_v28, %v988_v49  ;;  %v1566_v54 = vld [vmem:[#allocation4 + $0x28] sm:$0xff]  ;;  %11945 = vmatprep.mubr.msk.f32.mxu1 %vm285_vm1, %v3494_v40  ;;  %v3955_v39 = vld [vmem:[#allocation2 + $0x172] sm:$0xff] }
 0x131   : > { %1180 = vst.msk [vmem:[#allocation4 + $0x48] sm:$0xff] %vm716_vm3, %v1148_v27  ;;  %v1598_v56 = vadd.f32 %v13551_v59, %v1566_v54  ;;  %v1565_v35 = vld [vmem:[#allocation4 + $0x20] sm:$0xff]  ;;  %v13590_v38 = vpop.f32.mrb[26].mxu0  ;;  %v3498_v59 = vld [vmem:[#allocation2 + $0x151] sm:$0xff]  ;;  %v1124_v27 = vld [vmem:[#allocation4 + $0x88] sm:$0xff] }
 0x132   : > { %1179 = vst.msk [vmem:[#allocation4 + $0x40] sm:$0xff] %vm716_vm3, %v1147_v50  ;;  %v1597_v41 = vadd.f32 %v1565_v35, %v13554_v25  ;;  %v11632_v51 = vpop.f32.mrb[26].mxu1  ;;  %v13594_v5 = vpop.f32.mrb[27].mxu0  ;;  %11996 = vmatmul.mubr.msk.f32.gmra.mrb[132].mxu0 %vm285_vm1, %v3949_v33  ;;  %v3501_v40 = vld [vmem:[#allocation2 + $0x171] sm:$0xff]  ;;  %v1123_v50 = vld [vmem:[#allocation4 + $0x80] sm:$0xff] }
 0x133   : > { %1630 = vst.msk [vmem:[#allocation4 + $0x28] sm:$0xff] %vm716_vm3, %v1598_v56  ;;  %v1150_v43 = vadd.f32 %v11632_v51, %v1118_v60  ;;  %v998_v62 = vpop.f32.mrb[27].mxu1  ;;  %11946 = vmatmul.mubr.msk.f32.gmra.mrb[132].mxu1 %vm285_vm1, %v3495_v44  ;;  %11998 = vmatprep.mubr.msk.f32.mxu0 %vm285_vm1, %v3950_v46  ;;  %v3958_v46 = vld [vmem:[#allocation2 + $0x19a] sm:$0xff] }
 0x134   : > { %1629 = vst.msk [vmem:[#allocation4 + $0x20] sm:$0xff] %vm716_vm3, %v1597_v41  ;;  %v1149_v7 = vadd.f32 %v1117_v48, %v998_v62  ;;  %v1568_v55 = vld [vmem:[#allocation4 + $0x38] sm:$0xff]  ;;  %11948 = vmatprep.mubr.msk.f32.mxu1 %vm285_vm1, %v3496_v58  ;;  %v4590_v56 = vld [vmem:[%s15645_s3] sm:$0xff]  ;;  %v1125_v62 = vld [vmem:[#allocation4 + $0x90] sm:$0xff] }
 0x135   : > { %1182 = vst.msk [vmem:[#allocation4 + $0x58] sm:$0xff] %vm716_vm3, %v1150_v43  ;;  %v1600_v0 = vadd.f32 %v13563_v12, %v1568_v55  ;;  %v1567_v57 = vld [vmem:[#allocation4 + $0x30] sm:$0xff]  ;;  %v13604_v3 = vpop.f32.mrb[28].mxu0  ;;  %12013 = vmatprep.subr.mxu1 %v4590_v56  ;;  %v1126_v60 = vld [vmem:[#allocation4 + $0x98] sm:$0xff]  ;;  %v3959_v48 = vld [vmem:[#allocation2 + $0x1a2] sm:$0xff] }
 0x136   : > { %1181 = vst.msk [vmem:[#allocation4 + $0x50] sm:$0xff] %vm716_vm3, %v1149_v7  ;;  %v1599_v61 = vadd.f32 %v1567_v57, %v13566_v4  ;;  %v11635_v25 = vpop.f32.mrb[28].mxu1  ;;  %v13608_v63 = vpop.f32.mrb[29].mxu0  ;;  %11999 = vmatmul.mubr.msk.f32.gmra.mrb[134].mxu0 %vm285_vm1, %v3951_v53  ;;  %v3954_v12 = vld [vmem:[#allocation2 + $0x16a] sm:$0xff]  ;;  %12014 = vmatpush3.msra.mxu1 %v4590_v56  ;;  %v3505_v55 = vld [vmem:[#allocation2 + $0x1a1] sm:$0xff] }
 0x137   : > { %1632 = vst.msk [vmem:[#allocation4 + $0x38] sm:$0xff] %vm716_vm3, %v1600_v0  ;;  %v1152_v2 = vadd.f32 %v11635_v25, %v1120_v1  ;;  %v1008_v47 = vpop.f32.mrb[29].mxu1  ;;  %11949 = vmatmul.mubr.msk.f32.gmra.mrb[134].mxu1 %vm285_vm1, %v3497_v23  ;;  %12001 = vmatprep.mubr.msk.f32.mxu0 %vm285_vm1, %v3952_v15  ;;  %v1128_v57 = vld [vmem:[#allocation4 + $0xa8] sm:$0xff]  ;;  %v1127_v25 = vld [vmem:[#allocation4 + $0xa0] sm:$0xff] }
 0x138   : > { %1631 = vst.msk [vmem:[#allocation4 + $0x30] sm:$0xff] %vm716_vm3, %v1599_v61  ;;  %v1151_v8 = vadd.f32 %v1119_v45, %v1008_v47  ;;  %v1570_v21 = vld [vmem:[#allocation4 + $0x48] sm:$0xff]  ;;  %11951 = vmatprep.mubr.msk.f32.mxu1 %vm285_vm1, %v3498_v59 }
 0x139   : > { %1184 = vst.msk [vmem:[#allocation4 + $0x68] sm:$0xff] %vm716_vm3, %v1152_v2  ;;  %v1602_v11 = vadd.f32 %v13577_v10, %v1570_v21  ;;  %v1569_v14 = vld [vmem:[#allocation4 + $0x40] sm:$0xff]  ;;  %v13618_v4 = vpop.f32.mrb[30].mxu0 }
 0x13a   : > { %1183 = vst.msk [vmem:[#allocation4 + $0x60] sm:$0xff] %vm716_vm3, %v1151_v8  ;;  %v1601_v17 = vadd.f32 %v1569_v14, %v13580_v42  ;;  %v11638_v34 = vpop.f32.mrb[30].mxu1  ;;  %v13622_v30 = vpop.f32.mrb[31].mxu0  ;;  %12002 = vmatmul.mubr.msk.f32.gmra.mrb[136].mxu0 %vm285_vm1, %v3953_v52  ;;  %v10570_v52 = vld [vmem:[%s15645_s3 + $0x8] sm:$0xff] }
 0x13b   : > { %1634 = vst.msk [vmem:[#allocation4 + $0x48] sm:$0xff] %vm716_vm3, %v1602_v11  ;;  %v1154_v31 = vadd.f32 %v11638_v34, %v1122_v29  ;;  %v1018_v19 = vpop.f32.mrb[31].mxu1  ;;  %11952 = vmatmul.mubr.msk.f32.gmra.mrb[136].mxu1 %vm285_vm1, %v3499_v9  ;;  %12004 = vmatprep.mubr.msk.f32.mxu0 %vm285_vm1, %v3954_v12  ;;  %v1130_v9 = vld [vmem:[#allocation4 + $0xb8] sm:$0xff] }
 0x13c   : > { %1633 = vst.msk [vmem:[#allocation4 + $0x40] sm:$0xff] %vm716_vm3, %v1601_v17  ;;  %v1153_v20 = vadd.f32 %v1121_v18, %v1018_v19  ;;  %v1572_v22 = vld [vmem:[#allocation4 + $0x58] sm:$0xff]  ;;  %11954 = vmatprep.mubr.msk.f32.mxu1 %vm285_vm1, %v3500_v6  ;;  %12063 = vmatprep.subr.mxu0 %v10570_v52  ;;  %v1129_v6 = vld [vmem:[#allocation4 + $0xb0] sm:$0xff]  ;;  %v1132_v18 = vld [vmem:[#allocation4 + $0xc8] sm:$0xff] }
 0x13d   : > { %1186 = vst.msk [vmem:[#allocation4 + $0x78] sm:$0xff] %vm716_vm3, %v1154_v31  ;;  %v1604_v10 = vadd.f32 %v13590_v38, %v1572_v22  ;;  %v1571_v16 = vld [vmem:[#allocation4 + $0x50] sm:$0xff]  ;;  %v13632_v24 = vpop.f32.mrb[32].mxu0  ;;  %v3504_v38 = vld [vmem:[#allocation2 + $0x199] sm:$0xff]  ;;  %12064 = vmatpush3.msra.mxu0 %v10570_v52 }
 0x13e   : > { %1185 = vst.msk [vmem:[#allocation4 + $0x70] sm:$0xff] %vm716_vm3, %v1153_v20  ;;  %v1603_v26 = vadd.f32 %v1571_v16, %v13594_v5  ;;  %v11641_v42 = vpop.f32.mrb[32].mxu1  ;;  %v13636_v49 = vpop.f32.mrb[33].mxu0  ;;  %12005 = vmatmul.mubr.msk.f32.gmra.mrb[138].mxu0 %vm285_vm1, %v3955_v39 }
 0x13f   : > { %1636 = vst.msk [vmem:[#allocation4 + $0x58] sm:$0xff] %vm716_vm3, %v1604_v10  ;;  %v1156_v28 = vadd.f32 %v11641_v42, %v1124_v27  ;;  %v1028_v33 = vpop.f32.mrb[33].mxu1  ;;  %11955 = vmatmul.mubr.msk.f32.gmra.mrb[138].mxu1 %vm285_vm1, %v3501_v40  ;;  %12007 = vmatprep.mubr.msk.f32.mxu0 %vm285_vm1, %v13447_v32  ;;  %v1131_v40 = vld [vmem:[#allocation4 + $0xc0] sm:$0xff] }
 0x140   : > { %1635 = vst.msk [vmem:[#allocation4 + $0x50] sm:$0xff] %vm716_vm3, %v1603_v26  ;;  %v1155_v54 = vadd.f32 %v1123_v50, %v1028_v33  ;;  %v1574_v44 = vld [vmem:[#allocation4 + $0x68] sm:$0xff]  ;;  %11957 = vmatprep.mubr.msk.f32.mxu1 %vm285_vm1, %v13303_v36 }
 0x141   : > { %1188 = vst.msk [vmem:[#allocation4 + $0x88] sm:$0xff] %vm716_vm3, %v1156_v28  ;;  %v1606_v35 = vadd.f32 %v13604_v3, %v1574_v44  ;;  %v1573_v58 = vld [vmem:[#allocation4 + $0x60] sm:$0xff]  ;;  %v11694_v41 = vpop.f32.mrb[34].mxu0  ;;  %v1134_v28 = vld [vmem:[#allocation4 + $0xd8] sm:$0xff]  ;;  %v1133_v44 = vld [vmem:[#allocation4 + $0xd0] sm:$0xff] }
 0x142   : > { %1187 = vst.msk [vmem:[#allocation4 + $0x80] sm:$0xff] %vm716_vm3, %v1155_v54  ;;  %v1605_v32 = vadd.f32 %v1573_v58, %v13608_v63  ;;  %v11644_v51 = vpop.f32.mrb[34].mxu1  ;;  %v1492_v36 = vpop.f32.mrb[35].mxu0  ;;  %12008 = vmatmul.mubr.msk.f32.gmra.mrb[140].mxu0 %vm285_vm1, %v13460_v37 }
 0x143   : > { %1638 = vst.msk [vmem:[#allocation4 + $0x68] sm:$0xff] %vm716_vm3, %v1606_v35  ;;  %v1158_v5 = vadd.f32 %v11644_v51, %v1126_v60  ;;  %v1038_v43 = vpop.f32.mrb[35].mxu1  ;;  %11958 = vmatmul.mubr.msk.f32.gmra.mrb[140].mxu1 %vm285_vm1, %v13313_v13  ;;  %12010 = vmatprep.mubr.msk.f32.mxu0 %vm285_vm1, %v3958_v46  ;;  %v1136_v51 = vld [vmem:[#allocation4 + $0xe8] sm:$0xff] }
 0x144   : > { %1637 = vst.msk [vmem:[#allocation4 + $0x60] sm:$0xff] %vm716_vm3, %v1605_v32  ;;  %v1157_v53 = vadd.f32 %v1125_v62, %v1038_v43  ;;  %v1576_v7 = vld [vmem:[#allocation4 + $0x78] sm:$0xff]  ;;  %11960 = vmatprep.mubr.msk.f32.mxu1 %vm285_vm1, %v3504_v38  ;;  %v1135_v43 = vld [vmem:[#allocation4 + $0xe0] sm:$0xff] }
 0x145   : > { %1190 = vst.msk [vmem:[#allocation4 + $0x98] sm:$0xff] %vm716_vm3, %v1158_v5  ;;  %v1608_v37 = vadd.f32 %v13618_v4, %v1576_v7  ;;  %v1575_v23 = vld [vmem:[#allocation4 + $0x70] sm:$0xff]  ;;  %v11697_v15 = vpop.f32.mrb[36].mxu0 }
 0x146   : > { %1189 = vst.msk [vmem:[#allocation4 + $0x90] sm:$0xff] %vm716_vm3, %v1157_v53  ;;  %v1607_v13 = vadd.f32 %v1575_v23, %v13622_v30  ;;  %v11647_v0 = vpop.f32.mrb[36].mxu1  ;;  %v1502_v59 = vpop.f32.mrb[37].mxu0  ;;  %12011 = vmatmul.mubr.msk.f32.gmra.mrb[142].mxu0 %vm285_vm1, %v3959_v48 }
 0x147   : > { %1640 = vst.msk [vmem:[#allocation4 + $0x78] sm:$0xff] %vm716_vm3, %v1608_v37  ;;  %v1160_v3 = vadd.f32 %v11647_v0, %v1128_v57  ;;  %v1048_v61 = vpop.f32.mrb[37].mxu1  ;;  %11961 = vmatmul.mubr.msk.f32.gmra.mrb[142].mxu1 %vm285_vm1, %v3505_v55 }
 0x148   : > { %1639 = vst.msk [vmem:[#allocation4 + $0x70] sm:$0xff] %vm716_vm3, %v1607_v13  ;;  %v1159_v1 = vadd.f32 %v1127_v25, %v1048_v61  ;;  %v1578_v63 = vld [vmem:[#allocation4 + $0x88] sm:$0xff] }
 0x149   : > { %1192 = vst.msk [vmem:[#allocation4 + $0xa8] sm:$0xff] %vm716_vm3, %v1160_v3  ;;  %v1610_v2 = vadd.f32 %v13632_v24, %v1578_v63  ;;  %v1577_v47 = vld [vmem:[#allocation4 + $0x80] sm:$0xff]  ;;  %v11700_v45 = vpop.f32.mrb[38].mxu0 }
 0x14a   : > { %1191 = vst.msk [vmem:[#allocation4 + $0xa0] sm:$0xff] %vm716_vm3, %v1159_v1  ;;  %v1609_v8 = vadd.f32 %v1577_v47, %v13636_v49  ;;  %v11650_v21 = vpop.f32.mrb[38].mxu1  ;;  %v1512_v12 = vpop.f32.mrb[39].mxu0 }
 0x14b   : > { %1642 = vst.msk [vmem:[#allocation4 + $0x88] sm:$0xff] %vm716_vm3, %v1610_v2  ;;  %v1162_v11 = vadd.f32 %v11650_v21, %v1130_v9  ;;  %v1058_v14 = vpop.f32.mrb[39].mxu1  ;;  %v2015_v9 = vld [vmem:[#allocation4] sm:$0xff] }
 0x14c   : > { %1641 = vst.msk [vmem:[#allocation4 + $0x80] sm:$0xff] %vm716_vm3, %v1609_v8  ;;  %v1161_v4 = vadd.f32 %v1129_v6, %v1058_v14  ;;  %v1580_v17 = vld [vmem:[#allocation4 + $0x98] sm:$0xff] }
 0x14d   : > { %1194 = vst.msk [vmem:[#allocation4 + $0xb8] sm:$0xff] %vm716_vm3, %v1162_v11  ;;  %v1612_v34 = vadd.f32 %v11694_v41, %v1580_v17  ;;  %v1579_v29 = vld [vmem:[#allocation4 + $0x90] sm:$0xff]  ;;  %v11703_v30 = vpop.f32.mrb[40].mxu0 }
 0x14e   : > { %1193 = vst.msk [vmem:[#allocation4 + $0xb0] sm:$0xff] %vm716_vm3, %v1161_v4  ;;  %v1611_v31 = vadd.f32 %v1579_v29, %v1492_v36  ;;  %v11653_v19 = vpop.f32.mrb[40].mxu1  ;;  %v1522_v39 = vpop.f32.mrb[41].mxu0  ;;  %v2018_v29 = vld [vmem:[#allocation4 + $0x18] sm:$0xff] }
 0x14f   : > { %1644 = vst.msk [vmem:[#allocation4 + $0x98] sm:$0xff] %vm716_vm3, %v1612_v34  ;;  %v1164_v20 = vadd.f32 %v11653_v19, %v1132_v18  ;;  %v1068_v22 = vpop.f32.mrb[41].mxu1  ;;  %v2017_v18 = vld [vmem:[#allocation4 + $0x10] sm:$0xff] }
 0x150   : > { %1643 = vst.msk [vmem:[#allocation4 + $0x90] sm:$0xff] %vm716_vm3, %v1611_v31  ;;  %v1163_v10 = vadd.f32 %v1131_v40, %v1068_v22  ;;  %v1582_v16 = vld [vmem:[#allocation4 + $0xa8] sm:$0xff] }
 0x151   : > { %1196 = vst.msk [vmem:[#allocation4 + $0xc8] sm:$0xff] %vm716_vm3, %v1164_v20  ;;  %v1614_v24 = vadd.f32 %v11697_v15, %v1582_v16  ;;  %v1581_v26 = vld [vmem:[#allocation4 + $0xa0] sm:$0xff]  ;;  %v11706_v42 = vpop.f32.mrb[42].mxu0  ;;  %v1138_v15 = vld [vmem:[#allocation4 + $0xf8] sm:$0xff] }
 0x152   : > { %1195 = vst.msk [vmem:[#allocation4 + $0xc0] sm:$0xff] %vm716_vm3, %v1163_v10  ;;  %v1613_v27 = vadd.f32 %v1581_v26, %v1502_v59  ;;  %v11656_v49 = vpop.f32.mrb[42].mxu1  ;;  %v1532_v33 = vpop.f32.mrb[43].mxu0  ;;  %v1137_v59 = vld [vmem:[#allocation4 + $0xf0] sm:$0xff]  ;;  %v2020_v26 = vld [vmem:[#allocation4 + $0x28] sm:$0xff] }
 0x153   : > { %1646 = vst.msk [vmem:[#allocation4 + $0xa8] sm:$0xff] %vm716_vm3, %v1614_v24  ;;  %v1166_v50 = vadd.f32 %v11656_v49, %v1134_v28  ;;  %v1078_v54 = vpop.f32.mrb[43].mxu1  ;;  %v2019_v28 = vld [vmem:[#allocation4 + $0x20] sm:$0xff] }
 0x154   : > { %1645 = vst.msk [vmem:[#allocation4 + $0xa0] sm:$0xff] %vm716_vm3, %v1613_v27  ;;  %v1165_v46 = vadd.f32 %v1133_v44, %v1078_v54  ;;  %v1584_v56 = vld [vmem:[#allocation4 + $0xb8] sm:$0xff] }
 0x155   : > { %1198 = vst.msk [vmem:[#allocation4 + $0xd8] sm:$0xff] %vm716_vm3, %v1166_v50  ;;  %v1616_v35 = vadd.f32 %v11700_v45, %v1584_v56  ;;  %v1583_v58 = vld [vmem:[#allocation4 + $0xb0] sm:$0xff]  ;;  %v11709_v38 = vpop.f32.mrb[44].mxu0  ;;  %v2016_v45 = vld [vmem:[#allocation4 + $0x8] sm:$0xff] }
 0x156   : > { %1197 = vst.msk [vmem:[#allocation4 + $0xd0] sm:$0xff] %vm716_vm3, %v1165_v46  ;;  %v1615_v41 = vadd.f32 %v1583_v58, %v1512_v12  ;;  %v11659_v32 = vpop.f32.mrb[44].mxu1  ;;  %v1542_v60 = vpop.f32.mrb[45].mxu0  ;;  %v2022_v58 = vld [vmem:[#allocation4 + $0x38] sm:$0xff] }
 0x157   : > { %1648 = vst.msk [vmem:[#allocation4 + $0xb8] sm:$0xff] %vm716_vm3, %v1616_v35  ;;  %v1168_v36 = vadd.f32 %v11659_v32, %v1136_v51  ;;  %v1088_v5 = vpop.f32.mrb[45].mxu1  ;;  %v2021_v51 = vld [vmem:[#allocation4 + $0x30] sm:$0xff] }
 0x158   : > { %1647 = vst.msk [vmem:[#allocation4 + $0xb0] sm:$0xff] %vm716_vm3, %v1615_v41  ;;  %v1167_v62 = vadd.f32 %v1135_v43, %v1088_v5  ;;  %v1586_v48 = vld [vmem:[#allocation4 + $0xc8] sm:$0xff] }
 0x159   : > { %1200 = vst.msk [vmem:[#allocation4 + $0xe8] sm:$0xff] %vm716_vm3, %v1168_v36  ;;  %v1618_v53 = vadd.f32 %v11703_v30, %v1586_v48  ;;  %v1585_v7 = vld [vmem:[#allocation4 + $0xc0] sm:$0xff]  ;;  %v11712_v55 = vpop.f32.mrb[46].mxu0 }
 0x15a   : > { %1199 = vst.msk [vmem:[#allocation4 + $0xe0] sm:$0xff] %vm716_vm3, %v1167_v62  ;;  %v1617_v37 = vadd.f32 %v1585_v7, %v1522_v39  ;;  %v11662_v23 = vpop.f32.mrb[46].mxu1  ;;  %v1552_v13 = vpop.f32.mrb[47].mxu0  ;;  %v2024_v7 = vld [vmem:[#allocation4 + $0x48] sm:$0xff] }
 0x15b   : > { %1650 = vst.msk [vmem:[#allocation4 + $0xc8] sm:$0xff] %vm716_vm3, %v1618_v53  ;;  %v1170_v0 = vadd.f32 %v11662_v23, %v1138_v15  ;;  %v1098_v57 = vpop.f32.mrb[47].mxu1  ;;  %v2023_v15 = vld [vmem:[#allocation4 + $0x40] sm:$0xff] }
 0x15c   : > { %1649 = vst.msk [vmem:[#allocation4 + $0xc0] sm:$0xff] %vm716_vm3, %v1617_v37  ;;  %v1169_v3 = vadd.f32 %v1137_v59, %v1098_v57  ;;  %v1588_v61 = vld [vmem:[#allocation4 + $0xd8] sm:$0xff] }
 0x15d   : > { %1202 = vst.msk [vmem:[#allocation4 + $0xf8] sm:$0xff] %vm716_vm3, %v1170_v0  ;;  %v1620_v25 = vadd.f32 %v11706_v42, %v1588_v61  ;;  %v1587_v1 = vld [vmem:[#allocation4 + $0xd0] sm:$0xff]  ;;  %v11767_v63 = vpop.f32.mrb[48].mxu0 }
 0x15e   : > { %1201 = vst.msk [vmem:[#allocation4 + $0xf0] sm:$0xff] %vm716_vm3, %v1169_v3  ;;  %v1619_v2 = vadd.f32 %v1587_v1, %v1532_v33  ;;  %v11717_v47 = vpop.f32.mrb[48].mxu1  ;;  %v2310_v52 = vpop.f32.mrb[49].mxu0  ;;  %v2026_v1 = vld [vmem:[#allocation4 + $0x58] sm:$0xff] }
 0x15f   : > { %1652 = vst.msk [vmem:[#allocation4 + $0xd8] sm:$0xff] %vm716_vm3, %v1620_v25  ;;  %v2048_v8 = vadd.f32 %v11717_v47, %v2016_v45  ;;  %v1856_v21 = vpop.f32.mrb[49].mxu1  ;;  %v2025_v45 = vld [vmem:[#allocation4 + $0x50] sm:$0xff] }
 0x160   : > { %1651 = vst.msk [vmem:[#allocation4 + $0xd0] sm:$0xff] %vm716_vm3, %v1619_v2  ;;  %v1590_v12 = vld [vmem:[#allocation4 + $0xe8] sm:$0xff]  ;;  %v2047_v11 = vadd.f32 %v2015_v9, %v1856_v21 }
 0x161   : > { %2080 = vst.msk [vmem:[#allocation4 + $0x8] sm:$0xff] %vm716_vm3, %v2048_v8  ;;  %v1622_v14 = vadd.f32 %v11709_v38, %v1590_v12  ;;  %v1589_v6 = vld [vmem:[#allocation4 + $0xe0] sm:$0xff]  ;;  %v11770_v4 = vpop.f32.mrb[50].mxu0 }
 0x162   : > { %2079 = vst.msk [vmem:[#allocation4] sm:$0xff] %vm716_vm3, %v2047_v11  ;;  %v1621_v17 = vadd.f32 %v1589_v6, %v1542_v60  ;;  %v11720_v34 = vpop.f32.mrb[50].mxu1  ;;  %v2320_v30 = vpop.f32.mrb[51].mxu0  ;;  %v2028_v6 = vld [vmem:[#allocation4 + $0x68] sm:$0xff] }
 0x163   : > { %1654 = vst.msk [vmem:[#allocation4 + $0xe8] sm:$0xff] %vm716_vm3, %v1622_v14  ;;  %v2050_v31 = vadd.f32 %v11720_v34, %v2018_v29  ;;  %v1866_v19 = vpop.f32.mrb[51].mxu1  ;;  %v2027_v29 = vld [vmem:[#allocation4 + $0x60] sm:$0xff] }
 0x164   : > { %1653 = vst.msk [vmem:[#allocation4 + $0xe0] sm:$0xff] %vm716_vm3, %v1621_v17  ;;  %v1592_v39 = vld [vmem:[#allocation4 + $0xf8] sm:$0xff]  ;;  %v2049_v20 = vadd.f32 %v2017_v18, %v1866_v19 }
 0x165   : > { %2082 = vst.msk [vmem:[#allocation4 + $0x18] sm:$0xff] %vm716_vm3, %v2050_v31  ;;  %v1624_v22 = vadd.f32 %v11712_v55, %v1592_v39  ;;  %v1591_v40 = vld [vmem:[#allocation4 + $0xf0] sm:$0xff]  ;;  %v11773_v10 = vpop.f32.mrb[52].mxu0 }
 0x166   : > { %2081 = vst.msk [vmem:[#allocation4 + $0x10] sm:$0xff] %vm716_vm3, %v2049_v20  ;;  %v1623_v16 = vadd.f32 %v1591_v40, %v1552_v13  ;;  %v11723_v24 = vpop.f32.mrb[52].mxu1  ;;  %v2330_v42 = vpop.f32.mrb[53].mxu0 }
 0x167   : > { %1656 = vst.msk [vmem:[#allocation4 + $0xf8] sm:$0xff] %vm716_vm3, %v1624_v22  ;;  %v2052_v27 = vadd.f32 %v11723_v24, %v2020_v26  ;;  %v1876_v49 = vpop.f32.mrb[53].mxu1  ;;  %v4558_v24 = vld [vmem:[#allocation3] sm:$0xff] }
 0x168   : > { %1655 = vst.msk [vmem:[#allocation4 + $0xf0] sm:$0xff] %vm716_vm3, %v1623_v16  ;;  %v2051_v33 = vadd.f32 %v2019_v28, %v1876_v49  ;;  %v2470_v50 = vld [vmem:[#allocation4 + $0x8] sm:$0xff]  ;;  %12015 = vmatprep.mubr.msk.f32.mxu1 %vm716_vm3, %v4558_v24  ;;  %v4559_v49 = vld [vmem:[#allocation3 + $0x8] sm:$0xff] }
 0x169   : > { %2084 = vst.msk [vmem:[#allocation4 + $0x28] sm:$0xff] %vm716_vm3, %v2052_v27  ;;  %v2502_v54 = vadd.f32 %v11767_v63, %v2470_v50  ;;  %v2469_v44 = vld [vmem:[#allocation4] sm:$0xff]  ;;  %v11776_v46 = vpop.f32.mrb[54].mxu0  ;;  %v2029_v27 = vld [vmem:[#allocation4 + $0x70] sm:$0xff]  ;;  %12016 = vmatmul.mubr.msk.f32.vlgmr.msra.gmra.mrb[144].mxu1 %vm716_vm3, %v4559_v49  ;;  %v10636_v49 = vld [vmem:[%s15645_s3 + $0x18] sm:$0xff] }
 0x16a   : > { %2083 = vst.msk [vmem:[#allocation4 + $0x20] sm:$0xff] %vm716_vm3, %v2051_v33  ;;  %v2501_v56 = vadd.f32 %v2469_v44, %v2310_v52  ;;  %v11726_v35 = vpop.f32.mrb[54].mxu1  ;;  %v2340_v38 = vpop.f32.mrb[55].mxu0  ;;  %v4944_v28 = vld [vmem:[#allocation3 + $0x1] sm:$0xff]  ;;  %12163 = vmatprep.subr.mxu0 %v10636_v49 }
 0x16b   : > { %2534 = vst.msk [vmem:[#allocation4 + $0x8] sm:$0xff] %vm716_vm3, %v2502_v54  ;;  %v2054_v41 = vadd.f32 %v11726_v35, %v2022_v58  ;;  %v1886_v32 = vpop.f32.mrb[55].mxu1  ;;  %12065 = vmatprep.mubr.msk.f32.mxu0 %vm716_vm3, %v4944_v28  ;;  %v4945_v54 = vld [vmem:[#allocation3 + $0x9] sm:$0xff] }
 0x16c   : > { %2533 = vst.msk [vmem:[#allocation4] sm:$0xff] %vm716_vm3, %v2501_v56  ;;  %v2053_v60 = vadd.f32 %v2021_v51, %v1886_v32  ;;  %v2472_v36 = vld [vmem:[#allocation4 + $0x18] sm:$0xff]  ;;  %12066 = vmatmul.mubr.msk.f32.vlgmr.msra.gmra.mrb[144].mxu0 %vm716_vm3, %v4945_v54 }
 0x16d   : > { %2086 = vst.msk [vmem:[#allocation4 + $0x38] sm:$0xff] %vm716_vm3, %v2054_v41  ;;  %v2504_v5 = vadd.f32 %v11770_v4, %v2472_v36  ;;  %v2471_v43 = vld [vmem:[#allocation4 + $0x10] sm:$0xff]  ;;  %v13711_v62 = vpop.f32.mrb[56].mxu0  ;;  %12164 = vmatpush3.msra.mxu0 %v10636_v49 }
 0x16e   : > { %2085 = vst.msk [vmem:[#allocation4 + $0x30] sm:$0xff] %vm716_vm3, %v2053_v60  ;;  %v2503_v48 = vadd.f32 %v2471_v43, %v2320_v30  ;;  %v11729_v53 = vpop.f32.mrb[56].mxu1  ;;  %v13714_v55 = vpop.f32.mrb[57].mxu0  ;;  %v15783_v30 = vmov 0.0   ;;  %v2031_v60 = vld [vmem:[#allocation4 + $0x80] sm:$0xff] }
 0x16f   : > { %2536 = vst.msk [vmem:[#allocation4 + $0x18] sm:$0xff] %vm716_vm3, %v2504_v5  ;;  %v2056_v37 = vadd.f32 %v11729_v53, %v2024_v7  ;;  %v1896_v23 = vpop.f32.mrb[57].mxu1 }
 0x170   : > { %2535 = vst.msk [vmem:[#allocation4 + $0x10] sm:$0xff] %vm716_vm3, %v2503_v48  ;;  %v2055_v13 = vadd.f32 %v2023_v15, %v1896_v23  ;;  %v2474_v0 = vld [vmem:[#allocation4 + $0x28] sm:$0xff] }
 0x171   : > { %2088 = vst.msk [vmem:[#allocation4 + $0x48] sm:$0xff] %vm716_vm3, %v2056_v37  ;;  %v2506_v57 = vadd.f32 %v11773_v10, %v2474_v0  ;;  %v2473_v59 = vld [vmem:[#allocation4 + $0x20] sm:$0xff]  ;;  %v13719_v3 = vpop.f32.mrb[58].mxu0  ;;  %v2030_v10 = vld [vmem:[#allocation4 + $0x78] sm:$0xff] }
 0x172   : > { %2087 = vst.msk [vmem:[#allocation4 + $0x40] sm:$0xff] %vm716_vm3, %v2055_v13  ;;  %v2505_v61 = vadd.f32 %v2473_v59, %v2330_v42  ;;  %v11732_v25 = vpop.f32.mrb[58].mxu1  ;;  %v13722_v63 = vpop.f32.mrb[59].mxu0  ;;  %v2033_v13 = vld [vmem:[#allocation4 + $0x90] sm:$0xff] }
 0x173   : > { %2538 = vst.msk [vmem:[#allocation4 + $0x28] sm:$0xff] %vm716_vm3, %v2506_v57  ;;  %v2058_v2 = vadd.f32 %v11732_v25, %v2026_v1  ;;  %v1906_v47 = vpop.f32.mrb[59].mxu1 }
 0x174   : > { %2537 = vst.msk [vmem:[#allocation4 + $0x20] sm:$0xff] %vm716_vm3, %v2505_v61  ;;  %v2057_v52 = vadd.f32 %v2025_v45, %v1906_v47  ;;  %v2476_v8 = vld [vmem:[#allocation4 + $0x38] sm:$0xff] }
 0x175   : > { %2090 = vst.msk [vmem:[#allocation4 + $0x58] sm:$0xff] %vm716_vm3, %v2058_v2  ;;  %v2508_v21 = vadd.f32 %v11776_v46, %v2476_v8  ;;  %v2475_v9 = vld [vmem:[#allocation4 + $0x30] sm:$0xff]  ;;  %v13727_v12 = vpop.f32.mrb[60].mxu0 }
 0x176   : > { %2089 = vst.msk [vmem:[#allocation4 + $0x50] sm:$0xff] %vm716_vm3, %v2057_v52  ;;  %v2507_v11 = vadd.f32 %v2475_v9, %v2340_v38  ;;  %v11735_v14 = vpop.f32.mrb[60].mxu1  ;;  %v13730_v4 = vpop.f32.mrb[61].mxu0  ;;  %v2032_v38 = vld [vmem:[#allocation4 + $0x88] sm:$0xff]  ;;  %v2035_v52 = vld [vmem:[#allocation4 + $0xa0] sm:$0xff]  ;;  %v10603_v8 = vld [vmem:[%s15645_s3 + $0x10] sm:$0xff] }
 0x177   : > { %2540 = vst.msk [vmem:[#allocation4 + $0x38] sm:$0xff] %vm716_vm3, %v2508_v21  ;;  %v2060_v17 = vadd.f32 %v11735_v14, %v2028_v6  ;;  %v1916_v34 = vpop.f32.mrb[61].mxu1  ;;  %12113 = vmatprep.subr.mxu1 %v10603_v8 }
 0x178   : > { %4391 = vst.msk [vmem:[#allocation3 + $0x18] sm:$0x1] %vm4390_vm4, %v15783_v30  ;;  %4392 = vst.msk [vmem:[#allocation3 + $0x30] sm:$0x1] %vm4390_vm4, %v15783_v30  ;;  %v2059_v31 = vadd.f32 %v2027_v29, %v1916_v34  ;;  %v2478_v19 = vld [vmem:[#allocation4 + $0x48] sm:$0xff]  ;;  %12114 = vmatpush3.msra.mxu1 %v10603_v8 }
 0x179   : > { %4393 = vst.msk [vmem:[#allocation3 + $0x48] sm:$0x1] %vm4390_vm4, %v15783_v30  ;;  %4394 = vst.msk [vmem:[#allocation3 + $0x60] sm:$0x1] %vm4390_vm4, %v15783_v30  ;;  %v2510_v18 = vadd.f32 %v13711_v62, %v2478_v19  ;;  %v2477_v39 = vld [vmem:[#allocation4 + $0x40] sm:$0xff]  ;;  %v11788_v20 = vpop.f32.mrb[62].mxu0 }
 0x17a   : > { %4395 = vst.msk [vmem:[#allocation3 + $0x78] sm:$0x1] %vm4390_vm4, %v15783_v30  ;;  %4396 = vst.msk [vmem:[#allocation3 + $0x90] sm:$0x1] %vm4390_vm4, %v15783_v30  ;;  %v2509_v22 = vadd.f32 %v2477_v39, %v13714_v55  ;;  %v11738_v40 = vpop.f32.mrb[62].mxu1  ;;  %v2380_v16 = vpop.f32.mrb[63].mxu0 }
 0x17b   : > { %4397 = vst.msk [vmem:[#allocation3 + $0xa8] sm:$0x1] %vm4390_vm4, %v15783_v30  ;;  %4398 = vst.msk [vmem:[#allocation3 + $0xc0] sm:$0x1] %vm4390_vm4, %v15783_v30  ;;  %v2062_v26 = vadd.f32 %v11738_v40, %v2030_v10  ;;  %v1926_v42 = vpop.f32.mrb[63].mxu1  ;;  %v2034_v55 = vld [vmem:[#allocation4 + $0x98] sm:$0xff] }
 0x17c   : > { %4399 = vst.msk [vmem:[#allocation3 + $0xd8] sm:$0x1] %vm4390_vm4, %v15783_v30  ;;  %4400 = vst.msk [vmem:[#allocation3 + $0xf0] sm:$0x1] %vm4390_vm4, %v15783_v30  ;;  %v2061_v33 = vadd.f32 %v2029_v27, %v1926_v42  ;;  %v2480_v50 = vld [vmem:[#allocation4 + $0x58] sm:$0xff]  ;;  %v2039_v27 = vld [vmem:[#allocation4 + $0xc0] sm:$0xff] }
 0x17d   : > { %4401 = vst.msk [vmem:[#allocation3 + $0x108] sm:$0x1] %vm4390_vm4, %v15783_v30  ;;  %4402 = vst.msk [vmem:[#allocation3 + $0x120] sm:$0x1] %vm4390_vm4, %v15783_v30  ;;  %v2512_v44 = vadd.f32 %v13719_v3, %v2480_v50  ;;  %v2479_v46 = vld [vmem:[#allocation4 + $0x50] sm:$0xff]  ;;  %v11791_v56 = vpop.f32.mrb[64].mxu0 }
 0x17e   : > { %4403 = vst.msk [vmem:[#allocation3 + $0x138] sm:$0x1] %vm4390_vm4, %v15783_v30  ;;  %4404 = vst.msk [vmem:[#allocation3 + $0x150] sm:$0x1] %vm4390_vm4, %v15783_v30  ;;  %v2511_v35 = vadd.f32 %v2479_v46, %v13722_v63  ;;  %v11741_v58 = vpop.f32.mrb[64].mxu1  ;;  %v2390_v41 = vpop.f32.mrb[65].mxu0 }
 0x17f   : > { %4405 = vst.msk [vmem:[#allocation3 + $0x168] sm:$0x1] %vm4390_vm4, %v15783_v30  ;;  %4406 = vst.msk [vmem:[#allocation3 + $0x180] sm:$0x1] %vm4390_vm4, %v15783_v30  ;;  %v2064_v32 = vadd.f32 %v11741_v58, %v2032_v38  ;;  %v1936_v51 = vpop.f32.mrb[65].mxu1  ;;  %v2036_v63 = vld [vmem:[#allocation4 + $0xa8] sm:$0xff] }
 0x180   : > { %4407 = vst.msk [vmem:[#allocation3 + $0x29] sm:$0x1] %vm4390_vm4, %v15783_v30  ;;  %4408 = vst.msk [vmem:[#allocation3 + $0x41] sm:$0x1] %vm4390_vm4, %v15783_v30  ;;  %v2063_v36 = vadd.f32 %v2031_v60, %v1936_v51 }
 0x181   : > { %4409 = vst.msk [vmem:[#allocation3 + $0x59] sm:$0x1] %vm4390_vm4, %v15783_v30  ;;  %4410 = vst.msk [vmem:[#allocation3 + $0x71] sm:$0x1] %vm4390_vm4, %v15783_v30  ;;  %v11794_v48 = vpop.f32.mrb[66].mxu0 }
 0x182   : > { %4411 = vst.msk [vmem:[#allocation3 + $0x89] sm:$0x1] %vm4390_vm4, %v15783_v30  ;;  %4412 = vst.msk [vmem:[#allocation3 + $0xa1] sm:$0x1] %vm4390_vm4, %v15783_v30  ;;  %v11744_v7 = vpop.f32.mrb[66].mxu1  ;;  %v2400_v37 = vpop.f32.mrb[67].mxu0 }
 0x183   : > { %4413 = vst.msk [vmem:[#allocation3 + $0xb9] sm:$0x1] %vm4390_vm4, %v15783_v30  ;;  %4414 = vst.msk [vmem:[#allocation3 + $0xd1] sm:$0x1] %vm4390_vm4, %v15783_v30  ;;  %v2066_v23 = vadd.f32 %v11744_v7, %v2034_v55  ;;  %v1946_v15 = vpop.f32.mrb[67].mxu1 }
 0x184   : > { %4415 = vst.msk [vmem:[#allocation3 + $0xe9] sm:$0x1] %vm4390_vm4, %v15783_v30  ;;  %4416 = vst.msk [vmem:[#allocation3 + $0x101] sm:$0x1] %vm4390_vm4, %v15783_v30  ;;  %v2065_v0 = vadd.f32 %v2033_v13, %v1946_v15 }
 0x185   : > { %4417 = vst.msk [vmem:[#allocation3 + $0x119] sm:$0x1] %vm4390_vm4, %v15783_v30  ;;  %4418 = vst.msk [vmem:[#allocation3 + $0x131] sm:$0x1] %vm4390_vm4, %v15783_v30  ;;  %v11797_v61 = vpop.f32.mrb[68].mxu0 }
 0x186   : > { %4419 = vst.msk [vmem:[#allocation3 + $0x149] sm:$0x1] %vm4390_vm4, %v15783_v30  ;;  %4420 = vst.msk [vmem:[#allocation3 + $0x161] sm:$0x1] %vm4390_vm4, %v15783_v30  ;;  %v11747_v1 = vpop.f32.mrb[68].mxu1  ;;  %v2410_v2 = vpop.f32.mrb[69].mxu0 }
 0x187   : > { %4421 = vst.msk [vmem:[#allocation3 + $0x179] sm:$0x1] %vm4390_vm4, %v15783_v30  ;;  %4422 = vst.msk [vmem:[#allocation3 + $0x191] sm:$0x1] %vm4390_vm4, %v15783_v30  ;;  %v2068_v47 = vadd.f32 %v11747_v1, %v2036_v63  ;;  %v1956_v45 = vpop.f32.mrb[69].mxu1 }
 0x188   : > { %2539 = vst.msk [vmem:[#allocation4 + $0x30] sm:$0xff] %vm716_vm3, %v2507_v11  ;;  %2092 = vst.msk [vmem:[#allocation4 + $0x68] sm:$0xff] %vm716_vm3, %v2060_v17  ;;  %v2067_v21 = vadd.f32 %v2035_v52, %v1956_v45  ;;  %v2038_v17 = vld [vmem:[#allocation4 + $0xb8] sm:$0xff] }
 0x189   : > { %2091 = vst.msk [vmem:[#allocation4 + $0x60] sm:$0xff] %vm716_vm3, %v2059_v31  ;;  %2542 = vst.msk [vmem:[#allocation4 + $0x48] sm:$0xff] %vm716_vm3, %v2510_v18  ;;  %v11800_v14 = vpop.f32.mrb[70].mxu0  ;;  %v2037_v31 = vld [vmem:[#allocation4 + $0xb0] sm:$0xff] }
 0x18a   : > { %2541 = vst.msk [vmem:[#allocation4 + $0x40] sm:$0xff] %vm716_vm3, %v2509_v22  ;;  %2094 = vst.msk [vmem:[#allocation4 + $0x78] sm:$0xff] %vm716_vm3, %v2062_v26  ;;  %v2420_v34 = vpop.f32.mrb[71].mxu0 }
 0x18b   : > { %2093 = vst.msk [vmem:[#allocation4 + $0x70] sm:$0xff] %vm716_vm3, %v2061_v33  ;;  %2544 = vst.msk [vmem:[#allocation4 + $0x58] sm:$0xff] %vm716_vm3, %v2512_v44 }
 0x18c   : > { %2543 = vst.msk [vmem:[#allocation4 + $0x50] sm:$0xff] %vm716_vm3, %v2511_v35  ;;  %2096 = vst.msk [vmem:[#allocation4 + $0x88] sm:$0xff] %vm716_vm3, %v2064_v32  ;;  %v2042_v35 = vld [vmem:[#allocation4 + $0xd8] sm:$0xff]  ;;  %v2041_v32 = vld [vmem:[#allocation4 + $0xd0] sm:$0xff] }
 0x18d   : > { %2095 = vst.msk [vmem:[#allocation4 + $0x80] sm:$0xff] %vm716_vm3, %v2063_v36  ;;  %2098 = vst.msk [vmem:[#allocation4 + $0x98] sm:$0xff] %vm716_vm3, %v2066_v23  ;;  %v11803_v22 = vpop.f32.mrb[72].mxu0  ;;  %v2043_v23 = vld [vmem:[#allocation4 + $0xe0] sm:$0xff] }
 0x18e   : > { %2097 = vst.msk [vmem:[#allocation4 + $0x90] sm:$0xff] %vm716_vm3, %v2065_v0  ;;  %2100 = vst.msk [vmem:[#allocation4 + $0xa8] sm:$0xff] %vm716_vm3, %v2068_v47  ;;  %v2430_v24 = vpop.f32.mrb[73].mxu0  ;;  %v2045_v47 = vld [vmem:[#allocation4 + $0xf0] sm:$0xff] }
 0x18f   : > { %v2482_v5 = vld [vmem:[#allocation4 + $0x68] sm:$0xff]  ;;  %2099 = vst.msk [vmem:[#allocation4 + $0xa0] sm:$0xff] %vm716_vm3, %v2067_v21 }
 0x190   : > { %v2514_v43 = vadd.f32 %v13727_v12, %v2482_v5  ;;  %v2481_v62 = vld [vmem:[#allocation4 + $0x60] sm:$0xff] }
 0x191   : > { %v2513_v53 = vadd.f32 %v2481_v62, %v13730_v4  ;;  %v2484_v57 = vld [vmem:[#allocation4 + $0x78] sm:$0xff]  ;;  %v11750_v4 = vpop.f32.mrb[70].mxu1  ;;  %v11806_v44 = vpop.f32.mrb[74].mxu0 }
 0x192   : > { %2546 = vst.msk [vmem:[#allocation4 + $0x68] sm:$0xff] %vm716_vm3, %v2514_v43  ;;  %v2516_v59 = vadd.f32 %v11788_v20, %v2484_v57  ;;  %v2483_v3 = vld [vmem:[#allocation4 + $0x70] sm:$0xff]  ;;  %v2070_v29 = vadd.f32 %v11750_v4, %v2038_v17  ;;  %v1966_v30 = vpop.f32.mrb[71].mxu1  ;;  %v2440_v58 = vpop.f32.mrb[75].mxu0 }
 0x193   : > { %2545 = vst.msk [vmem:[#allocation4 + $0x60] sm:$0xff] %vm716_vm3, %v2513_v53  ;;  %v2515_v25 = vadd.f32 %v2483_v3, %v2380_v16  ;;  %v2486_v9 = vld [vmem:[#allocation4 + $0x88] sm:$0xff]  ;;  %v2069_v19 = vadd.f32 %v2037_v31, %v1966_v30  ;;  %v11753_v10 = vpop.f32.mrb[72].mxu1 }
 0x194   : > { %2548 = vst.msk [vmem:[#allocation4 + $0x78] sm:$0xff] %vm716_vm3, %v2516_v59  ;;  %v2518_v12 = vadd.f32 %v11791_v56, %v2486_v9  ;;  %v2485_v11 = vld [vmem:[#allocation4 + $0x80] sm:$0xff]  ;;  %v2488_v18 = vld [vmem:[#allocation4 + $0x98] sm:$0xff]  ;;  %2102 = vst.msk [vmem:[#allocation4 + $0xb8] sm:$0xff] %vm716_vm3, %v2070_v29  ;;  %v1976_v42 = vpop.f32.mrb[73].mxu1 }
 0x195   : > { %2547 = vst.msk [vmem:[#allocation4 + $0x70] sm:$0xff] %vm716_vm3, %v2515_v25  ;;  %v2517_v6 = vadd.f32 %v2485_v11, %v2390_v41  ;;  %v2520_v39 = vadd.f32 %v11794_v48, %v2488_v18  ;;  %v2487_v20 = vld [vmem:[#allocation4 + $0x90] sm:$0xff]  ;;  %2101 = vst.msk [vmem:[#allocation4 + $0xb0] sm:$0xff] %vm716_vm3, %v2069_v19  ;;  %v2040_v16 = vld [vmem:[#allocation4 + $0xc8] sm:$0xff]  ;;  %v2071_v28 = vadd.f32 %v2039_v27, %v1976_v42  ;;  %v11756_v56 = vpop.f32.mrb[74].mxu1  ;;  %v11809_v43 = vpop.f32.mrb[76].mxu0 }
 0x196   : > { %2550 = vst.msk [vmem:[#allocation4 + $0x88] sm:$0xff] %vm716_vm3, %v2518_v12  ;;  %v2519_v40 = vadd.f32 %v2487_v20, %v2400_v37  ;;  %v2072_v26 = vadd.f32 %v11753_v10, %v2040_v16  ;;  %v2490_v33 = vld [vmem:[#allocation4 + $0xa8] sm:$0xff]  ;;  %v2489_v54 = vld [vmem:[#allocation4 + $0xa0] sm:$0xff]  ;;  %v2074_v38 = vadd.f32 %v11756_v56, %v2042_v35  ;;  %v1986_v41 = vpop.f32.mrb[75].mxu1  ;;  %v2450_v7 = vpop.f32.mrb[77].mxu0  ;;  %v2046_v25 = vld [vmem:[#allocation4 + $0xf8] sm:$0xff] }
 0x197   : > { %2549 = vst.msk [vmem:[#allocation4 + $0x80] sm:$0xff] %vm716_vm3, %v2517_v6  ;;  %2552 = vst.msk [vmem:[#allocation4 + $0x98] sm:$0xff] %vm716_vm3, %v2520_v39  ;;  %v2522_v50 = vadd.f32 %v11797_v61, %v2490_v33  ;;  %v2521_v46 = vadd.f32 %v2489_v54, %v2410_v2  ;;  %v2073_v51 = vadd.f32 %v2041_v32, %v1986_v41  ;;  %v11759_v48 = vpop.f32.mrb[76].mxu1  ;;  %v2044_v53 = vld [vmem:[#allocation4 + $0xe8] sm:$0xff]  ;;  %v2927_v35 = vld [vmem:[#allocation4 + $0x20] sm:$0xff] }
 0x198   : > { %2551 = vst.msk [vmem:[#allocation4 + $0x90] sm:$0xff] %vm716_vm3, %v2519_v40  ;;  %2104 = vst.msk [vmem:[#allocation4 + $0xc8] sm:$0xff] %vm716_vm3, %v2072_v26  ;;  %v2076_v55 = vadd.f32 %v11759_v48, %v2044_v53  ;;  %v1996_v37 = vpop.f32.mrb[77].mxu1  ;;  %v2928_v54 = vld [vmem:[#allocation4 + $0x28] sm:$0xff]  ;;  %v2929_v53 = vld [vmem:[#allocation4 + $0x30] sm:$0xff] }
 0x199   : > { %2103 = vst.msk [vmem:[#allocation4 + $0xc0] sm:$0xff] %vm716_vm3, %v2071_v28  ;;  %2554 = vst.msk [vmem:[#allocation4 + $0xa8] sm:$0xff] %vm716_vm3, %v2522_v50  ;;  %v2075_v15 = vadd.f32 %v2043_v23, %v1996_v37  ;;  %v11812_v59 = vpop.f32.mrb[78].mxu0 }
 0x19a   : > { %2553 = vst.msk [vmem:[#allocation4 + $0xa0] sm:$0xff] %vm716_vm3, %v2521_v46  ;;  %2106 = vst.msk [vmem:[#allocation4 + $0xd8] sm:$0xff] %vm716_vm3, %v2074_v38  ;;  %v11762_v61 = vpop.f32.mrb[78].mxu1  ;;  %v2460_v1 = vpop.f32.mrb[79].mxu0 }
 0x19b   : > { %v2492_v60 = vld [vmem:[#allocation4 + $0xb8] sm:$0xff]  ;;  %2105 = vst.msk [vmem:[#allocation4 + $0xd0] sm:$0xff] %vm716_vm3, %v2073_v51  ;;  %2108 = vst.msk [vmem:[#allocation4 + $0xe8] sm:$0xff] %vm716_vm3, %v2076_v55  ;;  %v2078_v63 = vadd.f32 %v11762_v61, %v2046_v25  ;;  %v2006_v2 = vpop.f32.mrb[79].mxu1  ;;  %v2931_v25 = vld [vmem:[#allocation4 + $0x40] sm:$0xff] }
 0x19c   : > { %v2524_v36 = vadd.f32 %v11800_v14, %v2492_v60  ;;  %v2491_v5 = vld [vmem:[#allocation4 + $0xb0] sm:$0xff]  ;;  %2107 = vst.msk [vmem:[#allocation4 + $0xe0] sm:$0xff] %vm716_vm3, %v2075_v15  ;;  %v2077_v45 = vadd.f32 %v2045_v47, %v2006_v2  ;;  %v2924_v14 = vld [vmem:[#allocation4 + $0x8] sm:$0xff] }
 0x19d   : > { %v2523_v62 = vadd.f32 %v2491_v5, %v2420_v34  ;;  %2110 = vst.msk [vmem:[#allocation4 + $0xf8] sm:$0xff] %vm716_vm3, %v2078_v63  ;;  %v11867_v9 = vpop.f32.mrb[80].mxu0  ;;  %v2923_v34 = vld [vmem:[#allocation4] sm:$0xff]  ;;  %v2930_v5 = vld [vmem:[#allocation4 + $0x38] sm:$0xff] }
 0x19e   : > { %2556 = vst.msk [vmem:[#allocation4 + $0xb8] sm:$0xff] %vm716_vm3, %v2524_v36  ;;  %2109 = vst.msk [vmem:[#allocation4 + $0xf0] sm:$0xff] %vm716_vm3, %v2077_v45  ;;  %v11817_v11 = vpop.f32.mrb[80].mxu1  ;;  %v3219_v6 = vpop.f32.mrb[81].mxu0 }
 0x19f   : > { %2555 = vst.msk [vmem:[#allocation4 + $0xb0] sm:$0xff] %vm716_vm3, %v2523_v62  ;;  %v2494_v13 = vld [vmem:[#allocation4 + $0xc8] sm:$0xff]  ;;  %v2956_v4 = vadd.f32 %v11817_v11, %v2924_v14  ;;  %v2764_v17 = vpop.f32.mrb[81].mxu1  ;;  %v2933_v14 = vld [vmem:[#allocation4 + $0x50] sm:$0xff] }
 0x1a0   : > { %v2526_v0 = vadd.f32 %v11803_v22, %v2494_v13  ;;  %v2493_v57 = vld [vmem:[#allocation4 + $0xc0] sm:$0xff]  ;;  %v2955_v30 = vadd.f32 %v2923_v34, %v2764_v17  ;;  %v2926_v22 = vld [vmem:[#allocation4 + $0x18] sm:$0xff] }
 0x1a1   : > { %v2525_v3 = vadd.f32 %v2493_v57, %v2430_v24  ;;  %v2496_v52 = vld [vmem:[#allocation4 + $0xd8] sm:$0xff]  ;;  %2988 = vst.msk [vmem:[#allocation4 + $0x8] sm:$0xff] %vm716_vm3, %v2956_v4  ;;  %v11870_v18 = vpop.f32.mrb[82].mxu0  ;;  %v2925_v24 = vld [vmem:[#allocation4 + $0x10] sm:$0xff]  ;;  %v2932_v57 = vld [vmem:[#allocation4 + $0x48] sm:$0xff] }
 0x1a2   : > { %2558 = vst.msk [vmem:[#allocation4 + $0xc8] sm:$0xff] %vm716_vm3, %v2526_v0  ;;  %v2528_v8 = vadd.f32 %v11806_v44, %v2496_v52  ;;  %v2495_v21 = vld [vmem:[#allocation4 + $0xd0] sm:$0xff]  ;;  %v2498_v29 = vld [vmem:[#allocation4 + $0xe8] sm:$0xff]  ;;  %2987 = vst.msk [vmem:[#allocation4] sm:$0xff] %vm716_vm3, %v2955_v30  ;;  %v11820_v20 = vpop.f32.mrb[82].mxu1  ;;  %v3229_v40 = vpop.f32.mrb[83].mxu0 }
 0x1a3   : > { %2557 = vst.msk [vmem:[#allocation4 + $0xc0] sm:$0xff] %vm716_vm3, %v2525_v3  ;;  %v2527_v12 = vadd.f32 %v2495_v21, %v2440_v58  ;;  %v2530_v31 = vadd.f32 %v11809_v43, %v2498_v29  ;;  %v2497_v19 = vld [vmem:[#allocation4 + $0xe0] sm:$0xff]  ;;  %v2958_v10 = vadd.f32 %v11820_v20, %v2926_v22  ;;  %v2774_v16 = vpop.f32.mrb[83].mxu1  ;;  %v2934_v21 = vld [vmem:[#allocation4 + $0x58] sm:$0xff] }
 0x1a4   : > { %2560 = vst.msk [vmem:[#allocation4 + $0xd8] sm:$0xff] %vm716_vm3, %v2528_v8  ;;  %v2529_v39 = vadd.f32 %v2497_v19, %v2450_v7  ;;  %v2500_v26 = vld [vmem:[#allocation4 + $0xf8] sm:$0xff]  ;;  %v2957_v42 = vadd.f32 %v2925_v24, %v2774_v16  ;;  %v2936_v19 = vld [vmem:[#allocation4 + $0x68] sm:$0xff]  ;;  %v2935_v22 = vld [vmem:[#allocation4 + $0x60] sm:$0xff] }
 0x1a5   : > { %2559 = vst.msk [vmem:[#allocation4 + $0xd0] sm:$0xff] %vm716_vm3, %v2527_v12  ;;  %2562 = vst.msk [vmem:[#allocation4 + $0xe8] sm:$0xff] %vm716_vm3, %v2530_v31  ;;  %v2532_v27 = vadd.f32 %v11812_v59, %v2500_v26  ;;  %v2499_v49 = vld [vmem:[#allocation4 + $0xf0] sm:$0xff]  ;;  %v11873_v28 = vpop.f32.mrb[84].mxu0 }
 0x1a6   : > { %2561 = vst.msk [vmem:[#allocation4 + $0xe0] sm:$0xff] %vm716_vm3, %v2529_v39  ;;  %2990 = vst.msk [vmem:[#allocation4 + $0x18] sm:$0xff] %vm716_vm3, %v2958_v10  ;;  %v2531_v33 = vadd.f32 %v2499_v49, %v2460_v1  ;;  %v11823_v50 = vpop.f32.mrb[84].mxu1  ;;  %v3239_v44 = vpop.f32.mrb[85].mxu0  ;;  %v2938_v49 = vld [vmem:[#allocation4 + $0x78] sm:$0xff] }
 0x1a7   : > { %2989 = vst.msk [vmem:[#allocation4 + $0x10] sm:$0xff] %vm716_vm3, %v2957_v42  ;;  %2564 = vst.msk [vmem:[#allocation4 + $0xf8] sm:$0xff] %vm716_vm3, %v2532_v27  ;;  %v2960_v46 = vadd.f32 %v11823_v50, %v2928_v54  ;;  %v2784_v56 = vpop.f32.mrb[85].mxu1 }
 0x1a8   : > { %2563 = vst.msk [vmem:[#allocation4 + $0xf0] sm:$0xff] %vm716_vm3, %v2531_v33  ;;  %v2959_v58 = vadd.f32 %v2927_v35, %v2784_v56  ;;  %v3379_v38 = vld [vmem:[#allocation4 + $0x8] sm:$0xff]  ;;  %v10669_v33 = vld [vmem:[%s15645_s3 + $0x20] sm:$0xff] }
 0x1a9   : > { %2992 = vst.msk [vmem:[#allocation4 + $0x28] sm:$0xff] %vm716_vm3, %v2960_v46  ;;  %v3411_v41 = vadd.f32 %v11867_v9, %v3379_v38  ;;  %v3378_v32 = vld [vmem:[#allocation4] sm:$0xff]  ;;  %v11876_v51 = vpop.f32.mrb[86].mxu0  ;;  %12213 = vmatprep.subr.mxu1 %v10669_v33 }
 0x1aa   : > { %2991 = vst.msk [vmem:[#allocation4 + $0x20] sm:$0xff] %vm716_vm3, %v2959_v58  ;;  %v3410_v60 = vadd.f32 %v3378_v32, %v3219_v6  ;;  %v11826_v36 = vpop.f32.mrb[86].mxu1  ;;  %v3249_v43 = vpop.f32.mrb[87].mxu0  ;;  %v2947_v33 = vld [vmem:[#allocation4 + $0xc0] sm:$0xff] }
 0x1ab   : > { %3443 = vst.msk [vmem:[#allocation4 + $0x8] sm:$0xff] %vm716_vm3, %v3411_v41  ;;  %v2962_v62 = vadd.f32 %v11826_v36, %v2930_v5  ;;  %v2794_v48 = vpop.f32.mrb[87].mxu1 }
 0x1ac   : > { %3442 = vst.msk [vmem:[#allocation4] sm:$0xff] %vm716_vm3, %v3410_v60  ;;  %v2961_v7 = vadd.f32 %v2929_v53, %v2794_v48 }
 0x1ad   : > { %v3381_v55 = vld [vmem:[#allocation4 + $0x18] sm:$0xff]  ;;  %2994 = vst.msk [vmem:[#allocation4 + $0x38] sm:$0xff] %vm716_vm3, %v2962_v62  ;;  %v11879_v15 = vpop.f32.mrb[88].mxu0 }
 0x1ae   : > { %v3413_v37 = vadd.f32 %v11870_v18, %v3381_v55  ;;  %v3380_v23 = vld [vmem:[#allocation4 + $0x10] sm:$0xff]  ;;  %2993 = vst.msk [vmem:[#allocation4 + $0x30] sm:$0xff] %vm716_vm3, %v2961_v7  ;;  %v11829_v0 = vpop.f32.mrb[88].mxu1  ;;  %v3259_v59 = vpop.f32.mrb[89].mxu0 }
 0x1af   : > { %v3412_v13 = vadd.f32 %v3380_v23, %v3229_v40  ;;  %v2964_v3 = vadd.f32 %v11829_v0, %v2932_v57  ;;  %v2804_v61 = vpop.f32.mrb[89].mxu1 }
 0x1b0   : > { %3445 = vst.msk [vmem:[#allocation4 + $0x18] sm:$0xff] %vm716_vm3, %v3413_v37  ;;  %v2963_v1 = vadd.f32 %v2931_v25, %v2804_v61  ;;  %v3383_v63 = vld [vmem:[#allocation4 + $0x28] sm:$0xff] }
 0x1b1   : > { %3444 = vst.msk [vmem:[#allocation4 + $0x10] sm:$0xff] %vm716_vm3, %v3412_v13  ;;  %2996 = vst.msk [vmem:[#allocation4 + $0x48] sm:$0xff] %vm716_vm3, %v2964_v3  ;;  %v3415_v2 = vadd.f32 %v11873_v28, %v3383_v63  ;;  %v3382_v47 = vld [vmem:[#allocation4 + $0x20] sm:$0xff]  ;;  %v11882_v45 = vpop.f32.mrb[90].mxu0 }
 0x1b2   : > { %2995 = vst.msk [vmem:[#allocation4 + $0x40] sm:$0xff] %vm716_vm3, %v2963_v1  ;;  %v3414_v52 = vadd.f32 %v3382_v47, %v3239_v44  ;;  %v11832_v8 = vpop.f32.mrb[90].mxu1  ;;  %v3269_v9 = vpop.f32.mrb[91].mxu0  ;;  %v2937_v44 = vld [vmem:[#allocation4 + $0x70] sm:$0xff] }
 0x1b3   : > { %3447 = vst.msk [vmem:[#allocation4 + $0x28] sm:$0xff] %vm716_vm3, %v3415_v2  ;;  %v2966_v12 = vadd.f32 %v11832_v8, %v2934_v21  ;;  %v2814_v11 = vpop.f32.mrb[91].mxu1  ;;  %v10702_v8 = vld [vmem:[%s15645_s3 + $0x28] sm:$0xff] }
 0x1b4   : > { %3446 = vst.msk [vmem:[#allocation4 + $0x20] sm:$0xff] %vm716_vm3, %v3414_v52  ;;  %v2965_v6 = vadd.f32 %v2933_v14, %v2814_v11  ;;  %v3385_v4 = vld [vmem:[#allocation4 + $0x38] sm:$0xff]  ;;  %12263 = vmatprep.subr.mxu0 %v10702_v8 }
 0x1b5   : > { %2998 = vst.msk [vmem:[#allocation4 + $0x58] sm:$0xff] %vm716_vm3, %v2966_v12  ;;  %v3417_v17 = vadd.f32 %v11876_v51, %v3385_v4  ;;  %v3384_v34 = vld [vmem:[#allocation4 + $0x30] sm:$0xff]  ;;  %v11885_v29 = vpop.f32.mrb[92].mxu0  ;;  %v2940_v51 = vld [vmem:[#allocation4 + $0x88] sm:$0xff]  ;;  %v2943_v12 = vld [vmem:[#allocation4 + $0xa0] sm:$0xff] }
 0x1b6   : > { %2997 = vst.msk [vmem:[#allocation4 + $0x50] sm:$0xff] %vm716_vm3, %v2965_v6  ;;  %v3416_v30 = vadd.f32 %v3384_v34, %v3249_v43  ;;  %v11835_v31 = vpop.f32.mrb[92].mxu1  ;;  %v3279_v18 = vpop.f32.mrb[93].mxu0  ;;  %v2939_v43 = vld [vmem:[#allocation4 + $0x80] sm:$0xff] }
 0x1b7   : > { %3449 = vst.msk [vmem:[#allocation4 + $0x38] sm:$0xff] %vm716_vm3, %v3417_v17  ;;  %v2968_v39 = vadd.f32 %v11835_v31, %v2936_v19  ;;  %v2824_v20 = vpop.f32.mrb[93].mxu1 }
 0x1b8   : > { %3448 = vst.msk [vmem:[#allocation4 + $0x30] sm:$0xff] %vm716_vm3, %v3416_v30  ;;  %v2967_v40 = vadd.f32 %v2935_v22, %v2824_v20  ;;  %v3387_v10 = vld [vmem:[#allocation4 + $0x48] sm:$0xff]  ;;  %v2946_v30 = vld [vmem:[#allocation4 + $0xb8] sm:$0xff] }
 0x1b9   : > { %3000 = vst.msk [vmem:[#allocation4 + $0x68] sm:$0xff] %vm716_vm3, %v2968_v39  ;;  %v3419_v16 = vadd.f32 %v11879_v15, %v3387_v10  ;;  %v3386_v24 = vld [vmem:[#allocation4 + $0x40] sm:$0xff]  ;;  %v11888_v26 = vpop.f32.mrb[94].mxu0  ;;  %v2942_v15 = vld [vmem:[#allocation4 + $0x98] sm:$0xff]  ;;  %v2945_v39 = vld [vmem:[#allocation4 + $0xb0] sm:$0xff] }
 0x1ba   : > { %2999 = vst.msk [vmem:[#allocation4 + $0x60] sm:$0xff] %vm716_vm3, %v2967_v40  ;;  %v3418_v42 = vadd.f32 %v3386_v24, %v3259_v59  ;;  %v11838_v27 = vpop.f32.mrb[94].mxu1  ;;  %v3289_v28 = vpop.f32.mrb[95].mxu0  ;;  %v2941_v59 = vld [vmem:[#allocation4 + $0x90] sm:$0xff] }
 0x1bb   : > { %3451 = vst.msk [vmem:[#allocation4 + $0x48] sm:$0xff] %vm716_vm3, %v3419_v16  ;;  %v2970_v50 = vadd.f32 %v11838_v27, %v2938_v49  ;;  %v2834_v54 = vpop.f32.mrb[95].mxu1 }
 0x1bc   : > { %3450 = vst.msk [vmem:[#allocation4 + $0x40] sm:$0xff] %vm716_vm3, %v3418_v42  ;;  %v2969_v46 = vadd.f32 %v2937_v44, %v2834_v54  ;;  %v3389_v56 = vld [vmem:[#allocation4 + $0x58] sm:$0xff]  ;;  %v2948_v42 = vld [vmem:[#allocation4 + $0xc8] sm:$0xff] }
 0x1bd   : > { %3002 = vst.msk [vmem:[#allocation4 + $0x78] sm:$0xff] %vm716_vm3, %v2970_v50  ;;  %v3421_v35 = vadd.f32 %v11882_v45, %v3389_v56  ;;  %v3388_v58 = vld [vmem:[#allocation4 + $0x50] sm:$0xff]  ;;  %v11891_v38 = vpop.f32.mrb[96].mxu0  ;;  %v2944_v45 = vld [vmem:[#allocation4 + $0xa8] sm:$0xff] }
 0x1be   : > { %3001 = vst.msk [vmem:[#allocation4 + $0x70] sm:$0xff] %vm716_vm3, %v2969_v46  ;;  %v3420_v41 = vadd.f32 %v3388_v58, %v3269_v9  ;;  %v11841_v32 = vpop.f32.mrb[96].mxu1  ;;  %v3299_v60 = vpop.f32.mrb[97].mxu0 }
 0x1bf   : > { %3453 = vst.msk [vmem:[#allocation4 + $0x58] sm:$0xff] %vm716_vm3, %v3421_v35  ;;  %v2972_v36 = vadd.f32 %v11841_v32, %v2940_v51  ;;  %v2844_v5 = vpop.f32.mrb[97].mxu1 }
 0x1c0   : > { %3452 = vst.msk [vmem:[#allocation4 + $0x50] sm:$0xff] %vm716_vm3, %v3420_v41  ;;  %v2971_v62 = vadd.f32 %v2939_v43, %v2844_v5  ;;  %v3391_v48 = vld [vmem:[#allocation4 + $0x68] sm:$0xff] }
 0x1c1   : > { %3004 = vst.msk [vmem:[#allocation4 + $0x88] sm:$0xff] %vm716_vm3, %v2972_v36  ;;  %v3423_v53 = vadd.f32 %v11885_v29, %v3391_v48  ;;  %v3390_v7 = vld [vmem:[#allocation4 + $0x60] sm:$0xff]  ;;  %v11894_v55 = vpop.f32.mrb[98].mxu0 }
 0x1c2   : > { %3003 = vst.msk [vmem:[#allocation4 + $0x80] sm:$0xff] %vm716_vm3, %v2971_v62  ;;  %v3422_v37 = vadd.f32 %v3390_v7, %v3279_v18  ;;  %v11844_v23 = vpop.f32.mrb[98].mxu1  ;;  %v3309_v13 = vpop.f32.mrb[99].mxu0 }
 0x1c3   : > { %3455 = vst.msk [vmem:[#allocation4 + $0x68] sm:$0xff] %vm716_vm3, %v3423_v53  ;;  %v2974_v0 = vadd.f32 %v11844_v23, %v2942_v15  ;;  %v2854_v57 = vpop.f32.mrb[99].mxu1 }
 0x1c4   : > { %3454 = vst.msk [vmem:[#allocation4 + $0x60] sm:$0xff] %vm716_vm3, %v3422_v37  ;;  %v2973_v3 = vadd.f32 %v2941_v59, %v2854_v57  ;;  %v3393_v61 = vld [vmem:[#allocation4 + $0x78] sm:$0xff] }
 0x1c5   : > { %3006 = vst.msk [vmem:[#allocation4 + $0x98] sm:$0xff] %vm716_vm3, %v2974_v0  ;;  %v3425_v25 = vadd.f32 %v11888_v26, %v3393_v61  ;;  %v3392_v1 = vld [vmem:[#allocation4 + $0x70] sm:$0xff]  ;;  %v11897_v63 = vpop.f32.mrb[100].mxu0 }
 0x1c6   : > { %3005 = vst.msk [vmem:[#allocation4 + $0x90] sm:$0xff] %vm716_vm3, %v2973_v3  ;;  %v3424_v2 = vadd.f32 %v3392_v1, %v3289_v28  ;;  %v11847_v47 = vpop.f32.mrb[100].mxu1  ;;  %v3319_v52 = vpop.f32.mrb[101].mxu0 }
 0x1c7   : > { %3457 = vst.msk [vmem:[#allocation4 + $0x78] sm:$0xff] %vm716_vm3, %v3425_v25  ;;  %v2976_v21 = vadd.f32 %v11847_v47, %v2944_v45  ;;  %v2864_v9 = vpop.f32.mrb[101].mxu1 }
 0x1c8   : > { %3456 = vst.msk [vmem:[#allocation4 + $0x70] sm:$0xff] %vm716_vm3, %v3424_v2  ;;  %v2975_v11 = vadd.f32 %v2943_v12, %v2864_v9  ;;  %v3395_v14 = vld [vmem:[#allocation4 + $0x88] sm:$0xff] }
 0x1c9   : > { %3008 = vst.msk [vmem:[#allocation4 + $0xa8] sm:$0xff] %vm716_vm3, %v2976_v21  ;;  %v3427_v6 = vadd.f32 %v11891_v38, %v3395_v14  ;;  %v3394_v4 = vld [vmem:[#allocation4 + $0x80] sm:$0xff]  ;;  %v11900_v17 = vpop.f32.mrb[102].mxu0  ;;  %v2950_v38 = vld [vmem:[#allocation4 + $0xd8] sm:$0xff] }
 0x1ca   : > { %3007 = vst.msk [vmem:[#allocation4 + $0xa0] sm:$0xff] %vm716_vm3, %v2975_v11  ;;  %v3426_v34 = vadd.f32 %v3394_v4, %v3299_v60  ;;  %v11850_v29 = vpop.f32.mrb[102].mxu1  ;;  %v3329_v31 = vpop.f32.mrb[103].mxu0  ;;  %v2949_v60 = vld [vmem:[#allocation4 + $0xd0] sm:$0xff]  ;;  %v3833_v4 = vld [vmem:[#allocation4 + $0x8] sm:$0xff] }
 0x1cb   : > { %3459 = vst.msk [vmem:[#allocation4 + $0x88] sm:$0xff] %vm716_vm3, %v3427_v6  ;;  %v2978_v19 = vadd.f32 %v11850_v29, %v2946_v30  ;;  %v2874_v18 = vpop.f32.mrb[103].mxu1  ;;  %v3832_v30 = vld [vmem:[#allocation4] sm:$0xff] }
 0x1cc   : > { %3458 = vst.msk [vmem:[#allocation4 + $0x80] sm:$0xff] %vm716_vm3, %v3426_v34  ;;  %v2977_v20 = vadd.f32 %v2945_v39, %v2874_v18  ;;  %v3397_v22 = vld [vmem:[#allocation4 + $0x98] sm:$0xff] }
 0x1cd   : > { %3010 = vst.msk [vmem:[#allocation4 + $0xb8] sm:$0xff] %vm716_vm3, %v2978_v19  ;;  %v3429_v40 = vadd.f32 %v11894_v55, %v3397_v22  ;;  %v3396_v10 = vld [vmem:[#allocation4 + $0x90] sm:$0xff]  ;;  %v11903_v16 = vpop.f32.mrb[104].mxu0  ;;  %v2952_v55 = vld [vmem:[#allocation4 + $0xe8] sm:$0xff] }
 0x1ce   : > { %3009 = vst.msk [vmem:[#allocation4 + $0xb0] sm:$0xff] %vm716_vm3, %v2977_v20  ;;  %v3428_v24 = vadd.f32 %v3396_v10, %v3309_v13  ;;  %v11853_v26 = vpop.f32.mrb[104].mxu1  ;;  %v3339_v27 = vpop.f32.mrb[105].mxu0  ;;  %v2951_v13 = vld [vmem:[#allocation4 + $0xe0] sm:$0xff]  ;;  %v3835_v10 = vld [vmem:[#allocation4 + $0x18] sm:$0xff] }
 0x1cf   : > { %3461 = vst.msk [vmem:[#allocation4 + $0x98] sm:$0xff] %vm716_vm3, %v3429_v40  ;;  %v2980_v49 = vadd.f32 %v11853_v26, %v2948_v42  ;;  %v2884_v28 = vpop.f32.mrb[105].mxu1  ;;  %v3834_v42 = vld [vmem:[#allocation4 + $0x10] sm:$0xff] }
 0x1d0   : > { %3460 = vst.msk [vmem:[#allocation4 + $0x90] sm:$0xff] %vm716_vm3, %v3428_v24  ;;  %v2979_v50 = vadd.f32 %v2947_v33, %v2884_v28  ;;  %v3399_v54 = vld [vmem:[#allocation4 + $0xa8] sm:$0xff] }
 0x1d1   : > { %3012 = vst.msk [vmem:[#allocation4 + $0xc8] sm:$0xff] %vm716_vm3, %v2980_v49  ;;  %v3431_v44 = vadd.f32 %v11897_v63, %v3399_v54  ;;  %v3398_v46 = vld [vmem:[#allocation4 + $0xa0] sm:$0xff]  ;;  %v11906_v56 = vpop.f32.mrb[106].mxu0  ;;  %v2954_v63 = vld [vmem:[#allocation4 + $0xf8] sm:$0xff] }
 0x1d2   : > { %3011 = vst.msk [vmem:[#allocation4 + $0xc0] sm:$0xff] %vm716_vm3, %v2979_v50  ;;  %v3430_v35 = vadd.f32 %v3398_v46, %v3319_v52  ;;  %v11856_v58 = vpop.f32.mrb[106].mxu1  ;;  %v3349_v41 = vpop.f32.mrb[107].mxu0  ;;  %v2953_v52 = vld [vmem:[#allocation4 + $0xf0] sm:$0xff]  ;;  %v3837_v46 = vld [vmem:[#allocation4 + $0x28] sm:$0xff] }
 0x1d3   : > { %3463 = vst.msk [vmem:[#allocation4 + $0xa8] sm:$0xff] %vm716_vm3, %v3431_v44  ;;  %v2982_v32 = vadd.f32 %v11856_v58, %v2950_v38  ;;  %v2894_v51 = vpop.f32.mrb[107].mxu1  ;;  %v3836_v38 = vld [vmem:[#allocation4 + $0x20] sm:$0xff] }
 0x1d4   : > { %3462 = vst.msk [vmem:[#allocation4 + $0xa0] sm:$0xff] %vm716_vm3, %v3430_v35  ;;  %v2981_v36 = vadd.f32 %v2949_v60, %v2894_v51  ;;  %v3401_v5 = vld [vmem:[#allocation4 + $0xb8] sm:$0xff] }
 0x1d5   : > { %3014 = vst.msk [vmem:[#allocation4 + $0xd8] sm:$0xff] %vm716_vm3, %v2982_v32  ;;  %v3433_v43 = vadd.f32 %v11900_v17, %v3401_v5  ;;  %v3400_v62 = vld [vmem:[#allocation4 + $0xb0] sm:$0xff]  ;;  %v11909_v48 = vpop.f32.mrb[108].mxu0 }
 0x1d6   : > { %3013 = vst.msk [vmem:[#allocation4 + $0xd0] sm:$0xff] %vm716_vm3, %v2981_v36  ;;  %v3432_v53 = vadd.f32 %v3400_v62, %v3329_v31  ;;  %v11859_v7 = vpop.f32.mrb[108].mxu1  ;;  %v3359_v37 = vpop.f32.mrb[109].mxu0  ;;  %v3839_v62 = vld [vmem:[#allocation4 + $0x38] sm:$0xff] }
 0x1d7   : > { %3465 = vst.msk [vmem:[#allocation4 + $0xb8] sm:$0xff] %vm716_vm3, %v3433_v43  ;;  %v2984_v23 = vadd.f32 %v11859_v7, %v2952_v55  ;;  %v2904_v15 = vpop.f32.mrb[109].mxu1  ;;  %v3838_v55 = vld [vmem:[#allocation4 + $0x30] sm:$0xff] }
 0x1d8   : > { %3464 = vst.msk [vmem:[#allocation4 + $0xb0] sm:$0xff] %vm716_vm3, %v3432_v53  ;;  %v2983_v0 = vadd.f32 %v2951_v13, %v2904_v15  ;;  %v3403_v57 = vld [vmem:[#allocation4 + $0xc8] sm:$0xff] }
 0x1d9   : > { %3016 = vst.msk [vmem:[#allocation4 + $0xe8] sm:$0xff] %vm716_vm3, %v2984_v23  ;;  %v3435_v59 = vadd.f32 %v11903_v16, %v3403_v57  ;;  %v3402_v3 = vld [vmem:[#allocation4 + $0xc0] sm:$0xff]  ;;  %v11912_v61 = vpop.f32.mrb[110].mxu0 }
 0x1da   : > { %3015 = vst.msk [vmem:[#allocation4 + $0xe0] sm:$0xff] %vm716_vm3, %v2983_v0  ;;  %v3434_v25 = vadd.f32 %v3402_v3, %v3339_v27  ;;  %v11862_v1 = vpop.f32.mrb[110].mxu1  ;;  %v3369_v2 = vpop.f32.mrb[111].mxu0  ;;  %v3841_v3 = vld [vmem:[#allocation4 + $0x48] sm:$0xff] }
 0x1db   : > { %3467 = vst.msk [vmem:[#allocation4 + $0xc8] sm:$0xff] %vm716_vm3, %v3435_v59  ;;  %v2986_v47 = vadd.f32 %v11862_v1, %v2954_v63  ;;  %v2914_v45 = vpop.f32.mrb[111].mxu1  ;;  %v3840_v63 = vld [vmem:[#allocation4 + $0x40] sm:$0xff] }
 0x1dc   : > { %3466 = vst.msk [vmem:[#allocation4 + $0xc0] sm:$0xff] %vm716_vm3, %v3434_v25  ;;  %v2985_v8 = vadd.f32 %v2953_v52, %v2914_v45  ;;  %v3405_v21 = vld [vmem:[#allocation4 + $0xd8] sm:$0xff]  ;;  %v13943_v45 = vld [vmem:[%s15644_s2] ss:$0 sm:$0xff] }
 0x1dd   : > { %3018 = vst.msk [vmem:[#allocation4 + $0xf8] sm:$0xff] %vm716_vm3, %v2986_v47  ;;  %v3437_v9 = vadd.f32 %v11906_v56, %v3405_v21  ;;  %v3404_v12 = vld [vmem:[#allocation4 + $0xd0] sm:$0xff]  ;;  %v11967_v11 = vpop.f32.mrb[112].mxu0 }
 0x1de   : > { %3017 = vst.msk [vmem:[#allocation4 + $0xf0] sm:$0xff] %vm716_vm3, %v2985_v8  ;;  %v3436_v14 = vadd.f32 %v3404_v12, %v3349_v41  ;;  %v11917_v6 = vpop.f32.mrb[112].mxu1  ;;  %v4127_v17 = vpop.f32.mrb[113].mxu0 }
 0x1df   : > { %3469 = vst.msk [vmem:[#allocation4 + $0xd8] sm:$0xff] %vm716_vm3, %v3437_v9  ;;  %v3865_v34 = vadd.f32 %v11917_v6, %v3833_v4  ;;  %v3673_v29 = vpop.f32.mrb[113].mxu1 }
 0x1e0   : > { %3468 = vst.msk [vmem:[#allocation4 + $0xd0] sm:$0xff] %vm716_vm3, %v3436_v14  ;;  %v3407_v31 = vld [vmem:[#allocation4 + $0xe8] sm:$0xff]  ;;  %v3864_v19 = vadd.f32 %v3832_v30, %v3673_v29  ;;  %v3843_v14 = vld [vmem:[#allocation4 + $0x58] sm:$0xff]  ;;  %v3842_v29 = vld [vmem:[#allocation4 + $0x50] sm:$0xff] }
 0x1e1   : > { %3897 = vst.msk [vmem:[#allocation4 + $0x8] sm:$0xff] %vm716_vm3, %v3865_v34  ;;  %v3439_v18 = vadd.f32 %v11909_v48, %v3407_v31  ;;  %v3406_v39 = vld [vmem:[#allocation4 + $0xe0] sm:$0xff]  ;;  %v11970_v20 = vpop.f32.mrb[114].mxu0 }
 0x1e2   : > { %3896 = vst.msk [vmem:[#allocation4] sm:$0xff] %vm716_vm3, %v3864_v19  ;;  %v3438_v22 = vadd.f32 %v3406_v39, %v3359_v37  ;;  %v11920_v40 = vpop.f32.mrb[114].mxu1  ;;  %v4137_v16 = vpop.f32.mrb[115].mxu0 }
 0x1e3   : > { %3471 = vst.msk [vmem:[#allocation4 + $0xe8] sm:$0xff] %vm716_vm3, %v3439_v18  ;;  %v3867_v24 = vadd.f32 %v11920_v40, %v3835_v10  ;;  %v3683_v26 = vpop.f32.mrb[115].mxu1 }
 0x1e4   : > { %3470 = vst.msk [vmem:[#allocation4 + $0xe0] sm:$0xff] %vm716_vm3, %v3438_v22  ;;  %v3409_v27 = vld [vmem:[#allocation4 + $0xf8] sm:$0xff]  ;;  %v3866_v49 = vadd.f32 %v3834_v42, %v3683_v26  ;;  %v3845_v26 = vld [vmem:[#allocation4 + $0x68] sm:$0xff] }
 0x1e5   : > { %3899 = vst.msk [vmem:[#allocation4 + $0x18] sm:$0xff] %vm716_vm3, %v3867_v24  ;;  %v3441_v28 = vadd.f32 %v11912_v61, %v3409_v27  ;;  %v3408_v33 = vld [vmem:[#allocation4 + $0xf0] sm:$0xff]  ;;  %v11973_v50 = vpop.f32.mrb[116].mxu0 }
 0x1e6   : > { %3898 = vst.msk [vmem:[#allocation4 + $0x10] sm:$0xff] %vm716_vm3, %v3866_v49  ;;  %v3440_v54 = vadd.f32 %v3408_v33, %v3369_v2  ;;  %v11923_v44 = vpop.f32.mrb[116].mxu1  ;;  %v4147_v56 = vpop.f32.mrb[117].mxu0 }
 0x1e7   : > { %3473 = vst.msk [vmem:[#allocation4 + $0xf8] sm:$0xff] %vm716_vm3, %v3441_v28  ;;  %v3869_v35 = vadd.f32 %v11923_v44, %v3837_v46  ;;  %v3693_v58 = vpop.f32.mrb[117].mxu1 }
 0x1e8   : > { %3472 = vst.msk [vmem:[#allocation4 + $0xf0] sm:$0xff] %vm716_vm3, %v3440_v54  ;;  %v3868_v41 = vadd.f32 %v3836_v38, %v3693_v58  ;;  %v4287_v32 = vld [vmem:[#allocation4 + $0x8] sm:$0xff] }
 0x1e9   : > { %3901 = vst.msk [vmem:[#allocation4 + $0x28] sm:$0xff] %vm716_vm3, %v3869_v35  ;;  %v4319_v51 = vadd.f32 %v11967_v11, %v4287_v32  ;;  %v4286_v60 = vld [vmem:[#allocation4] sm:$0xff]  ;;  %v11976_v36 = vpop.f32.mrb[118].mxu0 }
 0x1ea   : > { %3900 = vst.msk [vmem:[#allocation4 + $0x20] sm:$0xff] %vm716_vm3, %v3868_v41  ;;  %v4318_v5 = vadd.f32 %v4286_v60, %v4127_v17  ;;  %v11926_v43 = vpop.f32.mrb[118].mxu1  ;;  %v4157_v48 = vpop.f32.mrb[119].mxu0 }
 0x1eb   : > { %4351 = vst.msk [vmem:[#allocation4 + $0x8] sm:$0xff] %vm716_vm3, %v4319_v51  ;;  %v3871_v53 = vadd.f32 %v11926_v43, %v3839_v62  ;;  %v3703_v7 = vpop.f32.mrb[119].mxu1 }
 0x1ec   : > { %4350 = vst.msk [vmem:[#allocation4] sm:$0xff] %vm716_vm3, %v4318_v5  ;;  %v3870_v37 = vadd.f32 %v3838_v55, %v3703_v7  ;;  %v4289_v23 = vld [vmem:[#allocation4 + $0x18] sm:$0xff]  ;;  %v3846_v7 = vld [vmem:[#allocation4 + $0x70] sm:$0xff] }
 0x1ed   : > { %3903 = vst.msk [vmem:[#allocation4 + $0x38] sm:$0xff] %vm716_vm3, %v3871_v53  ;;  %v4321_v15 = vadd.f32 %v11970_v20, %v4289_v23  ;;  %v4288_v13 = vld [vmem:[#allocation4 + $0x10] sm:$0xff]  ;;  %v11979_v0 = vpop.f32.mrb[120].mxu0 }
 0x1ee   : > { %3902 = vst.msk [vmem:[#allocation4 + $0x30] sm:$0xff] %vm716_vm3, %v3870_v37  ;;  %v4320_v57 = vadd.f32 %v4288_v13, %v4137_v16  ;;  %v11929_v59 = vpop.f32.mrb[120].mxu1  ;;  %v4167_v61 = vpop.f32.mrb[121].mxu0 }
 0x1ef   : > { %4353 = vst.msk [vmem:[#allocation4 + $0x18] sm:$0xff] %vm716_vm3, %v4321_v15  ;;  %v3873_v25 = vadd.f32 %v11929_v59, %v3841_v3  ;;  %v3713_v1 = vpop.f32.mrb[121].mxu1 }
 0x1f0   : > { %4352 = vst.msk [vmem:[#allocation4 + $0x10] sm:$0xff] %vm716_vm3, %v4320_v57  ;;  %v3872_v2 = vadd.f32 %v3840_v63, %v3713_v1  ;;  %v4291_v47 = vld [vmem:[#allocation4 + $0x28] sm:$0xff]  ;;  %v3848_v63 = vld [vmem:[#allocation4 + $0x80] sm:$0xff] }
 0x1f1   : > { %3905 = vst.msk [vmem:[#allocation4 + $0x48] sm:$0xff] %vm716_vm3, %v3873_v25  ;;  %v4323_v52 = vadd.f32 %v11973_v50, %v4291_v47  ;;  %v4290_v8 = vld [vmem:[#allocation4 + $0x20] sm:$0xff]  ;;  %v13946_v21 = vpop.f32.mrb[122].mxu0  ;;  %v3849_v1 = vld [vmem:[#allocation4 + $0x88] sm:$0xff] }
 0x1f2   : > { %v4424_v9 = vld [vmem:[#allocation4 + $0x8] sm:$0xff]  ;;  %3904 = vst.msk [vmem:[#allocation4 + $0x40] sm:$0xff] %vm716_vm3, %v3872_v2  ;;  %v4322_v12 = vadd.f32 %v4290_v8, %v4147_v56  ;;  %v11932_v11 = vpop.f32.mrb[122].mxu1  ;;  %v13949_v6 = vpop.f32.mrb[123].mxu0  ;;  %v3844_v50 = vld [vmem:[#allocation4 + $0x60] sm:$0xff] }
 0x1f3   : > { %v4423_v4 = vld [vmem:[#allocation4] sm:$0xff]  ;;  %4355 = vst.msk [vmem:[#allocation4 + $0x28] sm:$0xff] %vm716_vm3, %v4323_v52  ;;  %v3875_v17 = vadd.f32 %v11932_v11, %v3843_v14  ;;  %v3723_v34 = vpop.f32.mrb[123].mxu1  ;;  %v4463_v30 = vadd.f32 %v13943_v45, %v4424_v9 }
 0x1f4   : > { %4354 = vst.msk [vmem:[#allocation4 + $0x20] sm:$0xff] %vm716_vm3, %v4322_v12  ;;  %v3874_v31 = vadd.f32 %v3842_v29, %v3723_v34  ;;  %v4293_v19 = vld [vmem:[#allocation4 + $0x38] sm:$0xff]  ;;  %v4462_v18 = vadd.f32 %v13943_v45, %v4423_v4 }
 0x1f5   : > { %3907 = vst.msk [vmem:[#allocation4 + $0x58] sm:$0xff] %vm716_vm3, %v3875_v17  ;;  %v4325_v39 = vadd.f32 %v11976_v36, %v4293_v19  ;;  %v4292_v20 = vld [vmem:[#allocation4 + $0x30] sm:$0xff]  ;;  %v13956_v22 = vpop.f32.mrb[124].mxu0  ;;  %v4495_v40 = vmax.f32 %v4463_v30, 0.0  ;;  %v3847_v36 = vld [vmem:[#allocation4 + $0x78] sm:$0xff] }
 0x1f6   : > { %v4426_v10 = vld [vmem:[#allocation4 + $0x18] sm:$0xff]  ;;  %3906 = vst.msk [vmem:[#allocation4 + $0x50] sm:$0xff] %vm716_vm3, %v3874_v31  ;;  %v4324_v16 = vadd.f32 %v4292_v20, %v4157_v48  ;;  %v11935_v24 = vpop.f32.mrb[124].mxu1  ;;  %v13959_v42 = vpop.f32.mrb[125].mxu0  ;;  %v4494_v27 = vmax.f32 %v4462_v18, 0.0 }
 0x1f7   : > { %v4425_v49 = vld [vmem:[#allocation4 + $0x10] sm:$0xff]  ;;  %4357 = vst.msk [vmem:[#allocation4 + $0x38] sm:$0xff] %vm716_vm3, %v4325_v39  ;;  %v3877_v28 = vadd.f32 %v11935_v24, %v3845_v26  ;;  %v3733_v33 = vpop.f32.mrb[125].mxu1  ;;  %4527 = vst.msk [vmem:[#allocation3 + $0x21] sm:$0xff] %vm716_vm3, %v4495_v40  ;;  %v4465_v54 = vadd.f32 %v13943_v45, %v4426_v10  ;;  %v3851_v40 = vld [vmem:[#allocation4 + $0x98] sm:$0xff] }
 0x1f8   : > { %4356 = vst.msk [vmem:[#allocation4 + $0x30] sm:$0xff] %vm716_vm3, %v4324_v16  ;;  %v3876_v44 = vadd.f32 %v3844_v50, %v3733_v33  ;;  %v4295_v46 = vld [vmem:[#allocation4 + $0x48] sm:$0xff]  ;;  %4526 = vst.msk [vmem:[#allocation3 + $0x19] sm:$0xff] %vm716_vm3, %v4494_v27  ;;  %v4464_v56 = vadd.f32 %v13943_v45, %v4425_v49  ;;  %v3850_v10 = vld [vmem:[#allocation4 + $0x90] sm:$0xff] }
 0x1f9   : > { %3909 = vst.msk [vmem:[#allocation4 + $0x68] sm:$0xff] %vm716_vm3, %v3877_v28  ;;  %v4327_v35 = vadd.f32 %v11979_v0, %v4295_v46  ;;  %v4294_v58 = vld [vmem:[#allocation4 + $0x40] sm:$0xff]  ;;  %v13968_v38 = vpop.f32.mrb[126].mxu0  ;;  %v4497_v41 = vmax.f32 %v4465_v54, 0.0 }
 0x1fa   : > { %v4428_v32 = vld [vmem:[#allocation4 + $0x28] sm:$0xff]  ;;  %3908 = vst.msk [vmem:[#allocation4 + $0x60] sm:$0xff] %vm716_vm3, %v3876_v44  ;;  %v4326_v51 = vadd.f32 %v4294_v58, %v4167_v61  ;;  %v11938_v60 = vpop.f32.mrb[126].mxu1  ;;  %v13971_v5 = vpop.f32.mrb[127].mxu0  ;;  %v4496_v43 = vmax.f32 %v4464_v56, 0.0 }
 0x1fb   : > { %v4427_v62 = vld [vmem:[#allocation4 + $0x20] sm:$0xff]  ;;  %4359 = vst.msk [vmem:[#allocation4 + $0x48] sm:$0xff] %vm716_vm3, %v4327_v35  ;;  %v3879_v48 = vadd.f32 %v11938_v60, %v3847_v36  ;;  %v3743_v53 = vpop.f32.mrb[127].mxu1  ;;  %4529 = vst.msk [vmem:[#allocation3 + $0x39] sm:$0xff] %vm716_vm3, %v4497_v41  ;;  %v4467_v55 = vadd.f32 %v13943_v45, %v4428_v32  ;;  %v3853_v36 = vld [vmem:[#allocation4 + $0xa8] sm:$0xff] }
 0x1fc   : > { %4358 = vst.msk [vmem:[#allocation4 + $0x40] sm:$0xff] %vm716_vm3, %v4326_v51  ;;  %v3878_v37 = vadd.f32 %v3846_v7, %v3743_v53  ;;  %v4297_v23 = vld [vmem:[#allocation4 + $0x58] sm:$0xff]  ;;  %4528 = vst.msk [vmem:[#allocation3 + $0x31] sm:$0xff] %vm716_vm3, %v4496_v43  ;;  %v4466_v15 = vadd.f32 %v13943_v45, %v4427_v62  ;;  %v3852_v43 = vld [vmem:[#allocation4 + $0xa0] sm:$0xff] }
 0x1fd   : > { %3911 = vst.msk [vmem:[#allocation4 + $0x78] sm:$0xff] %vm716_vm3, %v3879_v48  ;;  %v4329_v13 = vadd.f32 %v13946_v21, %v4297_v23  ;;  %v4296_v0 = vld [vmem:[#allocation4 + $0x50] sm:$0xff]  ;;  %v13981_v57 = vpop.f32.mrb[128].mxu0  ;;  %v4499_v59 = vmax.f32 %v4467_v55, 0.0 }
 0x1fe   : > { %v4430_v3 = vld [vmem:[#allocation4 + $0x38] sm:$0xff]  ;;  %3910 = vst.msk [vmem:[#allocation4 + $0x70] sm:$0xff] %vm716_vm3, %v3878_v37  ;;  %v4328_v61 = vadd.f32 %v4296_v0, %v13949_v6  ;;  %v11941_v25 = vpop.f32.mrb[128].mxu1  ;;  %v13985_v2 = vpop.f32.mrb[129].mxu0  ;;  %v4498_v47 = vmax.f32 %v4466_v15, 0.0 }
 0x1ff   : > { %v4429_v52 = vld [vmem:[#allocation4 + $0x30] sm:$0xff]  ;;  %4361 = vst.msk [vmem:[#allocation4 + $0x58] sm:$0xff] %vm716_vm3, %v4329_v13  ;;  %v3881_v8 = vadd.f32 %v11941_v25, %v3849_v1  ;;  %v3753_v21 = vpop.f32.mrb[129].mxu1  ;;  %v13988_v9 = vld [vmem:[#allocation3 + $0x18] sm:$0xff]  ;;  %4531 = vst.msk [vmem:[#allocation3 + $0x51] sm:$0xff] %vm716_vm3, %v4499_v59  ;;  %v4469_v11 = vadd.f32 %v13943_v45, %v4430_v3 }
 0x200   : > { %v13990_v12 = vld [vmem:[#allocation3 + $0x19] sm:$0xff]  ;;  %4360 = vst.msk [vmem:[#allocation4 + $0x50] sm:$0xff] %vm716_vm3, %v4328_v61  ;;  %v3880_v14 = vadd.f32 %v3848_v63, %v3753_v21  ;;  %12018 = vmatprep.mubr.msk.f32.mxu1 %vm716_vm3, %v13988_v9  ;;  %v14001_v17 = vld [vmem:[#allocation3 + $0x21] sm:$0xff]  ;;  %4530 = vst.msk [vmem:[#allocation3 + $0x49] sm:$0xff] %vm716_vm3, %v4498_v47  ;;  %v4468_v34 = vadd.f32 %v13943_v45, %v4429_v52 }
 0x201   : > { %v4299_v6 = vld [vmem:[#allocation4 + $0x68] sm:$0xff]  ;;  %12068 = vmatprep.mubr.msk.f32.mxu0 %vm716_vm3, %v13990_v12  ;;  %v13999_v4 = vld [vmem:[#allocation3 + $0x20] sm:$0xff]  ;;  %3913 = vst.msk [vmem:[#allocation4 + $0x88] sm:$0xff] %vm716_vm3, %v3881_v8  ;;  %v4298_v30 = vld [vmem:[#allocation4 + $0x60] sm:$0xff]  ;;  %v14011_v31 = vpop.f32.mrb[130].mxu0  ;;  %v4501_v19 = vmax.f32 %v4469_v11, 0.0 }
 0x202   : > { %v4331_v29 = vadd.f32 %v13956_v22, %v4299_v6  ;;  %12019 = vmatmul.mubr.msk.f32.gmra.mrb[146].mxu1 %vm716_vm3, %v13999_v4  ;;  %12069 = vmatmul.mubr.msk.f32.gmra.mrb[146].mxu0 %vm716_vm3, %v14001_v17  ;;  %v4432_v18 = vld [vmem:[#allocation4 + $0x48] sm:$0xff]  ;;  %3912 = vst.msk [vmem:[#allocation4 + $0x80] sm:$0xff] %vm716_vm3, %v3880_v14  ;;  %v4330_v39 = vadd.f32 %v4298_v30, %v13959_v42  ;;  %v11944_v20 = vpop.f32.mrb[130].mxu1  ;;  %v14015_v16 = vpop.f32.mrb[131].mxu0  ;;  %v4500_v22 = vmax.f32 %v4468_v34, 0.0  ;;  %v3855_v8 = vld [vmem:[#allocation4 + $0xb8] sm:$0xff] }
 0x203   : > { %v4431_v24 = vld [vmem:[#allocation4 + $0x40] sm:$0xff]  ;;  %v3883_v26 = vadd.f32 %v11944_v20, %v3851_v40  ;;  %v3763_v27 = vpop.f32.mrb[131].mxu1  ;;  %4533 = vst.msk [vmem:[#allocation3 + $0x69] sm:$0xff] %vm716_vm3, %v4501_v19  ;;  %v4471_v33 = vadd.f32 %v13943_v45, %v4432_v18  ;;  %v14029_v54 = vld [vmem:[#allocation3 + $0x38] sm:$0xff]  ;;  %v3854_v21 = vld [vmem:[#allocation4 + $0xb0] sm:$0xff] }
 0x204   : > { %4363 = vst.msk [vmem:[#allocation4 + $0x68] sm:$0xff] %vm716_vm3, %v4331_v29  ;;  %v14018_v49 = vld [vmem:[#allocation3 + $0x30] sm:$0xff]  ;;  %4362 = vst.msk [vmem:[#allocation4 + $0x60] sm:$0xff] %vm716_vm3, %v4330_v39  ;;  %v3882_v42 = vadd.f32 %v3850_v10, %v3763_v27  ;;  %v4301_v50 = vld [vmem:[#allocation4 + $0x78] sm:$0xff]  ;;  %v4470_v46 = vadd.f32 %v13943_v45, %v4431_v24 }
 0x205   : > { %v14020_v28 = vld [vmem:[#allocation3 + $0x31] sm:$0xff]  ;;  %12021 = vmatprep.mubr.msk.f32.mxu1 %vm716_vm3, %v14018_v49  ;;  %v14031_v44 = vld [vmem:[#allocation3 + $0x39] sm:$0xff]  ;;  %4532 = vst.msk [vmem:[#allocation3 + $0x61] sm:$0xff] %vm716_vm3, %v4500_v22  ;;  %3915 = vst.msk [vmem:[#allocation4 + $0x98] sm:$0xff] %vm716_vm3, %v3883_v26  ;;  %v4333_v56 = vadd.f32 %v13968_v38, %v4301_v50  ;;  %v14041_v58 = vpop.f32.mrb[132].mxu0  ;;  %v4503_v41 = vmax.f32 %v4471_v33, 0.0 }
 0x206   : > { %12071 = vmatprep.mubr.msk.f32.mxu0 %vm716_vm3, %v14020_v28  ;;  %v4300_v35 = vld [vmem:[#allocation4 + $0x70] sm:$0xff]  ;;  %12022 = vmatmul.mubr.msk.f32.gmra.mrb[148].mxu1 %vm716_vm3, %v14029_v54  ;;  %v4434_v32 = vld [vmem:[#allocation4 + $0x58] sm:$0xff]  ;;  %3914 = vst.msk [vmem:[#allocation4 + $0x90] sm:$0xff] %vm716_vm3, %v3882_v42  ;;  %v11947_v60 = vpop.f32.mrb[132].mxu1  ;;  %v14045_v62 = vpop.f32.mrb[133].mxu0  ;;  %v4502_v38 = vmax.f32 %v4470_v46, 0.0 }
 0x207   : > { %12072 = vmatmul.mubr.msk.f32.gmra.mrb[148].mxu0 %vm716_vm3, %v14031_v44  ;;  %v4332_v51 = vadd.f32 %v4300_v35, %v13971_v5  ;;  %v4433_v48 = vld [vmem:[#allocation4 + $0x50] sm:$0xff]  ;;  %4365 = vst.msk [vmem:[#allocation4 + $0x78] sm:$0xff] %vm716_vm3, %v4333_v56  ;;  %v3885_v53 = vadd.f32 %v11947_v60, %v3853_v36  ;;  %v3773_v7 = vpop.f32.mrb[133].mxu1  ;;  %v14048_v55 = vld [vmem:[#allocation3 + $0x48] sm:$0xff]  ;;  %4535 = vst.msk [vmem:[#allocation3 + $0x81] sm:$0xff] %vm716_vm3, %v4503_v41  ;;  %v4473_v23 = vadd.f32 %v13943_v45, %v4434_v32 }
 0x208   : > { %v14050_v37 = vld [vmem:[#allocation3 + $0x49] sm:$0xff]  ;;  %v3884_v5 = vadd.f32 %v3852_v43, %v3773_v7  ;;  %v4303_v15 = vld [vmem:[#allocation4 + $0x88] sm:$0xff]  ;;  %12024 = vmatprep.mubr.msk.f32.mxu1 %vm716_vm3, %v14048_v55  ;;  %4534 = vst.msk [vmem:[#allocation3 + $0x79] sm:$0xff] %vm716_vm3, %v4502_v38  ;;  %v4472_v59 = vadd.f32 %v13943_v45, %v4433_v48 }
 0x209   : > { %4364 = vst.msk [vmem:[#allocation4 + $0x70] sm:$0xff] %vm716_vm3, %v4332_v51  ;;  %12074 = vmatprep.mubr.msk.f32.mxu0 %vm716_vm3, %v14050_v37  ;;  %v14059_v13 = vld [vmem:[#allocation3 + $0x50] sm:$0xff]  ;;  %3917 = vst.msk [vmem:[#allocation4 + $0xa8] sm:$0xff] %vm716_vm3, %v3885_v53  ;;  %v4335_v3 = vadd.f32 %v13981_v57, %v4303_v15  ;;  %v14071_v25 = vpop.f32.mrb[134].mxu0  ;;  %v4505_v1 = vmax.f32 %v4473_v23, 0.0  ;;  %v3857_v50 = vld [vmem:[#allocation4 + $0xc8] sm:$0xff] }
 0x20a   : > { %v14061_v0 = vld [vmem:[#allocation3 + $0x51] sm:$0xff]  ;;  %12025 = vmatmul.mubr.msk.f32.gmra.mrb[150].mxu1 %vm716_vm3, %v14059_v13  ;;  %3916 = vst.msk [vmem:[#allocation4 + $0xa0] sm:$0xff] %vm716_vm3, %v3884_v5  ;;  %v11950_v52 = vpop.f32.mrb[134].mxu1  ;;  %v14075_v11 = vpop.f32.mrb[135].mxu0  ;;  %v4504_v57 = vmax.f32 %v4472_v59, 0.0  ;;  %v14091_v20 = vld [vmem:[#allocation3 + $0x69] sm:$0xff] }
 0x20b   : > { %v4302_v61 = vld [vmem:[#allocation4 + $0x80] sm:$0xff]  ;;  %12075 = vmatmul.mubr.msk.f32.gmra.mrb[150].mxu0 %vm716_vm3, %v14061_v0  ;;  %v4436_v63 = vld [vmem:[#allocation4 + $0x68] sm:$0xff]  ;;  %4367 = vst.msk [vmem:[#allocation4 + $0x88] sm:$0xff] %vm716_vm3, %v4335_v3  ;;  %v3887_v6 = vadd.f32 %v11950_v52, %v3855_v8  ;;  %v3783_v34 = vpop.f32.mrb[135].mxu1  ;;  %4537 = vst.msk [vmem:[#allocation3 + $0x99] sm:$0xff] %vm716_vm3, %v4505_v1 }
 0x20c   : > { %v4334_v47 = vadd.f32 %v4302_v61, %v13985_v2  ;;  %v4435_v14 = vld [vmem:[#allocation4 + $0x60] sm:$0xff]  ;;  %v14078_v29 = vld [vmem:[#allocation3 + $0x60] sm:$0xff]  ;;  %v4475_v19 = vadd.f32 %v13943_v45, %v4436_v63  ;;  %v3886_v2 = vadd.f32 %v3854_v21, %v3783_v34  ;;  %v4305_v18 = vld [vmem:[#allocation4 + $0x98] sm:$0xff]  ;;  %4536 = vst.msk [vmem:[#allocation3 + $0x91] sm:$0xff] %vm716_vm3, %v4504_v57 }
 0x20d   : > { %v14080_v30 = vld [vmem:[#allocation3 + $0x61] sm:$0xff]  ;;  %12027 = vmatprep.mubr.msk.f32.mxu1 %vm716_vm3, %v14078_v29  ;;  %v4474_v40 = vadd.f32 %v13943_v45, %v4435_v14  ;;  %3919 = vst.msk [vmem:[#allocation4 + $0xb8] sm:$0xff] %vm716_vm3, %v3887_v6  ;;  %v4337_v10 = vadd.f32 %v14011_v31, %v4305_v18  ;;  %v14101_v24 = vpop.f32.mrb[136].mxu0  ;;  %v3856_v46 = vld [vmem:[#allocation4 + $0xc0] sm:$0xff] }
 0x20e   : > { %4366 = vst.msk [vmem:[#allocation4 + $0x80] sm:$0xff] %vm716_vm3, %v4334_v47  ;;  %12077 = vmatprep.mubr.msk.f32.mxu0 %vm716_vm3, %v14080_v30  ;;  %v14089_v39 = vld [vmem:[#allocation3 + $0x68] sm:$0xff]  ;;  %v4304_v22 = vld [vmem:[#allocation4 + $0x90] sm:$0xff]  ;;  %v4507_v26 = vmax.f32 %v4475_v19, 0.0  ;;  %3918 = vst.msk [vmem:[#allocation4 + $0xb0] sm:$0xff] %vm716_vm3, %v3886_v2  ;;  %v11953_v42 = vpop.f32.mrb[136].mxu1 }
 0x20f   : > { %12028 = vmatmul.mubr.msk.f32.gmra.mrb[152].mxu1 %vm716_vm3, %v14089_v39  ;;  %12078 = vmatmul.mubr.msk.f32.gmra.mrb[152].mxu0 %vm716_vm3, %v14091_v20  ;;  %v4438_v27 = vld [vmem:[#allocation4 + $0x78] sm:$0xff]  ;;  %v4336_v33 = vadd.f32 %v4304_v22, %v14015_v16  ;;  %v14105_v56 = vpop.f32.mrb[137].mxu0  ;;  %v4506_v31 = vmax.f32 %v4474_v40, 0.0  ;;  %4369 = vst.msk [vmem:[#allocation4 + $0x98] sm:$0xff] %vm716_vm3, %v4337_v10  ;;  %v3889_v41 = vadd.f32 %v11953_v42, %v3857_v50  ;;  %v3793_v32 = vpop.f32.mrb[137].mxu1  ;;  %v14108_v51 = vld [vmem:[#allocation3 + $0x78] sm:$0xff] }
 0x210   : > { %v4437_v35 = vld [vmem:[#allocation4 + $0x70] sm:$0xff]  ;;  %4539 = vst.msk [vmem:[#allocation3 + $0xb1] sm:$0xff] %vm716_vm3, %v4507_v26  ;;  %v4477_v36 = vadd.f32 %v13943_v45, %v4438_v27  ;;  %v3888_v16 = vadd.f32 %v3856_v46, %v3793_v32  ;;  %v4307_v43 = vld [vmem:[#allocation4 + $0xa8] sm:$0xff]  ;;  %12030 = vmatprep.mubr.msk.f32.mxu1 %vm716_vm3, %v14108_v51  ;;  %v3859_v1 = vld [vmem:[#allocation4 + $0xd8] sm:$0xff] }
 0x211   : > { %v14110_v60 = vld [vmem:[#allocation3 + $0x79] sm:$0xff]  ;;  %4368 = vst.msk [vmem:[#allocation4 + $0x90] sm:$0xff] %vm716_vm3, %v4336_v33  ;;  %v14121_v48 = vld [vmem:[#allocation3 + $0x81] sm:$0xff]  ;;  %4538 = vst.msk [vmem:[#allocation3 + $0xa9] sm:$0xff] %vm716_vm3, %v4506_v31  ;;  %v4476_v53 = vadd.f32 %v13943_v45, %v4437_v35  ;;  %v4339_v7 = vadd.f32 %v14041_v58, %v4307_v43  ;;  %v14131_v5 = vpop.f32.mrb[138].mxu0 }
 0x212   : > { %12080 = vmatprep.mubr.msk.f32.mxu0 %vm716_vm3, %v14110_v60  ;;  %v14119_v38 = vld [vmem:[#allocation3 + $0x80] sm:$0xff]  ;;  %3921 = vst.msk [vmem:[#allocation4 + $0xc8] sm:$0xff] %vm716_vm3, %v3889_v41  ;;  %v4306_v23 = vld [vmem:[#allocation4 + $0xa0] sm:$0xff]  ;;  %v4509_v15 = vmax.f32 %v4477_v36, 0.0  ;;  %v4440_v59 = vld [vmem:[#allocation4 + $0x88] sm:$0xff]  ;;  %v11956_v61 = vpop.f32.mrb[138].mxu1 }
 0x213   : > { %12031 = vmatmul.mubr.msk.f32.gmra.mrb[154].mxu1 %vm716_vm3, %v14119_v38  ;;  %12081 = vmatmul.mubr.msk.f32.gmra.mrb[154].mxu0 %vm716_vm3, %v14121_v48  ;;  %3920 = vst.msk [vmem:[#allocation4 + $0xc0] sm:$0xff] %vm716_vm3, %v3888_v16  ;;  %v4338_v3 = vadd.f32 %v4306_v23, %v14045_v62  ;;  %v3858_v63 = vld [vmem:[#allocation4 + $0xd0] sm:$0xff]  ;;  %v14135_v47 = vpop.f32.mrb[139].mxu0  ;;  %v4508_v58 = vmax.f32 %v4476_v53, 0.0  ;;  %4371 = vst.msk [vmem:[#allocation4 + $0xa8] sm:$0xff] %vm716_vm3, %v4339_v7  ;;  %v3891_v8 = vadd.f32 %v11956_v61, %v3859_v1  ;;  %v3803_v21 = vpop.f32.mrb[139].mxu1 }
 0x214   : > { %v14138_v57 = vld [vmem:[#allocation3 + $0x90] sm:$0xff]  ;;  %4541 = vst.msk [vmem:[#allocation3 + $0xc9] sm:$0xff] %vm716_vm3, %v4509_v15  ;;  %v4479_v6 = vadd.f32 %v13943_v45, %v4440_v59  ;;  %v3890_v62 = vadd.f32 %v3858_v63, %v3803_v21  ;;  %v4309_v34 = vld [vmem:[#allocation4 + $0xb8] sm:$0xff]  ;;  %v14149_v19 = vld [vmem:[#allocation3 + $0x98] sm:$0xff] }
 0x215   : > { %v4439_v52 = vld [vmem:[#allocation4 + $0x80] sm:$0xff]  ;;  %15784 = vst [vmem:[#allocation5_spill] sm:$0xff] %v14138_v57  ;;  %4370 = vst.msk [vmem:[#allocation4 + $0xa0] sm:$0xff] %vm716_vm3, %v4338_v3  ;;  %12033 = vmatprep.mubr.msk.f32.mxu1 %vm716_vm3, %v14138_v57  ;;  %v14151_v2 = vld [vmem:[#allocation3 + $0x99] sm:$0xff]  ;;  %v4341_v40 = vadd.f32 %v14071_v25, %v4309_v34  ;;  %v14161_v22 = vpop.f32.mrb[140].mxu0 }
 0x216   : > { %v14140_v14 = vld [vmem:[#allocation3 + $0x91] sm:$0xff]  ;;  %15785 = vst [vmem:[#allocation6_spill] sm:$0xff] %v14149_v19  ;;  %4540 = vst.msk [vmem:[#allocation3 + $0xc1] sm:$0xff] %vm716_vm3, %v4508_v58  ;;  %v4478_v18 = vadd.f32 %v13943_v45, %v4439_v52  ;;  %v4308_v10 = vld [vmem:[#allocation4 + $0xb0] sm:$0xff]  ;;  %v4511_v26 = vmax.f32 %v4479_v6, 0.0  ;;  %v11959_v42 = vpop.f32.mrb[140].mxu1 }
 0x217   : > { %12083 = vmatprep.mubr.msk.f32.mxu0 %vm716_vm3, %v14140_v14  ;;  %3923 = vst.msk [vmem:[#allocation4 + $0xd8] sm:$0xff] %vm716_vm3, %v3891_v8  ;;  %12034 = vmatmul.mubr.msk.f32.gmra.mrb[156].mxu1 %vm716_vm3, %v14149_v19  ;;  %v4442_v27 = vld [vmem:[#allocation4 + $0x98] sm:$0xff]  ;;  %3922 = vst.msk [vmem:[#allocation4 + $0xd0] sm:$0xff] %vm716_vm3, %v3890_v62  ;;  %v4340_v33 = vadd.f32 %v4308_v10, %v14075_v11  ;;  %v3861_v50 = vld [vmem:[#allocation4 + $0xe8] sm:$0xff]  ;;  %v14165_v31 = vpop.f32.mrb[141].mxu0  ;;  %v3813_v32 = vpop.f32.mrb[141].mxu1 }
 0x218   : > { %12084 = vmatmul.mubr.msk.f32.gmra.mrb[156].mxu0 %vm716_vm3, %v14151_v2  ;;  %v3860_v46 = vld [vmem:[#allocation4 + $0xe0] sm:$0xff]  ;;  %v4510_v25 = vmax.f32 %v4478_v18, 0.0  ;;  %v4441_v35 = vld [vmem:[#allocation4 + $0x90] sm:$0xff]  ;;  %4373 = vst.msk [vmem:[#allocation4 + $0xb8] sm:$0xff] %vm716_vm3, %v4341_v40  ;;  %v3893_v41 = vadd.f32 %v11959_v42, %v3861_v50  ;;  %v14168_v36 = vld [vmem:[#allocation3 + $0xa8] sm:$0xff]  ;;  %v4481_v43 = vadd.f32 %v13943_v45, %v4442_v27 }
 0x219   : > { %15786 = vst [vmem:[#allocation7_spill] sm:$0xff] %v14168_v36  ;;  %v14170_v16 = vld [vmem:[#allocation3 + $0xa9] sm:$0xff]  ;;  %4543 = vst.msk [vmem:[#allocation3 + $0xe1] sm:$0xff] %vm716_vm3, %v4511_v26  ;;  %v3892_v11 = vadd.f32 %v3860_v46, %v3813_v32  ;;  %v4311_v53 = vld [vmem:[#allocation4 + $0xc8] sm:$0xff]  ;;  %12036 = vmatprep.mubr.msk.f32.mxu1 %vm716_vm3, %v14168_v36  ;;  %v4480_v15 = vadd.f32 %v13943_v45, %v4441_v35  ;;  %v14191_v61 = vpop.f32.mrb[142].mxu0 }
 0x21a   : > { %4372 = vst.msk [vmem:[#allocation4 + $0xb0] sm:$0xff] %vm716_vm3, %v4340_v33  ;;  %12086 = vmatprep.mubr.msk.f32.mxu0 %vm716_vm3, %v14170_v16  ;;  %v14179_v7 = vld [vmem:[#allocation3 + $0xb0] sm:$0xff]  ;;  %4542 = vst.msk [vmem:[#allocation3 + $0xd9] sm:$0xff] %vm716_vm3, %v4510_v25  ;;  %v4343_v59 = vadd.f32 %v14101_v24, %v4311_v53  ;;  %v4513_v1 = vmax.f32 %v4481_v43, 0.0  ;;  %v4444_v63 = vld [vmem:[#allocation4 + $0xa8] sm:$0xff]  ;;  %v11962_v52 = vpop.f32.mrb[142].mxu1 }
 0x21b   : > { %15787 = vst [vmem:[#allocation8_spill] sm:$0xff] %v14179_v7  ;;  %v14181_v23 = vld [vmem:[#allocation3 + $0xb1] sm:$0xff]  ;;  %3925 = vst.msk [vmem:[#allocation4 + $0xe8] sm:$0xff] %vm716_vm3, %v3893_v41  ;;  %12037 = vmatmul.mubr.msk.f32.gmra.mrb[158].mxu1 %vm716_vm3, %v14179_v7  ;;  %v3863_v8 = vld [vmem:[#allocation4 + $0xf8] sm:$0xff]  ;;  %v4512_v6 = vmax.f32 %v4480_v15, 0.0  ;;  %v14195_v24 = vpop.f32.mrb[143].mxu0  ;;  %v4483_v26 = vadd.f32 %v13943_v45, %v4444_v63 }
 0x21c   : > { %v4310_v3 = vld [vmem:[#allocation4 + $0xc0] sm:$0xff]  ;;  %12087 = vmatmul.mubr.msk.f32.gmra.mrb[158].mxu0 %vm716_vm3, %v14181_v23  ;;  %3924 = vst.msk [vmem:[#allocation4 + $0xe0] sm:$0xff] %vm716_vm3, %v3892_v11  ;;  %v3862_v21 = vld [vmem:[#allocation4 + $0xf0] sm:$0xff]  ;;  %4375 = vst.msk [vmem:[#allocation4 + $0xc8] sm:$0xff] %vm716_vm3, %v4343_v59  ;;  %v3895_v34 = vadd.f32 %v11962_v52, %v3863_v8  ;;  %v3823_v18 = vpop.f32.mrb[143].mxu1 }
 0x21d   : > { %v4342_v58 = vadd.f32 %v4310_v3, %v14105_v56  ;;  %v4443_v62 = vld [vmem:[#allocation4 + $0xa0] sm:$0xff]  ;;  %v14198_v40 = vld [vmem:[#allocation3 + $0xc0] sm:$0xff]  ;;  %4545 = vst.msk [vmem:[#allocation3 + $0xf9] sm:$0xff] %vm716_vm3, %v4513_v1  ;;  %v3894_v56 = vadd.f32 %v3862_v21, %v3823_v18  ;;  %v14209_v33 = vld [vmem:[#allocation3 + $0xc8] sm:$0xff]  ;;  %v4515_v35 = vmax.f32 %v4483_v26, 0.0 }
 0x21e   : > { %v14200_v10 = vld [vmem:[#allocation3 + $0xc1] sm:$0xff]  ;;  %12039 = vmatprep.mubr.msk.f32.mxu1 %vm716_vm3, %v14198_v40  ;;  %v14211_v42 = vld [vmem:[#allocation3 + $0xc9] sm:$0xff]  ;;  %4544 = vst.msk [vmem:[#allocation3 + $0xf1] sm:$0xff] %vm716_vm3, %v4512_v6  ;;  %v4482_v50 = vadd.f32 %v13943_v45, %v4443_v62  ;;  %3927 = vst.msk [vmem:[#allocation4 + $0xf8] sm:$0xff] %vm716_vm3, %v3895_v34 }
 0x21f   : > { %4374 = vst.msk [vmem:[#allocation4 + $0xc0] sm:$0xff] %vm716_vm3, %v4342_v58  ;;  %v4313_v27 = vld [vmem:[#allocation4 + $0xd8] sm:$0xff]  ;;  %12089 = vmatprep.mubr.msk.f32.mxu0 %vm716_vm3, %v14200_v10  ;;  %v4312_v25 = vld [vmem:[#allocation4 + $0xd0] sm:$0xff]  ;;  %12040 = vmatmul.mubr.msk.f32.gmra.mrb[160].mxu1 %vm716_vm3, %v14209_v33  ;;  %3926 = vst.msk [vmem:[#allocation4 + $0xf0] sm:$0xff] %vm716_vm3, %v3894_v56 }
 0x220   : > { %v4345_v46 = vadd.f32 %v14131_v5, %v4313_v27  ;;  %12090 = vmatmul.mubr.msk.f32.gmra.mrb[160].mxu0 %vm716_vm3, %v14211_v42  ;;  %v4446_v41 = vld [vmem:[#allocation4 + $0xb8] sm:$0xff]  ;;  %v4344_v32 = vadd.f32 %v4312_v25, %v14135_v47  ;;  %v4514_v43 = vmax.f32 %v4482_v50, 0.0  ;;  %4547 = vst.msk [vmem:[#allocation3 + $0x111] sm:$0xff] %vm716_vm3, %v4515_v35 }
 0x221   : > { %v4445_v11 = vld [vmem:[#allocation4 + $0xb0] sm:$0xff]  ;;  %v14224_v53 = vld [vmem:[#allocation3 + $0xd8] sm:$0xff]  ;;  %v4485_v15 = vadd.f32 %v13943_v45, %v4446_v41 }
 0x222   : > { %4377 = vst.msk [vmem:[#allocation4 + $0xd8] sm:$0xff] %vm716_vm3, %v4345_v46  ;;  %v14226_v5 = vld [vmem:[#allocation3 + $0xd9] sm:$0xff]  ;;  %4376 = vst.msk [vmem:[#allocation4 + $0xd0] sm:$0xff] %vm716_vm3, %v4344_v32  ;;  %12042 = vmatprep.mubr.msk.f32.mxu1 %vm716_vm3, %v14224_v53  ;;  %v14237_v3 = vld [vmem:[#allocation3 + $0xe1] sm:$0xff]  ;;  %v4484_v1 = vadd.f32 %v13943_v45, %v4445_v11 }
 0x223   : > { %v4315_v59 = vld [vmem:[#allocation4 + $0xe8] sm:$0xff]  ;;  %12092 = vmatprep.mubr.msk.f32.mxu0 %vm716_vm3, %v14226_v5  ;;  %v14235_v47 = vld [vmem:[#allocation3 + $0xe0] sm:$0xff]  ;;  %4546 = vst.msk [vmem:[#allocation3 + $0x109] sm:$0xff] %vm716_vm3, %v4514_v43  ;;  %v4314_v58 = vld [vmem:[#allocation4 + $0xe0] sm:$0xff]  ;;  %v4517_v52 = vmax.f32 %v4485_v15, 0.0 }
 0x224   : > { %v4347_v63 = vadd.f32 %v14161_v22, %v4315_v59  ;;  %12043 = vmatmul.mubr.msk.f32.gmra.mrb[162].mxu1 %vm716_vm3, %v14235_v47  ;;  %12093 = vmatmul.mubr.msk.f32.gmra.mrb[162].mxu0 %vm716_vm3, %v14237_v3  ;;  %v4448_v8 = vld [vmem:[#allocation4 + $0xc8] sm:$0xff]  ;;  %v4346_v21 = vadd.f32 %v4314_v58, %v14165_v31  ;;  %v4516_v6 = vmax.f32 %v4484_v1, 0.0 }
 0x225   : > { %v14248_v34 = vld [vmem:[#allocation3 + $0xf0] sm:$0xff]  ;;  %4549 = vst.msk [vmem:[#allocation3 + $0x129] sm:$0xff] %vm716_vm3, %v4517_v52  ;;  %v4487_v22 = vadd.f32 %v13943_v45, %v4448_v8  ;;  %v4317_v26 = vld [vmem:[#allocation4 + $0xf8] sm:$0xff]  ;;  %v14259_v31 = vld [vmem:[#allocation3 + $0xf8] sm:$0xff] }
 0x226   : > { %v4447_v62 = vld [vmem:[#allocation4 + $0xc0] sm:$0xff]  ;;  %4379 = vst.msk [vmem:[#allocation4 + $0xe8] sm:$0xff] %vm716_vm3, %v4347_v63  ;;  %15788 = vst [vmem:[#allocation9_spill] sm:$0xff] %v14248_v34  ;;  %12045 = vmatprep.mubr.msk.f32.mxu1 %vm716_vm3, %v14248_v34  ;;  %v14261_v56 = vld [vmem:[#allocation3 + $0xf9] sm:$0xff]  ;;  %v4349_v50 = vadd.f32 %v14191_v61, %v4317_v26 }
 0x227   : > { %v14250_v18 = vld [vmem:[#allocation3 + $0xf1] sm:$0xff]  ;;  %4378 = vst.msk [vmem:[#allocation4 + $0xe0] sm:$0xff] %vm716_vm3, %v4346_v21  ;;  %15789 = vst [vmem:[#allocation10_spill] sm:$0xff] %v14259_v31  ;;  %v4486_v27 = vadd.f32 %v13943_v45, %v4447_v62  ;;  %v4316_v46 = vld [vmem:[#allocation4 + $0xf0] sm:$0xff]  ;;  %v4519_v25 = vmax.f32 %v4487_v22, 0.0 }
 0x228   : > { %12095 = vmatprep.mubr.msk.f32.mxu0 %vm716_vm3, %v14250_v18  ;;  %4548 = vst.msk [vmem:[#allocation3 + $0x121] sm:$0xff] %vm716_vm3, %v4516_v6  ;;  %12046 = vmatmul.mubr.msk.f32.gmra.mrb[164].mxu1 %vm716_vm3, %v14259_v31  ;;  %v4348_v41 = vadd.f32 %v4316_v46, %v14195_v24  ;;  %4381 = vst.msk [vmem:[#allocation4 + $0xf8] sm:$0xff] %vm716_vm3, %v4349_v50  ;;  %v14285_v59 = vld [vmem:[#allocation3 + $0x111] sm:$0xff] }
 0x229   : > { %12096 = vmatmul.mubr.msk.f32.gmra.mrb[164].mxu0 %vm716_vm3, %v14261_v56  ;;  %v4450_v35 = vld [vmem:[#allocation4 + $0xd8] sm:$0xff]  ;;  %v4518_v32 = vmax.f32 %v4486_v27, 0.0  ;;  %v4449_v43 = vld [vmem:[#allocation4 + $0xd0] sm:$0xff]  ;;  %4551 = vst.msk [vmem:[#allocation3 + $0x141] sm:$0xff] %vm716_vm3, %v4519_v25 }
 0x22a   : > { %v14272_v11 = vld [vmem:[#allocation3 + $0x108] sm:$0xff]  ;;  %v4489_v61 = vadd.f32 %v13943_v45, %v4450_v35  ;;  %4380 = vst.msk [vmem:[#allocation4 + $0xf0] sm:$0xff] %vm716_vm3, %v4348_v41  ;;  %v14283_v24 = vld [vmem:[#allocation3 + $0x110] sm:$0xff]  ;;  %v4488_v1 = vadd.f32 %v13943_v45, %v4449_v43 }
 0x22b   : > { %15790 = vst [vmem:[#allocation11_spill] sm:$0xff] %v14272_v11  ;;  %v14274_v15 = vld [vmem:[#allocation3 + $0x109] sm:$0xff]  ;;  %12048 = vmatprep.mubr.msk.f32.mxu1 %vm716_vm3, %v14272_v11  ;;  %15791 = vst [vmem:[#allocation12_spill] sm:$0xff] %v14283_v24 }
 0x22c   : > { %12098 = vmatprep.mubr.msk.f32.mxu0 %vm716_vm3, %v14274_v15  ;;  %4550 = vst.msk [vmem:[#allocation3 + $0x139] sm:$0xff] %vm716_vm3, %v4518_v32  ;;  %12049 = vmatmul.mubr.msk.f32.gmra.mrb[166].mxu1 %vm716_vm3, %v14283_v24  ;;  %v4521_v63 = vmax.f32 %v4489_v61, 0.0  ;;  %v4520_v52 = vmax.f32 %v4488_v1, 0.0  ;;  %v14305_v26 = vld [vmem:[#allocation3 + $0x129] sm:$0xff] }
 0x22d   : > { %12099 = vmatmul.mubr.msk.f32.gmra.mrb[166].mxu0 %vm716_vm3, %v14285_v59  ;;  %v4452_v58 = vld [vmem:[#allocation4 + $0xe8] sm:$0xff] }
 0x22e   : > { %v4451_v8 = vld [vmem:[#allocation4 + $0xe0] sm:$0xff]  ;;  %4553 = vst.msk [vmem:[#allocation3 + $0x159] sm:$0xff] %vm716_vm3, %v4521_v63  ;;  %v4491_v62 = vadd.f32 %v13943_v45, %v4452_v58  ;;  %4552 = vst.msk [vmem:[#allocation3 + $0x151] sm:$0xff] %vm716_vm3, %v4520_v52 }
 0x22f   : > { %v14293_v21 = vld [vmem:[#allocation3 + $0x120] sm:$0xff]  ;;  %v14303_v22 = vld [vmem:[#allocation3 + $0x128] sm:$0xff]  ;;  %v4490_v27 = vadd.f32 %v13943_v45, %v4451_v8 }
 0x230   : > { %15792 = vst [vmem:[#allocation13_spill] sm:$0xff] %v14293_v21  ;;  %v14295_v6 = vld [vmem:[#allocation3 + $0x121] sm:$0xff]  ;;  %12051 = vmatprep.mubr.msk.f32.mxu1 %vm716_vm3, %v14293_v21  ;;  %15793 = vst [vmem:[#allocation14_spill] sm:$0xff] %v14303_v22  ;;  %v4523_v50 = vmax.f32 %v4491_v62, 0.0 }
 0x231   : > { %12101 = vmatprep.mubr.msk.f32.mxu0 %vm716_vm3, %v14295_v6  ;;  %12052 = vmatmul.mubr.msk.f32.gmra.mrb[168].mxu1 %vm716_vm3, %v14303_v22  ;;  %v4454_v46 = vld [vmem:[#allocation4 + $0xf8] sm:$0xff]  ;;  %v4522_v25 = vmax.f32 %v4490_v27, 0.0  ;;  %v4453_v35 = vld [vmem:[#allocation4 + $0xf0] sm:$0xff] }
 0x232   : > { %12102 = vmatmul.mubr.msk.f32.gmra.mrb[168].mxu0 %vm716_vm3, %v14305_v26  ;;  %4555 = vst.msk [vmem:[#allocation3 + $0x171] sm:$0xff] %vm716_vm3, %v4523_v50  ;;  %v4493_v43 = vadd.f32 %v13943_v45, %v4454_v46  ;;  %v14325_v1 = vld [vmem:[#allocation3 + $0x141] sm:$0xff]  ;;  %v4492_v63 = vadd.f32 %v13943_v45, %v4453_v35 }
 0x233   : > { %v14313_v41 = vld [vmem:[#allocation3 + $0x138] sm:$0xff]  ;;  %v14323_v61 = vld [vmem:[#allocation3 + $0x140] sm:$0xff]  ;;  %15796 = vst [vmem:[#allocation17_spill] sm:$0xff] %v14325_v1  ;;  %4554 = vst.msk [vmem:[#allocation3 + $0x169] sm:$0xff] %vm716_vm3, %v4522_v25 }
 0x234   : > { %15794 = vst [vmem:[#allocation15_spill] sm:$0xff] %v14313_v41  ;;  %v14315_v32 = vld [vmem:[#allocation3 + $0x139] sm:$0xff]  ;;  %12054 = vmatprep.mubr.msk.f32.mxu1 %vm716_vm3, %v14313_v41  ;;  %15795 = vst [vmem:[#allocation16_spill] sm:$0xff] %v14323_v61  ;;  %v4525_v58 = vmax.f32 %v4493_v43, 0.0  ;;  %v4524_v52 = vmax.f32 %v4492_v63, 0.0  ;;  %v5395_v50 = vld [vmem:[#allocation3 + $0x2] sm:$0xff] }
 0x235   : > { %12104 = vmatprep.mubr.msk.f32.mxu0 %vm716_vm3, %v14315_v32  ;;  %12055 = vmatmul.mubr.msk.f32.gmra.mrb[170].mxu1 %vm716_vm3, %v14323_v61  ;;  %v14333_v8 = vld [vmem:[#allocation3 + $0x150] sm:$0xff]  ;;  %v14337_v27 = vld [vmem:[#allocation3 + $0x158] sm:$0xff] }
 0x236   : > { %12105 = vmatmul.mubr.msk.f32.gmra.mrb[170].mxu0 %vm716_vm3, %v14325_v1  ;;  %15797 = vst [vmem:[#allocation18_spill] sm:$0xff] %v14333_v8  ;;  %v14335_v62 = vld [vmem:[#allocation3 + $0x151] sm:$0xff]  ;;  %15799 = vst [vmem:[#allocation20_spill] sm:$0xff] %v14337_v27  ;;  %12057 = vmatprep.mubr.msk.f32.mxu1 %vm716_vm3, %v14333_v8  ;;  %v14344_v45 = vld [vmem:[#allocation3 + $0x159] sm:$0xff] }
 0x237   : > { %15798 = vst [vmem:[#allocation19_spill] sm:$0xff] %v14335_v62  ;;  %4557 = vst.msk [vmem:[#allocation3 + $0x189] sm:$0xff] %vm716_vm3, %v4525_v58  ;;  %12107 = vmatprep.mubr.msk.f32.mxu0 %vm716_vm3, %v14335_v62  ;;  %v5396_v63 = vld [vmem:[#allocation3 + $0xa] sm:$0xff]  ;;  %v14373_v58 = vld [vmem:[#allocation3 + $0x1a] sm:$0xff] }
 0x238   : > { %15800 = vst [vmem:[#allocation21_spill] sm:$0xff] %v14344_v45  ;;  %4556 = vst.msk [vmem:[#allocation3 + $0x181] sm:$0xff] %vm716_vm3, %v4524_v52  ;;  %v14378_v52 = vld [vmem:[%s15645_s3 + $0x30] sm:$0xff] }
 0x239   : > { %12058 = vmatmul.mubr.msk.f32.gmra.mrb[172].mxu1 %vm716_vm3, %v14337_v27  ;;  %v14361_v43 = vld [vmem:[#allocation3 + $0x171] sm:$0xff] }
 0x23a   : > { %12108 = vmatmul.mubr.msk.f32.gmra.mrb[172].mxu0 %vm716_vm3, %v14344_v45  ;;  %v14351_v46 = vld [vmem:[#allocation3 + $0x168] sm:$0xff]  ;;  %v14355_v35 = vld [vmem:[#allocation3 + $0x170] sm:$0xff]  ;;  %15803 = vst [vmem:[#allocation24_spill] sm:$0xff] %v14361_v43 }
 0x23b   : > { %15801 = vst [vmem:[#allocation22_spill] sm:$0xff] %v14351_v46  ;;  %v14353_v25 = vld [vmem:[#allocation3 + $0x169] sm:$0xff]  ;;  %12060 = vmatprep.mubr.msk.f32.mxu1 %vm716_vm3, %v14351_v46  ;;  %v14471_v45 = vld [vmem:[#allocation3 + $0xb2] sm:$0xff] }
 0x23c   : > { %15802 = vst [vmem:[#allocation23_spill] sm:$0xff] %v14353_v25  ;;  %12110 = vmatprep.mubr.msk.f32.mxu0 %vm716_vm3, %v14353_v25 }
 0x23d   : > { %12061 = vmatmul.mubr.msk.f32.gmra.mrb[174].mxu1 %vm716_vm3, %v14355_v35 }
 0x23e   : > { %12111 = vmatmul.mubr.msk.f32.gmra.mrb[174].mxu0 %vm716_vm3, %v14361_v43  ;;  %12115 = vmatprep.mubr.msk.f32.mxu1 %vm716_vm3, %v5395_v50  ;;  %v14383_v43 = vld [vmem:[%s15645_s3 + $0x38] sm:$0xff] }
 0x23f   : > { %12165 = vmatprep.mubr.msk.f32.mxu0 %vm716_vm3, %v13988_v9  ;;  %v12525_v9 = vld [vmem:[%s15645_s3 + $0x20] sm:$0xff]  ;;  %v14395_v50 = vld [vmem:[#allocation3 + $0x22] sm:$0xff]  ;;  %v12067_v25 = vpop.f32.mrb[144].mxu0 }
 0x241   : > { %12116 = vmatmul.mubr.msk.f32.vlgmr.msra.gmra.mrb[176].mxu1 %vm716_vm3, %v5396_v63  ;;  %v14403_v63 = vld [vmem:[#allocation3 + $0x32] sm:$0xff] }
 0x242   : > { %12166 = vmatmul.mubr.msk.f32.vlgmr.msra.gmra.mrb[176].mxu0 %vm716_vm3, %v13999_v4  ;;  %12214 = vmatpush3.msra.mxu1 %v12525_v9  ;;  %v12526_v4 = vld [vmem:[%s15645_s3 + $0x28] sm:$0xff]  ;;  %v14415_v9 = vld [vmem:[#allocation3 + $0x4a] sm:$0xff] }
 0x243   : > { %12118 = vmatprep.mubr.msk.f32.mxu1 %vm716_vm3, %v14373_v58  ;;  %12168 = vmatprep.mubr.msk.f32.mxu0 %vm716_vm3, %v14018_v49  ;;  %v14409_v49 = vld [vmem:[#allocation3 + $0x3a] sm:$0xff] }
 0x244   : > { %12264 = vmatpush3.msra.mxu0 %v12526_v4  ;;  %12313 = vmatprep.subr.mxu1 %v14378_v52  ;;  %v14445_v4 = vld [vmem:[#allocation3 + $0x82] sm:$0xff] }
 0x245   : > { %12363 = vmatprep.subr.mxu0 %v14383_v43  ;;  %12119 = vmatmul.mubr.msk.f32.gmra.mrb[178].mxu1 %vm716_vm3, %v14395_v50 }
 0x246   : > { %12169 = vmatmul.mubr.msk.f32.gmra.mrb[178].mxu0 %vm716_vm3, %v14029_v54  ;;  %12121 = vmatprep.mubr.msk.f32.mxu1 %vm716_vm3, %v14403_v63  ;;  %v14421_v54 = vld [vmem:[#allocation3 + $0x52] sm:$0xff] }
 0x247   : > { %12171 = vmatprep.mubr.msk.f32.mxu0 %vm716_vm3, %v14048_v55  ;;  %v14427_v55 = vld [vmem:[#allocation3 + $0x62] sm:$0xff] }
 0x249   : > { %12122 = vmatmul.mubr.msk.f32.gmra.mrb[180].mxu1 %vm716_vm3, %v14409_v49 }
 0x24a   : > { %12172 = vmatmul.mubr.msk.f32.gmra.mrb[180].mxu0 %vm716_vm3, %v14059_v13  ;;  %12124 = vmatprep.mubr.msk.f32.mxu1 %vm716_vm3, %v14415_v9  ;;  %v14433_v13 = vld [vmem:[#allocation3 + $0x6a] sm:$0xff] }
 0x24b   : > { %12174 = vmatprep.mubr.msk.f32.mxu0 %vm716_vm3, %v14078_v29  ;;  %v14439_v29 = vld [vmem:[#allocation3 + $0x7a] sm:$0xff] }
 0x24d   : > { %12125 = vmatmul.mubr.msk.f32.gmra.mrb[182].mxu1 %vm716_vm3, %v14421_v54 }
 0x24e   : > { %12175 = vmatmul.mubr.msk.f32.gmra.mrb[182].mxu0 %vm716_vm3, %v14089_v39  ;;  %12127 = vmatprep.mubr.msk.f32.mxu1 %vm716_vm3, %v14427_v55  ;;  %v12017_v39 = vpop.f32.mrb[144].mxu1 }
 0x24f   : > { %12177 = vmatprep.mubr.msk.f32.mxu0 %vm716_vm3, %v14108_v51  ;;  %4913 = vst.msk [vmem:[#allocation4 + $0x8] sm:$0xff] %vm716_vm3, %v12017_v39  ;;  %v4753_v51 = vpop.f32.mrb[145].mxu1  ;;  %v14459_v39 = vld [vmem:[#allocation3 + $0x9a] sm:$0xff] }
 0x250   : > { %4912 = vst.msk [vmem:[#allocation4] sm:$0xff] %vm716_vm3, %v4753_v51 }
 0x251   : > { %12128 = vmatmul.mubr.msk.f32.gmra.mrb[184].mxu1 %vm716_vm3, %v14433_v13 }
 0x252   : > { %12178 = vmatmul.mubr.msk.f32.gmra.mrb[184].mxu0 %vm716_vm3, %v14119_v38  ;;  %12130 = vmatprep.mubr.msk.f32.mxu1 %vm716_vm3, %v14439_v29  ;;  %v14452_v38 = vld [vmem:[#allocation3 + $0x92] sm:$0xff] }
 0x253   : > { %12180 = vmatprep.mubr.msk.f32.mxu0 %vm716_vm3, %v14138_v57  ;;  %v5140_v57 = vpop.f32.mrb[145].mxu0 }
 0x255   : > { %12131 = vmatmul.mubr.msk.f32.gmra.mrb[186].mxu1 %vm716_vm3, %v14445_v4 }
 0x256   : > { %12181 = vmatmul.mubr.msk.f32.gmra.mrb[186].mxu0 %vm716_vm3, %v14149_v19  ;;  %12133 = vmatprep.mubr.msk.f32.mxu1 %vm716_vm3, %v14452_v38  ;;  %v14465_v19 = vld [vmem:[#allocation3 + $0xaa] sm:$0xff]  ;;  %v5300_v51 = vld [vmem:[#allocation4 + $0x8] sm:$0xff] }
 0x257   : > { %12183 = vmatprep.mubr.msk.f32.mxu0 %vm716_vm3, %v14168_v36  ;;  %v5332_v36 = vadd.f32 %v12067_v25, %v5300_v51  ;;  %v5299_v62 = vld [vmem:[#allocation4] sm:$0xff]  ;;  %v14491_v51 = vld [vmem:[#allocation3 + $0xda] sm:$0xff] }
 0x258   : > { %v5331_v1 = vadd.f32 %v5299_v62, %v5140_v57  ;;  %v14485_v25 = vld [vmem:[#allocation3 + $0xca] sm:$0xff]  ;;  %v14497_v57 = vld [vmem:[#allocation3 + $0xe2] sm:$0xff] }
 0x259   : > { %12134 = vmatmul.mubr.msk.f32.gmra.mrb[188].mxu1 %vm716_vm3, %v14459_v39  ;;  %5364 = vst.msk [vmem:[#allocation4 + $0x8] sm:$0xff] %vm716_vm3, %v5332_v36  ;;  %v14503_v36 = vld [vmem:[#allocation3 + $0xf2] sm:$0xff]  ;;  %v14515_v62 = vld [vmem:[#allocation3 + $0x10a] sm:$0xff] }
 0x25a   : > { %12184 = vmatmul.mubr.msk.f32.gmra.mrb[188].mxu0 %vm716_vm3, %v14179_v7  ;;  %12136 = vmatprep.mubr.msk.f32.mxu1 %vm716_vm3, %v14465_v19  ;;  %v14477_v7 = vld [vmem:[#allocation3 + $0xc2] sm:$0xff]  ;;  %5363 = vst.msk [vmem:[#allocation4] sm:$0xff] %vm716_vm3, %v5331_v1  ;;  %v14509_v1 = vld [vmem:[#allocation3 + $0xfa] sm:$0xff] }
 0x25b   : > { %12186 = vmatprep.mubr.msk.f32.mxu0 %vm716_vm3, %v14198_v40 }
 0x25d   : > { %12137 = vmatmul.mubr.msk.f32.gmra.mrb[190].mxu1 %vm716_vm3, %v14471_v45 }
 0x25e   : > { %12187 = vmatmul.mubr.msk.f32.gmra.mrb[190].mxu0 %vm716_vm3, %v14209_v33  ;;  %12139 = vmatprep.mubr.msk.f32.mxu1 %vm716_vm3, %v14477_v7 }
 0x25f   : > { %12189 = vmatprep.mubr.msk.f32.mxu0 %vm716_vm3, %v14224_v53 }
 0x261   : > { %12140 = vmatmul.mubr.msk.f32.gmra.mrb[192].mxu1 %vm716_vm3, %v14485_v25 }
 0x262   : > { %12190 = vmatmul.mubr.msk.f32.gmra.mrb[192].mxu0 %vm716_vm3, %v14235_v47  ;;  %12142 = vmatprep.mubr.msk.f32.mxu1 %vm716_vm3, %v14491_v51 }
 0x263   : > { %12192 = vmatprep.mubr.msk.f32.mxu0 %vm716_vm3, %v14248_v34  ;;  %v14565_v34 = vld [vmem:[#allocation3 + $0x180] sm:$0xff] }
 0x264   : > { %15804 = vst [vmem:[#allocation25_spill] sm:$0xff] %v14565_v34 }
 0x265   : > { %12143 = vmatmul.mubr.msk.f32.gmra.mrb[194].mxu1 %vm716_vm3, %v14497_v57 }
 0x266   : > { %12193 = vmatmul.mubr.msk.f32.gmra.mrb[194].mxu0 %vm716_vm3, %v14259_v31  ;;  %12145 = vmatprep.mubr.msk.f32.mxu1 %vm716_vm3, %v14503_v36  ;;  %v14521_v31 = vld [vmem:[#allocation3 + $0x112] sm:$0xff] }
 0x267   : > { %12195 = vmatprep.mubr.msk.f32.mxu0 %vm716_vm3, %v14272_v11  ;;  %v14527_v11 = vld [vmem:[#allocation3 + $0x122] sm:$0xff] }
 0x269   : > { %12146 = vmatmul.mubr.msk.f32.gmra.mrb[196].mxu1 %vm716_vm3, %v14509_v1 }
 0x26a   : > { %12196 = vmatmul.mubr.msk.f32.gmra.mrb[196].mxu0 %vm716_vm3, %v14283_v24  ;;  %12148 = vmatprep.mubr.msk.f32.mxu1 %vm716_vm3, %v14515_v62  ;;  %v14533_v24 = vld [vmem:[#allocation3 + $0x12a] sm:$0xff] }
 0x26b   : > { %12198 = vmatprep.mubr.msk.f32.mxu0 %vm716_vm3, %v14293_v21  ;;  %v14539_v21 = vld [vmem:[#allocation3 + $0x13a] sm:$0xff] }
 0x26d   : > { %12149 = vmatmul.mubr.msk.f32.gmra.mrb[198].mxu1 %vm716_vm3, %v14521_v31 }
 0x26e   : > { %12199 = vmatmul.mubr.msk.f32.gmra.mrb[198].mxu0 %vm716_vm3, %v14303_v22  ;;  %12151 = vmatprep.mubr.msk.f32.mxu1 %vm716_vm3, %v14527_v11  ;;  %v14545_v22 = vld [vmem:[#allocation3 + $0x142] sm:$0xff] }
 0x26f   : > { %12201 = vmatprep.mubr.msk.f32.mxu0 %vm716_vm3, %v14313_v41  ;;  %v14551_v41 = vld [vmem:[#allocation3 + $0x152] sm:$0xff] }
 0x271   : > { %12152 = vmatmul.mubr.msk.f32.gmra.mrb[200].mxu1 %vm716_vm3, %v14533_v24 }
 0x272   : > { %12202 = vmatmul.mubr.msk.f32.gmra.mrb[200].mxu0 %vm716_vm3, %v14323_v61  ;;  %12154 = vmatprep.mubr.msk.f32.mxu1 %vm716_vm3, %v14539_v21  ;;  %v14557_v61 = vld [vmem:[#allocation3 + $0x15a] sm:$0xff] }
 0x273   : > { %12204 = vmatprep.mubr.msk.f32.mxu0 %vm716_vm3, %v14333_v8  ;;  %v14563_v8 = vld [vmem:[#allocation3 + $0x16a] sm:$0xff] }
 0x275   : > { %12155 = vmatmul.mubr.msk.f32.gmra.mrb[202].mxu1 %vm716_vm3, %v14545_v22 }
 0x276   : > { %12205 = vmatmul.mubr.msk.f32.gmra.mrb[202].mxu0 %vm716_vm3, %v14337_v27  ;;  %12157 = vmatprep.mubr.msk.f32.mxu1 %vm716_vm3, %v14551_v41  ;;  %v14571_v27 = vld [vmem:[#allocation3 + $0x172] sm:$0xff] }
 0x277   : > { %12207 = vmatprep.mubr.msk.f32.mxu0 %vm716_vm3, %v14351_v46  ;;  %v14573_v46 = vld [vmem:[#allocation3 + $0x188] sm:$0xff] }
 0x278   : > { %15805 = vst [vmem:[#allocation26_spill] sm:$0xff] %v14573_v46 }
 0x279   : > { %12158 = vmatmul.mubr.msk.f32.gmra.mrb[204].mxu1 %vm716_vm3, %v14557_v61 }
 0x27a   : > { %12208 = vmatmul.mubr.msk.f32.gmra.mrb[204].mxu0 %vm716_vm3, %v14355_v35  ;;  %12160 = vmatprep.mubr.msk.f32.mxu1 %vm716_vm3, %v14563_v8 }
 0x27b   : > { %12210 = vmatprep.mubr.msk.f32.mxu0 %vm716_vm3, %v14565_v34  ;;  %v14590_v34 = vld [vmem:[%s15645_s3 + $0x40] sm:$0xff] }
 0x27d   : > { %12161 = vmatmul.mubr.msk.f32.gmra.mrb[206].mxu1 %vm716_vm3, %v14571_v27 }
 0x27e   : > { %12211 = vmatmul.mubr.msk.f32.gmra.mrb[206].mxu0 %vm716_vm3, %v14573_v46  ;;  %12215 = vmatprep.mubr.msk.f32.mxu1 %vm716_vm3, %v13990_v12  ;;  %v14595_v46 = vld [vmem:[%s15646_s4] sm:$0xf] }
 0x27f   : > { %12265 = vmatprep.mubr.msk.f32.mxu0 %vm716_vm3, %v14373_v58  ;;  %v15806_v12 = vld [vmem:[#allocation17_spill] sm:$0xff] }
 0x280   : > { %v15811_v58 = vld [vmem:[#allocation5_spill] sm:$0xff] }
 0x281   : > { %12216 = vmatmul.mubr.msk.f32.vlgmr.msra.gmra.mrb[208].mxu1 %vm716_vm3, %v14001_v17  ;;  %v15807_v17 = vld [vmem:[#allocation19_spill] sm:$0xff] }
 0x282   : > { %12266 = vmatmul.mubr.msk.f32.vlgmr.msra.gmra.mrb[208].mxu0 %vm716_vm3, %v14395_v50  ;;  %12314 = vmatpush3.msra.mxu1 %v14378_v52  ;;  %v15812_v52 = vld [vmem:[#allocation6_spill] sm:$0xff]  ;;  %v15813_v50 = vld [vmem:[#allocation7_spill] sm:$0xff] }
 0x283   : > { %12218 = vmatprep.mubr.msk.f32.mxu1 %vm716_vm3, %v14020_v28  ;;  %12268 = vmatprep.mubr.msk.f32.mxu0 %vm716_vm3, %v14403_v63  ;;  %v15808_v28 = vld [vmem:[#allocation21_spill] sm:$0xff]  ;;  %v15814_v63 = vld [vmem:[#allocation8_spill] sm:$0xff] }
 0x284   : > { %12364 = vmatpush3.msra.mxu0 %v14383_v43  ;;  %12413 = vmatprep.subr.mxu1 %v14590_v34  ;;  %v7658_v43 = vld [vmem:[#allocation3 + $0x81] sm:$0xff] }
 0x285   : > { %12463 = vmatprep.subr.msk.mxu0 %vm487_vm0, %v14595_v46  ;;  %12219 = vmatmul.mubr.msk.f32.gmra.mrb[210].mxu1 %vm716_vm3, %v14031_v44  ;;  %v15809_v44 = vld [vmem:[#allocation23_spill] sm:$0xff] }
 0x286   : > { %12269 = vmatmul.mubr.msk.f32.gmra.mrb[210].mxu0 %vm716_vm3, %v14409_v49  ;;  %12221 = vmatprep.mubr.msk.f32.mxu1 %vm716_vm3, %v14050_v37  ;;  %v15810_v37 = vld [vmem:[#allocation24_spill] sm:$0xff] }
 0x287   : > { %12271 = vmatprep.mubr.msk.f32.mxu0 %vm716_vm3, %v14415_v9 }
 0x289   : > { %12222 = vmatmul.mubr.msk.f32.gmra.mrb[212].mxu1 %vm716_vm3, %v14061_v0  ;;  %v14714_v0 = vld [vmem:[#allocation3 + $0x181] sm:$0xff] }
 0x28a   : > { %12272 = vmatmul.mubr.msk.f32.gmra.mrb[212].mxu0 %vm716_vm3, %v14421_v54  ;;  %12224 = vmatprep.mubr.msk.f32.mxu1 %vm716_vm3, %v14080_v30  ;;  %v6778_v30 = vld [vmem:[#allocation3 + $0x182] sm:$0xff] }
 0x28b   : > { %12274 = vmatprep.mubr.msk.f32.mxu0 %vm716_vm3, %v14427_v55 }
 0x28d   : > { %12225 = vmatmul.mubr.msk.f32.gmra.mrb[214].mxu1 %vm716_vm3, %v14091_v20  ;;  %v14719_v20 = vld [vmem:[#allocation3 + $0x189] sm:$0xff] }
 0x28e   : > { %12275 = vmatmul.mubr.msk.f32.gmra.mrb[214].mxu0 %vm716_vm3, %v14433_v13  ;;  %12227 = vmatprep.mubr.msk.f32.mxu1 %vm716_vm3, %v14110_v60  ;;  %v6779_v60 = vld [vmem:[#allocation3 + $0x18a] sm:$0xff] }
 0x28f   : > { %12277 = vmatprep.mubr.msk.f32.mxu0 %vm716_vm3, %v14439_v29  ;;  %v15816_v29 = vld [vmem:[#allocation10_spill] sm:$0xff] }
 0x291   : > { %12228 = vmatmul.mubr.msk.f32.gmra.mrb[216].mxu1 %vm716_vm3, %v14121_v48  ;;  %v7200_v48 = vld [vmem:[#allocation3 + $0x30] sm:$0xff] }
 0x292   : > { %12278 = vmatmul.mubr.msk.f32.gmra.mrb[216].mxu0 %vm716_vm3, %v14445_v4  ;;  %12230 = vmatprep.mubr.msk.f32.mxu1 %vm716_vm3, %v14140_v14  ;;  %v15817_v4 = vld [vmem:[#allocation11_spill] sm:$0xff] }
 0x293   : > { %12280 = vmatprep.mubr.msk.f32.mxu0 %vm716_vm3, %v14452_v38 }
 0x295   : > { %12231 = vmatmul.mubr.msk.f32.gmra.mrb[218].mxu1 %vm716_vm3, %v14151_v2 }
 0x296   : > { %12281 = vmatmul.mubr.msk.f32.gmra.mrb[218].mxu0 %vm716_vm3, %v14459_v39  ;;  %12233 = vmatprep.mubr.msk.f32.mxu1 %vm716_vm3, %v14170_v16 }
 0x297   : > { %12283 = vmatprep.mubr.msk.f32.mxu0 %vm716_vm3, %v14465_v19  ;;  %v7651_v19 = vld [vmem:[#allocation3 + $0x31] sm:$0xff] }
 0x299   : > { %12234 = vmatmul.mubr.msk.f32.gmra.mrb[220].mxu1 %vm716_vm3, %v14181_v23 }
 0x29a   : > { %12284 = vmatmul.mubr.msk.f32.gmra.mrb[220].mxu0 %vm716_vm3, %v14471_v45  ;;  %12236 = vmatprep.mubr.msk.f32.mxu1 %vm716_vm3, %v14200_v10  ;;  %v7657_v45 = vld [vmem:[#allocation3 + $0x79] sm:$0xff] }
 0x29b   : > { %12286 = vmatprep.mubr.msk.f32.mxu0 %vm716_vm3, %v14477_v7  ;;  %v7201_v7 = vld [vmem:[#allocation3 + $0x38] sm:$0xff] }
 0x29d   : > { %12237 = vmatmul.mubr.msk.f32.gmra.mrb[222].mxu1 %vm716_vm3, %v14211_v42 }
 0x29e   : > { %12287 = vmatmul.mubr.msk.f32.gmra.mrb[222].mxu0 %vm716_vm3, %v14485_v25  ;;  %12239 = vmatprep.mubr.msk.f32.mxu1 %vm716_vm3, %v14226_v5 }
 0x29f   : > { %12289 = vmatprep.mubr.msk.f32.mxu0 %vm716_vm3, %v14491_v51 }
 0x2a1   : > { %12240 = vmatmul.mubr.msk.f32.gmra.mrb[224].mxu1 %vm716_vm3, %v14237_v3 }
 0x2a2   : > { %12290 = vmatmul.mubr.msk.f32.gmra.mrb[224].mxu0 %vm716_vm3, %v14497_v57  ;;  %12242 = vmatprep.mubr.msk.f32.mxu1 %vm716_vm3, %v14250_v18 }
 0x2a3   : > { %12292 = vmatprep.mubr.msk.f32.mxu0 %vm716_vm3, %v14503_v36  ;;  %v15818_v36 = vld [vmem:[#allocation12_spill] sm:$0xff] }
 0x2a5   : > { %12243 = vmatmul.mubr.msk.f32.gmra.mrb[226].mxu1 %vm716_vm3, %v14261_v56 }
 0x2a6   : > { %12293 = vmatmul.mubr.msk.f32.gmra.mrb[226].mxu0 %vm716_vm3, %v14509_v1  ;;  %12245 = vmatprep.mubr.msk.f32.mxu1 %vm716_vm3, %v14274_v15  ;;  %v15819_v1 = vld [vmem:[#allocation13_spill] sm:$0xff] }
 0x2a7   : > { %12295 = vmatprep.mubr.msk.f32.mxu0 %vm716_vm3, %v14515_v62 }
 0x2a9   : > { %12246 = vmatmul.mubr.msk.f32.gmra.mrb[228].mxu1 %vm716_vm3, %v14285_v59 }
 0x2aa   : > { %12296 = vmatmul.mubr.msk.f32.gmra.mrb[228].mxu0 %vm716_vm3, %v14521_v31  ;;  %12248 = vmatprep.mubr.msk.f32.mxu1 %vm716_vm3, %v14295_v6  ;;  %v7652_v31 = vld [vmem:[#allocation3 + $0x39] sm:$0xff] }
 0x2ab   : > { %12298 = vmatprep.mubr.msk.f32.mxu0 %vm716_vm3, %v14527_v11  ;;  %v7202_v11 = vld [vmem:[#allocation3 + $0x48] sm:$0xff] }
 0x2ad   : > { %12249 = vmatmul.mubr.msk.f32.gmra.mrb[230].mxu1 %vm716_vm3, %v14305_v26 }
 0x2ae   : > { %12299 = vmatmul.mubr.msk.f32.gmra.mrb[230].mxu0 %vm716_vm3, %v14533_v24  ;;  %12251 = vmatprep.mubr.msk.f32.mxu1 %vm716_vm3, %v14315_v32  ;;  %v7653_v24 = vld [vmem:[#allocation3 + $0x49] sm:$0xff] }
 0x2af   : > { %12301 = vmatprep.mubr.msk.f32.mxu0 %vm716_vm3, %v14539_v21  ;;  %v7203_v21 = vld [vmem:[#allocation3 + $0x50] sm:$0xff] }
 0x2b1   : > { %12252 = vmatmul.mubr.msk.f32.gmra.mrb[232].mxu1 %vm716_vm3, %v15806_v12 }
 0x2b2   : > { %12302 = vmatmul.mubr.msk.f32.gmra.mrb[232].mxu0 %vm716_vm3, %v14545_v22  ;;  %12254 = vmatprep.mubr.msk.f32.mxu1 %vm716_vm3, %v15807_v17  ;;  %v7654_v22 = vld [vmem:[#allocation3 + $0x51] sm:$0xff] }
 0x2b3   : > { %12304 = vmatprep.mubr.msk.f32.mxu0 %vm716_vm3, %v14551_v41  ;;  %v7204_v41 = vld [vmem:[#allocation3 + $0x60] sm:$0xff] }
 0x2b5   : > { %12255 = vmatmul.mubr.msk.f32.gmra.mrb[234].mxu1 %vm716_vm3, %v15808_v28 }
 0x2b6   : > { %12305 = vmatmul.mubr.msk.f32.gmra.mrb[234].mxu0 %vm716_vm3, %v14557_v61  ;;  %12257 = vmatprep.mubr.msk.f32.mxu1 %vm716_vm3, %v15809_v44  ;;  %v7655_v61 = vld [vmem:[#allocation3 + $0x61] sm:$0xff] }
 0x2b7   : > { %12307 = vmatprep.mubr.msk.f32.mxu0 %vm716_vm3, %v14563_v8  ;;  %v7656_v8 = vld [vmem:[#allocation3 + $0x69] sm:$0xff] }
 0x2b9   : > { %12258 = vmatmul.mubr.msk.f32.gmra.mrb[236].mxu1 %vm716_vm3, %v15810_v37 }
 0x2ba   : > { %12308 = vmatmul.mubr.msk.f32.gmra.mrb[236].mxu0 %vm716_vm3, %v14571_v27  ;;  %12260 = vmatprep.mubr.msk.f32.mxu1 %vm716_vm3, %v14714_v0  ;;  %v7206_v27 = vld [vmem:[#allocation3 + $0x78] sm:$0xff] }
 0x2bb   : > { %12310 = vmatprep.mubr.msk.f32.mxu0 %vm716_vm3, %v6778_v30 }
 0x2bd   : > { %12261 = vmatmul.mubr.msk.f32.gmra.mrb[238].mxu1 %vm716_vm3, %v14719_v20 }
 0x2be   : > { %12311 = vmatmul.mubr.msk.f32.gmra.mrb[238].mxu0 %vm716_vm3, %v6779_v60  ;;  %12315 = vmatprep.mubr.msk.f32.mxu1 %vm716_vm3, %v7200_v48 }
 0x2bf   : > { %12365 = vmatprep.mubr.msk.f32.mxu0 %vm716_vm3, %v7651_v19 }
 0x2c1   : > { %12316 = vmatmul.mubr.msk.f32.vlgmr.msra.gmra.mrb[240].mxu1 %vm716_vm3, %v7201_v7 }
 0x2c2   : > { %12366 = vmatmul.mubr.msk.f32.vlgmr.msra.gmra.mrb[240].mxu0 %vm716_vm3, %v7652_v31  ;;  %12414 = vmatpush3.msra.mxu1 %v14590_v34  ;;  %v7205_v34 = vld [vmem:[#allocation3 + $0x68] sm:$0xff]  ;;  %v15820_v31 = vld [vmem:[#allocation14_spill] sm:$0xff] }
 0x2c3   : > { %12318 = vmatprep.mubr.msk.f32.mxu1 %vm716_vm3, %v7202_v11  ;;  %12368 = vmatprep.mubr.msk.f32.mxu0 %vm716_vm3, %v7653_v24  ;;  %v15821_v11 = vld [vmem:[#allocation15_spill] sm:$0xff] }
 0x2c4   : > { %12464 = vmatpush3.msk.msra.mxu0 %vm487_vm0, %v14595_v46  ;;  %v7207_v46 = vld [vmem:[#allocation3 + $0x80] sm:$0xff] }
 0x2c5   : > { %12319 = vmatmul.mubr.msk.f32.gmra.mrb[242].mxu1 %vm716_vm3, %v7203_v21 }
 0x2c6   : > { %12369 = vmatmul.mubr.msk.f32.gmra.mrb[242].mxu0 %vm716_vm3, %v7654_v22  ;;  %12321 = vmatprep.mubr.msk.f32.mxu1 %vm716_vm3, %v7204_v41 }
 0x2c7   : > { %12371 = vmatprep.mubr.msk.f32.mxu0 %vm716_vm3, %v7655_v61 }
 0x2c9   : > { %12322 = vmatmul.mubr.msk.f32.gmra.mrb[244].mxu1 %vm716_vm3, %v7205_v34 }
 0x2ca   : > { %12372 = vmatmul.mubr.msk.f32.gmra.mrb[244].mxu0 %vm716_vm3, %v7656_v8  ;;  %12324 = vmatprep.mubr.msk.f32.mxu1 %vm716_vm3, %v7206_v27  ;;  %v15822_v8 = vld [vmem:[#allocation16_spill] sm:$0xff]  ;;  %v15823_v27 = vld [vmem:[#allocation18_spill] sm:$0xff] }
 0x2cb   : > { %12374 = vmatprep.mubr.msk.f32.mxu0 %vm716_vm3, %v7657_v45 }
 0x2cd   : > { %12325 = vmatmul.mubr.msk.f32.gmra.mrb[246].mxu1 %vm716_vm3, %v7207_v46 }
 0x2ce   : > { %12375 = vmatmul.mubr.msk.f32.gmra.mrb[246].mxu0 %vm716_vm3, %v7658_v43  ;;  %12327 = vmatprep.mubr.msk.f32.mxu1 %vm716_vm3, %v15811_v58 }
 0x2cf   : > { %12377 = vmatprep.mubr.msk.f32.mxu0 %vm716_vm3, %v14140_v14 }
 0x2d1   : > { %12328 = vmatmul.mubr.msk.f32.gmra.mrb[248].mxu1 %vm716_vm3, %v15812_v52 }
 0x2d2   : > { %12378 = vmatmul.mubr.msk.f32.gmra.mrb[248].mxu0 %vm716_vm3, %v14151_v2  ;;  %12330 = vmatprep.mubr.msk.f32.mxu1 %vm716_vm3, %v15813_v50 }
 0x2d3   : > { %12380 = vmatprep.mubr.msk.f32.mxu0 %vm716_vm3, %v14170_v16 }
 0x2d5   : > { %12331 = vmatmul.mubr.msk.f32.gmra.mrb[250].mxu1 %vm716_vm3, %v15814_v63  ;;  %v12020_v14 = vpop.f32.mrb[146].mxu1  ;;  %v12070_v2 = vpop.f32.mrb[146].mxu0  ;;  %v15824_v63 = vld [vmem:[#allocation20_spill] sm:$0xff] }
 0x2d6   : > { %12381 = vmatmul.mubr.msk.f32.gmra.mrb[250].mxu0 %vm716_vm3, %v14181_v23  ;;  %12333 = vmatprep.mubr.msk.f32.mxu1 %vm716_vm3, %v14198_v40  ;;  %4915 = vst.msk [vmem:[#allocation4 + $0x18] sm:$0xff] %vm716_vm3, %v12020_v14  ;;  %v4763_v49 = vpop.f32.mrb[147].mxu1  ;;  %v5150_v9 = vpop.f32.mrb[147].mxu0  ;;  %v15825_v14 = vld [vmem:[#allocation22_spill] sm:$0xff] }
 0x2d7   : > { %12383 = vmatprep.mubr.msk.f32.mxu0 %vm716_vm3, %v14200_v10  ;;  %4914 = vst.msk [vmem:[#allocation4 + $0x10] sm:$0xff] %vm716_vm3, %v4763_v49 }
 0x2d9   : > { %12334 = vmatmul.mubr.msk.f32.gmra.mrb[252].mxu1 %vm716_vm3, %v14209_v33  ;;  %v12023_v16 = vpop.f32.mrb[148].mxu1  ;;  %v15815_v33 = vld [vmem:[#allocation9_spill] sm:$0xff] }
 0x2da   : > { %12384 = vmatmul.mubr.msk.f32.gmra.mrb[252].mxu0 %vm716_vm3, %v14211_v42  ;;  %12336 = vmatprep.mubr.msk.f32.mxu1 %vm716_vm3, %v14224_v53  ;;  %v12073_v23 = vpop.f32.mrb[148].mxu0  ;;  %4917 = vst.msk [vmem:[#allocation4 + $0x28] sm:$0xff] %vm716_vm3, %v12023_v16  ;;  %v4773_v40 = vpop.f32.mrb[149].mxu1 }
 0x2db   : > { %12386 = vmatprep.mubr.msk.f32.mxu0 %vm716_vm3, %v14226_v5  ;;  %v5160_v10 = vpop.f32.mrb[149].mxu0  ;;  %4916 = vst.msk [vmem:[#allocation4 + $0x20] sm:$0xff] %vm716_vm3, %v4773_v40 }
 0x2dd   : > { %12337 = vmatmul.mubr.msk.f32.gmra.mrb[254].mxu1 %vm716_vm3, %v14235_v47  ;;  %v5302_v42 = vld [vmem:[#allocation4 + $0x18] sm:$0xff]  ;;  %v12026_v53 = vpop.f32.mrb[150].mxu1 }
 0x2de   : > { %12387 = vmatmul.mubr.msk.f32.gmra.mrb[254].mxu0 %vm716_vm3, %v14237_v3  ;;  %12339 = vmatprep.mubr.msk.f32.mxu1 %vm716_vm3, %v15815_v33  ;;  %v12076_v5 = vpop.f32.mrb[150].mxu0  ;;  %v5334_v54 = vadd.f32 %v12070_v2, %v5302_v42  ;;  %v5301_v55 = vld [vmem:[#allocation4 + $0x10] sm:$0xff]  ;;  %4919 = vst.msk [vmem:[#allocation4 + $0x38] sm:$0xff] %vm716_vm3, %v12026_v53  ;;  %v4783_v13 = vpop.f32.mrb[151].mxu1  ;;  %v7230_v33 = vld [vmem:[#allocation3 + $0x198] sm:$0xff] }
 0x2df   : > { %12389 = vmatprep.mubr.msk.f32.mxu0 %vm716_vm3, %v14250_v18  ;;  %v5170_v47 = vpop.f32.mrb[151].mxu0  ;;  %v5333_v3 = vadd.f32 %v5301_v55, %v5150_v9  ;;  %4918 = vst.msk [vmem:[#allocation4 + $0x30] sm:$0xff] %vm716_vm3, %v4783_v13  ;;  %v7681_v42 = vld [vmem:[#allocation3 + $0x199] sm:$0xff] }
 0x2e0   : > { %5366 = vst.msk [vmem:[#allocation4 + $0x18] sm:$0xff] %vm716_vm3, %v5334_v54 }
 0x2e1   : > { %12340 = vmatmul.mubr.msk.f32.gmra.mrb[0].mxu1 %vm716_vm3, %v15816_v29  ;;  %5365 = vst.msk [vmem:[#allocation4 + $0x10] sm:$0xff] %vm716_vm3, %v5333_v3  ;;  %v5304_v18 = vld [vmem:[#allocation4 + $0x28] sm:$0xff]  ;;  %v7231_v29 = vld [vmem:[#allocation3 + $0x1a0] sm:$0xff] }
 0x2e2   : > { %12390 = vmatmul.mubr.msk.f32.gmra.mrb[0].mxu0 %vm716_vm3, %v14261_v56  ;;  %12342 = vmatprep.mubr.msk.f32.mxu1 %vm716_vm3, %v15817_v4  ;;  %v12029_v38 = vpop.f32.mrb[152].mxu1  ;;  %v12079_v39 = vpop.f32.mrb[152].mxu0  ;;  %v5336_v25 = vadd.f32 %v12073_v23, %v5304_v18  ;;  %v5303_v51 = vld [vmem:[#allocation4 + $0x20] sm:$0xff]  ;;  %v7682_v3 = vld [vmem:[#allocation3 + $0x1a1] sm:$0xff] }
 0x2e3   : > { %12392 = vmatprep.mubr.msk.f32.mxu0 %vm716_vm3, %v14274_v15  ;;  %4921 = vst.msk [vmem:[#allocation4 + $0x48] sm:$0xff] %vm716_vm3, %v12029_v38  ;;  %v4793_v56 = vpop.f32.mrb[153].mxu1  ;;  %v5180_v57 = vpop.f32.mrb[153].mxu0  ;;  %v5335_v15 = vadd.f32 %v5303_v51, %v5160_v10  ;;  %v15826_v10 = vld [vmem:[#allocation25_spill] sm:$0xff] }
 0x2e4   : > { %4920 = vst.msk [vmem:[#allocation4 + $0x40] sm:$0xff] %vm716_vm3, %v4793_v56  ;;  %5368 = vst.msk [vmem:[#allocation4 + $0x28] sm:$0xff] %vm716_vm3, %v5336_v25  ;;  %v8553_v4 = vld [vmem:[#allocation2 + $0x19] sm:$0xff] }
 0x2e5   : > { %12343 = vmatmul.mubr.msk.f32.gmra.mrb[2].mxu1 %vm716_vm3, %v15818_v36  ;;  %5367 = vst.msk [vmem:[#allocation4 + $0x20] sm:$0xff] %vm716_vm3, %v5335_v15  ;;  %v5306_v62 = vld [vmem:[#allocation4 + $0x38] sm:$0xff]  ;;  %v8554_v15 = vld [vmem:[#allocation2 + $0x21] sm:$0xff] }
 0x2e6   : > { %12393 = vmatmul.mubr.msk.f32.gmra.mrb[2].mxu0 %vm716_vm3, %v14285_v59  ;;  %12345 = vmatprep.mubr.msk.f32.mxu1 %vm716_vm3, %v15819_v1  ;;  %v12032_v30 = vpop.f32.mrb[154].mxu1  ;;  %v12082_v60 = vpop.f32.mrb[154].mxu0  ;;  %v5338_v48 = vadd.f32 %v12076_v5, %v5306_v62  ;;  %v5305_v19 = vld [vmem:[#allocation4 + $0x30] sm:$0xff] }
 0x2e7   : > { %12395 = vmatprep.mubr.msk.f32.mxu0 %vm716_vm3, %v14295_v6  ;;  %4923 = vst.msk [vmem:[#allocation4 + $0x58] sm:$0xff] %vm716_vm3, %v12032_v30  ;;  %v4803_v59 = vpop.f32.mrb[155].mxu1  ;;  %v5190_v7 = vpop.f32.mrb[155].mxu0  ;;  %v5337_v6 = vadd.f32 %v5305_v19, %v5170_v47  ;;  %v15827_v47 = vld [vmem:[#allocation26_spill] sm:$0xff]  ;;  %v8555_v1 = vld [vmem:[#allocation2 + $0x31] sm:$0xff] }
 0x2e8   : > { %4922 = vst.msk [vmem:[#allocation4 + $0x50] sm:$0xff] %vm716_vm3, %v4803_v59  ;;  %5370 = vst.msk [vmem:[#allocation4 + $0x38] sm:$0xff] %vm716_vm3, %v5338_v48  ;;  %v8103_v48 = vld [vmem:[#allocation3 + $0x3a] sm:$0xff] }
 0x2e9   : > { %12346 = vmatmul.mubr.msk.f32.gmra.mrb[4].mxu1 %vm716_vm3, %v15820_v31  ;;  %5369 = vst.msk [vmem:[#allocation4 + $0x30] sm:$0xff] %vm716_vm3, %v5337_v6  ;;  %v8104_v6 = vld [vmem:[#allocation3 + $0x4a] sm:$0xff] }
 0x2ea   : > { %12396 = vmatmul.mubr.msk.f32.gmra.mrb[4].mxu0 %vm716_vm3, %v14305_v26  ;;  %12348 = vmatprep.mubr.msk.f32.mxu1 %vm716_vm3, %v15821_v11  ;;  %v5308_v24 = vld [vmem:[#allocation4 + $0x48] sm:$0xff]  ;;  %v12035_v21 = vpop.f32.mrb[156].mxu1 }
 0x2eb   : > { %12398 = vmatprep.mubr.msk.f32.mxu0 %vm716_vm3, %v14315_v32  ;;  %v12085_v22 = vpop.f32.mrb[156].mxu0  ;;  %v5340_v41 = vadd.f32 %v12079_v39, %v5308_v24  ;;  %v5307_v61 = vld [vmem:[#allocation4 + $0x40] sm:$0xff]  ;;  %4925 = vst.msk [vmem:[#allocation4 + $0x68] sm:$0xff] %vm716_vm3, %v12035_v21  ;;  %v4813_v26 = vpop.f32.mrb[157].mxu1  ;;  %v8557_v21 = vld [vmem:[#allocation2 + $0x49] sm:$0xff] }
 0x2ec   : > { %v5200_v34 = vpop.f32.mrb[157].mxu0  ;;  %v5339_v32 = vadd.f32 %v5307_v61, %v5180_v57  ;;  %4924 = vst.msk [vmem:[#allocation4 + $0x60] sm:$0xff] %vm716_vm3, %v4813_v26  ;;  %v8102_v57 = vld [vmem:[#allocation3 + $0x32] sm:$0xff]  ;;  %v8556_v24 = vld [vmem:[#allocation2 + $0x39] sm:$0xff] }
 0x2ed   : > { %12349 = vmatmul.mubr.msk.f32.gmra.mrb[6].mxu1 %vm716_vm3, %v15822_v8  ;;  %5372 = vst.msk [vmem:[#allocation4 + $0x48] sm:$0xff] %vm716_vm3, %v5340_v41  ;;  %v8105_v26 = vld [vmem:[#allocation3 + $0x52] sm:$0xff] }
 0x2ee   : > { %12399 = vmatmul.mubr.msk.f32.gmra.mrb[6].mxu0 %vm716_vm3, %v15806_v12  ;;  %12351 = vmatprep.mubr.msk.f32.mxu1 %vm716_vm3, %v15823_v27  ;;  %5371 = vst.msk [vmem:[#allocation4 + $0x40] sm:$0xff] %vm716_vm3, %v5339_v32  ;;  %v5310_v45 = vld [vmem:[#allocation4 + $0x58] sm:$0xff]  ;;  %v12038_v46 = vpop.f32.mrb[158].mxu1 }
 0x2ef   : > { %12401 = vmatprep.mubr.msk.f32.mxu0 %vm716_vm3, %v15807_v17  ;;  %v12088_v43 = vpop.f32.mrb[158].mxu0  ;;  %v5342_v58 = vadd.f32 %v12082_v60, %v5310_v45  ;;  %v5309_v52 = vld [vmem:[#allocation4 + $0x50] sm:$0xff]  ;;  %4927 = vst.msk [vmem:[#allocation4 + $0x78] sm:$0xff] %vm716_vm3, %v12038_v46  ;;  %v4823_v12 = vpop.f32.mrb[159].mxu1 }
 0x2f0   : > { %v5210_v50 = vpop.f32.mrb[159].mxu0  ;;  %v5341_v17 = vadd.f32 %v5309_v52, %v5190_v7  ;;  %4926 = vst.msk [vmem:[#allocation4 + $0x70] sm:$0xff] %vm716_vm3, %v4823_v12  ;;  %v8106_v45 = vld [vmem:[#allocation3 + $0x62] sm:$0xff] }
 0x2f1   : > { %12352 = vmatmul.mubr.msk.f32.gmra.mrb[8].mxu1 %vm716_vm3, %v15824_v63  ;;  %5374 = vst.msk [vmem:[#allocation4 + $0x58] sm:$0xff] %vm716_vm3, %v5342_v58  ;;  %v8559_v58 = vld [vmem:[#allocation2 + $0x61] sm:$0xff] }
 0x2f2   : > { %12402 = vmatmul.mubr.msk.f32.gmra.mrb[8].mxu0 %vm716_vm3, %v15808_v28  ;;  %12354 = vmatprep.mubr.msk.f32.mxu1 %vm716_vm3, %v15825_v14  ;;  %5373 = vst.msk [vmem:[#allocation4 + $0x50] sm:$0xff] %vm716_vm3, %v5341_v17  ;;  %v5312_v2 = vld [vmem:[#allocation4 + $0x68] sm:$0xff]  ;;  %v12041_v49 = vpop.f32.mrb[160].mxu1  ;;  %v8107_v63 = vld [vmem:[#allocation3 + $0x6a] sm:$0xff] }
 0x2f3   : > { %12404 = vmatprep.mubr.msk.f32.mxu0 %vm716_vm3, %v15809_v44  ;;  %v12091_v9 = vpop.f32.mrb[160].mxu0  ;;  %v5344_v16 = vadd.f32 %v12085_v22, %v5312_v2  ;;  %v5311_v23 = vld [vmem:[#allocation4 + $0x60] sm:$0xff]  ;;  %4929 = vst.msk [vmem:[#allocation4 + $0x88] sm:$0xff] %vm716_vm3, %v12041_v49  ;;  %v4833_v28 = vpop.f32.mrb[161].mxu1 }
 0x2f4   : > { %v5220_v40 = vpop.f32.mrb[161].mxu0  ;;  %v5343_v44 = vadd.f32 %v5311_v23, %v5200_v34  ;;  %4928 = vst.msk [vmem:[#allocation4 + $0x80] sm:$0xff] %vm716_vm3, %v4833_v28  ;;  %v8560_v23 = vld [vmem:[#allocation2 + $0x69] sm:$0xff]  ;;  %v8561_v28 = vld [vmem:[#allocation2 + $0x79] sm:$0xff] }
 0x2f5   : > { %12355 = vmatmul.mubr.msk.f32.gmra.mrb[10].mxu1 %vm716_vm3, %v14355_v35  ;;  %5376 = vst.msk [vmem:[#allocation4 + $0x68] sm:$0xff] %vm716_vm3, %v5344_v16 }
 0x2f6   : > { %12405 = vmatmul.mubr.msk.f32.gmra.mrb[10].mxu0 %vm716_vm3, %v15810_v37  ;;  %12357 = vmatprep.mubr.msk.f32.mxu1 %vm716_vm3, %v15826_v10  ;;  %5375 = vst.msk [vmem:[#allocation4 + $0x60] sm:$0xff] %vm716_vm3, %v5343_v44  ;;  %v5314_v53 = vld [vmem:[#allocation4 + $0x78] sm:$0xff] }
 0x2f7   : > { %12407 = vmatprep.mubr.msk.f32.mxu0 %vm716_vm3, %v14714_v0  ;;  %v12044_v35 = vpop.f32.mrb[162].mxu1  ;;  %v12094_v5 = vpop.f32.mrb[162].mxu0  ;;  %v5346_v54 = vadd.f32 %v12088_v43, %v5314_v53  ;;  %v5313_v37 = vld [vmem:[#allocation4 + $0x70] sm:$0xff] }
 0x2f8   : > { %4931 = vst.msk [vmem:[#allocation4 + $0x98] sm:$0xff] %vm716_vm3, %v12044_v35  ;;  %v4843_v55 = vpop.f32.mrb[163].mxu1  ;;  %v5230_v13 = vpop.f32.mrb[163].mxu0  ;;  %v5345_v0 = vadd.f32 %v5313_v37, %v5210_v50  ;;  %v8558_v43 = vld [vmem:[#allocation2 + $0x51] sm:$0xff] }
 0x2f9   : > { %12358 = vmatmul.mubr.msk.f32.gmra.mrb[12].mxu1 %vm716_vm3, %v15827_v47  ;;  %4930 = vst.msk [vmem:[#allocation4 + $0x90] sm:$0xff] %vm716_vm3, %v4843_v55  ;;  %5378 = vst.msk [vmem:[#allocation4 + $0x78] sm:$0xff] %vm716_vm3, %v5346_v54  ;;  %v8110_v54 = vld [vmem:[#allocation3 + $0x92] sm:$0xff] }
 0x2fa   : > { %12408 = vmatmul.mubr.msk.f32.gmra.mrb[12].mxu0 %vm716_vm3, %v14719_v20  ;;  %12360 = vmatprep.mubr.msk.f32.mxu1 %vm716_vm3, %v7230_v33  ;;  %5377 = vst.msk [vmem:[#allocation4 + $0x70] sm:$0xff] %vm716_vm3, %v5345_v0  ;;  %v5316_v18 = vld [vmem:[#allocation4 + $0x88] sm:$0xff]  ;;  %v8109_v33 = vld [vmem:[#allocation3 + $0x82] sm:$0xff] }
 0x2fb   : > { %12410 = vmatprep.mubr.msk.f32.mxu0 %vm716_vm3, %v7681_v42  ;;  %v12047_v38 = vpop.f32.mrb[164].mxu1  ;;  %v5348_v25 = vadd.f32 %v12091_v9, %v5316_v18  ;;  %v5315_v51 = vld [vmem:[#allocation4 + $0x80] sm:$0xff]  ;;  %v8108_v9 = vld [vmem:[#allocation3 + $0x7a] sm:$0xff] }
 0x2fc   : > { %v12097_v39 = vpop.f32.mrb[164].mxu0  ;;  %4933 = vst.msk [vmem:[#allocation4 + $0xa8] sm:$0xff] %vm716_vm3, %v12047_v38  ;;  %v4853_v20 = vpop.f32.mrb[165].mxu1  ;;  %v5347_v36 = vadd.f32 %v5315_v51, %v5220_v40  ;;  %v8562_v55 = vld [vmem:[#allocation2 + $0x81] sm:$0xff] }
 0x2fd   : > { %v5240_v56 = vpop.f32.mrb[165].mxu0  ;;  %12361 = vmatmul.mubr.msk.f32.gmra.mrb[14].mxu1 %vm716_vm3, %v7231_v29  ;;  %4932 = vst.msk [vmem:[#allocation4 + $0xa0] sm:$0xff] %vm716_vm3, %v4853_v20  ;;  %5380 = vst.msk [vmem:[#allocation4 + $0x88] sm:$0xff] %vm716_vm3, %v5348_v25  ;;  %v8112_v25 = vld [vmem:[#allocation3 + $0xaa] sm:$0xff] }
 0x2fe   : > { %12411 = vmatmul.mubr.msk.f32.gmra.mrb[14].mxu0 %vm716_vm3, %v7682_v3  ;;  %12415 = vmatprep.mubr.msk.f32.mxu1 %vm716_vm3, %v8102_v57  ;;  %5379 = vst.msk [vmem:[#allocation4 + $0x80] sm:$0xff] %vm716_vm3, %v5347_v36  ;;  %v8111_v3 = vld [vmem:[#allocation3 + $0x9a] sm:$0xff]  ;;  %v8564_v20 = vld [vmem:[#allocation2 + $0x99] sm:$0xff] }
 0x2ff   : > { %12465 = vmatprep.mubr.msk.f32.mxu0 %vm285_vm1, %v8553_v4  ;;  %v5318_v62 = vld [vmem:[#allocation4 + $0x98] sm:$0xff]  ;;  %v12050_v30 = vpop.f32.mrb[166].mxu1 }
 0x300   : > { %v12100_v60 = vpop.f32.mrb[166].mxu0  ;;  %v5350_v19 = vadd.f32 %v12094_v5, %v5318_v62  ;;  %v5317_v59 = vld [vmem:[#allocation4 + $0x90] sm:$0xff]  ;;  %4935 = vst.msk [vmem:[#allocation4 + $0xb8] sm:$0xff] %vm716_vm3, %v12050_v30  ;;  %v4863_v7 = vpop.f32.mrb[167].mxu1  ;;  %v8113_v62 = vld [vmem:[#allocation3 + $0xb2] sm:$0xff] }
 0x301   : > { %v5250_v31 = vpop.f32.mrb[167].mxu0  ;;  %12416 = vmatmul.mubr.msk.f32.vlgmr.msra.gmra.mrb[16].mxu1 %vm716_vm3, %v8103_v48  ;;  %v5349_v11 = vadd.f32 %v5317_v59, %v5230_v13  ;;  %4934 = vst.msk [vmem:[#allocation4 + $0xb0] sm:$0xff] %vm716_vm3, %v4863_v7  ;;  %v8563_v13 = vld [vmem:[#allocation2 + $0x91] sm:$0xff]  ;;  %v5750_v59 = vld [vmem:[#allocation4] sm:$0xff] }
 0x302   : > { %12466 = vmatmul.mubr.msk.f32.vlgmr.msra.gmra.mrb[16].mxu0 %vm285_vm1, %v8554_v15  ;;  %12418 = vmatprep.mubr.msk.f32.mxu1 %vm716_vm3, %v8104_v6  ;;  %5382 = vst.msk [vmem:[#allocation4 + $0x98] sm:$0xff] %vm716_vm3, %v5350_v19  ;;  %v5751_v15 = vld [vmem:[#allocation4 + $0x8] sm:$0xff] }
 0x303   : > { %12468 = vmatprep.mubr.msk.f32.mxu0 %vm285_vm1, %v8555_v1  ;;  %5381 = vst.msk [vmem:[#allocation4 + $0x90] sm:$0xff] %vm716_vm3, %v5349_v11  ;;  %v5320_v22 = vld [vmem:[#allocation4 + $0xa8] sm:$0xff] }
 0x304   : > { %v12053_v41 = vpop.f32.mrb[168].mxu1  ;;  %v5352_v34 = vadd.f32 %v12097_v39, %v5320_v22  ;;  %v5319_v8 = vld [vmem:[#allocation4 + $0xa0] sm:$0xff] }
 0x305   : > { %v12103_v61 = vpop.f32.mrb[168].mxu0  ;;  %4937 = vst.msk [vmem:[#allocation4 + $0xc8] sm:$0xff] %vm716_vm3, %v12053_v41  ;;  %v4873_v32 = vpop.f32.mrb[169].mxu1  ;;  %12419 = vmatmul.mubr.msk.f32.gmra.mrb[18].mxu1 %vm716_vm3, %v8105_v26  ;;  %v5351_v46 = vadd.f32 %v5319_v8, %v5240_v56  ;;  %v8565_v56 = vld [vmem:[#allocation2 + $0xa9] sm:$0xff] }
 0x306   : > { %v5260_v27 = vpop.f32.mrb[169].mxu0  ;;  %12469 = vmatmul.mubr.msk.f32.gmra.mrb[18].mxu0 %vm285_vm1, %v8556_v24  ;;  %4936 = vst.msk [vmem:[#allocation4 + $0xc0] sm:$0xff] %vm716_vm3, %v4873_v32  ;;  %12421 = vmatprep.mubr.msk.f32.mxu1 %vm716_vm3, %v8106_v45  ;;  %5384 = vst.msk [vmem:[#allocation4 + $0xa8] sm:$0xff] %vm716_vm3, %v5352_v34  ;;  %v8566_v24 = vld [vmem:[#allocation2 + $0xb1] sm:$0xff]  ;;  %v8115_v34 = vld [vmem:[#allocation3 + $0xca] sm:$0xff] }
 0x307   : > { %12471 = vmatprep.mubr.msk.f32.mxu0 %vm285_vm1, %v8557_v21  ;;  %5383 = vst.msk [vmem:[#allocation4 + $0xa0] sm:$0xff] %vm716_vm3, %v5351_v46  ;;  %v5322_v52 = vld [vmem:[#allocation4 + $0xb8] sm:$0xff]  ;;  %v8567_v21 = vld [vmem:[#allocation2 + $0xc1] sm:$0xff]  ;;  %v5752_v46 = vld [vmem:[#allocation4 + $0x10] sm:$0xff] }
 0x308   : > { %v12056_v12 = vpop.f32.mrb[170].mxu1  ;;  %v5354_v17 = vadd.f32 %v12100_v60, %v5322_v52  ;;  %v5321_v14 = vld [vmem:[#allocation4 + $0xb0] sm:$0xff] }
 0x309   : > { %v12106_v50 = vpop.f32.mrb[170].mxu0  ;;  %4939 = vst.msk [vmem:[#allocation4 + $0xd8] sm:$0xff] %vm716_vm3, %v12056_v12  ;;  %v4883_v2 = vpop.f32.mrb[171].mxu1  ;;  %12422 = vmatmul.mubr.msk.f32.gmra.mrb[20].mxu1 %vm716_vm3, %v8107_v63  ;;  %v5353_v16 = vadd.f32 %v5321_v14, %v5250_v31  ;;  %v8114_v31 = vld [vmem:[#allocation3 + $0xc2] sm:$0xff]  ;;  %v5755_v14 = vld [vmem:[#allocation4 + $0x28] sm:$0xff] }
 0x30a   : > { %v5270_v49 = vpop.f32.mrb[171].mxu0  ;;  %12472 = vmatmul.mubr.msk.f32.gmra.mrb[20].mxu0 %vm285_vm1, %v8558_v43  ;;  %4938 = vst.msk [vmem:[#allocation4 + $0xd0] sm:$0xff] %vm716_vm3, %v4883_v2  ;;  %12424 = vmatprep.mubr.msk.f32.mxu1 %vm716_vm3, %v8108_v9  ;;  %5386 = vst.msk [vmem:[#allocation4 + $0xb8] sm:$0xff] %vm716_vm3, %v5354_v17  ;;  %v8569_v63 = vld [vmem:[#allocation2 + $0xd9] sm:$0xff] }
 0x30b   : > { %12474 = vmatprep.mubr.msk.f32.mxu0 %vm285_vm1, %v8559_v58  ;;  %5385 = vst.msk [vmem:[#allocation4 + $0xb0] sm:$0xff] %vm716_vm3, %v5353_v16  ;;  %v8116_v58 = vld [vmem:[#allocation3 + $0xda] sm:$0xff] }
 0x30c   : > { %v5324_v40 = vld [vmem:[#allocation4 + $0xc8] sm:$0xff]  ;;  %v12059_v44 = vpop.f32.mrb[172].mxu1 }
 0x30d   : > { %v12109_v10 = vpop.f32.mrb[172].mxu0  ;;  %v5356_v42 = vadd.f32 %v12103_v61, %v5324_v40  ;;  %v5323_v53 = vld [vmem:[#allocation4 + $0xc0] sm:$0xff]  ;;  %4941 = vst.msk [vmem:[#allocation4 + $0xe8] sm:$0xff] %vm716_vm3, %v12059_v44  ;;  %v4893_v35 = vpop.f32.mrb[173].mxu1  ;;  %12425 = vmatmul.mubr.msk.f32.gmra.mrb[22].mxu1 %vm716_vm3, %v8109_v33  ;;  %v5753_v61 = vld [vmem:[#allocation4 + $0x18] sm:$0xff] }
 0x30e   : > { %v5280_v5 = vpop.f32.mrb[173].mxu0  ;;  %12475 = vmatmul.mubr.msk.f32.gmra.mrb[22].mxu0 %vm285_vm1, %v8560_v23  ;;  %v5355_v37 = vadd.f32 %v5323_v53, %v5260_v27  ;;  %4940 = vst.msk [vmem:[#allocation4 + $0xe0] sm:$0xff] %vm716_vm3, %v4893_v35  ;;  %12427 = vmatprep.mubr.msk.f32.mxu1 %vm716_vm3, %v8110_v54  ;;  %v5754_v23 = vld [vmem:[#allocation4 + $0x20] sm:$0xff]  ;;  %v8571_v35 = vld [vmem:[#allocation2 + $0xf1] sm:$0xff] }
 0x30f   : > { %12477 = vmatprep.mubr.msk.f32.mxu0 %vm285_vm1, %v8561_v28  ;;  %5388 = vst.msk [vmem:[#allocation4 + $0xc8] sm:$0xff] %vm716_vm3, %v5356_v42  ;;  %v8118_v40 = vld [vmem:[#allocation3 + $0xf2] sm:$0xff] }
 0x310   : > { %5387 = vst.msk [vmem:[#allocation4 + $0xc0] sm:$0xff] %vm716_vm3, %v5355_v37  ;;  %v5326_v47 = vld [vmem:[#allocation4 + $0xd8] sm:$0xff]  ;;  %v12062_v0 = vpop.f32.mrb[174].mxu1  ;;  %v8570_v33 = vld [vmem:[#allocation2 + $0xe1] sm:$0xff] }
 0x311   : > { %v12112_v29 = vpop.f32.mrb[174].mxu0  ;;  %v5358_v4 = vadd.f32 %v12106_v50, %v5326_v47  ;;  %v5325_v18 = vld [vmem:[#allocation4 + $0xd0] sm:$0xff]  ;;  %4943 = vst.msk [vmem:[#allocation4 + $0xf8] sm:$0xff] %vm716_vm3, %v12062_v0  ;;  %v4903_v38 = vpop.f32.mrb[175].mxu1  ;;  %12428 = vmatmul.mubr.msk.f32.gmra.mrb[24].mxu1 %vm716_vm3, %v8111_v3  ;;  %v5757_v37 = vld [vmem:[#allocation4 + $0x38] sm:$0xff] }
 0x312   : > { %v5290_v39 = vpop.f32.mrb[175].mxu0  ;;  %12478 = vmatmul.mubr.msk.f32.gmra.mrb[24].mxu0 %vm285_vm1, %v8562_v55  ;;  %v5357_v51 = vadd.f32 %v5325_v18, %v5270_v49  ;;  %4942 = vst.msk [vmem:[#allocation4 + $0xf0] sm:$0xff] %vm716_vm3, %v4903_v38  ;;  %12430 = vmatprep.mubr.msk.f32.mxu1 %vm716_vm3, %v8112_v25  ;;  %v8568_v50 = vld [vmem:[#allocation2 + $0xc9] sm:$0xff]  ;;  %v8117_v49 = vld [vmem:[#allocation3 + $0xe2] sm:$0xff] }
 0x313   : > { %12480 = vmatprep.mubr.msk.f32.mxu0 %vm285_vm1, %v8563_v13  ;;  %5390 = vst.msk [vmem:[#allocation4 + $0xd8] sm:$0xff] %vm716_vm3, %v5358_v4  ;;  %v8119_v13 = vld [vmem:[#allocation3 + $0xfa] sm:$0xff]  ;;  %v8120_v4 = vld [vmem:[#allocation3 + $0x10a] sm:$0xff] }
 0x314   : > { %5389 = vst.msk [vmem:[#allocation4 + $0xd0] sm:$0xff] %vm716_vm3, %v5357_v51  ;;  %v5328_v57 = vld [vmem:[#allocation4 + $0xe8] sm:$0xff]  ;;  %v12117_v36 = vpop.f32.mrb[176].mxu1 }
 0x315   : > { %v12167_v1 = vpop.f32.mrb[176].mxu0  ;;  %v5360_v30 = vadd.f32 %v12109_v10, %v5328_v57  ;;  %v5327_v60 = vld [vmem:[#allocation4 + $0xe0] sm:$0xff]  ;;  %v5783_v48 = vadd.f32 %v12117_v36, %v5751_v15  ;;  %v5591_v19 = vpop.f32.mrb[177].mxu1  ;;  %12431 = vmatmul.mubr.msk.f32.gmra.mrb[26].mxu1 %vm716_vm3, %v8113_v62  ;;  %v5759_v36 = vld [vmem:[#allocation4 + $0x48] sm:$0xff] }
 0x316   : > { %v6042_v7 = vpop.f32.mrb[177].mxu0  ;;  %12481 = vmatmul.mubr.msk.f32.gmra.mrb[26].mxu0 %vm285_vm1, %v8564_v20  ;;  %v5359_v6 = vadd.f32 %v5327_v60, %v5280_v5  ;;  %v5782_v11 = vadd.f32 %v5750_v59, %v5591_v19  ;;  %12433 = vmatprep.mubr.msk.f32.mxu1 %vm716_vm3, %v8114_v31  ;;  %v8573_v20 = vld [vmem:[#allocation2 + $0x109] sm:$0xff]  ;;  %v5758_v60 = vld [vmem:[#allocation4 + $0x40] sm:$0xff]  ;;  %v8122_v19 = vld [vmem:[#allocation3 + $0x122] sm:$0xff] }
 0x317   : > { %12483 = vmatprep.mubr.msk.f32.mxu0 %vm285_vm1, %v8565_v56  ;;  %5392 = vst.msk [vmem:[#allocation4 + $0xe8] sm:$0xff] %vm716_vm3, %v5360_v30  ;;  %5815 = vst.msk [vmem:[#allocation4 + $0x8] sm:$0xff] %vm716_vm3, %v5783_v48  ;;  %v8574_v31 = vld [vmem:[#allocation2 + $0x111] sm:$0xff] }
 0x318   : > { %5391 = vst.msk [vmem:[#allocation4 + $0xe0] sm:$0xff] %vm716_vm3, %v5359_v6  ;;  %v5330_v22 = vld [vmem:[#allocation4 + $0xf8] sm:$0xff]  ;;  %5814 = vst.msk [vmem:[#allocation4] sm:$0xff] %vm716_vm3, %v5782_v11  ;;  %v12120_v41 = vpop.f32.mrb[178].mxu1 }
 0x319   : > { %v12170_v26 = vpop.f32.mrb[178].mxu0  ;;  %v5362_v8 = vadd.f32 %v12112_v29, %v5330_v22  ;;  %v5329_v32 = vld [vmem:[#allocation4 + $0xf0] sm:$0xff]  ;;  %v5785_v27 = vadd.f32 %v12120_v41, %v5753_v61  ;;  %v5601_v45 = vpop.f32.mrb[179].mxu1  ;;  %12434 = vmatmul.mubr.msk.f32.gmra.mrb[28].mxu1 %vm716_vm3, %v8115_v34  ;;  %v5761_v41 = vld [vmem:[#allocation4 + $0x58] sm:$0xff] }
 0x31a   : > { %v6052_v43 = vpop.f32.mrb[179].mxu0  ;;  %12484 = vmatmul.mubr.msk.f32.gmra.mrb[28].mxu0 %vm285_vm1, %v8566_v24  ;;  %v5361_v52 = vadd.f32 %v5329_v32, %v5290_v39  ;;  %v5784_v12 = vadd.f32 %v5752_v46, %v5601_v45  ;;  %12436 = vmatprep.mubr.msk.f32.mxu1 %vm716_vm3, %v8116_v58  ;;  %v5756_v29 = vld [vmem:[#allocation4 + $0x30] sm:$0xff]  ;;  %v8572_v39 = vld [vmem:[#allocation2 + $0xf9] sm:$0xff]  ;;  %v8575_v24 = vld [vmem:[#allocation2 + $0x121] sm:$0xff] }
 0x31b   : > { %12486 = vmatprep.mubr.msk.f32.mxu0 %vm285_vm1, %v8567_v21  ;;  %5394 = vst.msk [vmem:[#allocation4 + $0xf8] sm:$0xff] %vm716_vm3, %v5362_v8  ;;  %5817 = vst.msk [vmem:[#allocation4 + $0x18] sm:$0xff] %vm716_vm3, %v5785_v27  ;;  %v5760_v32 = vld [vmem:[#allocation4 + $0x50] sm:$0xff] }
 0x31c   : > { %5393 = vst.msk [vmem:[#allocation4 + $0xf0] sm:$0xff] %vm716_vm3, %v5361_v52  ;;  %5816 = vst.msk [vmem:[#allocation4 + $0x10] sm:$0xff] %vm716_vm3, %v5784_v12  ;;  %v12123_v17 = vpop.f32.mrb[180].mxu1  ;;  %v8124_v45 = vld [vmem:[#allocation3 + $0x13a] sm:$0xff] }
 0x31d   : > { %v12173_v2 = vpop.f32.mrb[180].mxu0  ;;  %v5787_v9 = vadd.f32 %v12123_v17, %v5755_v14  ;;  %v5611_v16 = vpop.f32.mrb[181].mxu1  ;;  %12437 = vmatmul.mubr.msk.f32.gmra.mrb[30].mxu1 %vm716_vm3, %v8117_v49  ;;  %v8576_v58 = vld [vmem:[#allocation2 + $0x129] sm:$0xff]  ;;  %v8125_v49 = vld [vmem:[#allocation3 + $0x142] sm:$0xff] }
 0x31e   : > { %v6062_v28 = vpop.f32.mrb[181].mxu0  ;;  %12487 = vmatmul.mubr.msk.f32.gmra.mrb[30].mxu0 %vm285_vm1, %v8568_v50  ;;  %v6202_v44 = vld [vmem:[#allocation4 + $0x8] sm:$0xff]  ;;  %v5786_v10 = vadd.f32 %v5754_v23, %v5611_v16  ;;  %12439 = vmatprep.mubr.msk.f32.mxu1 %vm716_vm3, %v8118_v40  ;;  %v8577_v50 = vld [vmem:[#allocation2 + $0x139] sm:$0xff] }
 0x31f   : > { %12489 = vmatprep.mubr.msk.f32.mxu0 %vm285_vm1, %v8569_v63  ;;  %v6234_v42 = vadd.f32 %v12167_v1, %v6202_v44  ;;  %v6201_v53 = vld [vmem:[#allocation4] sm:$0xff]  ;;  %5819 = vst.msk [vmem:[#allocation4 + $0x28] sm:$0xff] %vm716_vm3, %v5787_v9  ;;  %v5763_v14 = vld [vmem:[#allocation4 + $0x68] sm:$0xff] }
 0x320   : > { %v6233_v5 = vadd.f32 %v6201_v53, %v6042_v7  ;;  %5818 = vst.msk [vmem:[#allocation4 + $0x20] sm:$0xff] %vm716_vm3, %v5786_v10  ;;  %v12126_v54 = vpop.f32.mrb[182].mxu1  ;;  %v8121_v1 = vld [vmem:[#allocation3 + $0x112] sm:$0xff] }
 0x321   : > { %v14935_v55 = vpop.f32.mrb[182].mxu0  ;;  %6266 = vst.msk [vmem:[#allocation4 + $0x8] sm:$0xff] %vm716_vm3, %v6234_v42  ;;  %v5789_v47 = vadd.f32 %v12126_v54, %v5757_v37  ;;  %v5621_v0 = vpop.f32.mrb[183].mxu1  ;;  %12440 = vmatmul.mubr.msk.f32.gmra.mrb[32].mxu1 %vm716_vm3, %v8119_v13  ;;  %v5762_v23 = vld [vmem:[#allocation4 + $0x60] sm:$0xff]  ;;  %v5765_v37 = vld [vmem:[#allocation4 + $0x78] sm:$0xff]  ;;  %v8127_v13 = vld [vmem:[#allocation3 + $0x15a] sm:$0xff] }
 0x322   : > { %v6072_v3 = vpop.f32.mrb[183].mxu0  ;;  %12490 = vmatmul.mubr.msk.f32.gmra.mrb[32].mxu0 %vm285_vm1, %v8570_v33  ;;  %6265 = vst.msk [vmem:[#allocation4] sm:$0xff] %vm716_vm3, %v6233_v5  ;;  %v6204_v18 = vld [vmem:[#allocation4 + $0x18] sm:$0xff]  ;;  %v5788_v38 = vadd.f32 %v5756_v29, %v5621_v0  ;;  %12442 = vmatprep.mubr.msk.f32.mxu1 %vm716_vm3, %v8120_v4  ;;  %v8126_v40 = vld [vmem:[#allocation3 + $0x152] sm:$0xff]  ;;  %v5764_v29 = vld [vmem:[#allocation4 + $0x70] sm:$0xff] }
 0x323   : > { %12492 = vmatprep.mubr.msk.f32.mxu0 %vm285_vm1, %v8571_v35  ;;  %v6236_v25 = vadd.f32 %v12170_v26, %v6204_v18  ;;  %v6203_v51 = vld [vmem:[#allocation4 + $0x10] sm:$0xff]  ;;  %5821 = vst.msk [vmem:[#allocation4 + $0x38] sm:$0xff] %vm716_vm3, %v5789_v47  ;;  %v8123_v26 = vld [vmem:[#allocation3 + $0x12a] sm:$0xff] }
 0x324   : > { %v6235_v56 = vadd.f32 %v6203_v51, %v6052_v43  ;;  %5820 = vst.msk [vmem:[#allocation4 + $0x30] sm:$0xff] %vm716_vm3, %v5788_v38  ;;  %v12129_v57 = vpop.f32.mrb[184].mxu1  ;;  %v8578_v33 = vld [vmem:[#allocation2 + $0x141] sm:$0xff]  ;;  %v8579_v35 = vld [vmem:[#allocation2 + $0x151] sm:$0xff] }
 0x325   : > { %v14945_v15 = vpop.f32.mrb[184].mxu0  ;;  %6268 = vst.msk [vmem:[#allocation4 + $0x18] sm:$0xff] %vm716_vm3, %v6236_v25  ;;  %v5791_v62 = vadd.f32 %v12129_v57, %v5759_v36  ;;  %v5631_v30 = vpop.f32.mrb[185].mxu1  ;;  %12443 = vmatmul.mubr.msk.f32.gmra.mrb[34].mxu1 %vm716_vm3, %v8121_v1  ;;  %v8128_v4 = vld [vmem:[#allocation3 + $0x16a] sm:$0xff]  ;;  %v5767_v36 = vld [vmem:[#allocation4 + $0x88] sm:$0xff] }
 0x326   : > { %v6082_v48 = vpop.f32.mrb[185].mxu0  ;;  %12493 = vmatmul.mubr.msk.f32.gmra.mrb[34].mxu0 %vm285_vm1, %v8572_v39  ;;  %6267 = vst.msk [vmem:[#allocation4 + $0x10] sm:$0xff] %vm716_vm3, %v6235_v56  ;;  %v6206_v59 = vld [vmem:[#allocation4 + $0x28] sm:$0xff]  ;;  %v5790_v7 = vadd.f32 %v5758_v60, %v5631_v30  ;;  %12445 = vmatprep.mubr.msk.f32.mxu1 %vm716_vm3, %v8122_v19  ;;  %v8580_v39 = vld [vmem:[#allocation2 + $0x159] sm:$0xff] }
 0x327   : > { %12495 = vmatprep.mubr.msk.f32.mxu0 %vm285_vm1, %v8573_v20  ;;  %v6238_v6 = vadd.f32 %v12173_v2, %v6206_v59  ;;  %v6205_v11 = vld [vmem:[#allocation4 + $0x20] sm:$0xff]  ;;  %5823 = vst.msk [vmem:[#allocation4 + $0x48] sm:$0xff] %vm716_vm3, %v5791_v62  ;;  %v8581_v20 = vld [vmem:[#allocation2 + $0x169] sm:$0xff]  ;;  %v8130_v19 = vld [vmem:[#allocation3 + $0x182] sm:$0xff] }
 0x328   : > { %v6237_v21 = vadd.f32 %v6205_v11, %v6062_v28  ;;  %5822 = vst.msk [vmem:[#allocation4 + $0x40] sm:$0xff] %vm716_vm3, %v5790_v7  ;;  %v12132_v22 = vpop.f32.mrb[186].mxu1  ;;  %v8129_v1 = vld [vmem:[#allocation3 + $0x172] sm:$0xff] }
 0x329   : > { %v14955_v61 = vpop.f32.mrb[186].mxu0  ;;  %6270 = vst.msk [vmem:[#allocation4 + $0x28] sm:$0xff] %vm716_vm3, %v6238_v6  ;;  %v5793_v34 = vadd.f32 %v12132_v22, %v5761_v41  ;;  %v5641_v8 = vpop.f32.mrb[187].mxu1  ;;  %12446 = vmatmul.mubr.msk.f32.gmra.mrb[36].mxu1 %vm716_vm3, %v8123_v26  ;;  %v5766_v60 = vld [vmem:[#allocation4 + $0x80] sm:$0xff] }
 0x32a   : > { %v6092_v27 = vpop.f32.mrb[187].mxu0  ;;  %12496 = vmatmul.mubr.msk.f32.gmra.mrb[36].mxu0 %vm285_vm1, %v8574_v31  ;;  %6269 = vst.msk [vmem:[#allocation4 + $0x20] sm:$0xff] %vm716_vm3, %v6237_v21  ;;  %v6208_v46 = vld [vmem:[#allocation4 + $0x38] sm:$0xff]  ;;  %v5792_v43 = vadd.f32 %v5760_v32, %v5641_v8  ;;  %12448 = vmatprep.mubr.msk.f32.mxu1 %vm716_vm3, %v8124_v45  ;;  %v8583_v21 = vld [vmem:[#allocation2 + $0x181] sm:$0xff] }
 0x32b   : > { %12498 = vmatprep.mubr.msk.f32.mxu0 %vm285_vm1, %v8575_v24  ;;  %v6240_v52 = vadd.f32 %v14935_v55, %v6208_v46  ;;  %v6207_v12 = vld [vmem:[#allocation4 + $0x30] sm:$0xff]  ;;  %5825 = vst.msk [vmem:[#allocation4 + $0x58] sm:$0xff] %vm716_vm3, %v5793_v34  ;;  %v8131_v34 = vld [vmem:[#allocation3 + $0x18a] sm:$0xff] }
 0x32c   : > { %v6239_v63 = vadd.f32 %v6207_v12, %v6072_v3  ;;  %5824 = vst.msk [vmem:[#allocation4 + $0x50] sm:$0xff] %vm716_vm3, %v5792_v43  ;;  %v12135_v17 = vpop.f32.mrb[188].mxu1  ;;  %v8582_v31 = vld [vmem:[#allocation2 + $0x171] sm:$0xff] }
 0x32d   : > { %v14966_v2 = vpop.f32.mrb[188].mxu0  ;;  %6272 = vst.msk [vmem:[#allocation4 + $0x38] sm:$0xff] %vm716_vm3, %v6240_v52  ;;  %v5795_v9 = vadd.f32 %v12135_v17, %v5763_v14  ;;  %v5651_v16 = vpop.f32.mrb[189].mxu1  ;;  %12449 = vmatmul.mubr.msk.f32.gmra.mrb[38].mxu1 %vm716_vm3, %v8125_v49  ;;  %v8132_v24 = vld [vmem:[#allocation3 + $0x19a] sm:$0xff] }
 0x32e   : > { %v14969_v28 = vpop.f32.mrb[189].mxu0  ;;  %12499 = vmatmul.mubr.msk.f32.gmra.mrb[38].mxu0 %vm285_vm1, %v8576_v58  ;;  %6271 = vst.msk [vmem:[#allocation4 + $0x30] sm:$0xff] %vm716_vm3, %v6239_v63  ;;  %v6210_v44 = vld [vmem:[#allocation4 + $0x48] sm:$0xff]  ;;  %v5794_v10 = vadd.f32 %v5762_v23, %v5651_v16  ;;  %12451 = vmatprep.mubr.msk.f32.mxu1 %vm716_vm3, %v8126_v40  ;;  %v8133_v58 = vld [vmem:[#allocation3 + $0x1a2] sm:$0xff]  ;;  %v5770_v16 = vld [vmem:[#allocation4 + $0xa0] sm:$0xff] }
 0x32f   : > { %12501 = vmatprep.mubr.msk.f32.mxu0 %vm285_vm1, %v8577_v50  ;;  %v6242_v42 = vadd.f32 %v14945_v15, %v6210_v44  ;;  %v6209_v53 = vld [vmem:[#allocation4 + $0x40] sm:$0xff]  ;;  %5827 = vst.msk [vmem:[#allocation4 + $0x68] sm:$0xff] %vm716_vm3, %v5795_v9  ;;  %v8584_v52 = vld [vmem:[#allocation2 + $0x189] sm:$0xff] }
 0x330   : > { %v6241_v5 = vadd.f32 %v6209_v53, %v6082_v48  ;;  %5826 = vst.msk [vmem:[#allocation4 + $0x60] sm:$0xff] %vm716_vm3, %v5794_v10  ;;  %v12138_v54 = vpop.f32.mrb[190].mxu1  ;;  %v5771_v14 = vld [vmem:[#allocation4 + $0xa8] sm:$0xff]  ;;  %v5773_v53 = vld [vmem:[#allocation4 + $0xb8] sm:$0xff] }
 0x331   : > { %v14979_v55 = vpop.f32.mrb[190].mxu0  ;;  %6274 = vst.msk [vmem:[#allocation4 + $0x48] sm:$0xff] %vm716_vm3, %v6242_v42  ;;  %v5797_v47 = vadd.f32 %v12138_v54, %v5765_v37  ;;  %v5661_v0 = vpop.f32.mrb[191].mxu1  ;;  %12452 = vmatmul.mubr.msk.f32.gmra.mrb[40].mxu1 %vm716_vm3, %v8127_v13  ;;  %v5772_v37 = vld [vmem:[#allocation4 + $0xb0] sm:$0xff] }
 0x332   : > { %v6112_v3 = vpop.f32.mrb[191].mxu0  ;;  %12502 = vmatmul.mubr.msk.f32.gmra.mrb[40].mxu0 %vm285_vm1, %v8578_v33  ;;  %6273 = vst.msk [vmem:[#allocation4 + $0x40] sm:$0xff] %vm716_vm3, %v6241_v5  ;;  %v6212_v18 = vld [vmem:[#allocation4 + $0x58] sm:$0xff]  ;;  %v5796_v38 = vadd.f32 %v5764_v29, %v5661_v0  ;;  %12454 = vmatprep.mubr.msk.f32.mxu1 %vm716_vm3, %v8128_v4 }
 0x333   : > { %12504 = vmatprep.mubr.msk.f32.mxu0 %vm285_vm1, %v8579_v35  ;;  %v6244_v25 = vadd.f32 %v14955_v61, %v6212_v18  ;;  %v6211_v51 = vld [vmem:[#allocation4 + $0x50] sm:$0xff]  ;;  %5829 = vst.msk [vmem:[#allocation4 + $0x78] sm:$0xff] %vm716_vm3, %v5797_v47  ;;  %v5769_v61 = vld [vmem:[#allocation4 + $0x98] sm:$0xff]  ;;  %v5775_v18 = vld [vmem:[#allocation4 + $0xc8] sm:$0xff] }
 0x334   : > { %v6243_v56 = vadd.f32 %v6211_v51, %v6092_v27  ;;  %5828 = vst.msk [vmem:[#allocation4 + $0x70] sm:$0xff] %vm716_vm3, %v5796_v38  ;;  %v12141_v57 = vpop.f32.mrb[192].mxu1  ;;  %v5768_v27 = vld [vmem:[#allocation4 + $0x90] sm:$0xff]  ;;  %v5774_v51 = vld [vmem:[#allocation4 + $0xc0] sm:$0xff] }
 0x335   : > { %v12191_v15 = vpop.f32.mrb[192].mxu0  ;;  %6276 = vst.msk [vmem:[#allocation4 + $0x58] sm:$0xff] %vm716_vm3, %v6244_v25  ;;  %v5799_v62 = vadd.f32 %v12141_v57, %v5767_v36  ;;  %v5671_v30 = vpop.f32.mrb[193].mxu1  ;;  %12455 = vmatmul.mubr.msk.f32.gmra.mrb[42].mxu1 %vm716_vm3, %v8129_v1 }
 0x336   : > { %v6122_v48 = vpop.f32.mrb[193].mxu0  ;;  %12505 = vmatmul.mubr.msk.f32.gmra.mrb[42].mxu0 %vm285_vm1, %v8580_v39  ;;  %6275 = vst.msk [vmem:[#allocation4 + $0x50] sm:$0xff] %vm716_vm3, %v6243_v56  ;;  %v6214_v59 = vld [vmem:[#allocation4 + $0x68] sm:$0xff]  ;;  %v5798_v7 = vadd.f32 %v5766_v60, %v5671_v30  ;;  %12457 = vmatprep.mubr.msk.f32.mxu1 %vm716_vm3, %v8130_v19  ;;  %v5777_v30 = vld [vmem:[#allocation4 + $0xd8] sm:$0xff] }
 0x337   : > { %12507 = vmatprep.mubr.msk.f32.mxu0 %vm285_vm1, %v8581_v20  ;;  %v6246_v6 = vadd.f32 %v14966_v2, %v6214_v59  ;;  %v6213_v11 = vld [vmem:[#allocation4 + $0x60] sm:$0xff]  ;;  %5831 = vst.msk [vmem:[#allocation4 + $0x88] sm:$0xff] %vm716_vm3, %v5799_v62  ;;  %v5776_v59 = vld [vmem:[#allocation4 + $0xd0] sm:$0xff] }
 0x338   : > { %v6245_v22 = vadd.f32 %v6213_v11, %v14969_v28  ;;  %5830 = vst.msk [vmem:[#allocation4 + $0x80] sm:$0xff] %vm716_vm3, %v5798_v7  ;;  %v12144_v41 = vpop.f32.mrb[194].mxu1 }
 0x339   : > { %v12194_v26 = vpop.f32.mrb[194].mxu0  ;;  %6278 = vst.msk [vmem:[#allocation4 + $0x68] sm:$0xff] %vm716_vm3, %v6246_v6  ;;  %v5801_v8 = vadd.f32 %v12144_v41, %v5769_v61  ;;  %v5681_v32 = vpop.f32.mrb[195].mxu1  ;;  %12458 = vmatmul.mubr.msk.f32.gmra.mrb[44].mxu1 %vm716_vm3, %v8131_v34  ;;  %v5779_v41 = vld [vmem:[#allocation4 + $0xe8] sm:$0xff] }
 0x33a   : > { %v6132_v45 = vpop.f32.mrb[195].mxu0  ;;  %12508 = vmatmul.mubr.msk.f32.gmra.mrb[44].mxu0 %vm285_vm1, %v8582_v31  ;;  %6277 = vst.msk [vmem:[#allocation4 + $0x60] sm:$0xff] %vm716_vm3, %v6245_v22  ;;  %v6216_v46 = vld [vmem:[#allocation4 + $0x78] sm:$0xff]  ;;  %v5800_v43 = vadd.f32 %v5768_v27, %v5681_v32  ;;  %12460 = vmatprep.mubr.msk.f32.mxu1 %vm716_vm3, %v8132_v24 }
 0x33b   : > { %12510 = vmatprep.mubr.msk.f32.mxu0 %vm285_vm1, %v8583_v21  ;;  %v6248_v12 = vadd.f32 %v14979_v55, %v6216_v46  ;;  %v6215_v50 = vld [vmem:[#allocation4 + $0x70] sm:$0xff]  ;;  %5833 = vst.msk [vmem:[#allocation4 + $0x98] sm:$0xff] %vm716_vm3, %v5801_v8  ;;  %v5778_v8 = vld [vmem:[#allocation4 + $0xe0] sm:$0xff] }
 0x33c   : > { %v6247_v63 = vadd.f32 %v6215_v50, %v6112_v3  ;;  %5832 = vst.msk [vmem:[#allocation4 + $0x90] sm:$0xff] %vm716_vm3, %v5800_v43  ;;  %v12147_v17 = vpop.f32.mrb[196].mxu1 }
 0x33d   : > { %v12197_v2 = vpop.f32.mrb[196].mxu0  ;;  %6280 = vst.msk [vmem:[#allocation4 + $0x78] sm:$0xff] %vm716_vm3, %v6248_v12  ;;  %v5803_v49 = vadd.f32 %v12147_v17, %v5771_v14  ;;  %v5691_v9 = vpop.f32.mrb[197].mxu1  ;;  %12461 = vmatmul.mubr.msk.f32.gmra.mrb[46].mxu1 %vm716_vm3, %v8133_v58  ;;  %v5781_v12 = vld [vmem:[#allocation4 + $0xf8] sm:$0xff]  ;;  %v5780_v14 = vld [vmem:[#allocation4 + $0xf0] sm:$0xff] }
 0x33e   : > { %v6142_v23 = vpop.f32.mrb[197].mxu0  ;;  %12511 = vmatmul.mubr.msk.f32.gmra.mrb[46].mxu0 %vm285_vm1, %v8584_v52  ;;  %6279 = vst.msk [vmem:[#allocation4 + $0x70] sm:$0xff] %vm716_vm3, %v6247_v63  ;;  %v6218_v28 = vld [vmem:[#allocation4 + $0x88] sm:$0xff]  ;;  %v5802_v40 = vadd.f32 %v5770_v16, %v5691_v9 }
 0x33f   : > { %v6250_v44 = vadd.f32 %v12191_v15, %v6218_v28  ;;  %v6217_v10 = vld [vmem:[#allocation4 + $0x80] sm:$0xff]  ;;  %5835 = vst.msk [vmem:[#allocation4 + $0xa8] sm:$0xff] %vm716_vm3, %v5803_v49 }
 0x340   : > { %v6249_v33 = vadd.f32 %v6217_v10, %v6122_v48  ;;  %5834 = vst.msk [vmem:[#allocation4 + $0xa0] sm:$0xff] %vm716_vm3, %v5802_v40  ;;  %v12150_v42 = vpop.f32.mrb[198].mxu1 }
 0x341   : > { %v12200_v35 = vpop.f32.mrb[198].mxu0  ;;  %6282 = vst.msk [vmem:[#allocation4 + $0x88] sm:$0xff] %vm716_vm3, %v6250_v44  ;;  %v5805_v5 = vadd.f32 %v12150_v42, %v5773_v53  ;;  %v5701_v54 = vpop.f32.mrb[199].mxu1  ;;  %v6653_v44 = vld [vmem:[#allocation4 + $0x8] sm:$0xff]  ;;  %v6652_v53 = vld [vmem:[#allocation4] sm:$0xff] }
 0x342   : > { %v6152_v55 = vpop.f32.mrb[199].mxu0  ;;  %6281 = vst.msk [vmem:[#allocation4 + $0x80] sm:$0xff] %vm716_vm3, %v6249_v33  ;;  %v6220_v13 = vld [vmem:[#allocation4 + $0x98] sm:$0xff]  ;;  %v5804_v47 = vadd.f32 %v5772_v37, %v5701_v54 }
 0x343   : > { %v6252_v0 = vadd.f32 %v12194_v26, %v6220_v13  ;;  %v6219_v29 = vld [vmem:[#allocation4 + $0x90] sm:$0xff]  ;;  %5837 = vst.msk [vmem:[#allocation4 + $0xb8] sm:$0xff] %vm716_vm3, %v5805_v5 }
 0x344   : > { %v6251_v3 = vadd.f32 %v6219_v29, %v6132_v45  ;;  %5836 = vst.msk [vmem:[#allocation4 + $0xb0] sm:$0xff] %vm716_vm3, %v5804_v47  ;;  %v12153_v4 = vpop.f32.mrb[200].mxu1 }
 0x345   : > { %v12203_v38 = vpop.f32.mrb[200].mxu0  ;;  %6284 = vst.msk [vmem:[#allocation4 + $0x98] sm:$0xff] %vm716_vm3, %v6252_v0  ;;  %v5807_v39 = vadd.f32 %v12153_v4, %v5775_v18  ;;  %v5711_v25 = vpop.f32.mrb[201].mxu1  ;;  %v6655_v0 = vld [vmem:[#allocation4 + $0x18] sm:$0xff]  ;;  %v6654_v18 = vld [vmem:[#allocation4 + $0x10] sm:$0xff] }
 0x346   : > { %v6162_v20 = vpop.f32.mrb[201].mxu0  ;;  %6283 = vst.msk [vmem:[#allocation4 + $0x90] sm:$0xff] %vm716_vm3, %v6251_v3  ;;  %v6222_v56 = vld [vmem:[#allocation4 + $0xa8] sm:$0xff]  ;;  %v5806_v57 = vadd.f32 %v5774_v51, %v5711_v25 }
 0x347   : > { %v6254_v36 = vadd.f32 %v12197_v2, %v6222_v56  ;;  %v6221_v15 = vld [vmem:[#allocation4 + $0xa0] sm:$0xff]  ;;  %5839 = vst.msk [vmem:[#allocation4 + $0xc8] sm:$0xff] %vm716_vm3, %v5807_v39 }
 0x348   : > { %v6253_v1 = vadd.f32 %v6221_v15, %v6142_v23  ;;  %5838 = vst.msk [vmem:[#allocation4 + $0xc0] sm:$0xff] %vm716_vm3, %v5806_v57  ;;  %v12156_v62 = vpop.f32.mrb[202].mxu1 }
 0x349   : > { %v12206_v60 = vpop.f32.mrb[202].mxu0  ;;  %6286 = vst.msk [vmem:[#allocation4 + $0xa8] sm:$0xff] %vm716_vm3, %v6254_v36  ;;  %v5809_v48 = vadd.f32 %v12156_v62, %v5777_v30  ;;  %v5721_v19 = vpop.f32.mrb[203].mxu1  ;;  %v6657_v36 = vld [vmem:[#allocation4 + $0x28] sm:$0xff]  ;;  %v6656_v30 = vld [vmem:[#allocation4 + $0x20] sm:$0xff] }
 0x34a   : > { %v6172_v7 = vpop.f32.mrb[203].mxu0  ;;  %6285 = vst.msk [vmem:[#allocation4 + $0xa0] sm:$0xff] %vm716_vm3, %v6253_v1  ;;  %v6224_v31 = vld [vmem:[#allocation4 + $0xb8] sm:$0xff]  ;;  %v5808_v6 = vadd.f32 %v5776_v59, %v5721_v19 }
 0x34b   : > { %v6256_v11 = vadd.f32 %v12200_v35, %v6224_v31  ;;  %v6223_v24 = vld [vmem:[#allocation4 + $0xb0] sm:$0xff]  ;;  %5841 = vst.msk [vmem:[#allocation4 + $0xd8] sm:$0xff] %vm716_vm3, %v5809_v48 }
 0x34c   : > { %v6255_v21 = vadd.f32 %v6223_v24, %v6152_v55  ;;  %5840 = vst.msk [vmem:[#allocation4 + $0xd0] sm:$0xff] %vm716_vm3, %v5808_v6  ;;  %v12159_v22 = vpop.f32.mrb[204].mxu1 }
 0x34d   : > { %v12209_v61 = vpop.f32.mrb[204].mxu0  ;;  %6288 = vst.msk [vmem:[#allocation4 + $0xb8] sm:$0xff] %vm716_vm3, %v6256_v11  ;;  %v5811_v26 = vadd.f32 %v12159_v22, %v5779_v41  ;;  %v5731_v34 = vpop.f32.mrb[205].mxu1  ;;  %v6659_v11 = vld [vmem:[#allocation4 + $0x38] sm:$0xff]  ;;  %v6658_v41 = vld [vmem:[#allocation4 + $0x30] sm:$0xff] }
 0x34e   : > { %v6182_v32 = vpop.f32.mrb[205].mxu0  ;;  %6287 = vst.msk [vmem:[#allocation4 + $0xb0] sm:$0xff] %vm716_vm3, %v6255_v21  ;;  %v6226_v27 = vld [vmem:[#allocation4 + $0xc8] sm:$0xff]  ;;  %v5810_v45 = vadd.f32 %v5778_v8, %v5731_v34 }
 0x34f   : > { %v6258_v46 = vadd.f32 %v12203_v38, %v6226_v27  ;;  %v6225_v43 = vld [vmem:[#allocation4 + $0xc0] sm:$0xff]  ;;  %5843 = vst.msk [vmem:[#allocation4 + $0xe8] sm:$0xff] %vm716_vm3, %v5811_v26 }
 0x350   : > { %v6257_v58 = vadd.f32 %v6225_v43, %v6162_v20  ;;  %5842 = vst.msk [vmem:[#allocation4 + $0xe0] sm:$0xff] %vm716_vm3, %v5810_v45  ;;  %v12162_v52 = vpop.f32.mrb[206].mxu1 }
 0x351   : > { %v12212_v50 = vpop.f32.mrb[206].mxu0  ;;  %6290 = vst.msk [vmem:[#allocation4 + $0xc8] sm:$0xff] %vm716_vm3, %v6258_v46  ;;  %v5813_v63 = vadd.f32 %v12162_v52, %v5781_v12  ;;  %v5741_v17 = vpop.f32.mrb[207].mxu1  ;;  %v6661_v46 = vld [vmem:[#allocation4 + $0x48] sm:$0xff]  ;;  %v6660_v12 = vld [vmem:[#allocation4 + $0x40] sm:$0xff] }
 0x352   : > { %v6192_v2 = vpop.f32.mrb[207].mxu0  ;;  %6289 = vst.msk [vmem:[#allocation4 + $0xc0] sm:$0xff] %vm716_vm3, %v6257_v58  ;;  %v6228_v49 = vld [vmem:[#allocation4 + $0xd8] sm:$0xff]  ;;  %v5812_v9 = vadd.f32 %v5780_v14, %v5741_v17 }
 0x353   : > { %v6260_v16 = vadd.f32 %v12206_v60, %v6228_v49  ;;  %v6227_v23 = vld [vmem:[#allocation4 + $0xd0] sm:$0xff]  ;;  %5845 = vst.msk [vmem:[#allocation4 + $0xf8] sm:$0xff] %vm716_vm3, %v5813_v63 }
 0x354   : > { %v6259_v28 = vadd.f32 %v6227_v23, %v6172_v7  ;;  %5844 = vst.msk [vmem:[#allocation4 + $0xf0] sm:$0xff] %vm716_vm3, %v5812_v9  ;;  %v12217_v40 = vpop.f32.mrb[208].mxu1 }
 0x355   : > { %v12267_v10 = vpop.f32.mrb[208].mxu0  ;;  %6292 = vst.msk [vmem:[#allocation4 + $0xd8] sm:$0xff] %vm716_vm3, %v6260_v16  ;;  %v6685_v33 = vadd.f32 %v12217_v40, %v6653_v44  ;;  %v6493_v42 = vpop.f32.mrb[209].mxu1  ;;  %v6663_v16 = vld [vmem:[#allocation4 + $0x58] sm:$0xff]  ;;  %v6662_v44 = vld [vmem:[#allocation4 + $0x50] sm:$0xff] }
 0x356   : > { %v6944_v35 = vpop.f32.mrb[209].mxu0  ;;  %6291 = vst.msk [vmem:[#allocation4 + $0xd0] sm:$0xff] %vm716_vm3, %v6259_v28  ;;  %v6230_v5 = vld [vmem:[#allocation4 + $0xe8] sm:$0xff]  ;;  %v6684_v54 = vadd.f32 %v6652_v53, %v6493_v42 }
 0x357   : > { %v6262_v37 = vadd.f32 %v12209_v61, %v6230_v5  ;;  %v6229_v55 = vld [vmem:[#allocation4 + $0xe0] sm:$0xff]  ;;  %6717 = vst.msk [vmem:[#allocation4 + $0x8] sm:$0xff] %vm716_vm3, %v6685_v33 }
 0x358   : > { %v6261_v13 = vadd.f32 %v6229_v55, %v6182_v32  ;;  %6716 = vst.msk [vmem:[#allocation4] sm:$0xff] %vm716_vm3, %v6684_v54  ;;  %v12220_v47 = vpop.f32.mrb[210].mxu1 }
 0x359   : > { %v12270_v29 = vpop.f32.mrb[210].mxu0  ;;  %6294 = vst.msk [vmem:[#allocation4 + $0xe8] sm:$0xff] %vm716_vm3, %v6262_v37  ;;  %v6687_v3 = vadd.f32 %v12220_v47, %v6655_v0  ;;  %v6503_v4 = vpop.f32.mrb[211].mxu1  ;;  %v6665_v37 = vld [vmem:[#allocation4 + $0x68] sm:$0xff]  ;;  %v6664_v0 = vld [vmem:[#allocation4 + $0x60] sm:$0xff] }
 0x35a   : > { %v6954_v38 = vpop.f32.mrb[211].mxu0  ;;  %6293 = vst.msk [vmem:[#allocation4 + $0xe0] sm:$0xff] %vm716_vm3, %v6261_v13  ;;  %v6232_v39 = vld [vmem:[#allocation4 + $0xf8] sm:$0xff]  ;;  %v6686_v25 = vadd.f32 %v6654_v18, %v6503_v4 }
 0x35b   : > { %v6264_v51 = vadd.f32 %v12212_v50, %v6232_v39  ;;  %v6231_v20 = vld [vmem:[#allocation4 + $0xf0] sm:$0xff]  ;;  %6719 = vst.msk [vmem:[#allocation4 + $0x18] sm:$0xff] %vm716_vm3, %v6687_v3 }
 0x35c   : > { %v6263_v56 = vadd.f32 %v6231_v20, %v6192_v2  ;;  %6718 = vst.msk [vmem:[#allocation4 + $0x10] sm:$0xff] %vm716_vm3, %v6686_v25  ;;  %v12223_v57 = vpop.f32.mrb[212].mxu1 }
 0x35d   : > { %v12273_v15 = vpop.f32.mrb[212].mxu0  ;;  %6296 = vst.msk [vmem:[#allocation4 + $0xf8] sm:$0xff] %vm716_vm3, %v6264_v51  ;;  %v6689_v1 = vadd.f32 %v12223_v57, %v6657_v36  ;;  %v6513_v62 = vpop.f32.mrb[213].mxu1  ;;  %v6667_v51 = vld [vmem:[#allocation4 + $0x78] sm:$0xff]  ;;  %v6666_v36 = vld [vmem:[#allocation4 + $0x70] sm:$0xff] }
 0x35e   : > { %v6964_v60 = vpop.f32.mrb[213].mxu0  ;;  %6295 = vst.msk [vmem:[#allocation4 + $0xf0] sm:$0xff] %vm716_vm3, %v6263_v56  ;;  %v7104_v48 = vld [vmem:[#allocation4 + $0x8] sm:$0xff]  ;;  %v6688_v19 = vadd.f32 %v6656_v30, %v6513_v62 }
 0x35f   : > { %v7136_v59 = vadd.f32 %v12267_v10, %v7104_v48  ;;  %v7103_v7 = vld [vmem:[#allocation4] sm:$0xff]  ;;  %6721 = vst.msk [vmem:[#allocation4 + $0x28] sm:$0xff] %vm716_vm3, %v6689_v1 }
 0x360   : > { %v7135_v31 = vadd.f32 %v7103_v7, %v6944_v35  ;;  %6720 = vst.msk [vmem:[#allocation4 + $0x20] sm:$0xff] %vm716_vm3, %v6688_v19  ;;  %v12226_v6 = vpop.f32.mrb[214].mxu1 }
 0x361   : > { %v12276_v24 = vpop.f32.mrb[214].mxu0  ;;  %7168 = vst.msk [vmem:[#allocation4 + $0x8] sm:$0xff] %vm716_vm3, %v7136_v59  ;;  %v6691_v21 = vadd.f32 %v12226_v6, %v6659_v11  ;;  %v6523_v22 = vpop.f32.mrb[215].mxu1  ;;  %v6669_v59 = vld [vmem:[#allocation4 + $0x88] sm:$0xff]  ;;  %v6668_v11 = vld [vmem:[#allocation4 + $0x80] sm:$0xff] }
 0x362   : > { %v6974_v61 = vpop.f32.mrb[215].mxu0  ;;  %7167 = vst.msk [vmem:[#allocation4] sm:$0xff] %vm716_vm3, %v7135_v31  ;;  %v7106_v26 = vld [vmem:[#allocation4 + $0x18] sm:$0xff]  ;;  %v6690_v34 = vadd.f32 %v6658_v41, %v6523_v22 }
 0x363   : > { %v7138_v8 = vadd.f32 %v12270_v29, %v7106_v26  ;;  %v7105_v32 = vld [vmem:[#allocation4 + $0x10] sm:$0xff]  ;;  %6723 = vst.msk [vmem:[#allocation4 + $0x38] sm:$0xff] %vm716_vm3, %v6691_v21 }
 0x364   : > { %v7137_v27 = vadd.f32 %v7105_v32, %v6954_v38  ;;  %6722 = vst.msk [vmem:[#allocation4 + $0x30] sm:$0xff] %vm716_vm3, %v6690_v34  ;;  %v12229_v45 = vpop.f32.mrb[216].mxu1 }
 0x365   : > { %v12279_v43 = vpop.f32.mrb[216].mxu0  ;;  %7170 = vst.msk [vmem:[#allocation4 + $0x18] sm:$0xff] %vm716_vm3, %v7138_v8  ;;  %v6693_v58 = vadd.f32 %v12229_v45, %v6661_v46  ;;  %v6533_v52 = vpop.f32.mrb[217].mxu1  ;;  %v6671_v8 = vld [vmem:[#allocation4 + $0x98] sm:$0xff]  ;;  %v6670_v46 = vld [vmem:[#allocation4 + $0x90] sm:$0xff] }
 0x366   : > { %v6984_v50 = vpop.f32.mrb[217].mxu0  ;;  %7169 = vst.msk [vmem:[#allocation4 + $0x10] sm:$0xff] %vm716_vm3, %v7137_v27  ;;  %v7108_v63 = vld [vmem:[#allocation4 + $0x28] sm:$0xff]  ;;  %v6692_v17 = vadd.f32 %v6660_v12, %v6533_v52 }
 0x367   : > { %v7140_v14 = vadd.f32 %v12273_v15, %v7108_v63  ;;  %v7107_v2 = vld [vmem:[#allocation4 + $0x20] sm:$0xff]  ;;  %6725 = vst.msk [vmem:[#allocation4 + $0x48] sm:$0xff] %vm716_vm3, %v6693_v58 }
 0x368   : > { %v7139_v49 = vadd.f32 %v7107_v2, %v6964_v60  ;;  %6724 = vst.msk [vmem:[#allocation4 + $0x40] sm:$0xff] %vm716_vm3, %v6692_v17  ;;  %v12232_v9 = vpop.f32.mrb[218].mxu1 }
 0x369   : > { %v12282_v23 = vpop.f32.mrb[218].mxu0  ;;  %7172 = vst.msk [vmem:[#allocation4 + $0x28] sm:$0xff] %vm716_vm3, %v7140_v14  ;;  %v6695_v28 = vadd.f32 %v12232_v9, %v6663_v16  ;;  %v6543_v40 = vpop.f32.mrb[219].mxu1  ;;  %v6673_v14 = vld [vmem:[#allocation4 + $0xa8] sm:$0xff]  ;;  %v6672_v16 = vld [vmem:[#allocation4 + $0xa0] sm:$0xff] }
 0x36a   : > { %v6994_v10 = vpop.f32.mrb[219].mxu0  ;;  %7171 = vst.msk [vmem:[#allocation4 + $0x20] sm:$0xff] %vm716_vm3, %v7139_v49  ;;  %v7110_v33 = vld [vmem:[#allocation4 + $0x38] sm:$0xff]  ;;  %v6694_v42 = vadd.f32 %v6662_v44, %v6543_v40 }
 0x36b   : > { %v7142_v53 = vadd.f32 %v12276_v24, %v7110_v33  ;;  %v7109_v35 = vld [vmem:[#allocation4 + $0x30] sm:$0xff]  ;;  %6727 = vst.msk [vmem:[#allocation4 + $0x58] sm:$0xff] %vm716_vm3, %v6695_v28 }
 0x36c   : > { %v7141_v5 = vadd.f32 %v7109_v35, %v6974_v61  ;;  %6726 = vst.msk [vmem:[#allocation4 + $0x50] sm:$0xff] %vm716_vm3, %v6694_v42  ;;  %v12235_v54 = vpop.f32.mrb[220].mxu1 }
 0x36d   : > { %v12285_v55 = vpop.f32.mrb[220].mxu0  ;;  %7174 = vst.msk [vmem:[#allocation4 + $0x38] sm:$0xff] %vm716_vm3, %v7142_v53  ;;  %v6697_v13 = vadd.f32 %v12235_v54, %v6665_v37  ;;  %v6553_v47 = vpop.f32.mrb[221].mxu1  ;;  %v6675_v53 = vld [vmem:[#allocation4 + $0xb8] sm:$0xff]  ;;  %v6674_v37 = vld [vmem:[#allocation4 + $0xb0] sm:$0xff] }
 0x36e   : > { %v7004_v29 = vpop.f32.mrb[221].mxu0  ;;  %7173 = vst.msk [vmem:[#allocation4 + $0x30] sm:$0xff] %vm716_vm3, %v7141_v5  ;;  %v7112_v3 = vld [vmem:[#allocation4 + $0x48] sm:$0xff]  ;;  %v6696_v4 = vadd.f32 %v6664_v0, %v6553_v47 }
 0x36f   : > { %v7144_v18 = vadd.f32 %v12279_v43, %v7112_v3  ;;  %v7111_v38 = vld [vmem:[#allocation4 + $0x40] sm:$0xff]  ;;  %6729 = vst.msk [vmem:[#allocation4 + $0x68] sm:$0xff] %vm716_vm3, %v6697_v13 }
 0x370   : > { %v7143_v39 = vadd.f32 %v7111_v38, %v6984_v50  ;;  %6728 = vst.msk [vmem:[#allocation4 + $0x60] sm:$0xff] %vm716_vm3, %v6696_v4  ;;  %v12238_v25 = vpop.f32.mrb[222].mxu1 }
 0x371   : > { %v12288_v20 = vpop.f32.mrb[222].mxu0  ;;  %7176 = vst.msk [vmem:[#allocation4 + $0x48] sm:$0xff] %vm716_vm3, %v7144_v18  ;;  %v6699_v56 = vadd.f32 %v12238_v25, %v6667_v51  ;;  %v6563_v57 = vpop.f32.mrb[223].mxu1  ;;  %v6677_v18 = vld [vmem:[#allocation4 + $0xc8] sm:$0xff]  ;;  %v6676_v51 = vld [vmem:[#allocation4 + $0xc0] sm:$0xff] }
 0x372   : > { %v7014_v15 = vpop.f32.mrb[223].mxu0  ;;  %7175 = vst.msk [vmem:[#allocation4 + $0x40] sm:$0xff] %vm716_vm3, %v7143_v39  ;;  %v7114_v1 = vld [vmem:[#allocation4 + $0x58] sm:$0xff]  ;;  %v6698_v62 = vadd.f32 %v6666_v36, %v6563_v57 }
 0x373   : > { %v7146_v30 = vadd.f32 %v12282_v23, %v7114_v1  ;;  %v7113_v60 = vld [vmem:[#allocation4 + $0x50] sm:$0xff]  ;;  %6731 = vst.msk [vmem:[#allocation4 + $0x78] sm:$0xff] %vm716_vm3, %v6699_v56 }
 0x374   : > { %v7145_v48 = vadd.f32 %v7113_v60, %v6994_v10  ;;  %6730 = vst.msk [vmem:[#allocation4 + $0x70] sm:$0xff] %vm716_vm3, %v6698_v62  ;;  %v12241_v19 = vpop.f32.mrb[224].mxu1 }
 0x375   : > { %v12291_v7 = vpop.f32.mrb[224].mxu0  ;;  %7178 = vst.msk [vmem:[#allocation4 + $0x58] sm:$0xff] %vm716_vm3, %v7146_v30  ;;  %v6701_v31 = vadd.f32 %v12241_v19, %v6669_v59  ;;  %v6573_v6 = vpop.f32.mrb[225].mxu1  ;;  %v6679_v30 = vld [vmem:[#allocation4 + $0xd8] sm:$0xff]  ;;  %v6678_v59 = vld [vmem:[#allocation4 + $0xd0] sm:$0xff] }
 0x376   : > { %v7024_v24 = vpop.f32.mrb[225].mxu0  ;;  %7177 = vst.msk [vmem:[#allocation4 + $0x50] sm:$0xff] %vm716_vm3, %v7145_v48  ;;  %v7116_v21 = vld [vmem:[#allocation4 + $0x68] sm:$0xff]  ;;  %v6700_v22 = vadd.f32 %v6668_v11, %v6573_v6 }
 0x377   : > { %v7148_v41 = vadd.f32 %v12285_v55, %v7116_v21  ;;  %v7115_v61 = vld [vmem:[#allocation4 + $0x60] sm:$0xff]  ;;  %6733 = vst.msk [vmem:[#allocation4 + $0x88] sm:$0xff] %vm716_vm3, %v6701_v31 }
 0x378   : > { %v7147_v26 = vadd.f32 %v7115_v61, %v7004_v29  ;;  %6732 = vst.msk [vmem:[#allocation4 + $0x80] sm:$0xff] %vm716_vm3, %v6700_v22  ;;  %v12244_v34 = vpop.f32.mrb[226].mxu1 }
 0x379   : > { %v12294_v32 = vpop.f32.mrb[226].mxu0  ;;  %7180 = vst.msk [vmem:[#allocation4 + $0x68] sm:$0xff] %vm716_vm3, %v7148_v41  ;;  %v6703_v27 = vadd.f32 %v12244_v34, %v6671_v8  ;;  %v6583_v45 = vpop.f32.mrb[227].mxu1  ;;  %v6681_v41 = vld [vmem:[#allocation4 + $0xe8] sm:$0xff]  ;;  %v6680_v8 = vld [vmem:[#allocation4 + $0xe0] sm:$0xff] }
 0x37a   : > { %v7034_v43 = vpop.f32.mrb[227].mxu0  ;;  %7179 = vst.msk [vmem:[#allocation4 + $0x60] sm:$0xff] %vm716_vm3, %v7147_v26  ;;  %v7118_v58 = vld [vmem:[#allocation4 + $0x78] sm:$0xff]  ;;  %v6702_v52 = vadd.f32 %v6670_v46, %v6583_v45 }
 0x37b   : > { %v7150_v12 = vadd.f32 %v12288_v20, %v7118_v58  ;;  %v7117_v50 = vld [vmem:[#allocation4 + $0x70] sm:$0xff]  ;;  %6735 = vst.msk [vmem:[#allocation4 + $0x98] sm:$0xff] %vm716_vm3, %v6703_v27 }
 0x37c   : > { %v7149_v63 = vadd.f32 %v7117_v50, %v7014_v15  ;;  %6734 = vst.msk [vmem:[#allocation4 + $0x90] sm:$0xff] %vm716_vm3, %v6702_v52  ;;  %v12247_v17 = vpop.f32.mrb[228].mxu1 }
 0x37d   : > { %v12297_v2 = vpop.f32.mrb[228].mxu0  ;;  %7182 = vst.msk [vmem:[#allocation4 + $0x78] sm:$0xff] %vm716_vm3, %v7150_v12  ;;  %v6705_v49 = vadd.f32 %v12247_v17, %v6673_v14  ;;  %v6593_v9 = vpop.f32.mrb[229].mxu1  ;;  %v6683_v12 = vld [vmem:[#allocation4 + $0xf8] sm:$0xff]  ;;  %v6682_v14 = vld [vmem:[#allocation4 + $0xf0] sm:$0xff] }
 0x37e   : > { %v7044_v23 = vpop.f32.mrb[229].mxu0  ;;  %7181 = vst.msk [vmem:[#allocation4 + $0x70] sm:$0xff] %vm716_vm3, %v7149_v63  ;;  %v7120_v28 = vld [vmem:[#allocation4 + $0x88] sm:$0xff]  ;;  %v6704_v40 = vadd.f32 %v6672_v16, %v6593_v9 }
 0x37f   : > { %v7152_v44 = vadd.f32 %v12291_v7, %v7120_v28  ;;  %v7119_v10 = vld [vmem:[#allocation4 + $0x80] sm:$0xff]  ;;  %6737 = vst.msk [vmem:[#allocation4 + $0xa8] sm:$0xff] %vm716_vm3, %v6705_v49 }
 0x380   : > { %v7151_v33 = vadd.f32 %v7119_v10, %v7024_v24  ;;  %6736 = vst.msk [vmem:[#allocation4 + $0xa0] sm:$0xff] %vm716_vm3, %v6704_v40  ;;  %v12250_v42 = vpop.f32.mrb[230].mxu1 }
 0x381   : > { %v12300_v35 = vpop.f32.mrb[230].mxu0  ;;  %7184 = vst.msk [vmem:[#allocation4 + $0x88] sm:$0xff] %vm716_vm3, %v7152_v44  ;;  %v6707_v5 = vadd.f32 %v12250_v42, %v6675_v53  ;;  %v6603_v54 = vpop.f32.mrb[231].mxu1  ;;  %v7556_v44 = vld [vmem:[#allocation4 + $0x8] sm:$0xff]  ;;  %v7555_v53 = vld [vmem:[#allocation4] sm:$0xff] }
 0x382   : > { %v7054_v55 = vpop.f32.mrb[231].mxu0  ;;  %7183 = vst.msk [vmem:[#allocation4 + $0x80] sm:$0xff] %vm716_vm3, %v7151_v33  ;;  %v7122_v13 = vld [vmem:[#allocation4 + $0x98] sm:$0xff]  ;;  %v6706_v47 = vadd.f32 %v6674_v37, %v6603_v54 }
 0x383   : > { %v7154_v0 = vadd.f32 %v12294_v32, %v7122_v13  ;;  %v7121_v29 = vld [vmem:[#allocation4 + $0x90] sm:$0xff]  ;;  %6739 = vst.msk [vmem:[#allocation4 + $0xb8] sm:$0xff] %vm716_vm3, %v6707_v5 }
 0x384   : > { %v7153_v3 = vadd.f32 %v7121_v29, %v7034_v43  ;;  %6738 = vst.msk [vmem:[#allocation4 + $0xb0] sm:$0xff] %vm716_vm3, %v6706_v47  ;;  %v12253_v4 = vpop.f32.mrb[232].mxu1 }
 0x385   : > { %v12303_v38 = vpop.f32.mrb[232].mxu0  ;;  %7186 = vst.msk [vmem:[#allocation4 + $0x98] sm:$0xff] %vm716_vm3, %v7154_v0  ;;  %v6709_v39 = vadd.f32 %v12253_v4, %v6677_v18  ;;  %v6613_v25 = vpop.f32.mrb[233].mxu1  ;;  %v7558_v0 = vld [vmem:[#allocation4 + $0x18] sm:$0xff]  ;;  %v7557_v18 = vld [vmem:[#allocation4 + $0x10] sm:$0xff] }
 0x386   : > { %v7064_v20 = vpop.f32.mrb[233].mxu0  ;;  %7185 = vst.msk [vmem:[#allocation4 + $0x90] sm:$0xff] %vm716_vm3, %v7153_v3  ;;  %v7124_v56 = vld [vmem:[#allocation4 + $0xa8] sm:$0xff]  ;;  %v6708_v57 = vadd.f32 %v6676_v51, %v6613_v25 }
 0x387   : > { %v7156_v36 = vadd.f32 %v12297_v2, %v7124_v56  ;;  %v7123_v15 = vld [vmem:[#allocation4 + $0xa0] sm:$0xff]  ;;  %6741 = vst.msk [vmem:[#allocation4 + $0xc8] sm:$0xff] %vm716_vm3, %v6709_v39 }
 0x388   : > { %v7155_v1 = vadd.f32 %v7123_v15, %v7044_v23  ;;  %6740 = vst.msk [vmem:[#allocation4 + $0xc0] sm:$0xff] %vm716_vm3, %v6708_v57  ;;  %v12256_v62 = vpop.f32.mrb[234].mxu1 }
 0x389   : > { %v12306_v60 = vpop.f32.mrb[234].mxu0  ;;  %7188 = vst.msk [vmem:[#allocation4 + $0xa8] sm:$0xff] %vm716_vm3, %v7156_v36  ;;  %v6711_v48 = vadd.f32 %v12256_v62, %v6679_v30  ;;  %v6623_v19 = vpop.f32.mrb[235].mxu1  ;;  %v7560_v36 = vld [vmem:[#allocation4 + $0x28] sm:$0xff]  ;;  %v7559_v30 = vld [vmem:[#allocation4 + $0x20] sm:$0xff] }
 0x38a   : > { %v7074_v7 = vpop.f32.mrb[235].mxu0  ;;  %7187 = vst.msk [vmem:[#allocation4 + $0xa0] sm:$0xff] %vm716_vm3, %v7155_v1  ;;  %v7126_v31 = vld [vmem:[#allocation4 + $0xb8] sm:$0xff]  ;;  %v6710_v6 = vadd.f32 %v6678_v59, %v6623_v19 }
 0x38b   : > { %v7158_v11 = vadd.f32 %v12300_v35, %v7126_v31  ;;  %v7125_v24 = vld [vmem:[#allocation4 + $0xb0] sm:$0xff]  ;;  %6743 = vst.msk [vmem:[#allocation4 + $0xd8] sm:$0xff] %vm716_vm3, %v6711_v48 }
 0x38c   : > { %v7157_v21 = vadd.f32 %v7125_v24, %v7054_v55  ;;  %6742 = vst.msk [vmem:[#allocation4 + $0xd0] sm:$0xff] %vm716_vm3, %v6710_v6  ;;  %v12259_v22 = vpop.f32.mrb[236].mxu1 }
 0x38d   : > { %v12309_v61 = vpop.f32.mrb[236].mxu0  ;;  %7190 = vst.msk [vmem:[#allocation4 + $0xb8] sm:$0xff] %vm716_vm3, %v7158_v11  ;;  %v6713_v26 = vadd.f32 %v12259_v22, %v6681_v41  ;;  %v6633_v34 = vpop.f32.mrb[237].mxu1  ;;  %v7562_v11 = vld [vmem:[#allocation4 + $0x38] sm:$0xff]  ;;  %v7561_v41 = vld [vmem:[#allocation4 + $0x30] sm:$0xff] }
 0x38e   : > { %v7084_v32 = vpop.f32.mrb[237].mxu0  ;;  %7189 = vst.msk [vmem:[#allocation4 + $0xb0] sm:$0xff] %vm716_vm3, %v7157_v21  ;;  %v7128_v27 = vld [vmem:[#allocation4 + $0xc8] sm:$0xff]  ;;  %v6712_v45 = vadd.f32 %v6680_v8, %v6633_v34 }
 0x38f   : > { %v7160_v46 = vadd.f32 %v12303_v38, %v7128_v27  ;;  %v7127_v43 = vld [vmem:[#allocation4 + $0xc0] sm:$0xff]  ;;  %6745 = vst.msk [vmem:[#allocation4 + $0xe8] sm:$0xff] %vm716_vm3, %v6713_v26 }
 0x390   : > { %v7159_v58 = vadd.f32 %v7127_v43, %v7064_v20  ;;  %6744 = vst.msk [vmem:[#allocation4 + $0xe0] sm:$0xff] %vm716_vm3, %v6712_v45  ;;  %v12262_v52 = vpop.f32.mrb[238].mxu1 }
 0x391   : > { %v12312_v50 = vpop.f32.mrb[238].mxu0  ;;  %7192 = vst.msk [vmem:[#allocation4 + $0xc8] sm:$0xff] %vm716_vm3, %v7160_v46  ;;  %v6715_v63 = vadd.f32 %v12262_v52, %v6683_v12  ;;  %v6643_v17 = vpop.f32.mrb[239].mxu1  ;;  %v7564_v46 = vld [vmem:[#allocation4 + $0x48] sm:$0xff]  ;;  %v7563_v12 = vld [vmem:[#allocation4 + $0x40] sm:$0xff] }
 0x392   : > { %v7094_v2 = vpop.f32.mrb[239].mxu0  ;;  %7191 = vst.msk [vmem:[#allocation4 + $0xc0] sm:$0xff] %vm716_vm3, %v7159_v58  ;;  %v7130_v49 = vld [vmem:[#allocation4 + $0xd8] sm:$0xff]  ;;  %v6714_v9 = vadd.f32 %v6682_v14, %v6643_v17 }
 0x393   : > { %v7162_v16 = vadd.f32 %v12306_v60, %v7130_v49  ;;  %v7129_v23 = vld [vmem:[#allocation4 + $0xd0] sm:$0xff]  ;;  %6747 = vst.msk [vmem:[#allocation4 + $0xf8] sm:$0xff] %vm716_vm3, %v6715_v63 }
 0x394   : > { %v7161_v28 = vadd.f32 %v7129_v23, %v7074_v7  ;;  %6746 = vst.msk [vmem:[#allocation4 + $0xf0] sm:$0xff] %vm716_vm3, %v6714_v9  ;;  %v12317_v40 = vpop.f32.mrb[240].mxu1 }
 0x395   : > { %v12367_v10 = vpop.f32.mrb[240].mxu0  ;;  %7194 = vst.msk [vmem:[#allocation4 + $0xd8] sm:$0xff] %vm716_vm3, %v7162_v16  ;;  %v7588_v33 = vadd.f32 %v12317_v40, %v7556_v44  ;;  %v7396_v42 = vpop.f32.mrb[241].mxu1  ;;  %v7566_v16 = vld [vmem:[#allocation4 + $0x58] sm:$0xff]  ;;  %v7565_v44 = vld [vmem:[#allocation4 + $0x50] sm:$0xff] }
 0x396   : > { %v7847_v35 = vpop.f32.mrb[241].mxu0  ;;  %7193 = vst.msk [vmem:[#allocation4 + $0xd0] sm:$0xff] %vm716_vm3, %v7161_v28  ;;  %v7132_v5 = vld [vmem:[#allocation4 + $0xe8] sm:$0xff]  ;;  %v7587_v54 = vadd.f32 %v7555_v53, %v7396_v42 }
 0x397   : > { %v7164_v37 = vadd.f32 %v12309_v61, %v7132_v5  ;;  %v7131_v55 = vld [vmem:[#allocation4 + $0xe0] sm:$0xff]  ;;  %7620 = vst.msk [vmem:[#allocation4 + $0x8] sm:$0xff] %vm716_vm3, %v7588_v33 }
 0x398   : > { %v7163_v13 = vadd.f32 %v7131_v55, %v7084_v32  ;;  %7619 = vst.msk [vmem:[#allocation4] sm:$0xff] %vm716_vm3, %v7587_v54  ;;  %v12320_v47 = vpop.f32.mrb[242].mxu1 }
 0x399   : > { %v12370_v29 = vpop.f32.mrb[242].mxu0  ;;  %7196 = vst.msk [vmem:[#allocation4 + $0xe8] sm:$0xff] %vm716_vm3, %v7164_v37  ;;  %v7590_v3 = vadd.f32 %v12320_v47, %v7558_v0  ;;  %v7406_v4 = vpop.f32.mrb[243].mxu1  ;;  %v7568_v37 = vld [vmem:[#allocation4 + $0x68] sm:$0xff]  ;;  %v7567_v0 = vld [vmem:[#allocation4 + $0x60] sm:$0xff] }
 0x39a   : > { %v7857_v38 = vpop.f32.mrb[243].mxu0  ;;  %7195 = vst.msk [vmem:[#allocation4 + $0xe0] sm:$0xff] %vm716_vm3, %v7163_v13  ;;  %v7134_v39 = vld [vmem:[#allocation4 + $0xf8] sm:$0xff]  ;;  %v7589_v25 = vadd.f32 %v7557_v18, %v7406_v4 }
 0x39b   : > { %v7166_v51 = vadd.f32 %v12312_v50, %v7134_v39  ;;  %v7133_v20 = vld [vmem:[#allocation4 + $0xf0] sm:$0xff]  ;;  %7622 = vst.msk [vmem:[#allocation4 + $0x18] sm:$0xff] %vm716_vm3, %v7590_v3 }
 0x39c   : > { %v7165_v56 = vadd.f32 %v7133_v20, %v7094_v2  ;;  %7621 = vst.msk [vmem:[#allocation4 + $0x10] sm:$0xff] %vm716_vm3, %v7589_v25  ;;  %v12323_v57 = vpop.f32.mrb[244].mxu1 }
 0x39d   : > { %v12373_v15 = vpop.f32.mrb[244].mxu0  ;;  %7198 = vst.msk [vmem:[#allocation4 + $0xf8] sm:$0xff] %vm716_vm3, %v7166_v51  ;;  %v7592_v1 = vadd.f32 %v12323_v57, %v7560_v36  ;;  %v7416_v62 = vpop.f32.mrb[245].mxu1  ;;  %v7570_v51 = vld [vmem:[#allocation4 + $0x78] sm:$0xff]  ;;  %v7569_v36 = vld [vmem:[#allocation4 + $0x70] sm:$0xff] }
 0x39e   : > { %v7867_v60 = vpop.f32.mrb[245].mxu0  ;;  %7197 = vst.msk [vmem:[#allocation4 + $0xf0] sm:$0xff] %vm716_vm3, %v7165_v56  ;;  %v8007_v48 = vld [vmem:[#allocation4 + $0x8] sm:$0xff]  ;;  %v7591_v19 = vadd.f32 %v7559_v30, %v7416_v62 }
 0x39f   : > { %v8039_v59 = vadd.f32 %v12367_v10, %v8007_v48  ;;  %v8006_v7 = vld [vmem:[#allocation4] sm:$0xff]  ;;  %7624 = vst.msk [vmem:[#allocation4 + $0x28] sm:$0xff] %vm716_vm3, %v7592_v1 }
 0x3a0   : > { %v8038_v31 = vadd.f32 %v8006_v7, %v7847_v35  ;;  %7623 = vst.msk [vmem:[#allocation4 + $0x20] sm:$0xff] %vm716_vm3, %v7591_v19  ;;  %v12326_v6 = vpop.f32.mrb[246].mxu1 }
 0x3a1   : > { %v12376_v24 = vpop.f32.mrb[246].mxu0  ;;  %8071 = vst.msk [vmem:[#allocation4 + $0x8] sm:$0xff] %vm716_vm3, %v8039_v59  ;;  %v7594_v21 = vadd.f32 %v12326_v6, %v7562_v11  ;;  %v7426_v22 = vpop.f32.mrb[247].mxu1  ;;  %v7572_v59 = vld [vmem:[#allocation4 + $0x88] sm:$0xff]  ;;  %v7571_v11 = vld [vmem:[#allocation4 + $0x80] sm:$0xff] }
 0x3a2   : > { %v7877_v61 = vpop.f32.mrb[247].mxu0  ;;  %8070 = vst.msk [vmem:[#allocation4] sm:$0xff] %vm716_vm3, %v8038_v31  ;;  %v8009_v26 = vld [vmem:[#allocation4 + $0x18] sm:$0xff]  ;;  %v7593_v34 = vadd.f32 %v7561_v41, %v7426_v22 }
 0x3a3   : > { %v8041_v8 = vadd.f32 %v12370_v29, %v8009_v26  ;;  %v8008_v32 = vld [vmem:[#allocation4 + $0x10] sm:$0xff]  ;;  %7626 = vst.msk [vmem:[#allocation4 + $0x38] sm:$0xff] %vm716_vm3, %v7594_v21 }
 0x3a4   : > { %v8040_v27 = vadd.f32 %v8008_v32, %v7857_v38  ;;  %7625 = vst.msk [vmem:[#allocation4 + $0x30] sm:$0xff] %vm716_vm3, %v7593_v34  ;;  %v12329_v45 = vpop.f32.mrb[248].mxu1 }
 0x3a5   : > { %v12379_v43 = vpop.f32.mrb[248].mxu0  ;;  %8073 = vst.msk [vmem:[#allocation4 + $0x18] sm:$0xff] %vm716_vm3, %v8041_v8  ;;  %v7596_v58 = vadd.f32 %v12329_v45, %v7564_v46  ;;  %v7436_v52 = vpop.f32.mrb[249].mxu1  ;;  %v7574_v8 = vld [vmem:[#allocation4 + $0x98] sm:$0xff]  ;;  %v7573_v46 = vld [vmem:[#allocation4 + $0x90] sm:$0xff] }
 0x3a6   : > { %v7887_v50 = vpop.f32.mrb[249].mxu0  ;;  %8072 = vst.msk [vmem:[#allocation4 + $0x10] sm:$0xff] %vm716_vm3, %v8040_v27  ;;  %v8011_v63 = vld [vmem:[#allocation4 + $0x28] sm:$0xff]  ;;  %v7595_v17 = vadd.f32 %v7563_v12, %v7436_v52 }
 0x3a7   : > { %v8043_v14 = vadd.f32 %v12373_v15, %v8011_v63  ;;  %v8010_v2 = vld [vmem:[#allocation4 + $0x20] sm:$0xff]  ;;  %7628 = vst.msk [vmem:[#allocation4 + $0x48] sm:$0xff] %vm716_vm3, %v7596_v58 }
 0x3a8   : > { %v8042_v49 = vadd.f32 %v8010_v2, %v7867_v60  ;;  %7627 = vst.msk [vmem:[#allocation4 + $0x40] sm:$0xff] %vm716_vm3, %v7595_v17  ;;  %v12332_v9 = vpop.f32.mrb[250].mxu1 }
 0x3a9   : > { %v12382_v23 = vpop.f32.mrb[250].mxu0  ;;  %8075 = vst.msk [vmem:[#allocation4 + $0x28] sm:$0xff] %vm716_vm3, %v8043_v14  ;;  %v7598_v28 = vadd.f32 %v12332_v9, %v7566_v16  ;;  %v7446_v40 = vpop.f32.mrb[251].mxu1  ;;  %v7576_v14 = vld [vmem:[#allocation4 + $0xa8] sm:$0xff]  ;;  %v7575_v16 = vld [vmem:[#allocation4 + $0xa0] sm:$0xff] }
 0x3aa   : > { %v7897_v10 = vpop.f32.mrb[251].mxu0  ;;  %8074 = vst.msk [vmem:[#allocation4 + $0x20] sm:$0xff] %vm716_vm3, %v8042_v49  ;;  %v8013_v33 = vld [vmem:[#allocation4 + $0x38] sm:$0xff]  ;;  %v7597_v42 = vadd.f32 %v7565_v44, %v7446_v40 }
 0x3ab   : > { %v8045_v53 = vadd.f32 %v12376_v24, %v8013_v33  ;;  %v8012_v35 = vld [vmem:[#allocation4 + $0x30] sm:$0xff]  ;;  %7630 = vst.msk [vmem:[#allocation4 + $0x58] sm:$0xff] %vm716_vm3, %v7598_v28 }
 0x3ac   : > { %v8044_v5 = vadd.f32 %v8012_v35, %v7877_v61  ;;  %7629 = vst.msk [vmem:[#allocation4 + $0x50] sm:$0xff] %vm716_vm3, %v7597_v42  ;;  %v12335_v54 = vpop.f32.mrb[252].mxu1 }
 0x3ad   : > { %v12385_v55 = vpop.f32.mrb[252].mxu0  ;;  %8077 = vst.msk [vmem:[#allocation4 + $0x38] sm:$0xff] %vm716_vm3, %v8045_v53  ;;  %v7600_v13 = vadd.f32 %v12335_v54, %v7568_v37  ;;  %v7456_v47 = vpop.f32.mrb[253].mxu1  ;;  %v7578_v53 = vld [vmem:[#allocation4 + $0xb8] sm:$0xff]  ;;  %v7577_v37 = vld [vmem:[#allocation4 + $0xb0] sm:$0xff] }
 0x3ae   : > { %v7907_v29 = vpop.f32.mrb[253].mxu0  ;;  %8076 = vst.msk [vmem:[#allocation4 + $0x30] sm:$0xff] %vm716_vm3, %v8044_v5  ;;  %v8015_v3 = vld [vmem:[#allocation4 + $0x48] sm:$0xff]  ;;  %v7599_v4 = vadd.f32 %v7567_v0, %v7456_v47 }
 0x3af   : > { %v8047_v18 = vadd.f32 %v12379_v43, %v8015_v3  ;;  %v8014_v38 = vld [vmem:[#allocation4 + $0x40] sm:$0xff]  ;;  %7632 = vst.msk [vmem:[#allocation4 + $0x68] sm:$0xff] %vm716_vm3, %v7600_v13 }
 0x3b0   : > { %v8046_v39 = vadd.f32 %v8014_v38, %v7887_v50  ;;  %7631 = vst.msk [vmem:[#allocation4 + $0x60] sm:$0xff] %vm716_vm3, %v7599_v4  ;;  %v12338_v25 = vpop.f32.mrb[254].mxu1 }
 0x3b1   : > { %v12388_v20 = vpop.f32.mrb[254].mxu0  ;;  %8079 = vst.msk [vmem:[#allocation4 + $0x48] sm:$0xff] %vm716_vm3, %v8047_v18  ;;  %v7602_v56 = vadd.f32 %v12338_v25, %v7570_v51  ;;  %v7466_v57 = vpop.f32.mrb[255].mxu1  ;;  %v7580_v18 = vld [vmem:[#allocation4 + $0xc8] sm:$0xff]  ;;  %v7579_v51 = vld [vmem:[#allocation4 + $0xc0] sm:$0xff] }
 0x3b2   : > { %v7917_v15 = vpop.f32.mrb[255].mxu0  ;;  %8078 = vst.msk [vmem:[#allocation4 + $0x40] sm:$0xff] %vm716_vm3, %v8046_v39  ;;  %v8017_v1 = vld [vmem:[#allocation4 + $0x58] sm:$0xff]  ;;  %v7601_v62 = vadd.f32 %v7569_v36, %v7466_v57 }
 0x3b3   : > { %v8049_v30 = vadd.f32 %v12382_v23, %v8017_v1  ;;  %v8016_v60 = vld [vmem:[#allocation4 + $0x50] sm:$0xff]  ;;  %7634 = vst.msk [vmem:[#allocation4 + $0x78] sm:$0xff] %vm716_vm3, %v7602_v56 }
 0x3b4   : > { %v8048_v48 = vadd.f32 %v8016_v60, %v7897_v10  ;;  %7633 = vst.msk [vmem:[#allocation4 + $0x70] sm:$0xff] %vm716_vm3, %v7601_v62  ;;  %v12341_v19 = vpop.f32.mrb[0].mxu1 }
 0x3b5   : > { %v12391_v7 = vpop.f32.mrb[0].mxu0  ;;  %8081 = vst.msk [vmem:[#allocation4 + $0x58] sm:$0xff] %vm716_vm3, %v8049_v30  ;;  %v7604_v31 = vadd.f32 %v12341_v19, %v7572_v59  ;;  %v7476_v6 = vpop.f32.mrb[1].mxu1  ;;  %v7582_v30 = vld [vmem:[#allocation4 + $0xd8] sm:$0xff]  ;;  %v7581_v59 = vld [vmem:[#allocation4 + $0xd0] sm:$0xff] }
 0x3b6   : > { %v7927_v24 = vpop.f32.mrb[1].mxu0  ;;  %8080 = vst.msk [vmem:[#allocation4 + $0x50] sm:$0xff] %vm716_vm3, %v8048_v48  ;;  %v8019_v21 = vld [vmem:[#allocation4 + $0x68] sm:$0xff]  ;;  %v7603_v22 = vadd.f32 %v7571_v11, %v7476_v6 }
 0x3b7   : > { %v8051_v41 = vadd.f32 %v12385_v55, %v8019_v21  ;;  %v8018_v61 = vld [vmem:[#allocation4 + $0x60] sm:$0xff]  ;;  %7636 = vst.msk [vmem:[#allocation4 + $0x88] sm:$0xff] %vm716_vm3, %v7604_v31 }
 0x3b8   : > { %v8050_v26 = vadd.f32 %v8018_v61, %v7907_v29  ;;  %7635 = vst.msk [vmem:[#allocation4 + $0x80] sm:$0xff] %vm716_vm3, %v7603_v22  ;;  %v12344_v34 = vpop.f32.mrb[2].mxu1 }
 0x3b9   : > { %v12394_v32 = vpop.f32.mrb[2].mxu0  ;;  %8083 = vst.msk [vmem:[#allocation4 + $0x68] sm:$0xff] %vm716_vm3, %v8051_v41  ;;  %v7606_v27 = vadd.f32 %v12344_v34, %v7574_v8  ;;  %v7486_v45 = vpop.f32.mrb[3].mxu1  ;;  %v7584_v41 = vld [vmem:[#allocation4 + $0xe8] sm:$0xff]  ;;  %v7583_v8 = vld [vmem:[#allocation4 + $0xe0] sm:$0xff] }
 0x3ba   : > { %v7937_v43 = vpop.f32.mrb[3].mxu0  ;;  %8082 = vst.msk [vmem:[#allocation4 + $0x60] sm:$0xff] %vm716_vm3, %v8050_v26  ;;  %v8021_v58 = vld [vmem:[#allocation4 + $0x78] sm:$0xff]  ;;  %v7605_v52 = vadd.f32 %v7573_v46, %v7486_v45 }
 0x3bb   : > { %v8053_v12 = vadd.f32 %v12388_v20, %v8021_v58  ;;  %v8020_v50 = vld [vmem:[#allocation4 + $0x70] sm:$0xff]  ;;  %7638 = vst.msk [vmem:[#allocation4 + $0x98] sm:$0xff] %vm716_vm3, %v7606_v27 }
 0x3bc   : > { %v8052_v63 = vadd.f32 %v8020_v50, %v7917_v15  ;;  %7637 = vst.msk [vmem:[#allocation4 + $0x90] sm:$0xff] %vm716_vm3, %v7605_v52  ;;  %v12347_v17 = vpop.f32.mrb[4].mxu1 }
 0x3bd   : > { %v12397_v2 = vpop.f32.mrb[4].mxu0  ;;  %8085 = vst.msk [vmem:[#allocation4 + $0x78] sm:$0xff] %vm716_vm3, %v8053_v12  ;;  %v7608_v49 = vadd.f32 %v12347_v17, %v7576_v14  ;;  %v7496_v9 = vpop.f32.mrb[5].mxu1  ;;  %v7586_v12 = vld [vmem:[#allocation4 + $0xf8] sm:$0xff]  ;;  %v7585_v14 = vld [vmem:[#allocation4 + $0xf0] sm:$0xff] }
 0x3be   : > { %v7947_v23 = vpop.f32.mrb[5].mxu0  ;;  %8084 = vst.msk [vmem:[#allocation4 + $0x70] sm:$0xff] %vm716_vm3, %v8052_v63  ;;  %v8023_v28 = vld [vmem:[#allocation4 + $0x88] sm:$0xff]  ;;  %v7607_v40 = vadd.f32 %v7575_v16, %v7496_v9 }
 0x3bf   : > { %v8055_v44 = vadd.f32 %v12391_v7, %v8023_v28  ;;  %v8022_v10 = vld [vmem:[#allocation4 + $0x80] sm:$0xff]  ;;  %7640 = vst.msk [vmem:[#allocation4 + $0xa8] sm:$0xff] %vm716_vm3, %v7608_v49 }
 0x3c0   : > { %v8054_v33 = vadd.f32 %v8022_v10, %v7927_v24  ;;  %7639 = vst.msk [vmem:[#allocation4 + $0xa0] sm:$0xff] %vm716_vm3, %v7607_v40  ;;  %v12350_v42 = vpop.f32.mrb[6].mxu1 }
 0x3c1   : > { %v12400_v35 = vpop.f32.mrb[6].mxu0  ;;  %8087 = vst.msk [vmem:[#allocation4 + $0x88] sm:$0xff] %vm716_vm3, %v8055_v44  ;;  %v7610_v5 = vadd.f32 %v12350_v42, %v7578_v53  ;;  %v7506_v54 = vpop.f32.mrb[7].mxu1  ;;  %v8458_v44 = vld [vmem:[#allocation4 + $0x8] sm:$0xff]  ;;  %v8457_v53 = vld [vmem:[#allocation4] sm:$0xff] }
 0x3c2   : > { %v7957_v55 = vpop.f32.mrb[7].mxu0  ;;  %8086 = vst.msk [vmem:[#allocation4 + $0x80] sm:$0xff] %vm716_vm3, %v8054_v33  ;;  %v8025_v13 = vld [vmem:[#allocation4 + $0x98] sm:$0xff]  ;;  %v7609_v47 = vadd.f32 %v7577_v37, %v7506_v54 }
 0x3c3   : > { %v8057_v0 = vadd.f32 %v12394_v32, %v8025_v13  ;;  %v8024_v29 = vld [vmem:[#allocation4 + $0x90] sm:$0xff]  ;;  %7642 = vst.msk [vmem:[#allocation4 + $0xb8] sm:$0xff] %vm716_vm3, %v7610_v5 }
 0x3c4   : > { %v8056_v3 = vadd.f32 %v8024_v29, %v7937_v43  ;;  %7641 = vst.msk [vmem:[#allocation4 + $0xb0] sm:$0xff] %vm716_vm3, %v7609_v47  ;;  %v12353_v4 = vpop.f32.mrb[8].mxu1 }
 0x3c5   : > { %v12403_v38 = vpop.f32.mrb[8].mxu0  ;;  %8089 = vst.msk [vmem:[#allocation4 + $0x98] sm:$0xff] %vm716_vm3, %v8057_v0  ;;  %v7612_v39 = vadd.f32 %v12353_v4, %v7580_v18  ;;  %v7516_v25 = vpop.f32.mrb[9].mxu1  ;;  %v8460_v0 = vld [vmem:[#allocation4 + $0x18] sm:$0xff]  ;;  %v8459_v18 = vld [vmem:[#allocation4 + $0x10] sm:$0xff] }
 0x3c6   : > { %v7967_v20 = vpop.f32.mrb[9].mxu0  ;;  %8088 = vst.msk [vmem:[#allocation4 + $0x90] sm:$0xff] %vm716_vm3, %v8056_v3  ;;  %v8027_v56 = vld [vmem:[#allocation4 + $0xa8] sm:$0xff]  ;;  %v7611_v57 = vadd.f32 %v7579_v51, %v7516_v25 }
 0x3c7   : > { %v8059_v36 = vadd.f32 %v12397_v2, %v8027_v56  ;;  %v8026_v15 = vld [vmem:[#allocation4 + $0xa0] sm:$0xff]  ;;  %7644 = vst.msk [vmem:[#allocation4 + $0xc8] sm:$0xff] %vm716_vm3, %v7612_v39 }
 0x3c8   : > { %v8058_v1 = vadd.f32 %v8026_v15, %v7947_v23  ;;  %7643 = vst.msk [vmem:[#allocation4 + $0xc0] sm:$0xff] %vm716_vm3, %v7611_v57  ;;  %v12356_v62 = vpop.f32.mrb[10].mxu1 }
 0x3c9   : > { %v12406_v60 = vpop.f32.mrb[10].mxu0  ;;  %8091 = vst.msk [vmem:[#allocation4 + $0xa8] sm:$0xff] %vm716_vm3, %v8059_v36  ;;  %v7614_v48 = vadd.f32 %v12356_v62, %v7582_v30  ;;  %v7526_v19 = vpop.f32.mrb[11].mxu1  ;;  %v8462_v36 = vld [vmem:[#allocation4 + $0x28] sm:$0xff]  ;;  %v8461_v30 = vld [vmem:[#allocation4 + $0x20] sm:$0xff] }
 0x3ca   : > { %v7977_v7 = vpop.f32.mrb[11].mxu0  ;;  %8090 = vst.msk [vmem:[#allocation4 + $0xa0] sm:$0xff] %vm716_vm3, %v8058_v1  ;;  %v8029_v31 = vld [vmem:[#allocation4 + $0xb8] sm:$0xff]  ;;  %v7613_v6 = vadd.f32 %v7581_v59, %v7526_v19  ;;  %v9074_v19 = vlaneseq }
 0x3cb   : > { %v8061_v11 = vadd.f32 %v12400_v35, %v8029_v31  ;;  %v8028_v24 = vld [vmem:[#allocation4 + $0xb0] sm:$0xff]  ;;  %7646 = vst.msk [vmem:[#allocation4 + $0xd8] sm:$0xff] %vm716_vm3, %v7614_v48 }
 0x3cc   : > { %v8060_v21 = vadd.f32 %v8028_v24, %v7957_v55  ;;  %7645 = vst.msk [vmem:[#allocation4 + $0xd0] sm:$0xff] %vm716_vm3, %v7613_v6  ;;  %v12359_v22 = vpop.f32.mrb[12].mxu1 }
 0x3cd   : > { %v12409_v61 = vpop.f32.mrb[12].mxu0  ;;  %8093 = vst.msk [vmem:[#allocation4 + $0xb8] sm:$0xff] %vm716_vm3, %v8061_v11  ;;  %v7616_v26 = vadd.f32 %v12359_v22, %v7584_v41  ;;  %v7536_v34 = vpop.f32.mrb[13].mxu1  ;;  %v8464_v22 = vld [vmem:[#allocation4 + $0x38] sm:$0xff]  ;;  %v10931_v41 = vld [vmem:[%s15647_s5] ss:$0 sm:$0xff] }
 0x3ce   : > { %v7987_v32 = vpop.f32.mrb[13].mxu0  ;;  %8092 = vst.msk [vmem:[#allocation4 + $0xb0] sm:$0xff] %vm716_vm3, %v8060_v21  ;;  %v8031_v27 = vld [vmem:[#allocation4 + $0xc8] sm:$0xff]  ;;  %v7615_v45 = vadd.f32 %v7583_v8, %v7536_v34  ;;  %v8463_v8 = vld [vmem:[#allocation4 + $0x30] sm:$0xff] }
 0x3cf   : > { %v8063_v46 = vadd.f32 %v12403_v38, %v8031_v27  ;;  %v8030_v43 = vld [vmem:[#allocation4 + $0xc0] sm:$0xff]  ;;  %7648 = vst.msk [vmem:[#allocation4 + $0xe8] sm:$0xff] %vm716_vm3, %v7616_v26  ;;  %v9075_v27 = vshrl.u32 %v9074_v19, 7 }
 0x3d0   : > { %v8062_v58 = vadd.f32 %v8030_v43, %v7967_v20  ;;  %7647 = vst.msk [vmem:[#allocation4 + $0xe0] sm:$0xff] %vm716_vm3, %v7615_v45  ;;  %v12362_v52 = vpop.f32.mrb[14].mxu1 }
 0x3d1   : > { %v12412_v50 = vpop.f32.mrb[14].mxu0  ;;  %8095 = vst.msk [vmem:[#allocation4 + $0xc8] sm:$0xff] %vm716_vm3, %v8063_v46  ;;  %v7618_v63 = vadd.f32 %v12362_v52, %v7586_v12  ;;  %v7546_v17 = vpop.f32.mrb[15].mxu1  ;;  %v9668_v52 = vcombine.high %v10931_v41, %v10931_v41 }
 0x3d2   : > { %v7997_v2 = vpop.f32.mrb[15].mxu0  ;;  %8094 = vst.msk [vmem:[#allocation4 + $0xc0] sm:$0xff] %vm716_vm3, %v8062_v58  ;;  %v8033_v49 = vld [vmem:[#allocation4 + $0xd8] sm:$0xff]  ;;  %v7617_v9 = vadd.f32 %v7585_v14, %v7546_v17  ;;  %v8466_v17 = vld [vmem:[#allocation4 + $0x48] sm:$0xff] }
 0x3d3   : > { %v8065_v16 = vadd.f32 %v12406_v60, %v8033_v49  ;;  %v8032_v23 = vld [vmem:[#allocation4 + $0xd0] sm:$0xff]  ;;  %7650 = vst.msk [vmem:[#allocation4 + $0xf8] sm:$0xff] %vm716_vm3, %v7618_v63  ;;  %v12536_v60 = vmov 1983009808  }
 0x3d4   : > { %v8064_v28 = vadd.f32 %v8032_v23, %v7977_v7  ;;  %7649 = vst.msk [vmem:[#allocation4 + $0xf0] sm:$0xff] %vm716_vm3, %v7617_v9  ;;  %v12417_v40 = vpop.f32.mrb[16].mxu1  ;;  %v9072_v48 = vunpack.c.l.s4 %v12536_v60 }
 0x3d5   : > { %v12467_v10 = vpop.f32.mrb[16].mxu0  ;;  %8097 = vst.msk [vmem:[#allocation4 + $0xd8] sm:$0xff] %vm716_vm3, %v8065_v16  ;;  %v8490_v33 = vadd.f32 %v12417_v40, %v8458_v44  ;;  %v8298_v42 = vpop.f32.mrb[17].mxu1  ;;  %v8465_v16 = vld [vmem:[#allocation4 + $0x40] sm:$0xff] }
 0x3d6   : > { %v8783_v35 = vpop.f32.mrb[17].mxu0  ;;  %8096 = vst.msk [vmem:[#allocation4 + $0xd0] sm:$0xff] %vm716_vm3, %v8064_v28  ;;  %v8035_v5 = vld [vmem:[#allocation4 + $0xe8] sm:$0xff]  ;;  %v8489_v54 = vadd.f32 %v8457_v53, %v8298_v42 }
 0x3d7   : > { %v8067_v37 = vadd.f32 %v12409_v61, %v8035_v5  ;;  %v8034_v55 = vld [vmem:[#allocation4 + $0xe0] sm:$0xff]  ;;  %8522 = vst.msk [vmem:[#allocation4 + $0x8] sm:$0xff] %vm716_vm3, %v8490_v33  ;;  %v8468_v5 = vld [vmem:[#allocation4 + $0x58] sm:$0xff] }
 0x3d8   : > { %v8066_v13 = vadd.f32 %v8034_v55, %v7987_v32  ;;  %8521 = vst.msk [vmem:[#allocation4] sm:$0xff] %vm716_vm3, %v8489_v54  ;;  %v12420_v47 = vpop.f32.mrb[18].mxu1  ;;  %v9073_v32 = vunpack.c.0.s8 %v9072_v48  ;;  %v8469_v48 = vld [vmem:[#allocation4 + $0x60] sm:$0xff] }
 0x3d9   : > { %v12470_v29 = vpop.f32.mrb[18].mxu0  ;;  %8099 = vst.msk [vmem:[#allocation4 + $0xe8] sm:$0xff] %vm716_vm3, %v8067_v37  ;;  %v8492_v3 = vadd.f32 %v12420_v47, %v8460_v0  ;;  %v8308_v4 = vpop.f32.mrb[19].mxu1 }
 0x3da   : > { %v8793_v38 = vpop.f32.mrb[19].mxu0  ;;  %8098 = vst.msk [vmem:[#allocation4 + $0xe0] sm:$0xff] %vm716_vm3, %v8066_v13  ;;  %v8037_v39 = vld [vmem:[#allocation4 + $0xf8] sm:$0xff]  ;;  %v8491_v25 = vadd.f32 %v8459_v18, %v8308_v4  ;;  %v8467_v13 = vld [vmem:[#allocation4 + $0x50] sm:$0xff] }
 0x3db   : > { %8524 = vst.msk [vmem:[#allocation4 + $0x18] sm:$0xff] %vm716_vm3, %v8492_v3  ;;  %v8069_v51 = vadd.f32 %v12412_v50, %v8037_v39  ;;  %v8036_v20 = vld [vmem:[#allocation4 + $0xf0] sm:$0xff] }
 0x3dc   : > { %8523 = vst.msk [vmem:[#allocation4 + $0x10] sm:$0xff] %vm716_vm3, %v8491_v25  ;;  %v8068_v56 = vadd.f32 %v8036_v20, %v7997_v2  ;;  %v12423_v57 = vpop.f32.mrb[20].mxu1  ;;  %v15183_v2 = vsub.s32 %v9073_v32, %v9075_v27 }
 0x3dd   : > { %v12473_v15 = vpop.f32.mrb[20].mxu0  ;;  %8101 = vst.msk [vmem:[#allocation4 + $0xf8] sm:$0xff] %vm716_vm3, %v8069_v51  ;;  %v8494_v1 = vadd.f32 %v12423_v57, %v8462_v36  ;;  %v8318_v62 = vpop.f32.mrb[21].mxu1 }
 0x3de   : > { %v8803_v59 = vpop.f32.mrb[21].mxu0  ;;  %8100 = vst.msk [vmem:[#allocation4 + $0xf0] sm:$0xff] %vm716_vm3, %v8068_v56  ;;  %v8493_v7 = vadd.f32 %v8461_v30, %v8318_v62  ;;  %v8586_v31 = vld [vmem:[#allocation4 + $0x8] sm:$0xff]  ;;  %v15187_v44 = vrot.slane %v9668_v52, %v15183_v2  ;;  %v15191_v42 = vrot.slane %v10931_v41, %v15183_v2 }
 0x3df   : > { %8526 = vst.msk [vmem:[#allocation4 + $0x28] sm:$0xff] %vm716_vm3, %v8494_v1  ;;  %v8943_v6 = vadd.f32 %v12467_v10, %v8586_v31  ;;  %v8585_v11 = vld [vmem:[#allocation4] sm:$0xff]  ;;  %v8470_v56 = vld [vmem:[#allocation4 + $0x68] sm:$0xff]  ;;  %v15212_v1 = vsub.s32 0, %v9075_v27 }
 0x3e0   : > { %8525 = vst.msk [vmem:[#allocation4 + $0x20] sm:$0xff] %vm716_vm3, %v8493_v7  ;;  %v8942_v24 = vadd.f32 %v8783_v35, %v8585_v11  ;;  %v12426_v21 = vpop.f32.mrb[22].mxu1  ;;  %v15202_v3 = vcombine.high %v15187_v44, %v15187_v44  ;;  %v15207_v25 = vcombine.high %v15191_v42, %v15191_v42  ;;  %v15221_v31 = vrot.slane %v15191_v42, 1 }
 0x3e1   : > { %v12476_v61 = vpop.f32.mrb[22].mxu0  ;;  %8975 = vst.msk [vmem:[#allocation4 + $0x8] sm:$0xff] %vm716_vm3, %v8943_v6  ;;  %v8496_v26 = vadd.f32 %v12426_v21, %v8464_v22  ;;  %v8328_v34 = vpop.f32.mrb[23].mxu1 }
 0x3e2   : > { %v8813_v45 = vpop.f32.mrb[23].mxu0  ;;  %8974 = vst.msk [vmem:[#allocation4] sm:$0xff] %vm716_vm3, %v8942_v24  ;;  %v8495_v46 = vadd.f32 %v8463_v8, %v8328_v34  ;;  %v8588_v43 = vld [vmem:[#allocation4 + $0x18] sm:$0xff]  ;;  %v15226_v22 = vrot.slane %v15202_v3, 1  ;;  %v15231_v8 = vrot.slane %v15207_v25, 1 }
 0x3e3   : > { %8528 = vst.msk [vmem:[#allocation4 + $0x38] sm:$0xff] %vm716_vm3, %v8496_v26  ;;  %v8945_v58 = vadd.f32 %v12470_v29, %v8588_v43  ;;  %v8587_v12 = vld [vmem:[#allocation4 + $0x10] sm:$0xff] }
 0x3e4   : > { %8527 = vst.msk [vmem:[#allocation4 + $0x30] sm:$0xff] %vm716_vm3, %v8495_v46  ;;  %v8944_v50 = vadd.f32 %v8793_v38, %v8587_v12  ;;  %v12429_v63 = vpop.f32.mrb[24].mxu1 }
 0x3e5   : > { %v12479_v14 = vpop.f32.mrb[24].mxu0  ;;  %8977 = vst.msk [vmem:[#allocation4 + $0x18] sm:$0xff] %vm716_vm3, %v8945_v58  ;;  %v8498_v49 = vadd.f32 %v12429_v63, %v8466_v17  ;;  %v8338_v9 = vpop.f32.mrb[25].mxu1  ;;  %v8471_v63 = vld [vmem:[#allocation4 + $0x70] sm:$0xff] }
 0x3e6   : > { %v8823_v23 = vpop.f32.mrb[25].mxu0  ;;  %8976 = vst.msk [vmem:[#allocation4 + $0x10] sm:$0xff] %vm716_vm3, %v8944_v50  ;;  %v8497_v28 = vadd.f32 %v8465_v16, %v8338_v9  ;;  %v8590_v40 = vld [vmem:[#allocation4 + $0x28] sm:$0xff] }
 0x3e7   : > { %8530 = vst.msk [vmem:[#allocation4 + $0x48] sm:$0xff] %vm716_vm3, %v8498_v49  ;;  %v8947_v10 = vadd.f32 %v12473_v15, %v8590_v40  ;;  %v8589_v33 = vld [vmem:[#allocation4 + $0x20] sm:$0xff] }
 0x3e8   : > { %8529 = vst.msk [vmem:[#allocation4 + $0x40] sm:$0xff] %vm716_vm3, %v8497_v28  ;;  %v8946_v53 = vadd.f32 %v8803_v59, %v8589_v33  ;;  %v12432_v35 = vpop.f32.mrb[26].mxu1  ;;  %v9007_v38 = vld [vmem:[#allocation4 + $0x8] sm:$0xff]  ;;  %v15218_v59 = vrot.slane %v15187_v44, 1 }
 0x3e9   : > { %v15194_v54 = vpop.f32.mrb[26].mxu0  ;;  %8979 = vst.msk [vmem:[#allocation4 + $0x28] sm:$0xff] %vm716_vm3, %v8947_v10  ;;  %v8500_v37 = vadd.f32 %v12432_v35, %v8468_v5  ;;  %v8348_v55 = vpop.f32.mrb[27].mxu1  ;;  %v9006_v36 = vld [vmem:[#allocation4] sm:$0xff] }
 0x3ea   : > { %v15197_v47 = vpop.f32.mrb[27].mxu0  ;;  %8978 = vst.msk [vmem:[#allocation4 + $0x20] sm:$0xff] %vm716_vm3, %v8946_v53  ;;  %v8499_v0 = vadd.f32 %v8467_v13, %v8348_v55  ;;  %v8592_v29 = vld [vmem:[#allocation4 + $0x38] sm:$0xff] }
 0x3eb   : > { %8532 = vst.msk [vmem:[#allocation4 + $0x58] sm:$0xff] %vm716_vm3, %v8500_v37  ;;  %v8949_v4 = vadd.f32 %v12476_v61, %v8592_v29  ;;  %v8591_v18 = vld [vmem:[#allocation4 + $0x30] sm:$0xff] }
 0x3ec   : > { %v9009_v39 = vld [vmem:[#allocation4 + $0x18] sm:$0xff]  ;;  %8531 = vst.msk [vmem:[#allocation4 + $0x50] sm:$0xff] %vm716_vm3, %v8499_v0  ;;  %v8948_v51 = vadd.f32 %v8813_v45, %v8591_v18  ;;  %v12435_v20 = vpop.f32.mrb[28].mxu1 }
 0x3ed   : > { %v15210_v57 = vpop.f32.mrb[28].mxu0  ;;  %v9039_v15 = vadd.f32 %v9009_v39, %v9007_v38  ;;  %v9008_v62 = vld [vmem:[#allocation4 + $0x10] sm:$0xff]  ;;  %8981 = vst.msk [vmem:[#allocation4 + $0x38] sm:$0xff] %vm716_vm3, %v8949_v4  ;;  %v8502_v30 = vadd.f32 %v12435_v20, %v8470_v56  ;;  %v8358_v60 = vpop.f32.mrb[29].mxu1  ;;  %v8472_v45 = vld [vmem:[#allocation4 + $0x78] sm:$0xff] }
 0x3ee   : > { %v15215_v19 = vpop.f32.mrb[29].mxu0  ;;  %v9038_v7 = vadd.f32 %v9008_v62, %v9006_v36  ;;  %8980 = vst.msk [vmem:[#allocation4 + $0x30] sm:$0xff] %vm716_vm3, %v8948_v51  ;;  %v8501_v6 = vadd.f32 %v8469_v48, %v8358_v60  ;;  %v8594_v11 = vld [vmem:[#allocation4 + $0x48] sm:$0xff] }
 0x3ef   : > { %v9087_v24 = vcombine.high %v9039_v15, %v9039_v15  ;;  %v9094_v21 = vrot.slane %v9039_v15, %v15183_v2  ;;  %8534 = vst.msk [vmem:[#allocation4 + $0x68] sm:$0xff] %vm716_vm3, %v8502_v30  ;;  %v8951_v41 = vadd.f32 %v12479_v14, %v8594_v11  ;;  %v8593_v61 = vld [vmem:[#allocation4 + $0x40] sm:$0xff] }
 0x3f0   : > { %v9070_v26 = vcombine.high %v9038_v7, %v9038_v7  ;;  %v9077_v34 = vrot.slane %v9038_v7, %v15183_v2  ;;  %8533 = vst.msk [vmem:[#allocation4 + $0x60] sm:$0xff] %vm716_vm3, %v8501_v6  ;;  %v8950_v32 = vadd.f32 %v8823_v23, %v8593_v61  ;;  %v12438_v27 = vpop.f32.mrb[30].mxu1 }
 0x3f1   : > { %v15234_v46 = vpop.f32.mrb[30].mxu0  ;;  %v9101_v43 = vrot.slane %v9087_v24, %v15183_v2  ;;  %v9102_v58 = vcombine.high %v9094_v21, %v9094_v21  ;;  %v10871_v52 = vrot.slane %v9094_v21, 9  ;;  %8983 = vst.msk [vmem:[#allocation4 + $0x48] sm:$0xff] %vm716_vm3, %v8951_v41  ;;  %v8504_v12 = vadd.f32 %v12438_v27, %v8472_v45  ;;  %v8368_v50 = vpop.f32.mrb[31].mxu1  ;;  %v9010_v45 = vld [vmem:[#allocation4 + $0x20] sm:$0xff] }
 0x3f2   : > { %v15238_v17 = vpop.f32.mrb[31].mxu0  ;;  %v9084_v14 = vrot.slane %v9070_v26, %v15183_v2  ;;  %v9085_v49 = vcombine.high %v9077_v34, %v9077_v34  ;;  %v10867_v9 = vrot.slane %v9077_v34, 9  ;;  %8982 = vst.msk [vmem:[#allocation4 + $0x40] sm:$0xff] %vm716_vm3, %v8950_v32  ;;  %v8503_v16 = vadd.f32 %v8471_v63, %v8368_v50  ;;  %v8596_v41 = vld [vmem:[#allocation4 + $0x58] sm:$0xff] }
 0x3f3   : > { %v9103_v23 = vcombine.high %v9101_v43, %v9101_v43  ;;  %v10872_v28 = vrot.slane %v9102_v58, 9  ;;  %v10873_v40 = vrot.slane %v9101_v43, 9  ;;  %v9602_v10 = vadd.f32 %v10871_v52, %v9094_v21  ;;  %8536 = vst.msk [vmem:[#allocation4 + $0x78] sm:$0xff] %vm716_vm3, %v8504_v12  ;;  %v9011_v21 = vld [vmem:[#allocation4 + $0x28] sm:$0xff] }
 0x3f4   : > { %v9086_v33 = vcombine.high %v9084_v14, %v9084_v14  ;;  %v10868_v53 = vrot.slane %v9085_v49, 9  ;;  %v10869_v35 = vrot.slane %v9084_v14, 9  ;;  %v9598_v5 = vadd.f32 %v10867_v9, %v9077_v34  ;;  %8535 = vst.msk [vmem:[#allocation4 + $0x70] sm:$0xff] %vm716_vm3, %v8503_v16  ;;  %v15244_v37 = vpop.f32.mrb[32].mxu1  ;;  %v9013_v36 = vld [vmem:[#allocation4 + $0x38] sm:$0xff] }
 0x3f5   : > { %v15246_v55 = vpop.f32.mrb[32].mxu0  ;;  %v10874_v13 = vrot.slane %v9103_v23, 9  ;;  %v9603_v0 = vadd.f32 %v10872_v28, %v9102_v58  ;;  %v9604_v29 = vadd.f32 %v10873_v40, %v9101_v43  ;;  %v9701_v4 = vadd.f32 %v15187_v44, %v9602_v10  ;;  %v15249_v18 = vpop.f32.mrb[33].mxu1  ;;  %v9012_v48 = vld [vmem:[#allocation4 + $0x30] sm:$0xff] }
 0x3f6   : > { %v15251_v38 = vpop.f32.mrb[33].mxu0  ;;  %v10870_v39 = vrot.slane %v9086_v33, 9  ;;  %v9599_v51 = vadd.f32 %v10868_v53, %v9085_v49  ;;  %v9600_v20 = vadd.f32 %v10869_v35, %v9084_v14  ;;  %v9697_v56 = vadd.f32 %v15191_v42, %v9598_v5 }
 0x3f7   : > { %v9605_v15 = vadd.f32 %v10874_v13, %v9103_v23  ;;  %v9702_v62 = vadd.f32 %v15218_v59, %v9603_v0  ;;  %v9703_v30 = vadd.f32 %v15202_v3, %v9604_v29  ;;  %v9844_v60 = vrot.slane %v9701_v4, %v15212_v1 }
 0x3f8   : > { %v9601_v7 = vadd.f32 %v10870_v39, %v9086_v33  ;;  %v9698_v6 = vadd.f32 %v15221_v31, %v9599_v51  ;;  %v9699_v11 = vadd.f32 %v15207_v25, %v9600_v20  ;;  %v9828_v24 = vrot.slane %v9697_v56, %v15212_v1  ;;  %v15260_v61 = vpop.f32.mrb[34].mxu1 }
 0x3f9   : > { %v15262_v26 = vpop.f32.mrb[34].mxu0  ;;  %v9704_v34 = vadd.f32 %v15226_v22, %v9605_v15  ;;  %v9848_v32 = vrot.slane %v9702_v62, %v15212_v1  ;;  %v9852_v27 = vrot.slane %v9703_v30, %v15212_v1  ;;  %v9041_v43 = vadd.f32 %v9013_v36, %v9011_v21  ;;  %v15267_v58 = vpop.f32.mrb[35].mxu1 }
 0x3fa   : > { %v15269_v52 = vpop.f32.mrb[35].mxu0  ;;  %v9700_v12 = vadd.f32 %v15231_v8, %v9601_v7  ;;  %v9832_v50 = vrot.slane %v9698_v6, %v15212_v1  ;;  %v9836_v63 = vrot.slane %v9699_v11, %v15212_v1  ;;  %v9040_v14 = vadd.f32 %v9012_v48, %v9010_v45 }
 0x3fb   : > { %v9856_v49 = vrot.slane %v9704_v34, %v15212_v1  ;;  %v9121_v9 = vcombine.high %v9041_v43, %v9041_v43  ;;  %v9128_v16 = vrot.slane %v9041_v43, %v15183_v2  ;;  %v8953_v23 = vadd.f32 %v15194_v54, %v8596_v41 }
 0x3fc   : > { %v9840_v28 = vrot.slane %v9700_v12, %v15212_v1  ;;  %v10082_v40 = vsel %vm10081_vm5, %v9832_v50, %v9828_v24  ;;  %v9104_v10 = vcombine.high %v9040_v14, %v9040_v14  ;;  %v9111_v33 = vrot.slane %v9040_v14, %v15183_v2  ;;  %v15280_v53 = vpop.f32.mrb[36].mxu1 }
 0x3fd   : > { %v15282_v35 = vpop.f32.mrb[36].mxu0  ;;  %v10084_v5 = vsel %vm10083_vm6, %v9836_v63, %v10082_v40  ;;  %v9135_v13 = vrot.slane %v9121_v9, %v15183_v2  ;;  %v9136_v0 = vcombine.high %v9128_v16, %v9128_v16  ;;  %v10879_v29 = vrot.slane %v9128_v16, 9  ;;  %8985 = vst.msk [vmem:[#allocation4 + $0x58] sm:$0xff] %vm716_vm3, %v8953_v23  ;;  %v15287_v54 = vpop.f32.mrb[37].mxu1 }
 0x3fe   : > { %v15289_v4 = vpop.f32.mrb[37].mxu0  ;;  %v10086_v39 = vsel %vm10085_vm7, %v9840_v28, %v10084_v5  ;;  %v9118_v51 = vrot.slane %v9104_v10, %v15183_v2  ;;  %v9119_v20 = vcombine.high %v9111_v33, %v9111_v33  ;;  %v10875_v56 = vrot.slane %v9111_v33, 9 }
 0x3ff   : > { %v10088_v36 = vsel %vm10087_vm8, %v9844_v60, %v10086_v39  ;;  %v9137_v15 = vcombine.high %v9135_v13, %v9135_v13  ;;  %v10880_v62 = vrot.slane %v9136_v0, 9  ;;  %v10881_v30 = vrot.slane %v9135_v13, 9 }
 0x400   : > { %v10090_v48 = vsel %vm10089_vm9, %v9848_v32, %v10088_v36  ;;  %v9610_v7 = vadd.f32 %v10879_v29, %v9128_v16  ;;  %v9120_v6 = vcombine.high %v9118_v51, %v9118_v51  ;;  %v10876_v11 = vrot.slane %v9119_v20, 9  ;;  %v15296_v24 = vpop.f32.mrb[38].mxu1 }
 0x401   : > { %v15298_v21 = vpop.f32.mrb[38].mxu0  ;;  %v10092_v60 = vsel %vm10091_vm10, %v9852_v27, %v10090_v48  ;;  %v10882_v41 = vrot.slane %v9137_v15, 9  ;;  %v9611_v34 = vadd.f32 %v10880_v62, %v9136_v0  ;;  %v9612_v45 = vadd.f32 %v10881_v30, %v9135_v13  ;;  %v15306_v43 = vpop.f32.mrb[39].mxu1  ;;  %v9015_v62 = vld [vmem:[#allocation4 + $0x48] sm:$0xff] }
 0x402   : > { %v15308_v32 = vpop.f32.mrb[39].mxu0  ;;  %v10094_v12 = vsel %vm10093_vm11, %v9856_v49, %v10092_v60  ;;  %v15312_v50 = vadd.f32 %v15187_v44, %v9610_v7  ;;  %v10877_v63 = vrot.slane %v9118_v51, 9  ;;  %v10878_v14 = vrot.slane %v9120_v6, 9  ;;  %v8595_v49 = vld [vmem:[#allocation4 + $0x50] sm:$0xff]  ;;  %v8474_v7 = vld [vmem:[#allocation4 + $0x88] sm:$0xff] }
 0x403   : > { %v10152_v9 = vsel %vm716_vm3, %v10094_v12, 0.0  ;;  %v9613_v16 = vadd.f32 %v10882_v41, %v9137_v15  ;;  %v15316_v23 = vadd.f32 %v15218_v59, %v9611_v34  ;;  %v15319_v27 = vadd.f32 %v15202_v3, %v9612_v45  ;;  %v8597_v45 = vld [vmem:[#allocation4 + $0x60] sm:$0xff] }
 0x404   : > { %10160 = vst [vmem:[%s15303_s8] sm:$0xff] %v10152_v9  ;;  %v9606_v28 = vadd.f32 %v10875_v56, %v9111_v33  ;;  %v9607_v40 = vadd.f32 %v10876_v11, %v9119_v20  ;;  %v9608_v10 = vadd.f32 %v10877_v63, %v9118_v51  ;;  %v9017_v5 = vld [vmem:[#allocation4 + $0x58] sm:$0xff]  ;;  %v15322_v13 = vpop.f32.mrb[40].mxu1  ;;  %v9876_v39 = vrot.slane %v15312_v50, %v15212_v1  ;;  %v8598_v11 = vld [vmem:[#allocation4 + $0x68] sm:$0xff]  ;;  %v8473_v9 = vld [vmem:[#allocation4 + $0x80] sm:$0xff] }
 0x405   : > { %v15324_v0 = vpop.f32.mrb[40].mxu0  ;;  %v15327_v29 = vadd.f32 %v15226_v22, %v9613_v16  ;;  %v9880_v36 = vrot.slane %v15316_v23, %v15212_v1  ;;  %v9609_v15 = vadd.f32 %v10878_v14, %v9120_v6  ;;  %v15333_v33 = vpop.f32.mrb[41].mxu1  ;;  %v9043_v48 = vadd.f32 %v9017_v5, %v9015_v62 }
 0x406   : > { %v15335_v51 = vpop.f32.mrb[41].mxu0  ;;  %v9705_v20 = vadd.f32 %v15191_v42, %v9606_v28  ;;  %v9706_v56 = vadd.f32 %v15221_v31, %v9607_v40  ;;  %v9707_v30 = vadd.f32 %v15207_v25, %v9608_v10  ;;  %v9884_v60 = vrot.slane %v15319_v27, %v15212_v1  ;;  %v8476_v40 = vld [vmem:[#allocation4 + $0x98] sm:$0xff] }
 0x407   : > { %v9708_v41 = vadd.f32 %v15231_v8, %v9609_v15  ;;  %v8952_v6 = vadd.f32 %v15197_v47, %v8595_v49  ;;  %v8506_v34 = vadd.f32 %v15244_v37, %v8474_v7  ;;  %v9155_v14 = vcombine.high %v9043_v48, %v9043_v48  ;;  %v8600_v10 = vld [vmem:[#allocation4 + $0x78] sm:$0xff] }
 0x408   : > { %v9860_v12 = vrot.slane %v9705_v20, %v15212_v1  ;;  %v9864_v50 = vrot.slane %v9706_v56, %v15212_v1  ;;  %v9868_v63 = vrot.slane %v9707_v30, %v15212_v1  ;;  %v15348_v16 = vpop.f32.mrb[42].mxu1  ;;  %v9162_v28 = vrot.slane %v9043_v48, %v15183_v2  ;;  %v8475_v30 = vld [vmem:[#allocation4 + $0x90] sm:$0xff] }
 0x409   : > { %v15350_v23 = vpop.f32.mrb[42].mxu0  ;;  %v9872_v27 = vrot.slane %v9708_v41, %v15212_v1  ;;  %8984 = vst.msk [vmem:[#allocation4 + $0x50] sm:$0xff] %vm716_vm3, %v8952_v6  ;;  %8538 = vst.msk [vmem:[#allocation4 + $0x88] sm:$0xff] %vm716_vm3, %v8506_v34  ;;  %v8505_v47 = vadd.f32 %v8473_v9, %v15249_v18  ;;  %v8955_v37 = vadd.f32 %v15210_v57, %v8598_v11  ;;  %v15358_v5 = vpop.f32.mrb[43].mxu1  ;;  %v8599_v48 = vld [vmem:[#allocation4 + $0x70] sm:$0xff] }
 0x40a   : > { %v15360_v49 = vpop.f32.mrb[43].mxu0  ;;  %v10095_v15 = vsel %vm10081_vm5, %v9864_v50, %v9860_v12  ;;  %v9169_v62 = vrot.slane %v9155_v14, %v15183_v2  ;;  %v8954_v20 = vadd.f32 %v15215_v19, %v8597_v45  ;;  %v8508_v56 = vadd.f32 %v15260_v61, %v8476_v40  ;;  %v8478_v14 = vld [vmem:[#allocation4 + $0xa8] sm:$0xff]  ;;  %v8477_v40 = vld [vmem:[#allocation4 + $0xa0] sm:$0xff] }
 0x40b   : > { %v10096_v18 = vsel %vm10083_vm6, %v9868_v63, %v10095_v15  ;;  %v9170_v7 = vcombine.high %v9162_v28, %v9162_v28  ;;  %v10887_v57 = vrot.slane %v9162_v28, 9  ;;  %8537 = vst.msk [vmem:[#allocation4 + $0x80] sm:$0xff] %vm716_vm3, %v8505_v47  ;;  %8987 = vst.msk [vmem:[#allocation4 + $0x68] sm:$0xff] %vm716_vm3, %v8955_v37  ;;  %v8507_v11 = vadd.f32 %v8475_v30, %v15267_v58  ;;  %v8480_v15 = vld [vmem:[#allocation4 + $0xb8] sm:$0xff] }
 0x40c   : > { %v10097_v41 = vsel %vm10085_vm7, %v9872_v27, %v10096_v18  ;;  %v9171_v6 = vcombine.high %v9169_v62, %v9169_v62  ;;  %v10889_v34 = vrot.slane %v9169_v62, 9  ;;  %8986 = vst.msk [vmem:[#allocation4 + $0x60] sm:$0xff] %vm716_vm3, %v8954_v20  ;;  %8540 = vst.msk [vmem:[#allocation4 + $0x98] sm:$0xff] %vm716_vm3, %v8508_v56  ;;  %v8957_v19 = vadd.f32 %v15234_v46, %v8600_v10  ;;  %v15374_v61 = vpop.f32.mrb[44].mxu1  ;;  %v9014_v56 = vld [vmem:[#allocation4 + $0x40] sm:$0xff] }
 0x40d   : > { %v15376_v45 = vpop.f32.mrb[44].mxu0  ;;  %v9888_v12 = vrot.slane %v15327_v29, %v15212_v1  ;;  %v10098_v50 = vsel %vm10087_vm8, %v9876_v39, %v10097_v41  ;;  %v10888_v58 = vrot.slane %v9170_v7, 9  ;;  %8539 = vst.msk [vmem:[#allocation4 + $0x90] sm:$0xff] %vm716_vm3, %v8507_v11  ;;  %v8956_v63 = vadd.f32 %v15238_v17, %v8599_v48  ;;  %v15383_v9 = vpop.f32.mrb[45].mxu1 }
 0x40e   : > { %v15385_v27 = vpop.f32.mrb[45].mxu0  ;;  %v10099_v46 = vsel %vm10089_vm9, %v9880_v36, %v10098_v50  ;;  %v10890_v47 = vrot.slane %v9171_v6, 9  ;;  %v9618_v37 = vadd.f32 %v10887_v57, %v9162_v28  ;;  %8989 = vst.msk [vmem:[#allocation4 + $0x78] sm:$0xff] %vm716_vm3, %v8957_v19  ;;  %v8510_v29 = vadd.f32 %v15280_v53, %v8478_v14 }
 0x40f   : > { %v10100_v39 = vsel %vm10091_vm10, %v9884_v60, %v10099_v46  ;;  %v9620_v10 = vadd.f32 %v10889_v34, %v9169_v62  ;;  %8988 = vst.msk [vmem:[#allocation4 + $0x70] sm:$0xff] %vm716_vm3, %v8956_v63  ;;  %v8509_v17 = vadd.f32 %v8477_v40, %v15287_v54  ;;  %v9619_v36 = vadd.f32 %v10888_v58, %v9170_v7  ;;  %v8479_v54 = vld [vmem:[#allocation4 + $0xb0] sm:$0xff]  ;;  %v8481_v46 = vld [vmem:[#allocation4 + $0xc0] sm:$0xff]  ;;  %v8484_v40 = vld [vmem:[#allocation4 + $0xd8] sm:$0xff] }
 0x410   : > { %v10101_v20 = vsel %vm10093_vm11, %v9888_v12, %v10100_v39  ;;  %v9016_v30 = vld [vmem:[#allocation4 + $0x50] sm:$0xff]  ;;  %8542 = vst.msk [vmem:[#allocation4 + $0xa8] sm:$0xff] %vm716_vm3, %v8510_v29  ;;  %v8602_v28 = vld [vmem:[#allocation4 + $0x88] sm:$0xff]  ;;  %v8512_v53 = vadd.f32 %v15296_v24, %v8480_v15  ;;  %v15396_v48 = vpop.f32.mrb[46].mxu1  ;;  %v9621_v7 = vadd.f32 %v10890_v47, %v9171_v6  ;;  %v15408_v41 = vadd.f32 %v15187_v44, %v9618_v37 }
 0x411   : > { %v15398_v60 = vpop.f32.mrb[46].mxu0  ;;  %v10153_v62 = vsel %vm716_vm3, %v10101_v20, 0.0  ;;  %v9042_v18 = vadd.f32 %v9016_v30, %v9014_v56  ;;  %8541 = vst.msk [vmem:[#allocation4 + $0xa0] sm:$0xff] %vm716_vm3, %v8509_v17  ;;  %v15402_v57 = vpop.f32.mrb[47].mxu1  ;;  %v8959_v24 = vadd.f32 %v15246_v55, %v8602_v28  ;;  %v8511_v19 = vadd.f32 %v8479_v54, %v15306_v43  ;;  %v8482_v6 = vld [vmem:[#allocation4 + $0xc8] sm:$0xff]  ;;  %v8483_v39 = vld [vmem:[#allocation4 + $0xd0] sm:$0xff] }
 0x412   : > { %v15404_v11 = vpop.f32.mrb[47].mxu0  ;;  %10161 = vst [vmem:[%s15303_s8 + $0x8] sm:$0xff] %v10153_v62  ;;  %v8601_v34 = vld [vmem:[#allocation4 + $0x80] sm:$0xff]  ;;  %8544 = vst.msk [vmem:[#allocation4 + $0xb8] sm:$0xff] %vm716_vm3, %v8512_v53  ;;  %v15414_v12 = vadd.f32 %v15202_v3, %v9620_v10  ;;  %v15419_v47 = vadd.f32 %v15218_v59, %v9619_v36  ;;  %v8514_v37 = vadd.f32 %v15322_v13, %v8482_v6  ;;  %v9019_v15 = vld [vmem:[#allocation4 + $0x68] sm:$0xff] }
 0x413   : > { %v9138_v50 = vcombine.high %v9042_v18, %v9042_v18  ;;  %v9145_v58 = vrot.slane %v9042_v18, %v15183_v2  ;;  %v8958_v63 = vadd.f32 %v15251_v38, %v8601_v34  ;;  %v8604_v14 = vld [vmem:[#allocation4 + $0x98] sm:$0xff]  ;;  %8991 = vst.msk [vmem:[#allocation4 + $0x88] sm:$0xff] %vm716_vm3, %v8959_v24  ;;  %8543 = vst.msk [vmem:[#allocation4 + $0xb0] sm:$0xff] %vm716_vm3, %v8511_v19  ;;  %v8486_v36 = vld [vmem:[#allocation4 + $0xe8] sm:$0xff] }
 0x414   : > { %v8961_v55 = vadd.f32 %v15262_v26, %v8604_v14  ;;  %v8603_v43 = vld [vmem:[#allocation4 + $0x90] sm:$0xff]  ;;  %v8513_v29 = vadd.f32 %v8481_v46, %v15333_v33  ;;  %8546 = vst.msk [vmem:[#allocation4 + $0xc8] sm:$0xff] %vm716_vm3, %v8514_v37  ;;  %v8516_v13 = vadd.f32 %v15348_v16, %v8484_v40  ;;  %v8515_v33 = vadd.f32 %v8483_v39, %v15358_v5 }
 0x415   : > { %v9152_v38 = vrot.slane %v9138_v50, %v15183_v2  ;;  %v9153_v10 = vcombine.high %v9145_v58, %v9145_v58  ;;  %v10883_v17 = vrot.slane %v9145_v58, 9  ;;  %v9021_v20 = vld [vmem:[#allocation4 + $0x78] sm:$0xff]  ;;  %8990 = vst.msk [vmem:[#allocation4 + $0x80] sm:$0xff] %vm716_vm3, %v8958_v63  ;;  %v8960_v56 = vadd.f32 %v15269_v52, %v8603_v43  ;;  %v9018_v52 = vld [vmem:[#allocation4 + $0x60] sm:$0xff] }
 0x416   : > { %v9045_v30 = vadd.f32 %v9021_v20, %v9019_v15  ;;  %v9020_v26 = vld [vmem:[#allocation4 + $0x70] sm:$0xff]  ;;  %8993 = vst.msk [vmem:[#allocation4 + $0x98] sm:$0xff] %vm716_vm3, %v8961_v55  ;;  %8545 = vst.msk [vmem:[#allocation4 + $0xc0] sm:$0xff] %vm716_vm3, %v8513_v29  ;;  %v8518_v28 = vadd.f32 %v15374_v61, %v8486_v36  ;;  %v9720_v14 = vadd.f32 %v15226_v22, %v9621_v7 }
 0x417   : > { %v9154_v53 = vcombine.high %v9152_v38, %v9152_v38  ;;  %v10884_v62 = vrot.slane %v9153_v10, 9  ;;  %v10885_v18 = vrot.slane %v9152_v38, 9  ;;  %v9614_v54 = vadd.f32 %v10883_v17, %v9145_v58  ;;  %8992 = vst.msk [vmem:[#allocation4 + $0x90] sm:$0xff] %vm716_vm3, %v8960_v56  ;;  %v8606_v24 = vld [vmem:[#allocation4 + $0xa8] sm:$0xff]  ;;  %8548 = vst.msk [vmem:[#allocation4 + $0xd8] sm:$0xff] %vm716_vm3, %v8516_v13 }
 0x418   : > { %v9189_v34 = vcombine.high %v9045_v30, %v9045_v30  ;;  %v9196_v19 = vrot.slane %v9045_v30, %v15183_v2  ;;  %v9044_v50 = vadd.f32 %v9020_v26, %v9018_v52  ;;  %v8963_v63 = vadd.f32 %v15282_v35, %v8606_v24  ;;  %8547 = vst.msk [vmem:[#allocation4 + $0xd0] sm:$0xff] %vm716_vm3, %v8515_v33 }
 0x419   : > { %8550 = vst.msk [vmem:[#allocation4 + $0xe8] sm:$0xff] %vm716_vm3, %v8518_v28  ;;  %v10886_v16 = vrot.slane %v9154_v53, 9  ;;  %v9615_v5 = vadd.f32 %v10884_v62, %v9153_v10  ;;  %v9616_v61 = vadd.f32 %v10885_v18, %v9152_v38  ;;  %v9713_v58 = vadd.f32 %v15191_v42, %v9614_v54 }
 0x41a   : > { %v9203_v6 = vrot.slane %v9189_v34, %v15183_v2  ;;  %v9204_v46 = vcombine.high %v9196_v19, %v9196_v19  ;;  %v10895_v55 = vrot.slane %v9196_v19, 9  ;;  %8995 = vst.msk [vmem:[#allocation4 + $0xa8] sm:$0xff] %vm716_vm3, %v8963_v63  ;;  %v9172_v29 = vcombine.high %v9044_v50, %v9044_v50 }
 0x41b   : > { %v9617_v35 = vadd.f32 %v10886_v16, %v9154_v53  ;;  %v9714_v43 = vadd.f32 %v15221_v31, %v9615_v5  ;;  %v9715_v37 = vadd.f32 %v15207_v25, %v9616_v61  ;;  %v9892_v40 = vrot.slane %v9713_v58, %v15212_v1 }
 0x41c   : > { %v9205_v39 = vcombine.high %v9203_v6, %v9203_v6  ;;  %v10896_v38 = vrot.slane %v9204_v46, 9  ;;  %v10897_v10 = vrot.slane %v9203_v6, 9  ;;  %v9179_v20 = vrot.slane %v9044_v50, %v15183_v2 }
 0x41d   : > { %v9716_v17 = vadd.f32 %v15231_v8, %v9617_v35  ;;  %v9896_v7 = vrot.slane %v9714_v43, %v15212_v1  ;;  %v9900_v15 = vrot.slane %v9715_v37, %v15212_v1  ;;  %v9908_v56 = vrot.slane %v15408_v41, %v15212_v1  ;;  %v9025_v50 = vld [vmem:[#allocation4 + $0x98] sm:$0xff] }
 0x41e   : > { %v10898_v36 = vrot.slane %v9205_v39, 9  ;;  %v9626_v30 = vadd.f32 %v10895_v55, %v9196_v19  ;;  %v9627_v26 = vadd.f32 %v10896_v38, %v9204_v46  ;;  %v9186_v28 = vrot.slane %v9172_v29, %v15183_v2  ;;  %v9024_v37 = vld [vmem:[#allocation4 + $0x90] sm:$0xff] }
 0x41f   : > { %v9904_v13 = vrot.slane %v9716_v17, %v15212_v1  ;;  %v10102_v33 = vsel %vm10081_vm5, %v9896_v7, %v9892_v40  ;;  %v9187_v53 = vcombine.high %v9179_v20, %v9179_v20  ;;  %v9912_v62 = vrot.slane %v15419_v47, %v15212_v1  ;;  %v9022_v7 = vld [vmem:[#allocation4 + $0x80] sm:$0xff] }
 0x420   : > { %v9916_v18 = vrot.slane %v15414_v12, %v15212_v1  ;;  %v10103_v54 = vsel %vm10083_vm6, %v9900_v15, %v10102_v33  ;;  %v9628_v52 = vadd.f32 %v10897_v10, %v9203_v6  ;;  %v9920_v41 = vrot.slane %v9720_v14, %v15212_v1  ;;  %v9023_v6 = vld [vmem:[#allocation4 + $0x88] sm:$0xff] }
 0x421   : > { %v10104_v24 = vsel %vm10085_vm7, %v9904_v13, %v10103_v54  ;;  %v9188_v34 = vcombine.high %v9186_v28, %v9186_v28  ;;  %v10891_v19 = vrot.slane %v9179_v20, 9  ;;  %v9629_v16 = vadd.f32 %v10898_v36, %v9205_v39 }
 0x422   : > { %v10105_v63 = vsel %vm10087_vm8, %v9908_v56, %v10104_v24  ;;  %v9725_v5 = vadd.f32 %v15187_v44, %v9626_v30  ;;  %v9726_v47 = vadd.f32 %v15218_v59, %v9627_v26  ;;  %v10892_v12 = vrot.slane %v9187_v53, 9 }
 0x423   : > { %v10106_v61 = vsel %vm10089_vm9, %v9912_v62, %v10105_v63  ;;  %v10893_v58 = vrot.slane %v9186_v28, 9  ;;  %v10894_v46 = vrot.slane %v9188_v34, 9  ;;  %v9727_v55 = vadd.f32 %v15202_v3, %v9628_v52  ;;  %v8605_v62 = vld [vmem:[#allocation4 + $0xa0] sm:$0xff] }
 0x424   : > { %v10107_v14 = vsel %vm10091_vm10, %v9916_v18, %v10106_v61  ;;  %v9622_v35 = vadd.f32 %v10891_v19, %v9179_v20  ;;  %v9047_v43 = vadd.f32 %v9025_v50, %v9023_v6  ;;  %v9623_v40 = vadd.f32 %v10892_v12, %v9187_v53 }
 0x425   : > { %v10108_v29 = vsel %vm10093_vm11, %v9920_v41, %v10107_v14  ;;  %v9624_v39 = vadd.f32 %v10893_v58, %v9186_v28  ;;  %v9625_v38 = vadd.f32 %v10894_v46, %v9188_v34  ;;  %v9046_v26 = vadd.f32 %v9024_v37, %v9022_v7  ;;  %v8608_v7 = vld [vmem:[#allocation4 + $0xb8] sm:$0xff] }
 0x426   : > { %v10154_v10 = vsel %vm716_vm3, %v10108_v29, 0.0  ;;  %v9721_v17 = vadd.f32 %v15191_v42, %v9622_v35  ;;  %v9223_v15 = vcombine.high %v9047_v43, %v9047_v43  ;;  %v9230_v56 = vrot.slane %v9047_v43, %v15183_v2 }
 0x427   : > { %10162 = vst [vmem:[%s15303_s8 + $0x10] sm:$0xff] %v10154_v10  ;;  %v9722_v36 = vadd.f32 %v15221_v31, %v9623_v40  ;;  %v9723_v20 = vadd.f32 %v15207_v25, %v9624_v39  ;;  %v9724_v30 = vadd.f32 %v15231_v8, %v9625_v38  ;;  %v9206_v41 = vcombine.high %v9046_v26, %v9046_v26 }
 0x428   : > { %v9924_v13 = vrot.slane %v9721_v17, %v15212_v1  ;;  %v9237_v33 = vrot.slane %v9223_v15, %v15183_v2  ;;  %v9238_v28 = vcombine.high %v9230_v56, %v9230_v56  ;;  %v10903_v53 = vrot.slane %v9230_v56, 9 }
 0x429   : > { %v9928_v18 = vrot.slane %v9722_v36, %v15212_v1  ;;  %v9932_v54 = vrot.slane %v9723_v20, %v15212_v1  ;;  %v9936_v52 = vrot.slane %v9724_v30, %v15212_v1  ;;  %v9728_v24 = vadd.f32 %v15226_v22, %v9629_v16  ;;  %v8607_v20 = vld [vmem:[#allocation4 + $0xb0] sm:$0xff] }
 0x42a   : > { %v9940_v34 = vrot.slane %v9725_v5, %v15212_v1  ;;  %v9239_v19 = vcombine.high %v9237_v33, %v9237_v33  ;;  %v10904_v50 = vrot.slane %v9238_v28, 9  ;;  %v9213_v61 = vrot.slane %v9046_v26, %v15183_v2 }
 0x42b   : > { %v10109_v63 = vsel %vm10081_vm5, %v9928_v18, %v9924_v13  ;;  %v9220_v12 = vrot.slane %v9206_v41, %v15183_v2  ;;  %v8962_v58 = vadd.f32 %v15289_v4, %v8605_v62  ;;  %v10905_v6 = vrot.slane %v9237_v33, 9 }
 0x42c   : > { %v10110_v46 = vsel %vm10083_vm6, %v9932_v54, %v10109_v63  ;;  %v10906_v14 = vrot.slane %v9239_v19, 9  ;;  %v9634_v35 = vadd.f32 %v10903_v53, %v9230_v56  ;;  %v9944_v43 = vrot.slane %v9726_v47, %v15212_v1  ;;  %v8609_v53 = vld [vmem:[#allocation4 + $0xc0] sm:$0xff]  ;;  %v8611_v63 = vld [vmem:[#allocation4 + $0xd0] sm:$0xff] }
 0x42d   : > { %v10111_v16 = vsel %vm10085_vm7, %v9936_v52, %v10110_v46  ;;  %v9221_v5 = vcombine.high %v9213_v61, %v9213_v61  ;;  %v9222_v37 = vcombine.high %v9220_v12, %v9220_v12  ;;  %8994 = vst.msk [vmem:[#allocation4 + $0xa0] sm:$0xff] %vm716_vm3, %v8962_v58  ;;  %v9948_v29 = vrot.slane %v9727_v55, %v15212_v1 }
 0x42e   : > { %v10112_v40 = vsel %vm10087_vm8, %v9940_v34, %v10111_v16  ;;  %v9635_v39 = vadd.f32 %v10904_v50, %v9238_v28  ;;  %v9952_v4 = vrot.slane %v9728_v24, %v15212_v1  ;;  %v10899_v10 = vrot.slane %v9213_v61, 9  ;;  %v8610_v28 = vld [vmem:[#allocation4 + $0xc8] sm:$0xff]  ;;  %v8612_v50 = vld [vmem:[#allocation4 + $0xd8] sm:$0xff]  ;;  %v8487_v16 = vld [vmem:[#allocation4 + $0xf0] sm:$0xff] }
 0x42f   : > { %v10113_v38 = vsel %vm10089_vm9, %v9944_v43, %v10112_v40  ;;  %v10900_v17 = vrot.slane %v9221_v5, 9  ;;  %v9636_v15 = vadd.f32 %v10905_v6, %v9237_v33  ;;  %v9637_v56 = vadd.f32 %v10906_v14, %v9239_v19  ;;  %v8485_v19 = vld [vmem:[#allocation4 + $0xe0] sm:$0xff]  ;;  %v8488_v6 = vld [vmem:[#allocation4 + $0xf8] sm:$0xff] }
 0x430   : > { %v10114_v47 = vsel %vm10091_vm10, %v9948_v29, %v10113_v38  ;;  %v9733_v36 = vadd.f32 %v15187_v44, %v9634_v35  ;;  %v10901_v30 = vrot.slane %v9220_v12, 9  ;;  %v10902_v26 = vrot.slane %v9222_v37, 9 }
 0x431   : > { %v10115_v55 = vsel %vm10093_vm11, %v9952_v4, %v10114_v47  ;;  %v9630_v13 = vadd.f32 %v10899_v10, %v9213_v61  ;;  %v9734_v18 = vadd.f32 %v15218_v59, %v9635_v39  ;;  %v9631_v54 = vadd.f32 %v10900_v17, %v9221_v5  ;;  %v9027_v17 = vld [vmem:[#allocation4 + $0xa8] sm:$0xff] }
 0x432   : > { %v10155_v62 = vsel %vm716_vm3, %v10115_v55, 0.0  ;;  %v8965_v52 = vadd.f32 %v15298_v21, %v8608_v7  ;;  %v9632_v33 = vadd.f32 %v10901_v30, %v9220_v12  ;;  %v9633_v41 = vadd.f32 %v10902_v26, %v9222_v37  ;;  %v8614_v12 = vld [vmem:[#allocation4 + $0xe8] sm:$0xff] }
 0x433   : > { %10163 = vst [vmem:[%s15303_s8 + $0x18] sm:$0xff] %v10155_v62  ;;  %v9729_v24 = vadd.f32 %v15191_v42, %v9630_v13  ;;  %v8964_v34 = vadd.f32 %v15308_v32, %v8607_v20  ;;  %v9730_v61 = vadd.f32 %v15221_v31, %v9631_v54  ;;  %v8517_v58 = vadd.f32 %v8485_v19, %v15383_v9 }
 0x434   : > { %8997 = vst.msk [vmem:[#allocation4 + $0xb8] sm:$0xff] %vm716_vm3, %v8965_v52  ;;  %v8967_v46 = vadd.f32 %v15324_v0, %v8610_v28  ;;  %v8966_v21 = vadd.f32 %v15335_v51, %v8609_v53  ;;  %v9731_v14 = vadd.f32 %v15207_v25, %v9632_v33  ;;  %v9732_v35 = vadd.f32 %v15231_v8, %v9633_v41 }
 0x435   : > { %v9956_v32 = vrot.slane %v9729_v24, %v15212_v1  ;;  %8996 = vst.msk [vmem:[#allocation4 + $0xb0] sm:$0xff] %vm716_vm3, %v8964_v34  ;;  %v8520_v43 = vadd.f32 %v15396_v48, %v8488_v6  ;;  %v9960_v5 = vrot.slane %v9730_v61, %v15212_v1  ;;  %8549 = vst.msk [vmem:[#allocation4 + $0xe0] sm:$0xff] %vm716_vm3, %v8517_v58 }
 0x436   : > { %8999 = vst.msk [vmem:[#allocation4 + $0xc8] sm:$0xff] %vm716_vm3, %v8967_v46  ;;  %8998 = vst.msk [vmem:[#allocation4 + $0xc0] sm:$0xff] %vm716_vm3, %v8966_v21  ;;  %v8519_v0 = vadd.f32 %v8487_v16, %v15402_v57  ;;  %v8969_v51 = vadd.f32 %v15350_v23, %v8612_v50  ;;  %v8968_v9 = vadd.f32 %v15360_v49, %v8611_v63 }
 0x437   : > { %v9735_v37 = vadd.f32 %v15202_v3, %v9636_v15  ;;  %v9964_v29 = vrot.slane %v9731_v14, %v15212_v1  ;;  %v9968_v48 = vrot.slane %v9732_v35, %v15212_v1  ;;  %8552 = vst.msk [vmem:[#allocation4 + $0xf8] sm:$0xff] %vm716_vm3, %v8520_v43  ;;  %v8971_v40 = vadd.f32 %v15376_v45, %v8614_v12 }
 0x438   : > { %v9736_v39 = vadd.f32 %v15226_v22, %v9637_v56  ;;  %v10116_v4 = vsel %vm10081_vm5, %v9960_v5, %v9956_v32  ;;  %8551 = vst.msk [vmem:[#allocation4 + $0xf0] sm:$0xff] %vm716_vm3, %v8519_v0  ;;  %9001 = vst.msk [vmem:[#allocation4 + $0xd8] sm:$0xff] %vm716_vm3, %v8969_v51  ;;  %v9972_v23 = vrot.slane %v9733_v36, %v15212_v1  ;;  %v9026_v56 = vld [vmem:[#allocation4 + $0xa0] sm:$0xff] }
 0x439   : > { %9000 = vst.msk [vmem:[#allocation4 + $0xd0] sm:$0xff] %vm716_vm3, %v8968_v9  ;;  %v10117_v49 = vsel %vm10083_vm6, %v9964_v29, %v10116_v4  ;;  %9003 = vst.msk [vmem:[#allocation4 + $0xe8] sm:$0xff] %vm716_vm3, %v8971_v40  ;;  %v9976_v57 = vrot.slane %v9734_v18, %v15212_v1  ;;  %v9980_v38 = vrot.slane %v9735_v37, %v15212_v1 }
 0x43a   : > { %v10118_v45 = vsel %vm10085_vm7, %v9968_v48, %v10117_v49  ;;  %v9984_v47 = vrot.slane %v9736_v39, %v15212_v1 }
 0x43b   : > { %v10119_v10 = vsel %vm10087_vm8, %v9972_v23, %v10118_v45  ;;  %v9029_v7 = vld [vmem:[#allocation4 + $0xb8] sm:$0xff] }
 0x43c   : > { %v10120_v15 = vsel %vm10089_vm9, %v9976_v57, %v10119_v10  ;;  %v9049_v36 = vadd.f32 %v9029_v7, %v9027_v17  ;;  %v9028_v20 = vld [vmem:[#allocation4 + $0xb0] sm:$0xff]  ;;  %v8613_v26 = vld [vmem:[#allocation4 + $0xe0] sm:$0xff] }
 0x43d   : > { %v10121_v55 = vsel %vm10091_vm10, %v9980_v38, %v10120_v15  ;;  %v9048_v30 = vadd.f32 %v9028_v20, %v9026_v56  ;;  %v8970_v62 = vadd.f32 %v15385_v27, %v8613_v26  ;;  %v9031_v35 = vld [vmem:[#allocation4 + $0xc8] sm:$0xff]  ;;  %v9030_v48 = vld [vmem:[#allocation4 + $0xc0] sm:$0xff] }
 0x43e   : > { %v10122_v13 = vsel %vm10093_vm11, %v9984_v47, %v10121_v55  ;;  %v9257_v28 = vcombine.high %v9049_v36, %v9049_v36  ;;  %v9264_v53 = vrot.slane %v9049_v36, %v15183_v2  ;;  %v8616_v18 = vld [vmem:[#allocation4 + $0xf8] sm:$0xff] }
 0x43f   : > { %v10156_v54 = vsel %vm716_vm3, %v10122_v13, 0.0  ;;  %v9240_v52 = vcombine.high %v9048_v30, %v9048_v30  ;;  %v9247_v33 = vrot.slane %v9048_v30, %v15183_v2  ;;  %v8973_v41 = vadd.f32 %v15398_v60, %v8616_v18  ;;  %9002 = vst.msk [vmem:[#allocation4 + $0xe0] sm:$0xff] %vm716_vm3, %v8970_v62  ;;  %v9033_v27 = vld [vmem:[#allocation4 + $0xd8] sm:$0xff] }
 0x440   : > { %10164 = vst [vmem:[%s15303_s8 + $0x20] sm:$0xff] %v10156_v54  ;;  %v9271_v24 = vrot.slane %v9257_v28, %v15183_v2  ;;  %v9272_v34 = vcombine.high %v9264_v53, %v9264_v53  ;;  %v10911_v19 = vrot.slane %v9264_v53, 9  ;;  %v9032_v32 = vld [vmem:[#allocation4 + $0xd0] sm:$0xff]  ;;  %v9051_v0 = vadd.f32 %v9033_v27, %v9031_v35 }
 0x441   : > { %v9254_v50 = vrot.slane %v9240_v52, %v15183_v2  ;;  %v9255_v63 = vcombine.high %v9247_v33, %v9247_v33  ;;  %v10907_v61 = vrot.slane %v9247_v33, 9  ;;  %9005 = vst.msk [vmem:[#allocation4 + $0xf8] sm:$0xff] %vm716_vm3, %v8973_v41  ;;  %v9050_v39 = vadd.f32 %v9032_v32, %v9030_v48  ;;  %v9035_v48 = vld [vmem:[#allocation4 + $0xe8] sm:$0xff] }
 0x442   : > { %v9273_v58 = vcombine.high %v9271_v24, %v9271_v24  ;;  %v10912_v46 = vrot.slane %v9272_v34, 9  ;;  %v10913_v21 = vrot.slane %v9271_v24, 9  ;;  %v9642_v16 = vadd.f32 %v10911_v19, %v9264_v53 }
 0x443   : > { %v9256_v6 = vcombine.high %v9254_v50, %v9254_v50  ;;  %v10908_v12 = vrot.slane %v9255_v63, 9  ;;  %v10909_v60 = vrot.slane %v9254_v50, 9  ;;  %v9638_v14 = vadd.f32 %v10907_v61, %v9247_v33 }
 0x444   : > { %v10914_v43 = vrot.slane %v9273_v58, 9  ;;  %v9643_v5 = vadd.f32 %v10912_v46, %v9272_v34  ;;  %v9644_v40 = vadd.f32 %v10913_v21, %v9271_v24  ;;  %v9741_v45 = vadd.f32 %v15187_v44, %v9642_v16 }
 0x445   : > { %v10910_v51 = vrot.slane %v9256_v6, 9  ;;  %v9639_v9 = vadd.f32 %v10908_v12, %v9255_v63  ;;  %v9640_v37 = vadd.f32 %v10909_v60, %v9254_v50  ;;  %v9737_v29 = vadd.f32 %v15191_v42, %v9638_v14 }
 0x446   : > { %v9645_v4 = vadd.f32 %v10914_v43, %v9273_v58  ;;  %v9742_v38 = vadd.f32 %v15218_v59, %v9643_v5  ;;  %v9291_v17 = vcombine.high %v9051_v0, %v9051_v0  ;;  %v9298_v56 = vrot.slane %v9051_v0, %v15183_v2  ;;  %v8615_v43 = vld [vmem:[#allocation4 + $0xf0] sm:$0xff] }
 0x447   : > { %v9641_v23 = vadd.f32 %v10910_v51, %v9256_v6  ;;  %v9738_v49 = vadd.f32 %v15221_v31, %v9639_v9  ;;  %v9739_v57 = vadd.f32 %v15207_v25, %v9640_v37  ;;  %v9988_v10 = vrot.slane %v9737_v29, %v15212_v1 }
 0x448   : > { %v9743_v36 = vadd.f32 %v15202_v3, %v9644_v40  ;;  %v9305_v20 = vrot.slane %v9291_v17, %v15183_v2  ;;  %v9274_v55 = vcombine.high %v9050_v39, %v9050_v39  ;;  %v9281_v30 = vrot.slane %v9050_v39, %v15183_v2  ;;  %v9037_v32 = vld [vmem:[#allocation4 + $0xf8] sm:$0xff] }
 0x449   : > { %v9740_v7 = vadd.f32 %v15231_v8, %v9641_v23  ;;  %v9992_v47 = vrot.slane %v9738_v49, %v15212_v1  ;;  %v9996_v15 = vrot.slane %v9739_v57, %v15212_v1  ;;  %v9744_v26 = vadd.f32 %v15226_v22, %v9645_v4 }
 0x44a   : > { %v9306_v53 = vcombine.high %v9298_v56, %v9298_v56  ;;  %v10004_v62 = vrot.slane %v9741_v45, %v15212_v1  ;;  %v9288_v54 = vrot.slane %v9274_v55, %v15183_v2  ;;  %v10008_v52 = vrot.slane %v9742_v38, %v15212_v1 }
 0x44b   : > { %v10000_v13 = vrot.slane %v9740_v7, %v15212_v1  ;;  %v10123_v28 = vsel %vm10081_vm5, %v9992_v47, %v9988_v10  ;;  %v9307_v41 = vcombine.high %v9305_v20, %v9305_v20  ;;  %v9289_v24 = vcombine.high %v9281_v30, %v9281_v30 }
 0x44c   : > { %v10124_v18 = vsel %vm10083_vm6, %v9996_v15, %v10123_v28  ;;  %v10012_v34 = vrot.slane %v9743_v36, %v15212_v1  ;;  %v10919_v50 = vrot.slane %v9298_v56, 9  ;;  %v9290_v63 = vcombine.high %v9288_v54, %v9288_v54 }
 0x44d   : > { %v10125_v33 = vsel %vm10085_vm7, %v10000_v13, %v10124_v18  ;;  %v10016_v61 = vrot.slane %v9744_v26, %v15212_v1  ;;  %v10920_v58 = vrot.slane %v9306_v53, 9  ;;  %v10915_v46 = vrot.slane %v9281_v30, 9 }
 0x44e   : > { %v10126_v19 = vsel %vm10087_vm8, %v10004_v62, %v10125_v33  ;;  %v10921_v6 = vrot.slane %v9305_v20, 9  ;;  %v10916_v12 = vrot.slane %v9289_v24, 9  ;;  %v10922_v14 = vrot.slane %v9307_v41, 9 }
 0x44f   : > { %v10127_v27 = vsel %vm10089_vm9, %v10008_v52, %v10126_v19  ;;  %v10917_v35 = vrot.slane %v9288_v54, 9  ;;  %v9650_v5 = vadd.f32 %v10919_v50, %v9298_v56  ;;  %v10918_v0 = vrot.slane %v9290_v63, 9  ;;  %v9034_v19 = vld [vmem:[#allocation4 + $0xe0] sm:$0xff] }
 0x450   : > { %v10128_v21 = vsel %vm10091_vm10, %v10012_v34, %v10127_v27  ;;  %v9651_v51 = vadd.f32 %v10920_v58, %v9306_v53  ;;  %v9646_v9 = vadd.f32 %v10915_v46, %v9281_v30  ;;  %v9647_v37 = vadd.f32 %v10916_v12, %v9289_v24 }
 0x451   : > { %v10129_v60 = vsel %vm10093_vm11, %v10016_v61, %v10128_v21  ;;  %v9648_v29 = vadd.f32 %v10917_v35, %v9288_v54  ;;  %v9652_v40 = vadd.f32 %v10921_v6, %v9305_v20  ;;  %v9649_v39 = vadd.f32 %v10918_v0, %v9290_v63 }
 0x452   : > { %v10157_v16 = vsel %vm716_vm3, %v10129_v60, 0.0  ;;  %v9053_v4 = vadd.f32 %v9037_v32, %v9035_v48  ;;  %v8972_v23 = vadd.f32 %v15404_v11, %v8615_v43  ;;  %v9653_v49 = vadd.f32 %v10922_v14, %v9307_v41 }
 0x453   : > { %10165 = vst [vmem:[%s15303_s8 + $0x28] sm:$0xff] %v10157_v16  ;;  %v9745_v57 = vadd.f32 %v15191_v42, %v9646_v9  ;;  %v9746_v45 = vadd.f32 %v15221_v31, %v9647_v37  ;;  %v9747_v38 = vadd.f32 %v15207_v25, %v9648_v29  ;;  %v9749_v10 = vadd.f32 %v15187_v44, %v9650_v5 }
 0x454   : > { %v9748_v17 = vadd.f32 %v15231_v8, %v9649_v39  ;;  %9004 = vst.msk [vmem:[#allocation4 + $0xf0] sm:$0xff] %vm716_vm3, %v8972_v23  ;;  %v9750_v7 = vadd.f32 %v15218_v59, %v9651_v51  ;;  %v9751_v56 = vadd.f32 %v15202_v3, %v9652_v40  ;;  %v9325_v20 = vcombine.high %v9053_v4, %v9053_v4 }
 0x455   : > { %v10020_v47 = vrot.slane %v9745_v57, %v15212_v1  ;;  %v10024_v15 = vrot.slane %v9746_v45, %v15212_v1  ;;  %v10028_v11 = vrot.slane %v9747_v38, %v15212_v1  ;;  %v9752_v55 = vadd.f32 %v15226_v22, %v9653_v49 }
 0x456   : > { %v10032_v36 = vrot.slane %v9748_v17, %v15212_v1  ;;  %v10036_v26 = vrot.slane %v9749_v10, %v15212_v1  ;;  %v9332_v28 = vrot.slane %v9053_v4, %v15183_v2  ;;  %v10040_v53 = vrot.slane %v9750_v7, %v15212_v1 }
 0x457   : > { %v10130_v30 = vsel %vm10081_vm5, %v10024_v15, %v10020_v47  ;;  %v10044_v18 = vrot.slane %v9751_v56, %v15212_v1  ;;  %v9339_v52 = vrot.slane %v9325_v20, %v15183_v2  ;;  %v10048_v33 = vrot.slane %v9752_v55, %v15212_v1 }
 0x458   : > { %v10131_v13 = vsel %vm10083_vm6, %v10028_v11, %v10130_v30  ;;  %v9340_v50 = vcombine.high %v9332_v28, %v9332_v28  ;;  %v10927_v6 = vrot.slane %v9332_v28, 9 }
 0x459   : > { %v10132_v62 = vsel %vm10085_vm7, %v10032_v36, %v10131_v13  ;;  %v9341_v58 = vcombine.high %v9339_v52, %v9339_v52  ;;  %v10929_v32 = vrot.slane %v9339_v52, 9 }
 0x45a   : > { %v10133_v54 = vsel %vm10087_vm8, %v10036_v26, %v10132_v62  ;;  %v10928_v12 = vrot.slane %v9340_v50, 9  ;;  %v9658_v9 = vadd.f32 %v10927_v6, %v9332_v28 }
 0x45b   : > { %v10134_v41 = vsel %vm10089_vm9, %v10040_v53, %v10133_v54  ;;  %v9036_v24 = vld [vmem:[#allocation4 + $0xf0] sm:$0xff]  ;;  %v10930_v43 = vrot.slane %v9341_v58, 9  ;;  %v9660_v4 = vadd.f32 %v10929_v32, %v9339_v52 }
 0x45c   : > { %v10135_v34 = vsel %vm10091_vm10, %v10044_v18, %v10134_v41  ;;  %v9052_v61 = vadd.f32 %v9036_v24, %v9034_v19  ;;  %v9659_v37 = vadd.f32 %v10928_v12, %v9340_v50  ;;  %v9757_v45 = vadd.f32 %v15187_v44, %v9658_v9 }
 0x45d   : > { %v10136_v63 = vsel %vm10093_vm11, %v10048_v33, %v10135_v34  ;;  %v9661_v23 = vadd.f32 %v10930_v43, %v9341_v58 }
 0x45e   : > { %v10158_v27 = vsel %vm716_vm3, %v10136_v63, 0.0  ;;  %v9308_v46 = vcombine.high %v9052_v61, %v9052_v61  ;;  %v9315_v21 = vrot.slane %v9052_v61, %v15183_v2  ;;  %v9758_v38 = vadd.f32 %v15218_v59, %v9659_v37 }
 0x45f   : > { %10166 = vst [vmem:[%s15303_s8 + $0x30] sm:$0xff] %v10158_v27  ;;  %v9760_v15 = vadd.f32 %v15226_v22, %v9661_v23  ;;  %v10068_v44 = vrot.slane %v9757_v45, %v15212_v1 }
 0x460   : > { %v9322_v60 = vrot.slane %v9308_v46, %v15183_v2  ;;  %v9323_v14 = vcombine.high %v9315_v21, %v9315_v21  ;;  %v10923_v35 = vrot.slane %v9315_v21, 9 }
 0x462   : > { %v9324_v16 = vcombine.high %v9322_v60, %v9322_v60  ;;  %v10924_v5 = vrot.slane %v9323_v14, 9  ;;  %v10925_v0 = vrot.slane %v9322_v60, 9  ;;  %v9654_v51 = vadd.f32 %v10923_v35, %v9315_v21 }
 0x464   : > { %v10926_v29 = vrot.slane %v9324_v16, 9  ;;  %v9655_v48 = vadd.f32 %v10924_v5, %v9323_v14  ;;  %v9656_v40 = vadd.f32 %v10925_v0, %v9322_v60  ;;  %v9753_v39 = vadd.f32 %v15191_v42, %v9654_v51 }
 0x465   : > { %v9759_v42 = vadd.f32 %v15202_v3, %v9660_v4  ;;  %v10080_v3 = vrot.slane %v9760_v15, %v15212_v1 }
 0x466   : > { %v9657_v49 = vadd.f32 %v10926_v29, %v9324_v16  ;;  %v9754_v2 = vadd.f32 %v15221_v31, %v9655_v48  ;;  %v9755_v57 = vadd.f32 %v15207_v25, %v9656_v40  ;;  %v10052_v17 = vrot.slane %v9753_v39, %v15212_v1 }
 0x467   : > { %v10076_v56 = vrot.slane %v9759_v42, %v15212_v1 }
 0x468   : > { %v9756_v10 = vadd.f32 %v15231_v8, %v9657_v49  ;;  %v10056_v7 = vrot.slane %v9754_v2, %v15212_v1  ;;  %v10060_v47 = vrot.slane %v9755_v57, %v15212_v1  ;;  %v10072_v8 = vrot.slane %v9758_v38, %v15212_v1 }
 0x46a   : > { %v10064_v31 = vrot.slane %v9756_v10, %v15212_v1  ;;  %v10137_v25 = vsel %vm10081_vm5, %v10056_v7, %v10052_v17 }
 0x46b   : > { %v10138_v59 = vsel %vm10083_vm6, %v10060_v47, %v10137_v25 }
 0x46c   : > { %v10139_v11 = vsel %vm10085_vm7, %v10064_v31, %v10138_v59 }
 0x46d   : > { %v10140_v36 = vsel %vm10087_vm8, %v10068_v44, %v10139_v11 }
 0x46e   : > { %v10141_v22 = vsel %vm10089_vm9, %v10072_v8, %v10140_v36 }
 0x46f   : > { %v10142_v20 = vsel %vm10091_vm10, %v10076_v56, %v10141_v22 }
 0x470   : > { %v10143_v55 = vsel %vm10093_vm11, %v10080_v3, %v10142_v20 }
 0x471   : > { %v10159_v30 = vsel %vm716_vm3, %v10143_v55, 0.0 }
 0x472   : > { %10167 = vst [vmem:[%s15303_s8 + $0x38] sm:$0xff] %v10159_v30 }
 0x473 PF: > { %s16_s21 = sadd.s32 1, %s12533_s21  }
 0x474   : > { %p13_p4 = scmp.ge.s32.totalorder %s16_s21, 4  }
 0x476   :  { %15 = sbr.rel (!%p13_p4) target bundleno = 1 (0x1), region = 96 }

</bundles_post_ra>
